<compile_context>
chip_gen: v6e
topology: v6e:2x2x1
jax: 0.10.0
libtpu: 0.0.40
codegen_flags: <defaults>
</compile_context>

<pallas_src>
import jax
import jax.numpy as jnp
from jax import lax
from jax.experimental import pallas as pl
from jax.experimental.pallas import tpu as pltpu

EPS = 1e-5
DIMS = [3, 64, 128, 256, 256, 128, 64, 2]       # fc1..fc7 feature sizes
BN_DIMS = DIMS[1:7]                              # 64,128,256,256,128,64
SLAB_ROWS = 24                                   # 3 (w1) + 6 (gamma) + 6 (beta) + 1 (b7) + 2 (w7ᵀ), padded to 8k
SLAB_LANES = 256
G_ROW, B_ROW, B7_ROW, W7_ROW = 3, 9, 15, 16      # row offsets inside the vector slab
OUT_LANES = 128                                  # lane-dense output slab width


def net_kernel(x_ref, vec_ref, w2, w3, w4, w5, w6, o_ref):
    x = x_ref[...]                 # (B, 3)    f32
    vec = vec_ref[...]             # (24, 256) f32 packed small parameters

    def bn_relu_bf16(y, i):
        n = BN_DIMS[i]
        g = vec[G_ROW + i:G_ROW + i + 1, :n]
        beta = vec[B_ROW + i:B_ROW + i + 1, :n]
        mu = jnp.mean(y, axis=0, keepdims=True)
        d = y - mu                                   # centered (two-pass variance)
        var = jnp.mean(d * d, axis=0, keepdims=True)
        s = g * lax.rsqrt(var + EPS)                 # BN folded to one scale
        # fused scale + shift + ReLU + bf16 cast (next layer's MXU operand dtype)
        return jnp.maximum(d * s + beta, 0.0).astype(jnp.bfloat16)

    # fc1 (K=3): pure-VPU broadcast MACs — avoid a fully padded MXU pass.
    n1 = DIMS[1]
    y = (x[:, 0:1] * vec[0:1, :n1]
         + x[:, 1:2] * vec[1:2, :n1]
         + x[:, 2:3] * vec[2:3, :n1])
    h = bn_relu_bf16(y, 0)

    # fc2..fc6: bf16 MXU matmuls with f32 accumulation, then folded BN + ReLU.
    for i, w in enumerate((w2, w3, w4, w5, w6)):
        y = jnp.dot(h, w[...], preferred_element_type=jnp.float32)
        h = bn_relu_bf16(y, i + 1)

    # fc7 (K=64, N=2) off the MXU: VPU multiplies + XLU lane reductions + bias.
    w7r0 = vec[W7_ROW:W7_ROW + 1, :DIMS[6]]          # (1, 64) = w7[:, 0]
    w7r1 = vec[W7_ROW + 1:W7_ROW + 2, :DIMS[6]]      # (1, 64) = w7[:, 1]
    b7 = vec[B7_ROW:B7_ROW + 1, :DIMS[-1]]           # (1, 2)
    c0 = jnp.sum(h * w7r0, axis=-1, keepdims=True) + b7[:, 0:1]   # (B, 1) f32
    c1 = jnp.sum(h * w7r1, axis=-1, keepdims=True) + b7[:, 1:2]   # (B, 1) f32

    # Lane-dense (B, 128) store; the wrapper slices the first 2 lanes.
    lane = lax.broadcasted_iota(jnp.int32, o_ref.shape, 1)
    o_ref[...] = jnp.where(lane == 0, c0, jnp.where(lane == 1, c1, 0.0))


def init_params(key):
    """PyTorch-like init: Linear weights U(-1/sqrt(fan_in), +); BN gamma=1, beta=0.

    Biases of fc1..fc6 are omitted on purpose: with training-mode BatchNorm the
    per-batch mean subtraction cancels them (up to fp rounding in the last bits).
    Returns (vec_slab f32 (24,256), [w2..w6] pre-transposed (in,out) bf16).
    """
    layer_keys = jax.random.split(key, 7)
    ws_bf16 = []
    slab = jnp.zeros((SLAB_ROWS, SLAB_LANES), jnp.float32)
    for i in range(7):
        fan_in, fan_out = DIMS[i], DIMS[i + 1]
        bound = 1.0 / (fan_in ** 0.5)
        kw, kb = jax.random.split(layer_keys[i])
        w = jax.random.uniform(kw, (fan_in, fan_out), jnp.float32, -bound, bound)
        if i == 0:
            slab = slab.at[0:3, :fan_out].set(w)            # fc1 rows live in the slab
        elif i == 6:
            slab = slab.at[W7_ROW:W7_ROW + 2, :fan_in].set(w.T)   # fc7 weight as 2 slab rows
            b7 = jax.random.uniform(kb, (fan_out,), jnp.float32, -bound, bound)
            slab = slab.at[B7_ROW, :fan_out].set(b7)        # fc7 bias row
        else:
            ws_bf16.append(w.astype(jnp.bfloat16))          # fc2..fc6 fed to MXU as bf16
        if i < 6:
            slab = slab.at[G_ROW + i, :fan_out].set(1.0)    # gamma rows; beta rows stay 0
    return slab, ws_bf16


def net_forward(x, vec_slab, weights):
    B = x.shape[0]
    assert B % 8 == 0, "batch must be a multiple of 8 (sublane tiling)"

    # Real footprint-based VMEM sizing (capped at v7x's 64 MiB generation).
    weight_bytes = sum(int(w.size) * 2 for w in weights)
    io_bytes = int(x.size) * 4 + int(vec_slab.size) * 4 + weight_bytes + B * OUT_LANES * 4
    act_bytes = B * 256 * 6 * 4          # generous bound on live f32/bf16 activation tiles
    assert io_bytes + act_bytes < 60 * 1024 * 1024, \
        "batch too large for the grid-less VMEM-resident path; use a batch-tiled grid"
    vmem_limit = min(64 * 1024 * 1024,
                     max(8 * 1024 * 1024, 2 * (io_bytes + act_bytes)))

    flops = 2 * B * sum(DIMS[i] * DIMS[i + 1] for i in range(7))
    cost = pl.CostEstimate(flops=flops,
                           transcendentals=sum(BN_DIMS),    # one rsqrt lane per BN feature
                           bytes_accessed=io_bytes)

    vmem = pl.BlockSpec(memory_space=pltpu.MemorySpace.VMEM)
    out_pad = pl.pallas_call(
        net_kernel,
        out_shape=jax.ShapeDtypeStruct((B, OUT_LANES), jnp.float32),
        in_specs=[vmem] * (2 + len(weights)),
        out_specs=vmem,
        cost_estimate=cost,
        compiler_params=pltpu.CompilerParams(vmem_limit_bytes=vmem_limit),
    )(x, vec_slab, *weights)
    return out_pad[:, :DIMS[-1]]


if __name__ == "__main__":
    key = jax.random.PRNGKey(0)
    k_param, k_x = jax.random.split(key)
    vec_slab, weights = init_params(k_param)

    B = 256                                     # fills MXU rows on v6e/v7x; 2 passes on v5e
    x = jax.random.normal(k_x, (B, DIMS[0]), jnp.float32)

    fwd = jax.jit(lambda xx: net_forward(xx, vec_slab, weights))
    out = fwd(x)
    jax.block_until_ready(out)
    assert out.shape == (B, DIMS[-1]) and out.dtype == jnp.float32
    assert bool(jnp.all(jnp.isfinite(out)))
    print("KERNEL_OK")
</pallas_src>

<mosaic_0001>
module attributes {stable_mosaic.version = 11 : i64} {
  func.func @net_kernel(%arg0: memref<256x3xf32, #tpu.memory_space<vmem>>, %arg1: memref<24x256xf32, #tpu.memory_space<vmem>>, %arg2: memref<64x128xbf16, #tpu.memory_space<vmem>>, %arg3: memref<128x256xbf16, #tpu.memory_space<vmem>>, %arg4: memref<256x256xbf16, #tpu.memory_space<vmem>>, %arg5: memref<256x128xbf16, #tpu.memory_space<vmem>>, %arg6: memref<128x64xbf16, #tpu.memory_space<vmem>>, %arg7: memref<256x128xf32, #tpu.memory_space<vmem>>) attributes {dimension_semantics = [], scalar_prefetch = 0 : i64, scratch_operands = 0 : i64, tpu.core_type = #tpu.core_type<tc>} {
    %c0 = arith.constant 0 : index
    %c0_0 = arith.constant 0 : index
    %0 = vector.load %arg0[%c0, %c0_0] : memref<256x3xf32, #tpu.memory_space<vmem>>, vector<256x3xf32>
    %c0_1 = arith.constant 0 : index
    %c0_2 = arith.constant 0 : index
    %1 = vector.load %arg1[%c0_1, %c0_2] : memref<24x256xf32, #tpu.memory_space<vmem>>, vector<24x256xf32>
    %2 = vector.extract_strided_slice %0 {offsets = [0, 0], sizes = [256, 1], strides = [1, 1]} : vector<256x3xf32> to vector<256x1xf32>
    %3 = vector.extract_strided_slice %1 {offsets = [0, 0], sizes = [1, 64], strides = [1, 1]} : vector<24x256xf32> to vector<1x64xf32>
    %4 = vector.broadcast %2 : vector<256x1xf32> to vector<256x64xf32>
    %5 = vector.broadcast %3 : vector<1x64xf32> to vector<256x64xf32>
    %6 = arith.mulf %4, %5 : vector<256x64xf32>
    %7 = vector.extract_strided_slice %0 {offsets = [0, 1], sizes = [256, 1], strides = [1, 1]} : vector<256x3xf32> to vector<256x1xf32>
    %8 = vector.extract_strided_slice %1 {offsets = [1, 0], sizes = [1, 64], strides = [1, 1]} : vector<24x256xf32> to vector<1x64xf32>
    %9 = vector.broadcast %7 : vector<256x1xf32> to vector<256x64xf32>
    %10 = vector.broadcast %8 : vector<1x64xf32> to vector<256x64xf32>
    %11 = arith.mulf %9, %10 : vector<256x64xf32>
    %12 = arith.addf %6, %11 : vector<256x64xf32>
    %13 = vector.extract_strided_slice %0 {offsets = [0, 2], sizes = [256, 1], strides = [1, 1]} : vector<256x3xf32> to vector<256x1xf32>
    %14 = vector.extract_strided_slice %1 {offsets = [2, 0], sizes = [1, 64], strides = [1, 1]} : vector<24x256xf32> to vector<1x64xf32>
    %15 = vector.broadcast %13 : vector<256x1xf32> to vector<256x64xf32>
    %16 = vector.broadcast %14 : vector<1x64xf32> to vector<256x64xf32>
    %17 = arith.mulf %15, %16 : vector<256x64xf32>
    %18 = arith.addf %12, %17 : vector<256x64xf32>
    %19 = vector.extract_strided_slice %1 {offsets = [3, 0], sizes = [1, 64], strides = [1, 1]} : vector<24x256xf32> to vector<1x64xf32>
    %20 = vector.extract_strided_slice %1 {offsets = [9, 0], sizes = [1, 64], strides = [1, 1]} : vector<24x256xf32> to vector<1x64xf32>
    %cst = arith.constant dense<0.000000e+00> : vector<64xf32>
    %21 = vector.multi_reduction <add>, %18, %cst [0] : vector<256x64xf32> to vector<64xf32>
    %22 = vector.shape_cast %21 : vector<64xf32> to vector<1x64xf32>
    %cst_3 = arith.constant 2.560000e+02 : f32
    %23 = vector.broadcast %cst_3 : f32 to vector<1x64xf32>
    %24 = arith.divf %22, %23 : vector<1x64xf32>
    %25 = vector.broadcast %24 : vector<1x64xf32> to vector<256x64xf32>
    %26 = arith.subf %18, %25 : vector<256x64xf32>
    %27 = arith.mulf %26, %26 : vector<256x64xf32>
    %cst_4 = arith.constant dense<0.000000e+00> : vector<64xf32>
    %28 = vector.multi_reduction <add>, %27, %cst_4 [0] : vector<256x64xf32> to vector<64xf32>
    %29 = vector.shape_cast %28 : vector<64xf32> to vector<1x64xf32>
    %cst_5 = arith.constant 2.560000e+02 : f32
    %30 = vector.broadcast %cst_5 : f32 to vector<1x64xf32>
    %31 = arith.divf %29, %30 : vector<1x64xf32>
    %cst_6 = arith.constant 9.99999974E-6 : f32
    %32 = vector.broadcast %cst_6 : f32 to vector<1x64xf32>
    %33 = arith.addf %31, %32 : vector<1x64xf32>
    %34 = math.rsqrt %33 : vector<1x64xf32>
    %35 = arith.mulf %19, %34 : vector<1x64xf32>
    %36 = vector.broadcast %35 : vector<1x64xf32> to vector<256x64xf32>
    %37 = arith.mulf %26, %36 : vector<256x64xf32>
    %38 = vector.broadcast %20 : vector<1x64xf32> to vector<256x64xf32>
    %39 = arith.addf %37, %38 : vector<256x64xf32>
    %cst_7 = arith.constant 0.000000e+00 : f32
    %40 = vector.broadcast %cst_7 : f32 to vector<256x64xf32>
    %41 = arith.maximumf %39, %40 : vector<256x64xf32>
    %42 = arith.truncf %41 : vector<256x64xf32> to vector<256x64xbf16>
    %c0_8 = arith.constant 0 : index
    %c0_9 = arith.constant 0 : index
    %43 = vector.load %arg2[%c0_8, %c0_9] : memref<64x128xbf16, #tpu.memory_space<vmem>>, vector<64x128xbf16>
    %cst_10 = arith.constant dense<0.000000e+00> : vector<256x128xf32>
    %44 = tpu.matmul %42, %43, %cst_10 {dimension_numbers = #tpu.dot_dimension_numbers<[1], [0], [0], [1], [0, 0, 1, 1], [], []>} : vector<256x64xbf16>, vector<64x128xbf16>, vector<256x128xf32> -> vector<256x128xf32>
    %45 = vector.extract_strided_slice %1 {offsets = [4, 0], sizes = [1, 128], strides = [1, 1]} : vector<24x256xf32> to vector<1x128xf32>
    %46 = vector.extract_strided_slice %1 {offsets = [10, 0], sizes = [1, 128], strides = [1, 1]} : vector<24x256xf32> to vector<1x128xf32>
    %cst_11 = arith.constant dense<0.000000e+00> : vector<128xf32>
    %47 = vector.multi_reduction <add>, %44, %cst_11 [0] : vector<256x128xf32> to vector<128xf32>
    %48 = vector.shape_cast %47 : vector<128xf32> to vector<1x128xf32>
    %cst_12 = arith.constant 2.560000e+02 : f32
    %49 = vector.broadcast %cst_12 : f32 to vector<1x128xf32>
    %50 = arith.divf %48, %49 : vector<1x128xf32>
    %51 = vector.broadcast %50 : vector<1x128xf32> to vector<256x128xf32>
    %52 = arith.subf %44, %51 : vector<256x128xf32>
    %53 = arith.mulf %52, %52 : vector<256x128xf32>
    %cst_13 = arith.constant dense<0.000000e+00> : vector<128xf32>
    %54 = vector.multi_reduction <add>, %53, %cst_13 [0] : vector<256x128xf32> to vector<128xf32>
    %55 = vector.shape_cast %54 : vector<128xf32> to vector<1x128xf32>
    %cst_14 = arith.constant 2.560000e+02 : f32
    %56 = vector.broadcast %cst_14 : f32 to vector<1x128xf32>
    %57 = arith.divf %55, %56 : vector<1x128xf32>
    %cst_15 = arith.constant 9.99999974E-6 : f32
    %58 = vector.broadcast %cst_15 : f32 to vector<1x128xf32>
    %59 = arith.addf %57, %58 : vector<1x128xf32>
    %60 = math.rsqrt %59 : vector<1x128xf32>
    %61 = arith.mulf %45, %60 : vector<1x128xf32>
    %62 = vector.broadcast %61 : vector<1x128xf32> to vector<256x128xf32>
    %63 = arith.mulf %52, %62 : vector<256x128xf32>
    %64 = vector.broadcast %46 : vector<1x128xf32> to vector<256x128xf32>
    %65 = arith.addf %63, %64 : vector<256x128xf32>
    %cst_16 = arith.constant 0.000000e+00 : f32
    %66 = vector.broadcast %cst_16 : f32 to vector<256x128xf32>
    %67 = arith.maximumf %65, %66 : vector<256x128xf32>
    %68 = arith.truncf %67 : vector<256x128xf32> to vector<256x128xbf16>
    %c0_17 = arith.constant 0 : index
    %c0_18 = arith.constant 0 : index
    %69 = vector.load %arg3[%c0_17, %c0_18] : memref<128x256xbf16, #tpu.memory_space<vmem>>, vector<128x256xbf16>
    %cst_19 = arith.constant dense<0.000000e+00> : vector<256x256xf32>
    %70 = tpu.matmul %68, %69, %cst_19 {dimension_numbers = #tpu.dot_dimension_numbers<[1], [0], [0], [1], [0, 0, 1, 1], [], []>} : vector<256x128xbf16>, vector<128x256xbf16>, vector<256x256xf32> -> vector<256x256xf32>
    %71 = vector.extract_strided_slice %1 {offsets = [5, 0], sizes = [1, 256], strides = [1, 1]} : vector<24x256xf32> to vector<1x256xf32>
    %72 = vector.extract_strided_slice %1 {offsets = [11, 0], sizes = [1, 256], strides = [1, 1]} : vector<24x256xf32> to vector<1x256xf32>
    %cst_20 = arith.constant dense<0.000000e+00> : vector<256xf32>
    %73 = vector.multi_reduction <add>, %70, %cst_20 [0] : vector<256x256xf32> to vector<256xf32>
    %74 = vector.shape_cast %73 : vector<256xf32> to vector<1x256xf32>
    %cst_21 = arith.constant 2.560000e+02 : f32
    %75 = vector.broadcast %cst_21 : f32 to vector<1x256xf32>
    %76 = arith.divf %74, %75 : vector<1x256xf32>
    %77 = vector.broadcast %76 : vector<1x256xf32> to vector<256x256xf32>
    %78 = arith.subf %70, %77 : vector<256x256xf32>
    %79 = arith.mulf %78, %78 : vector<256x256xf32>
    %cst_22 = arith.constant dense<0.000000e+00> : vector<256xf32>
    %80 = vector.multi_reduction <add>, %79, %cst_22 [0] : vector<256x256xf32> to vector<256xf32>
    %81 = vector.shape_cast %80 : vector<256xf32> to vector<1x256xf32>
    %cst_23 = arith.constant 2.560000e+02 : f32
    %82 = vector.broadcast %cst_23 : f32 to vector<1x256xf32>
    %83 = arith.divf %81, %82 : vector<1x256xf32>
    %cst_24 = arith.constant 9.99999974E-6 : f32
    %84 = vector.broadcast %cst_24 : f32 to vector<1x256xf32>
    %85 = arith.addf %83, %84 : vector<1x256xf32>
    %86 = math.rsqrt %85 : vector<1x256xf32>
    %87 = arith.mulf %71, %86 : vector<1x256xf32>
    %88 = vector.broadcast %87 : vector<1x256xf32> to vector<256x256xf32>
    %89 = arith.mulf %78, %88 : vector<256x256xf32>
    %90 = vector.broadcast %72 : vector<1x256xf32> to vector<256x256xf32>
    %91 = arith.addf %89, %90 : vector<256x256xf32>
    %cst_25 = arith.constant 0.000000e+00 : f32
    %92 = vector.broadcast %cst_25 : f32 to vector<256x256xf32>
    %93 = arith.maximumf %91, %92 : vector<256x256xf32>
    %94 = arith.truncf %93 : vector<256x256xf32> to vector<256x256xbf16>
    %c0_26 = arith.constant 0 : index
    %c0_27 = arith.constant 0 : index
    %95 = vector.load %arg4[%c0_26, %c0_27] : memref<256x256xbf16, #tpu.memory_space<vmem>>, vector<256x256xbf16>
    %cst_28 = arith.constant dense<0.000000e+00> : vector<256x256xf32>
    %96 = tpu.matmul %94, %95, %cst_28 {dimension_numbers = #tpu.dot_dimension_numbers<[1], [0], [0], [1], [0, 0, 1, 1], [], []>} : vector<256x256xbf16>, vector<256x256xbf16>, vector<256x256xf32> -> vector<256x256xf32>
    %97 = vector.extract_strided_slice %1 {offsets = [6, 0], sizes = [1, 256], strides = [1, 1]} : vector<24x256xf32> to vector<1x256xf32>
    %98 = vector.extract_strided_slice %1 {offsets = [12, 0], sizes = [1, 256], strides = [1, 1]} : vector<24x256xf32> to vector<1x256xf32>
    %cst_29 = arith.constant dense<0.000000e+00> : vector<256xf32>
    %99 = vector.multi_reduction <add>, %96, %cst_29 [0] : vector<256x256xf32> to vector<256xf32>
    %100 = vector.shape_cast %99 : vector<256xf32> to vector<1x256xf32>
    %cst_30 = arith.constant 2.560000e+02 : f32
    %101 = vector.broadcast %cst_30 : f32 to vector<1x256xf32>
    %102 = arith.divf %100, %101 : vector<1x256xf32>
    %103 = vector.broadcast %102 : vector<1x256xf32> to vector<256x256xf32>
    %104 = arith.subf %96, %103 : vector<256x256xf32>
    %105 = arith.mulf %104, %104 : vector<256x256xf32>
    %cst_31 = arith.constant dense<0.000000e+00> : vector<256xf32>
    %106 = vector.multi_reduction <add>, %105, %cst_31 [0] : vector<256x256xf32> to vector<256xf32>
    %107 = vector.shape_cast %106 : vector<256xf32> to vector<1x256xf32>
    %cst_32 = arith.constant 2.560000e+02 : f32
    %108 = vector.broadcast %cst_32 : f32 to vector<1x256xf32>
    %109 = arith.divf %107, %108 : vector<1x256xf32>
    %cst_33 = arith.constant 9.99999974E-6 : f32
    %110 = vector.broadcast %cst_33 : f32 to vector<1x256xf32>
    %111 = arith.addf %109, %110 : vector<1x256xf32>
    %112 = math.rsqrt %111 : vector<1x256xf32>
    %113 = arith.mulf %97, %112 : vector<1x256xf32>
    %114 = vector.broadcast %113 : vector<1x256xf32> to vector<256x256xf32>
    %115 = arith.mulf %104, %114 : vector<256x256xf32>
    %116 = vector.broadcast %98 : vector<1x256xf32> to vector<256x256xf32>
    %117 = arith.addf %115, %116 : vector<256x256xf32>
    %cst_34 = arith.constant 0.000000e+00 : f32
    %118 = vector.broadcast %cst_34 : f32 to vector<256x256xf32>
    %119 = arith.maximumf %117, %118 : vector<256x256xf32>
    %120 = arith.truncf %119 : vector<256x256xf32> to vector<256x256xbf16>
    %c0_35 = arith.constant 0 : index
    %c0_36 = arith.constant 0 : index
    %121 = vector.load %arg5[%c0_35, %c0_36] : memref<256x128xbf16, #tpu.memory_space<vmem>>, vector<256x128xbf16>
    %cst_37 = arith.constant dense<0.000000e+00> : vector<256x128xf32>
    %122 = tpu.matmul %120, %121, %cst_37 {dimension_numbers = #tpu.dot_dimension_numbers<[1], [0], [0], [1], [0, 0, 1, 1], [], []>} : vector<256x256xbf16>, vector<256x128xbf16>, vector<256x128xf32> -> vector<256x128xf32>
    %123 = vector.extract_strided_slice %1 {offsets = [7, 0], sizes = [1, 128], strides = [1, 1]} : vector<24x256xf32> to vector<1x128xf32>
    %124 = vector.extract_strided_slice %1 {offsets = [13, 0], sizes = [1, 128], strides = [1, 1]} : vector<24x256xf32> to vector<1x128xf32>
    %cst_38 = arith.constant dense<0.000000e+00> : vector<128xf32>
    %125 = vector.multi_reduction <add>, %122, %cst_38 [0] : vector<256x128xf32> to vector<128xf32>
    %126 = vector.shape_cast %125 : vector<128xf32> to vector<1x128xf32>
    %cst_39 = arith.constant 2.560000e+02 : f32
    %127 = vector.broadcast %cst_39 : f32 to vector<1x128xf32>
    %128 = arith.divf %126, %127 : vector<1x128xf32>
    %129 = vector.broadcast %128 : vector<1x128xf32> to vector<256x128xf32>
    %130 = arith.subf %122, %129 : vector<256x128xf32>
    %131 = arith.mulf %130, %130 : vector<256x128xf32>
    %cst_40 = arith.constant dense<0.000000e+00> : vector<128xf32>
    %132 = vector.multi_reduction <add>, %131, %cst_40 [0] : vector<256x128xf32> to vector<128xf32>
    %133 = vector.shape_cast %132 : vector<128xf32> to vector<1x128xf32>
    %cst_41 = arith.constant 2.560000e+02 : f32
    %134 = vector.broadcast %cst_41 : f32 to vector<1x128xf32>
    %135 = arith.divf %133, %134 : vector<1x128xf32>
    %cst_42 = arith.constant 9.99999974E-6 : f32
    %136 = vector.broadcast %cst_42 : f32 to vector<1x128xf32>
    %137 = arith.addf %135, %136 : vector<1x128xf32>
    %138 = math.rsqrt %137 : vector<1x128xf32>
    %139 = arith.mulf %123, %138 : vector<1x128xf32>
    %140 = vector.broadcast %139 : vector<1x128xf32> to vector<256x128xf32>
    %141 = arith.mulf %130, %140 : vector<256x128xf32>
    %142 = vector.broadcast %124 : vector<1x128xf32> to vector<256x128xf32>
    %143 = arith.addf %141, %142 : vector<256x128xf32>
    %cst_43 = arith.constant 0.000000e+00 : f32
    %144 = vector.broadcast %cst_43 : f32 to vector<256x128xf32>
    %145 = arith.maximumf %143, %144 : vector<256x128xf32>
    %146 = arith.truncf %145 : vector<256x128xf32> to vector<256x128xbf16>
    %c0_44 = arith.constant 0 : index
    %c0_45 = arith.constant 0 : index
    %147 = vector.load %arg6[%c0_44, %c0_45] : memref<128x64xbf16, #tpu.memory_space<vmem>>, vector<128x64xbf16>
    %cst_46 = arith.constant dense<0.000000e+00> : vector<256x64xf32>
    %148 = tpu.matmul %146, %147, %cst_46 {dimension_numbers = #tpu.dot_dimension_numbers<[1], [0], [0], [1], [0, 0, 1, 1], [], []>} : vector<256x128xbf16>, vector<128x64xbf16>, vector<256x64xf32> -> vector<256x64xf32>
    %149 = vector.extract_strided_slice %1 {offsets = [8, 0], sizes = [1, 64], strides = [1, 1]} : vector<24x256xf32> to vector<1x64xf32>
    %150 = vector.extract_strided_slice %1 {offsets = [14, 0], sizes = [1, 64], strides = [1, 1]} : vector<24x256xf32> to vector<1x64xf32>
    %cst_47 = arith.constant dense<0.000000e+00> : vector<64xf32>
    %151 = vector.multi_reduction <add>, %148, %cst_47 [0] : vector<256x64xf32> to vector<64xf32>
    %152 = vector.shape_cast %151 : vector<64xf32> to vector<1x64xf32>
    %cst_48 = arith.constant 2.560000e+02 : f32
    %153 = vector.broadcast %cst_48 : f32 to vector<1x64xf32>
    %154 = arith.divf %152, %153 : vector<1x64xf32>
    %155 = vector.broadcast %154 : vector<1x64xf32> to vector<256x64xf32>
    %156 = arith.subf %148, %155 : vector<256x64xf32>
    %157 = arith.mulf %156, %156 : vector<256x64xf32>
    %cst_49 = arith.constant dense<0.000000e+00> : vector<64xf32>
    %158 = vector.multi_reduction <add>, %157, %cst_49 [0] : vector<256x64xf32> to vector<64xf32>
    %159 = vector.shape_cast %158 : vector<64xf32> to vector<1x64xf32>
    %cst_50 = arith.constant 2.560000e+02 : f32
    %160 = vector.broadcast %cst_50 : f32 to vector<1x64xf32>
    %161 = arith.divf %159, %160 : vector<1x64xf32>
    %cst_51 = arith.constant 9.99999974E-6 : f32
    %162 = vector.broadcast %cst_51 : f32 to vector<1x64xf32>
    %163 = arith.addf %161, %162 : vector<1x64xf32>
    %164 = math.rsqrt %163 : vector<1x64xf32>
    %165 = arith.mulf %149, %164 : vector<1x64xf32>
    %166 = vector.broadcast %165 : vector<1x64xf32> to vector<256x64xf32>
    %167 = arith.mulf %156, %166 : vector<256x64xf32>
    %168 = vector.broadcast %150 : vector<1x64xf32> to vector<256x64xf32>
    %169 = arith.addf %167, %168 : vector<256x64xf32>
    %cst_52 = arith.constant 0.000000e+00 : f32
    %170 = vector.broadcast %cst_52 : f32 to vector<256x64xf32>
    %171 = arith.maximumf %169, %170 : vector<256x64xf32>
    %172 = arith.truncf %171 : vector<256x64xf32> to vector<256x64xbf16>
    %173 = vector.extract_strided_slice %1 {offsets = [16, 0], sizes = [1, 64], strides = [1, 1]} : vector<24x256xf32> to vector<1x64xf32>
    %174 = vector.extract_strided_slice %1 {offsets = [17, 0], sizes = [1, 64], strides = [1, 1]} : vector<24x256xf32> to vector<1x64xf32>
    %175 = vector.extract_strided_slice %1 {offsets = [15, 0], sizes = [1, 2], strides = [1, 1]} : vector<24x256xf32> to vector<1x2xf32>
    %176 = arith.extf %172 : vector<256x64xbf16> to vector<256x64xf32>
    %177 = vector.broadcast %173 : vector<1x64xf32> to vector<256x64xf32>
    %178 = arith.mulf %176, %177 : vector<256x64xf32>
    %cst_53 = arith.constant dense<0.000000e+00> : vector<256xf32>
    %179 = vector.multi_reduction <add>, %178, %cst_53 [1] : vector<256x64xf32> to vector<256xf32>
    %180 = vector.shape_cast %179 : vector<256xf32> to vector<256x1xf32>
    %181 = vector.extract_strided_slice %175 {offsets = [0, 0], sizes = [1, 1], strides = [1, 1]} : vector<1x2xf32> to vector<1x1xf32>
    %182 = vector.broadcast %181 : vector<1x1xf32> to vector<256x1xf32>
    %183 = arith.addf %180, %182 : vector<256x1xf32>
    %184 = arith.extf %172 : vector<256x64xbf16> to vector<256x64xf32>
    %185 = vector.broadcast %174 : vector<1x64xf32> to vector<256x64xf32>
    %186 = arith.mulf %184, %185 : vector<256x64xf32>
    %cst_54 = arith.constant dense<0.000000e+00> : vector<256xf32>
    %187 = vector.multi_reduction <add>, %186, %cst_54 [1] : vector<256x64xf32> to vector<256xf32>
    %188 = vector.shape_cast %187 : vector<256xf32> to vector<256x1xf32>
    %189 = vector.extract_strided_slice %175 {offsets = [0, 1], sizes = [1, 1], strides = [1, 1]} : vector<1x2xf32> to vector<1x1xf32>
    %190 = vector.broadcast %189 : vector<1x1xf32> to vector<256x1xf32>
    %191 = arith.addf %188, %190 : vector<256x1xf32>
    %192 = tpu.iota {dimensions = array<i32: 1>} : vector<256x128xi32>
    %c0_i32 = arith.constant 0 : i32
    %193 = vector.broadcast %c0_i32 : i32 to vector<256x128xi32>
    %194 = arith.cmpi eq, %192, %193 : vector<256x128xi32>
    %c1_i32 = arith.constant 1 : i32
    %195 = vector.broadcast %c1_i32 : i32 to vector<256x128xi32>
    %196 = arith.cmpi eq, %192, %195 : vector<256x128xi32>
    %cst_55 = arith.constant 0.000000e+00 : f32
    %197 = vector.shape_cast %191 : vector<256x1xf32> to vector<256x1xf32>
    %198 = vector.broadcast %197 : vector<256x1xf32> to vector<256x128xf32>
    %199 = vector.broadcast %cst_55 : f32 to vector<256x128xf32>
    %200 = arith.select %196, %198, %199 : vector<256x128xi1>, vector<256x128xf32>
    %201 = vector.shape_cast %183 : vector<256x1xf32> to vector<256x1xf32>
    %202 = vector.broadcast %201 : vector<256x1xf32> to vector<256x128xf32>
    %203 = arith.select %194, %202, %200 : vector<256x128xi1>, vector<256x128xf32>
    %c0_56 = arith.constant 0 : index
    %c0_57 = arith.constant 0 : index
    %204 = vector.load %arg7[%c0_56, %c0_57] : memref<256x128xf32, #tpu.memory_space<vmem>>, vector<256x128xf32>
    tpu.vector_store %arg7[%c0_56, %c0_57], %203 {strides = array<i32>} : memref<256x128xf32, #tpu.memory_space<vmem>>, vector<256x128xf32>,
    return
  }
}

</mosaic_0001>

<bundles_post_ra>
// kernel: _lambda_.1
= control target key start
LH: loop header
LB: loop body
LE: loop exit
PB: predicated region body
PF: predicated region fallthrough
CT: control target
= control target key end

     0   :  { %12 = vsyncpa [#allocation3], 0  ;;  %s10844_s0 = inlined_call_operand.vmem [shape: f32[256,3], index: 0, kind: input, shape index: {}]   ;;  %s10845_s1 = inlined_call_operand.hbm [shape: f32[24,256], index: 1, kind: input, shape index: {}]   ;;  %s10846_s2 = inlined_call_operand.hbm [shape: bf16[64,128], index: 2, kind: input, shape index: {}]   ;;  %s10847_s3 = inlined_call_operand.hbm [shape: bf16[128,256], index: 3, kind: input, shape index: {}]   ;;  %s10848_s4 = inlined_call_operand.vmem [shape: bf16[256,256], index: 4, kind: input, shape index: {}]   ;;  %s10849_s5 = inlined_call_operand.hbm [shape: bf16[256,128], index: 5, kind: input, shape index: {}]   ;;  %s10850_s6 = inlined_call_operand.hbm [shape: bf16[128,64], index: 6, kind: input, shape index: {}]   ;;  %s10851_s7 = inlined_call_operand.vmem [shape: f32[256,128], index: 7, kind: output, shape index: {}]  }
   0x1   :  { %13 = vsyncpa [#allocation5], 0 }
   0x2   :  { %14 = vsyncpa [#allocation8], 0  ;;  %s5820_s24 = smov [#allocation4]  }
   0x3   :  { %s34_s25 = sshll.u32 %s5820_s24, 4  ;;  %s35_s25 = int_to_ptr.vmem [resolvable:$true] %s34_s25 }
   0x4   :  { %s5722_s26 = scalar_lea.vmem %s35_s25, 512  ;;  %p5727_p1 = scmp.lt.s32.totalorder %s35_s25, %s35_s25 }
   0x5   :  { %p5723_p0 = scmp.ne.s32.totalorder %s35_s25, %s5722_s26  ;;  %p5728_p2 = scmp.lt.s32.totalorder %s5722_s26, %s5722_s26 }
   0x7   :  { %p5729_p3 = por %p5728_p2, %p5727_p1 }
   0x9   :  { %p5730_p4 = pnand %p5729_p3, %p5723_p0 }
   0xb   :  { %5733 = shalt.err (!%p5730_p4)
}
   0xc   :  { %s5821_s27 = smov 64   ;;  %s5822_s28 = smov 4  }
   0xd   :  { %40 = dma.hbm_to_vmem [thread:$0]  %s10846_s2, 512, %s35_s25, [#allocation5], %s5821_s27, %s5821_s27, %s5822_s28  }
   0xe   :  { %s5823_s8 = smov [#allocation7]   ;;  %s5824_s10 = smov [#allocation2]  }
   0xf   :  { %s60_s9 = sshll.u32 %s5823_s8, 4  ;;  %s22_s11 = sshll.u32 %s5824_s10, 4  ;;  %s61_s9 = int_to_ptr.vmem [resolvable:$true] %s60_s9  ;;  %s23_s11 = int_to_ptr.vmem [resolvable:$true] %s22_s11 }
  0x10   :  { %s5742_s12 = scalar_lea.vmem %s61_s9, 2048  ;;  %p5747_p6 = scmp.lt.s32.totalorder %s61_s9, %s61_s9 }
  0x11   :  { %p5743_p5 = scmp.ne.s32.totalorder %s61_s9, %s5742_s12  ;;  %p5748_p7 = scmp.lt.s32.totalorder %s5742_s12, %s5742_s12 }
  0x13   :  { %p5749_p8 = por %p5748_p7, %p5747_p6 }
  0x15   :  { %p5750_p9 = pnand %p5749_p8, %p5743_p5 }
  0x17   :  { %5753 = shalt.err (!%p5750_p9)
}
  0x18   :  { %66 = dma.hbm_to_vmem [thread:$0]  %s10849_s5, 2048, %s61_s9, [#allocation8], %s5821_s27, %s5821_s27, %s5822_s28  }
  0x19   :  { %s5762_s2 = scalar_lea.vmem %s23_s11, 768  ;;  %p5767_p11 = scmp.lt.s32.totalorder %s23_s11, %s23_s11 }
  0x1a   :  { %p5763_p10 = scmp.ne.s32.totalorder %s23_s11, %s5762_s2  ;;  %p5768_p12 = scmp.lt.s32.totalorder %s5762_s2, %s5762_s2 }
  0x1c   :  { %p5769_p13 = por %p5768_p12, %p5767_p11 }
  0x1e   :  { %p5770_p0 = pnand %p5769_p13, %p5763_p10 }
  0x20   :  { %5773 = shalt.err (!%p5770_p0)
}
  0x21   :  { %s5825_s15 = smov 256   ;;  %s5826_s16 = smov 16  }
  0x22   :  { %28 = dma.hbm_to_vmem [thread:$0]  %s10845_s1, 768, %s23_s11, [#allocation3], %s5825_s15, %s5825_s15, %s5826_s16  }
  0x23   :  { %s5827_s19 = smov [#allocation6]  }
  0x24   :  { %s46_s20 = sshll.u32 %s5827_s19, 4  ;;  %s47_s20 = int_to_ptr.vmem [resolvable:$true] %s46_s20 }
  0x25   :  { %s5782_s21 = scalar_lea.vmem %s47_s20, 2048  ;;  %p5787_p2 = scmp.lt.s32.totalorder %s47_s20, %s47_s20 }
  0x26   :  { %p5783_p1 = scmp.ne.s32.totalorder %s47_s20, %s5782_s21  ;;  %p5788_p3 = scmp.lt.s32.totalorder %s5782_s21, %s5782_s21 }
  0x28   :  { %p5789_p4 = por %p5788_p3, %p5787_p2 }
  0x2a   :  { %p5790_p5 = pnand %p5789_p4, %p5783_p1 }
  0x2c   :  { %5793 = shalt.err (!%p5790_p5)
}
  0x2d   :  { %s5828_s5 = smov 128   ;;  %s5829_s22 = smov 8  }
  0x2e   :  { %52 = dma.hbm_to_vmem [thread:$0]  %s10847_s3, 2048, %s47_s20, [#allocation5], %s5828_s5, %s5828_s5, %s5829_s22  }
  0x2f   :  { %s5830_s25 = smov [#allocation9]  }
  0x30   :  { %s72_s26 = sshll.u32 %s5830_s25, 4  ;;  %s73_s26 = int_to_ptr.vmem [resolvable:$true] %s72_s26 }
  0x31   :  { %s5802_s1 = scalar_lea.vmem %s73_s26, 1024  ;;  %p5807_p7 = scmp.lt.s32.totalorder %s73_s26, %s73_s26 }
  0x32   :  { %p5803_p6 = scmp.ne.s32.totalorder %s73_s26, %s5802_s1  ;;  %p5808_p8 = scmp.lt.s32.totalorder %s5802_s1, %s5802_s1 }
  0x34   :  { %p5809_p9 = por %p5808_p8, %p5807_p7 }
  0x36   :  { %p5810_p10 = pnand %p5809_p9, %p5803_p6 }
  0x38   :  { %5813 = shalt.err (!%p5810_p10)
}
  0x39   :  { %78 = dma.hbm_to_vmem [thread:$0]  %s10850_s6, 1024, %s73_s26, [#allocation8], %s5821_s27, %s5821_s27, %s5822_s28  }
  0x3a   :  { %5814 = dma.done.wait [#allocation3], 768  }
  0x3b   :  { %5815 = vsyncadd [#allocation3], 4294966528 }
  0x3c   :  { %5816 = dma.done.wait [#allocation5], 2560  }
  0x3d   :  { %5817 = vsyncadd [#allocation5], 4294964736 }
  0x3e   :  { %5818 = dma.done.wait [#allocation8], 3072  }
  0x3f   :  { %5819 = vsyncadd [#allocation8], 4294964224  ;;  %v5831_v0 = vmov 1   ;;  %v10852_v1 = vmov 0   ;;  %v95_v2 = vld [vmem:[%s10844_s0] sm:$0xff]  ;;  %v96_v3 = vld [vmem:[%s10844_s0 + $0x8] sm:$0xff] }
  0x40   :  { %5525 = vset.pattern.permute.xlu1 %v5831_v0  ;;  %5524 = vset.pattern.permute.xlu0 %v10852_v1  ;;  %v97_v4 = vld [vmem:[%s10844_s0 + $0x10] sm:$0xff]  ;;  %v100_v5 = vld [vmem:[%s10844_s0 + $0x28] sm:$0xff]  ;;  %v5833_v7 = vmov 2   ;;  %v98_v8 = vld [vmem:[%s10844_s0 + $0x18] sm:$0xff]  ;;  %vm720_vm0 = vcmask 523264  }
  0x41   :  { %1681 = vmatprep.mubr.bf16.mxu1 %v10852_v1  ;;  %329 = vperm.xlu1 %5525, %v95_v2   ;;  %v101_v6 = vld [vmem:[%s10844_s0 + $0x30] sm:$0xff]  ;;  %v99_v9 = vld [vmem:[%s10844_s0 + $0x20] sm:$0xff]  ;;  %v5936_v11 = vld [vmem:[%s10844_s0 + $0x58] sm:$0xff] }
  0x42   :  { %134 = vperm.xlu0 %5524, %v95_v2   ;;  %v5930_v10 = vld [vmem:[%s10844_s0 + $0x50] sm:$0xff]  ;;  %v5942_v12 = vld [vmem:[%s10844_s0 + $0x78] sm:$0xff]  ;;  %v5949_v13 = vld [vmem:[%s10844_s0 + $0x80] sm:$0xff] }
  0x43   :  { %v5957_v14 = vld [vmem:[%s10844_s0 + $0xa0] sm:$0xff]  ;;  %v102_v15 = vld [vmem:[%s10844_s0 + $0x38] sm:$0xff]  ;;  %v5967_v16 = vld [vmem:[%s10844_s0 + $0xa8] sm:$0xff] }
  0x44   :  { %v5974_v17 = vld [vmem:[%s10844_s0 + $0xc8] sm:$0xff]  ;;  %v5981_v18 = vld [vmem:[%s10844_s0 + $0xd0] sm:$0xff]  ;;  %v103_v19 = vld [vmem:[%s10844_s0 + $0x40] sm:$0xff] }
  0x45   :  { %333 = vperm.xlu1 %5525, %v96_v3   ;;  %v104_v20 = vld [vmem:[%s10844_s0 + $0x48] sm:$0xff]  ;;  %v109_v22 = vld [vmem:[%s10844_s0 + $0x70] sm:$0xff]  ;;  %v6013_v24 = vld [vmem:[%s10844_s0 + $0x98] sm:$0xff] }
  0x46   :  { %139 = vperm.xlu0 %5524, %v96_v3   ;;  %v108_v21 = vld [vmem:[%s10844_s0 + $0x68] sm:$0xff]  ;;  %v6007_v23 = vld [vmem:[%s10844_s0 + $0x90] sm:$0xff]  ;;  %v107_v25 = vld [vmem:[%s10844_s0 + $0x60] sm:$0xff] }
  0x47   :  { %v6024_v26 = vld [vmem:[%s10844_s0 + $0xb8] sm:$0xff]  ;;  %v6031_v27 = vld [vmem:[%s10844_s0 + $0xc0] sm:$0xff]  ;;  %v6045_v29 = vld [vmem:[%s10844_s0 + $0xe8] sm:$0xff] }
  0x48   :  { %v6038_v28 = vld [vmem:[%s10844_s0 + $0xe0] sm:$0xff]  ;;  %v112_v34 = vld [vmem:[%s10844_s0 + $0x88] sm:$0xff]  ;;  %v6082_v36 = vld [vmem:[%s10844_s0 + $0xf0] sm:$0xff] }
  0x49   :  { %337 = vperm.xlu1 %5525, %v97_v4   ;;  %v6091_v38 = vld [vmem:[%s10844_s0 + $0xf8] sm:$0xff]  ;;  %v117_v50 = vld [vmem:[%s10844_s0 + $0xb0] sm:$0xff] }
  0x4a   :  { %144 = vperm.xlu0 %5524, %v97_v4  }
  0x4d   :  { %5526 = vset.pattern.permute.xlu1 %v5833_v7 }
  0x4e   :  { %159 = vperm.xlu0 %5524, %v100_v5   ;;  %529 = vperm.xlu1 %5526, %v96_v3  }
  0x52   :  { %164 = vperm.xlu0 %5524, %v101_v6   ;;  %5527 = vset.pattern.permute.xlu1 %v10852_v1 }
  0x53   :  { %149 = vperm.xlu1 %5527, %v98_v8  }
  0x56   :  { %5533 = vset.pattern.permute.xlu0 %v5833_v7 }
  0x57   :  { %525 = vperm.xlu0 %5533, %v95_v2   ;;  %5528 = vset.pattern.permute.xlu1 %v5833_v7 }
  0x58   :  { %533 = vperm.xlu1 %5528, %v97_v4  }
  0x5b   :  { %545 = vperm.xlu0 %5533, %v100_v5  }
  0x5c   :  { %5529 = vset.pattern.permute.xlu1 %v10852_v1 }
  0x5d   :  { %154 = vperm.xlu1 %5529, %v99_v9  }
  0x5f   :  { %549 = vperm.xlu0 %5533, %v101_v6  }
  0x61   :  { %5530 = vset.pattern.permute.xlu1 %v5833_v7 }
  0x62   :  { %537 = vperm.xlu1 %5530, %v98_v8  }
  0x63   :  { %565 = vperm.xlu0 %5533, %v5930_v10  }
  0x66   :  { %5531 = vset.pattern.permute.xlu1 %v5831_v0 }
  0x67   :  { %569 = vperm.xlu0 %5533, %v5936_v11   ;;  %349 = vperm.xlu1 %5531, %v100_v5  }
  0x6b   :  { %585 = vperm.xlu0 %5533, %v5942_v12   ;;  %5532 = vset.pattern.permute.xlu1 %v5833_v7 }
  0x6c   :  { %541 = vperm.xlu1 %5532, %v99_v9  }
  0x6f   :  { %589 = vperm.xlu0 %5533, %v5949_v13  }
  0x70   :  { %5534 = vset.pattern.permute.xlu1 %v5831_v0 }
  0x71   :  { %353 = vperm.xlu1 %5534, %v101_v6   ;;  %v122_v6 = vld [vmem:[%s10844_s0 + $0xd8] sm:$0xff] }
  0x73   :  { %605 = vperm.xlu0 %5533, %v5957_v14  }
  0x75   :  { %5535 = vset.pattern.permute.xlu1 %v10852_v1 }
  0x76   :  { %169 = vperm.xlu1 %5535, %v102_v15  }
  0x77   :  { %609 = vperm.xlu0 %5533, %v5967_v16  }
  0x7a   :  { %5536 = vset.pattern.permute.xlu1 %v5831_v0 }
  0x7b   :  { %625 = vperm.xlu0 %5533, %v5974_v17   ;;  %357 = vperm.xlu1 %5536, %v102_v15  }
  0x7f   :  { %629 = vperm.xlu0 %5533, %v5981_v18   ;;  %5537 = vset.pattern.permute.xlu1 %v10852_v1 }
  0x80   :  { %174 = vperm.xlu1 %5537, %v103_v19  }
  0x83   :  { %5573 = vset.pattern.permute.xlu0 %v5831_v0 }
  0x84   :  { %341 = vperm.xlu0 %5573, %v98_v8   ;;  %5538 = vset.pattern.permute.xlu1 %v5833_v7 }
  0x85   :  { %553 = vperm.xlu1 %5538, %v102_v15  }
  0x88   :  { %345 = vperm.xlu0 %5573, %v99_v9  }
  0x89   :  { %5539 = vset.pattern.permute.xlu1 %v10852_v1 }
  0x8a   :  { %179 = vperm.xlu1 %5539, %v104_v20  }
  0x8c   :  { %361 = vperm.xlu0 %5573, %v103_v19  }
  0x8e   :  { %5540 = vset.pattern.permute.xlu1 %v5833_v7 }
  0x8f   :  { %557 = vperm.xlu1 %5540, %v103_v19  }
  0x90   :  { %365 = vperm.xlu0 %5573, %v104_v20  }
  0x93   :  { %5541 = vset.pattern.permute.xlu1 %v5831_v0 }
  0x94   :  { %381 = vperm.xlu0 %5573, %v108_v21   ;;  %369 = vperm.xlu1 %5541, %v5930_v10  }
  0x98   :  { %385 = vperm.xlu0 %5573, %v109_v22   ;;  %5542 = vset.pattern.permute.xlu1 %v5833_v7 }
  0x99   :  { %561 = vperm.xlu1 %5542, %v104_v20  }
  0x9c   :  { %401 = vperm.xlu0 %5573, %v6007_v23  }
  0x9d   :  { %5543 = vset.pattern.permute.xlu1 %v5831_v0 }
  0x9e   :  { %373 = vperm.xlu1 %5543, %v5936_v11  }
  0xa0   :  { %405 = vperm.xlu0 %5573, %v6013_v24  }
  0xa2   :  { %5544 = vset.pattern.permute.xlu1 %v10852_v1 }
  0xa3   :  { %194 = vperm.xlu1 %5544, %v107_v25  }
  0xa4   :  { %421 = vperm.xlu0 %5573, %v6024_v26  }
  0xa7   :  { %5545 = vset.pattern.permute.xlu1 %v5831_v0 }
  0xa8   :  { %425 = vperm.xlu0 %5573, %v6031_v27   ;;  %377 = vperm.xlu1 %5545, %v107_v25  }
  0xac   :  { %441 = vperm.xlu0 %5573, %v6038_v28   ;;  %5546 = vset.pattern.permute.xlu1 %v10852_v1 }
  0xad   :  { %199 = vperm.xlu1 %5546, %v108_v21  }
  0xb0   :  { %445 = vperm.xlu0 %5573, %v6045_v29  }
  0xb1   :  { %5547 = vset.pattern.permute.xlu1 %v5833_v7 }
  0xb2   :  { %573 = vperm.xlu1 %5547, %v107_v25  }
  0xb4   :  { %5577 = vset.pattern.permute.xlu0 %v10852_v1 }
  0xb5   :  { %184 = vperm.xlu0 %5577, %v5930_v10  }
  0xb6   :  { %5548 = vset.pattern.permute.xlu1 %v10852_v1 }
  0xb7   :  { %204 = vperm.xlu1 %5548, %v109_v22  }
  0xb9   :  { %189 = vperm.xlu0 %5577, %v5936_v11  }
  0xbb   :  { %5549 = vset.pattern.permute.xlu1 %v5833_v7 }
  0xbc   :  { %577 = vperm.xlu1 %5549, %v108_v21   ;;  %v6054_v30 = vpop.permute.xlu1 %329 }
  0xbd   :  { %209 = vperm.xlu0 %5577, %v5942_v12   ;;  %v6107_v42 = vpop.permute.xlu0 %134 }
  0xc0   :  { %5550 = vset.pattern.permute.xlu1 %v5831_v0  ;;  %v6058_v31 = vpop.permute.xlu1 %333 }
  0xc1   :  { %214 = vperm.xlu0 %5577, %v5949_v13   ;;  %389 = vperm.xlu1 %5550, %v5942_v12   ;;  %v6114_v44 = vpop.permute.xlu0 %139 }
  0xc4   :  { %v6062_v32 = vpop.permute.xlu1 %337 }
  0xc5   :  { %234 = vperm.xlu0 %5577, %v5957_v14   ;;  %5551 = vset.pattern.permute.xlu1 %v5833_v7  ;;  %v6120_v46 = vpop.permute.xlu0 %144 }
  0xc6   :  { %581 = vperm.xlu1 %5551, %v109_v22  }
  0xc9   :  { %239 = vperm.xlu0 %5577, %v5967_v16   ;;  %v6067_v33 = vpop.permute.xlu1 %529  ;;  %v6126_v48 = vpop.permute.xlu0 %159 }
  0xca   :  { %5552 = vset.pattern.permute.xlu1 %v5831_v0 }
  0xcb   :  { %393 = vperm.xlu1 %5552, %v5949_v13  }
  0xcd   :  { %259 = vperm.xlu0 %5577, %v5974_v17   ;;  %v6137_v52 = vpop.permute.xlu0 %164 }
  0xce   :  { %v6075_v35 = vpop.permute.xlu1 %149 }
  0xcf   :  { %5553 = vset.pattern.permute.xlu1 %v10852_v1 }
  0xd0   :  { %219 = vperm.xlu1 %5553, %v112_v34  }
  0xd1   :  { %264 = vperm.xlu0 %5577, %v5981_v18  }
  0xd2   :  { %v6143_v54 = vpop.permute.xlu0 %525 }
  0xd3   :  { %v6084_v37 = vpop.permute.xlu1 %533 }
  0xd4   :  { %5554 = vset.pattern.permute.xlu1 %v5831_v0 }
  0xd5   :  { %284 = vperm.xlu0 %5577, %v6082_v36   ;;  %397 = vperm.xlu1 %5554, %v112_v34  }
  0xd6   :  { %v6149_v56 = vpop.permute.xlu0 %545 }
  0xd8   :  { %v6093_v39 = vpop.permute.xlu1 %154 }
  0xd9   :  { %289 = vperm.xlu0 %5577, %v6091_v38   ;;  %5555 = vset.pattern.permute.xlu1 %v10852_v1 }
  0xda   :  { %224 = vperm.xlu1 %5555, %v6007_v23   ;;  %v6154_v58 = vpop.permute.xlu0 %549 }
  0xdd   :  { %5582 = vset.pattern.permute.xlu0 %v5833_v7  ;;  %v6099_v40 = vpop.permute.xlu1 %537 }
  0xde   :  { %645 = vperm.xlu0 %5582, %v6082_v36   ;;  %5556 = vset.pattern.permute.xlu1 %v5833_v7  ;;  %v6160_v60 = vpop.permute.xlu0 %565 }
  0xdf   :  { %593 = vperm.xlu1 %5556, %v112_v34  }
  0xe2   :  { %5584 = vset.pattern.permute.xlu0 %v5831_v0  ;;  %v6104_v41 = vpop.permute.xlu1 %349  ;;  %v6168_v63 = vpop.permute.xlu0 %569 }
  0xe3   :  { %5557 = vset.pattern.permute.xlu1 %v10852_v1 }
  0xe4   :  { %229 = vperm.xlu1 %5557, %v6013_v24  }
  0xe6   :  { %v6175_v3 = vpop.permute.xlu0 %585 }
  0xe7   :  { %v6110_v43 = vpop.permute.xlu1 %541 }
  0xe8   :  { %5558 = vset.pattern.permute.xlu1 %v5833_v7 }
  0xe9   :  { %597 = vperm.xlu1 %5558, %v6007_v23  }
  0xea   :  { %v6182_v5 = vpop.permute.xlu0 %589 }
  0xec   :  { %v6116_v45 = vpop.permute.xlu1 %353 }
  0xed   :  { %5559 = vset.pattern.permute.xlu1 %v5831_v0 }
  0xee   :  { %409 = vperm.xlu1 %5559, %v5957_v14   ;;  %v6190_v9 = vpop.permute.xlu0 %605 }
  0xef   :  { %10941 = vst [vmem:[#allocation13_spill] sm:$0xff] %v6190_v9 }
  0xf1   :  { %v6122_v47 = vpop.permute.xlu1 %169 }
  0xf2   :  { %5560 = vset.pattern.permute.xlu1 %v5833_v7  ;;  %v6195_v11 = vpop.permute.xlu0 %609 }
  0xf3   :  { %601 = vperm.xlu1 %5560, %v6013_v24   ;;  %10942 = vst [vmem:[#allocation14_spill] sm:$0xff] %v6195_v11 }
  0xf6   :  { %v6128_v49 = vpop.permute.xlu1 %357  ;;  %v6203_v14 = vpop.permute.xlu0 %625 }
  0xf7   :  { %5561 = vset.pattern.permute.xlu1 %v5831_v0  ;;  %10943 = vst [vmem:[#allocation15_spill] sm:$0xff] %v6203_v14  ;;  %v6264_v14 = vld [vmem:[#allocation2] sm:$0xff] }
  0xf8   :  { %413 = vperm.xlu1 %5561, %v5967_v16   ;;  %10954 = vst [vmem:[#allocation26_spill] sm:$0xff] %v6264_v14 }
  0xfa   :  { %v6209_v16 = vpop.permute.xlu0 %629 }
  0xfb   :  { %v6135_v51 = vpop.permute.xlu1 %174  ;;  %10944 = vst [vmem:[#allocation16_spill] sm:$0xff] %v6209_v16 }
  0xfc   :  { %5562 = vset.pattern.permute.xlu1 %v10852_v1 }
  0xfd   :  { %244 = vperm.xlu1 %5562, %v117_v50  }
 0x100   :  { %v6140_v53 = vpop.permute.xlu1 %553 }
 0x101   :  { %5563 = vset.pattern.permute.xlu1 %v5831_v0 }
 0x102   :  { %417 = vperm.xlu1 %5563, %v117_v50  }
 0x105   :  { %v6145_v55 = vpop.permute.xlu1 %179 }
 0x106   :  { %5564 = vset.pattern.permute.xlu1 %v10852_v1 }
 0x107   :  { %249 = vperm.xlu1 %5564, %v6024_v26  }
 0x10a   :  { %v6151_v57 = vpop.permute.xlu1 %557 }
 0x10b   :  { %5565 = vset.pattern.permute.xlu1 %v5833_v7 }
 0x10c   :  { %613 = vperm.xlu1 %5565, %v117_v50  }
 0x10f   :  { %v6156_v59 = vpop.permute.xlu1 %369 }
 0x110   :  { %5566 = vset.pattern.permute.xlu1 %v10852_v1 }
 0x111   :  { %254 = vperm.xlu1 %5566, %v6031_v27  }
 0x114   :  { %v6162_v61 = vpop.permute.xlu1 %561 }
 0x115   :  { %5567 = vset.pattern.permute.xlu1 %v5833_v7 }
 0x116   :  { %617 = vperm.xlu1 %5567, %v6024_v26  }
 0x119   :  { %v6166_v62 = vpop.permute.xlu1 %373 }
 0x11a   :  { %5568 = vset.pattern.permute.xlu1 %v5831_v0 }
 0x11b   :  { %429 = vperm.xlu1 %5568, %v5974_v17  }
 0x11e   :  { %v6172_v2 = vpop.permute.xlu1 %194 }
 0x11f   :  { %5569 = vset.pattern.permute.xlu1 %v5833_v7 }
 0x120   :  { %621 = vperm.xlu1 %5569, %v6031_v27  }
 0x123   :  { %v6178_v4 = vpop.permute.xlu1 %377 }
 0x124   :  { %5570 = vset.pattern.permute.xlu1 %v5831_v0 }
 0x125   :  { %433 = vperm.xlu1 %5570, %v5981_v18   ;;  %v342_v18 = vpop.permute.xlu0 %341 }
 0x128   :  { %v6187_v8 = vpop.permute.xlu1 %199 }
 0x129   :  { %5571 = vset.pattern.permute.xlu1 %v10852_v1  ;;  %v346_v20 = vpop.permute.xlu0 %345 }
 0x12a   :  { %269 = vperm.xlu1 %5571, %v122_v6  }
 0x12d   :  { %v6192_v10 = vpop.permute.xlu1 %573  ;;  %v6224_v22 = vpop.permute.xlu0 %361 }
 0x12e   :  { %5572 = vset.pattern.permute.xlu1 %v5831_v0 }
 0x12f   :  { %437 = vperm.xlu1 %5572, %v122_v6  }
 0x131   :  { %v6232_v25 = vpop.permute.xlu0 %365 }
 0x132   :  { %v6197_v12 = vpop.permute.xlu1 %204 }
 0x133   :  { %5574 = vset.pattern.permute.xlu1 %v10852_v1 }
 0x134   :  { %274 = vperm.xlu1 %5574, %v6038_v28  }
 0x135   :  { %v6239_v27 = vpop.permute.xlu0 %381 }
 0x137   :  { %v6201_v13 = vpop.permute.xlu1 %577 }
 0x138   :  { %5575 = vset.pattern.permute.xlu1 %v5833_v7 }
 0x139   :  { %633 = vperm.xlu1 %5575, %v122_v6  }
 0x13c   :  { %v6206_v15 = vpop.permute.xlu1 %389 }
 0x13d   :  { %5576 = vset.pattern.permute.xlu1 %v10852_v1 }
 0x13e   :  { %279 = vperm.xlu1 %5576, %v6045_v29  }
 0x141   :  { %v6212_v17 = vpop.permute.xlu1 %581 }
 0x142   :  { %5578 = vset.pattern.permute.xlu1 %v5833_v7 }
 0x143   :  { %637 = vperm.xlu1 %5578, %v6038_v28  }
 0x146   :  { %v6216_v19 = vpop.permute.xlu1 %393 }
 0x147   :  { %5579 = vset.pattern.permute.xlu1 %v5831_v0 }
 0x148   :  { %449 = vperm.xlu1 %5579, %v6082_v36   ;;  %v10854_v36 = vlaneseq }
 0x14b   :  { %v6220_v21 = vpop.permute.xlu1 %219 }
 0x14c   :  { %5580 = vset.pattern.permute.xlu1 %v5833_v7 }
 0x14d   :  { %641 = vperm.xlu1 %5580, %v6045_v29   ;;  %v6243_v29 = vpop.permute.xlu0 %385 }
 0x150   :  { %v6226_v23 = vpop.permute.xlu1 %397 }
 0x151   :  { %5581 = vset.pattern.permute.xlu1 %v5831_v0  ;;  %v6247_v50 = vpop.permute.xlu0 %401 }
 0x152   :  { %453 = vperm.xlu1 %5581, %v6091_v38  }
 0x155   :  { %v6230_v24 = vpop.permute.xlu1 %224 }
 0x156   :  { %5583 = vset.pattern.permute.xlu1 %v5833_v7  ;;  %v6252_v7 = vshrl.u32 %v10854_v36, 7 }
 0x157   :  { %649 = vperm.xlu1 %5583, %v6091_v38   ;;  %v6254_v38 = vpop.permute.xlu0 %405 }
 0x158   :  { %10949 = vst [vmem:[#allocation21_spill] sm:$0xff] %v6252_v7  ;;  %10950 = vst [vmem:[#allocation22_spill] sm:$0xff] %v6254_v38  ;;  %v6262_v16 = vsub.s32 0, %v6252_v7 }
 0x15a   :  { %v6236_v26 = vpop.permute.xlu1 %593  ;;  %10953 = vst [vmem:[#allocation25_spill] sm:$0xff] %v6262_v16  ;;  %v6274_v36 = vrot.slane %v6264_v14, %v6262_v16 }
 0x15b   :  { %10945 = vst [vmem:[#allocation17_spill] sm:$0xff] %v6236_v26  ;;  %5585 = vset.pattern.permute.xlu1 %v5831_v0  ;;  %v6259_v0 = vsub.s32 1, %v6252_v7 }
 0x15d   :  { %10952 = vst [vmem:[#allocation24_spill] sm:$0xff] %v6259_v0  ;;  %v6270_v9 = vrot.slane %v6264_v14, %v6259_v0 }
 0x15f   :  { %v6241_v28 = vpop.permute.xlu1 %229  ;;  %v461_v16 = vmul.f32 %v6270_v9, %v6058_v31  ;;  %v463_v31 = vmul.f32 %v6270_v9, %v342_v18 }
 0x160   :  { %10946 = vst [vmem:[#allocation18_spill] sm:$0xff] %v6241_v28  ;;  %v296_v28 = vmul.f32 %v6274_v36, %v6107_v42  ;;  %v462_v42 = vmul.f32 %v6270_v9, %v6062_v32  ;;  %v464_v32 = vmul.f32 %v6270_v9, %v346_v20 }
 0x164   :  { %v6245_v34 = vpop.permute.xlu1 %597 }
 0x165   :  { %10947 = vst [vmem:[#allocation19_spill] sm:$0xff] %v6245_v34  ;;  %v460_v34 = vmul.f32 %v6270_v9, %v6054_v30 }
 0x167   :  { %v492_v26 = vadd.f32 %v460_v34, %v296_v28 }
 0x169   :  { %v6249_v6 = vpop.permute.xlu1 %409 }
 0x16a   :  { %10948 = vst [vmem:[#allocation20_spill] sm:$0xff] %v6249_v6  ;;  %v6276_v6 = vpop.permute.xlu0 %421 }
 0x16b   :  { %10956 = vst [vmem:[#allocation28_spill] sm:$0xff] %v6276_v6  ;;  %v297_v6 = vmul.f32 %v6274_v36, %v6114_v44 }
 0x16d   :  { %v493_v44 = vadd.f32 %v461_v16, %v297_v6 }
 0x16e   :  { %v6256_v1 = vpop.permute.xlu1 %601 }
 0x16f   :  { %10951 = vst [vmem:[#allocation23_spill] sm:$0xff] %v6256_v1  ;;  %v10861_v1 = vsub.s32 2, %v6252_v7  ;;  %v298_v7 = vmul.f32 %v6274_v36, %v6120_v46 }
 0x171   :  { %v6288_v0 = vrot.slane %v6264_v14, %v10861_v1  ;;  %v494_v46 = vadd.f32 %v462_v42, %v298_v7 }
 0x173   :  { %v6266_v11 = vpop.permute.xlu1 %413  ;;  %v656_v30 = vmul.f32 %v6288_v0, %v6143_v54  ;;  %v657_v1 = vmul.f32 %v6288_v0, %v6067_v33  ;;  %v658_v54 = vmul.f32 %v6288_v0, %v6084_v37  ;;  %v300_v33 = vmul.f32 %v6274_v36, %v6093_v39 }
 0x174   :  { %10955 = vst [vmem:[#allocation27_spill] sm:$0xff] %v6266_v11  ;;  %v6294_v11 = vpop.permute.xlu0 %425  ;;  %v659_v37 = vmul.f32 %v6288_v0, %v6099_v40  ;;  %v465_v39 = vmul.f32 %v6270_v9, %v6104_v41  ;;  %v466_v41 = vmul.f32 %v6270_v9, %v6116_v45 }
 0x175   :  { %10958 = vst [vmem:[#allocation30_spill] sm:$0xff] %v6294_v11  ;;  %v299_v11 = vmul.f32 %v6274_v36, %v6075_v35  ;;  %v6316_v34 = vadd.f32 %v657_v1, %v493_v44  ;;  %v496_v20 = vadd.f32 %v464_v32, %v300_v33  ;;  %v301_v1 = vmul.f32 %v6274_v36, %v6126_v48 }
 0x176   :  { %v302_v44 = vmul.f32 %v6274_v36, %v6137_v52 }
 0x177   :  { %v495_v18 = vadd.f32 %v463_v31, %v299_v11  ;;  %v722_v6 = vsel %vm720_vm0, %v6316_v34, 0.0  ;;  %v660_v11 = vmul.f32 %v6288_v0, %v6110_v43  ;;  %v661_v43 = vmul.f32 %v6288_v0, %v6149_v56 }
 0x178   :  { %v6283_v38 = vpop.permute.xlu1 %244  ;;  %v6314_v28 = vpop.permute.xlu0 %441  ;;  %v467_v56 = vmul.f32 %v6270_v9, %v6128_v49  ;;  %v468_v49 = vmul.f32 %v6270_v9, %v6224_v22  ;;  %v470_v22 = vmul.f32 %v6270_v9, %v6156_v59  ;;  %v667_v59 = vmul.f32 %v6288_v0, %v6168_v63 }
 0x179   :  { %10957 = vst [vmem:[#allocation29_spill] sm:$0xff] %v6283_v38  ;;  %v6309_v38 = vadd.f32 %v656_v30, %v492_v26  ;;  %v6324_v26 = vadd.f32 %v658_v54, %v494_v46  ;;  %v6336_v7 = vadd.f32 %v659_v37, %v495_v18  ;;  %v6342_v31 = vadd.f32 %v660_v11, %v496_v20 }
 0x17a   :  { %v497_v54 = vadd.f32 %v465_v39, %v301_v1  ;;  %v662_v18 = vmul.f32 %v6288_v0, %v6154_v58  ;;  %v303_v39 = vmul.f32 %v6274_v36, %v6122_v47  ;;  %v663_v11 = vmul.f32 %v6288_v0, %v6140_v53 }
 0x17b   :  { %v721_v35 = vsel %vm720_vm0, %v6309_v38, 0.0  ;;  %v724_v40 = vsel %vm720_vm0, %v6324_v26, 0.0  ;;  %v726_v32 = vsel %vm720_vm0, %v6336_v7, 0.0  ;;  %v728_v33 = vsel %vm720_vm0, %v6342_v31, 0.0 }
 0x17c   :  { %v723_v30 = vadd.f32 %v722_v6, %v721_v35  ;;  %v6338_v42 = vpop.permute.xlu0 %445  ;;  %v498_v35 = vadd.f32 %v466_v41, %v302_v44  ;;  %v6360_v45 = vadd.f32 %v661_v43, %v497_v54  ;;  %v469_v43 = vmul.f32 %v6270_v9, %v6232_v25 }
 0x17d   :  { %v6305_v14 = vpop.permute.xlu1 %417  ;;  %v304_v53 = vmul.f32 %v6274_v36, %v6135_v51  ;;  %v665_v25 = vmul.f32 %v6288_v0, %v6162_v61  ;;  %v472_v63 = vmul.f32 %v6270_v9, %v6178_v4  ;;  %v309_v4 = vmul.f32 %v6274_v36, %v6187_v8 }
 0x17e   :  { %v725_v46 = vadd.f32 %v724_v40, %v723_v30  ;;  %v6364_v6 = vadd.f32 %v662_v18, %v498_v35  ;;  %v730_v58 = vsel %vm720_vm0, %v6360_v45, 0.0  ;;  %v499_v40 = vadd.f32 %v467_v56, %v303_v39 }
 0x17f   :  { %v666_v35 = vmul.f32 %v6288_v0, %v6160_v60  ;;  %v670_v8 = vmul.f32 %v6288_v0, %v6212_v17 }
 0x180   :  { %v727_v37 = vadd.f32 %v726_v32, %v725_v46  ;;  %v185_v52 = vpop.permute.xlu0 %184  ;;  %v732_v47 = vsel %vm720_vm0, %v6364_v6, 0.0  ;;  %v6383_v32 = vadd.f32 %v663_v11, %v499_v40  ;;  %v305_v46 = vmul.f32 %v6274_v36, %v6145_v55 }
 0x181   :  { %v306_v54 = vmul.f32 %v6274_v36, %v185_v52  ;;  %v500_v52 = vadd.f32 %v468_v49, %v304_v53  ;;  %v471_v55 = vmul.f32 %v6270_v9, %v6166_v62 }
 0x182   :  { %v6320_v16 = vpop.permute.xlu1 %249  ;;  %v729_v1 = vadd.f32 %v728_v33, %v727_v37  ;;  %v664_v33 = vmul.f32 %v6288_v0, %v6151_v57  ;;  %v501_v56 = vadd.f32 %v469_v43, %v305_v46  ;;  %v734_v61 = vsel %vm720_vm0, %v6383_v32, 0.0 }
 0x183   :  { %v502_v57 = vadd.f32 %v470_v22, %v306_v54  ;;  %v308_v54 = vmul.f32 %v6274_v36, %v6172_v2  ;;  %v473_v46 = vmul.f32 %v6270_v9, %v6239_v27  ;;  %v310_v2 = vmul.f32 %v6274_v36, %v6197_v12 }
 0x184   :  { %v731_v44 = vadd.f32 %v730_v58, %v729_v1  ;;  %v190_v41 = vpop.permute.xlu0 %189  ;;  %v6404_v1 = vadd.f32 %v664_v33, %v500_v52  ;;  %v6406_v39 = vadd.f32 %v665_v25, %v501_v56  ;;  %v474_v25 = vmul.f32 %v6270_v9, %v6243_v29 }
 0x185   :  { %v307_v18 = vmul.f32 %v6274_v36, %v190_v41  ;;  %v6408_v58 = vadd.f32 %v666_v35, %v502_v57  ;;  %v669_v27 = vmul.f32 %v6288_v0, %v6201_v13  ;;  %v505_v56 = vadd.f32 %v473_v46, %v309_v4  ;;  %v10960_v4 = vld [vmem:[#allocation22_spill] sm:$0xff] }
 0x186   :  { %v733_v51 = vadd.f32 %v732_v47, %v731_v44  ;;  %v736_v62 = vsel %vm720_vm0, %v6404_v1, 0.0  ;;  %v738_v44 = vsel %vm720_vm0, %v6406_v39, 0.0  ;;  %v668_v47 = vmul.f32 %v6288_v0, %v6192_v10 }
 0x187   :  { %v6344_v48 = vpop.permute.xlu1 %613  ;;  %v503_v60 = vadd.f32 %v471_v55, %v307_v18  ;;  %v740_v53 = vsel %vm720_vm0, %v6408_v58, 0.0  ;;  %v504_v18 = vadd.f32 %v472_v63, %v308_v54  ;;  %v475_v29 = vmul.f32 %v6270_v9, %v6206_v15 }
 0x188   :  { %v735_v11 = vadd.f32 %v734_v61, %v733_v51  ;;  %v210_v43 = vpop.permute.xlu0 %209  ;;  %v506_v57 = vadd.f32 %v474_v25, %v310_v2  ;;  %v671_v15 = vmul.f32 %v6288_v0, %v6175_v3  ;;  %v478_v54 = vmul.f32 %v6270_v9, %v6247_v50 }
 0x189   :  { %v6418_v41 = vadd.f32 %v667_v59, %v503_v60  ;;  %v6440_v52 = vadd.f32 %v668_v47, %v504_v18  ;;  %v311_v12 = vmul.f32 %v6274_v36, %v210_v43  ;;  %v476_v59 = vmul.f32 %v6270_v9, %v6216_v19 }
 0x18a   :  { %v737_v49 = vadd.f32 %v736_v62, %v735_v11  ;;  %v6452_v60 = vadd.f32 %v669_v27, %v505_v56  ;;  %v6456_v11 = vadd.f32 %v670_v8, %v506_v57  ;;  %v477_v19 = vmul.f32 %v6270_v9, %v6226_v23 }
 0x18b   :  { %v742_v10 = vsel %vm720_vm0, %v6418_v41, 0.0  ;;  %v744_v17 = vsel %vm720_vm0, %v6440_v52, 0.0  ;;  %v672_v43 = vmul.f32 %v6288_v0, %v6182_v5  ;;  %v313_v46 = vmul.f32 %v6274_v36, %v6220_v21 }
 0x18c   :  { %v6358_v20 = vpop.permute.xlu1 %254  ;;  %v739_v33 = vadd.f32 %v738_v44, %v737_v49  ;;  %v215_v51 = vpop.permute.xlu0 %214  ;;  %v507_v44 = vadd.f32 %v475_v29, %v311_v12  ;;  %v746_v47 = vsel %vm720_vm0, %v6452_v60, 0.0  ;;  %v748_v3 = vsel %vm720_vm0, %v6456_v11, 0.0  ;;  %v10963_v29 = vld [vmem:[#allocation23_spill] sm:$0xff] }
 0x18d   :  { %v312_v61 = vmul.f32 %v6274_v36, %v215_v51  ;;  %v314_v23 = vmul.f32 %v6274_v36, %v6230_v24  ;;  %v479_v50 = vmul.f32 %v6270_v9, %v10960_v4  ;;  %v10962_v51 = vld [vmem:[#allocation19_spill] sm:$0xff]  ;;  %v675_v12 = vmul.f32 %v6288_v0, %v10963_v29 }
 0x18e   :  { %v741_v35 = vadd.f32 %v740_v53, %v739_v33  ;;  %v10959_v33 = vld [vmem:[#allocation17_spill] sm:$0xff]  ;;  %v6480_v18 = vadd.f32 %v671_v15, %v507_v44  ;;  %v674_v21 = vmul.f32 %v6288_v0, %v10962_v51  ;;  %v319_v29 = vmul.f32 %v6274_v36, %v6320_v16 }
 0x18f   :  { %v508_v63 = vadd.f32 %v476_v59, %v312_v61  ;;  %v673_v5 = vmul.f32 %v6288_v0, %v10959_v33  ;;  %v510_v56 = vadd.f32 %v478_v54, %v314_v23  ;;  %v10964_v61 = vld [vmem:[#allocation20_spill] sm:$0xff] }
 0x190   :  { %v743_v55 = vadd.f32 %v742_v10, %v741_v35  ;;  %v235_v49 = vpop.permute.xlu0 %234  ;;  %v509_v10 = vadd.f32 %v477_v19, %v313_v46  ;;  %v10961_v35 = vld [vmem:[#allocation18_spill] sm:$0xff]  ;;  %v750_v59 = vsel %vm720_vm0, %v6480_v18, 0.0 }
 0x191   :  { %v6372_v30 = vpop.permute.xlu1 %617  ;;  %v6482_v2 = vadd.f32 %v672_v43, %v508_v63  ;;  %v315_v27 = vmul.f32 %v6274_v36, %v10961_v35  ;;  %v316_v15 = vmul.f32 %v6274_v36, %v235_v49  ;;  %v6502_v19 = vadd.f32 %v674_v21, %v510_v56  ;;  %v10965_v43 = vld [vmem:[#allocation27_spill] sm:$0xff]  ;;  %v10967_v35 = vld [vmem:[#allocation14_spill] sm:$0xff] }
 0x192   :  { %v745_v62 = vadd.f32 %v744_v17, %v743_v55  ;;  %v6488_v55 = vadd.f32 %v673_v5, %v509_v10  ;;  %v480_v17 = vmul.f32 %v6270_v9, %v10964_v61  ;;  %v481_v54 = vmul.f32 %v6270_v9, %v10965_v43 }
 0x193   :  { %v752_v44 = vsel %vm720_vm0, %v6482_v2, 0.0  ;;  %v511_v63 = vadd.f32 %v479_v50, %v315_v27  ;;  %v756_v5 = vsel %vm720_vm0, %v6502_v19, 0.0  ;;  %v482_v50 = vmul.f32 %v6270_v9, %v6305_v14 }
 0x194   :  { %v747_v25 = vadd.f32 %v746_v47, %v745_v62  ;;  %v240_v8 = vpop.permute.xlu0 %239  ;;  %v512_v33 = vadd.f32 %v480_v17, %v316_v15  ;;  %v677_v27 = vmul.f32 %v6288_v0, %v10967_v35  ;;  %v678_v14 = vmul.f32 %v6288_v0, %v6344_v48 }
 0x195   :  { %v317_v62 = vmul.f32 %v6274_v36, %v240_v8  ;;  %v6508_v46 = vadd.f32 %v675_v12, %v511_v63  ;;  %v10969_v12 = vld [vmem:[#allocation28_spill] sm:$0xff]  ;;  %v679_v63 = vmul.f32 %v6288_v0, %v6372_v30 }
 0x196   :  { %v6396_v37 = vpop.permute.xlu1 %429  ;;  %v749_v24 = vadd.f32 %v748_v3, %v747_v25  ;;  %v754_v3 = vsel %vm720_vm0, %v6488_v55, 0.0  ;;  %v10966_v25 = vld [vmem:[#allocation13_spill] sm:$0xff] }
 0x197   :  { %v513_v4 = vadd.f32 %v481_v54, %v317_v62  ;;  %v676_v10 = vmul.f32 %v6288_v0, %v10966_v25  ;;  %v758_v8 = vsel %vm720_vm0, %v6508_v46, 0.0 }
 0x198   :  { %v751_v47 = vadd.f32 %v750_v59, %v749_v24  ;;  %v260_v21 = vpop.permute.xlu0 %259  ;;  %v10968_v24 = vld [vmem:[#allocation29_spill] sm:$0xff]  ;;  %v483_v59 = vmul.f32 %v6270_v9, %v10969_v12 }
 0x199   :  { %v318_v56 = vmul.f32 %v6274_v36, %v10968_v24  ;;  %v6528_v17 = vadd.f32 %v676_v10, %v512_v33  ;;  %v6530_v15 = vadd.f32 %v677_v27, %v513_v4 }
 0x19a   :  { %v753_v23 = vadd.f32 %v752_v44, %v751_v47  ;;  %v320_v44 = vmul.f32 %v6274_v36, %v6358_v20  ;;  %v10970_v47 = vld [vmem:[#allocation30_spill] sm:$0xff]  ;;  %v321_v20 = vmul.f32 %v6274_v36, %v260_v21 }
 0x19b   :  { %v6410_v40 = vpop.permute.xlu1 %621  ;;  %v514_v62 = vadd.f32 %v482_v50, %v318_v56  ;;  %v484_v48 = vmul.f32 %v6270_v9, %v10970_v47  ;;  %v760_v50 = vsel %vm720_vm0, %v6528_v17, 0.0  ;;  %v762_v25 = vsel %vm720_vm0, %v6530_v15, 0.0 }
 0x19c   :  { %v755_v51 = vadd.f32 %v754_v3, %v753_v23  ;;  %v265_v54 = vpop.permute.xlu0 %264  ;;  %v515_v3 = vadd.f32 %v483_v59, %v319_v29  ;;  %v680_v33 = vmul.f32 %v6288_v0, %v6410_v40  ;;  %v10972_v59 = vld [vmem:[#allocation16_spill] sm:$0xff] }
 0x19d   :  { %v6538_v23 = vadd.f32 %v678_v14, %v514_v62  ;;  %v322_v4 = vmul.f32 %v6274_v36, %v265_v54  ;;  %v516_v10 = vadd.f32 %v484_v48, %v320_v44  ;;  %v10971_v14 = vld [vmem:[#allocation15_spill] sm:$0xff] }
 0x19e   :  { %v757_v61 = vadd.f32 %v756_v5, %v755_v51  ;;  %v485_v5 = vmul.f32 %v6270_v9, %v6396_v37  ;;  %v6552_v35 = vadd.f32 %v679_v63, %v515_v3  ;;  %v681_v12 = vmul.f32 %v6288_v0, %v10971_v14 }
 0x19f   :  { %v764_v37 = vsel %vm720_vm0, %v6538_v23, 0.0  ;;  %v6556_v51 = vadd.f32 %v680_v33, %v516_v10  ;;  %v488_v33 = vmul.f32 %v6270_v9, %v6314_v28 }
 0x1a0   :  { %v6430_v22 = vpop.permute.xlu1 %433  ;;  %v759_v16 = vadd.f32 %v758_v8, %v757_v61  ;;  %v517_v8 = vadd.f32 %v485_v5, %v321_v20  ;;  %v766_v56 = vsel %vm720_vm0, %v6552_v35, 0.0  ;;  %v682_v61 = vmul.f32 %v6288_v0, %v10972_v59 }
 0x1a1   :  { %v486_v30 = vmul.f32 %v6270_v9, %v6430_v22  ;;  %v285_v22 = vpop.permute.xlu0 %284  ;;  %v768_v44 = vsel %vm720_vm0, %v6556_v51, 0.0 }
 0x1a2   :  { %v761_v40 = vadd.f32 %v760_v50, %v759_v16  ;;  %v6573_v48 = vadd.f32 %v681_v12, %v517_v8 }
 0x1a3   :  { %v518_v24 = vadd.f32 %v486_v30, %v322_v4 }
 0x1a4   :  { %v763_v21 = vadd.f32 %v762_v25, %v761_v40  ;;  %v770_v25 = vsel %vm720_vm0, %v6573_v48, 0.0 }
 0x1a5   :  { %v6450_v13 = vpop.permute.xlu1 %269  ;;  %v6575_v3 = vadd.f32 %v682_v61, %v518_v24  ;;  %v290_v30 = vpop.permute.xlu0 %289 }
 0x1a6   :  { %v765_v62 = vadd.f32 %v764_v37, %v763_v21  ;;  %v323_v63 = vmul.f32 %v6274_v36, %v6450_v13 }
 0x1a7   :  { %v772_v10 = vsel %vm720_vm0, %v6575_v3, 0.0 }
 0x1a9   :  { %v646_v8 = vpop.permute.xlu0 %645 }
 0x1aa   :  { %v6468_v53 = vpop.permute.xlu1 %437  ;;  %v686_v59 = vmul.f32 %v6288_v0, %v646_v8 }
 0x1ab   :  { %v487_v29 = vmul.f32 %v6270_v9, %v6468_v53  ;;  %v767_v53 = vadd.f32 %v766_v56, %v765_v62 }
 0x1ad   :  { %v519_v5 = vadd.f32 %v487_v29, %v323_v63  ;;  %v769_v13 = vadd.f32 %v768_v44, %v767_v53 }
 0x1af   :  { %v6492_v57 = vpop.permute.xlu1 %274  ;;  %v771_v21 = vadd.f32 %v770_v25, %v769_v13 }
 0x1b0   :  { %v324_v16 = vmul.f32 %v6274_v36, %v6492_v57  ;;  %v489_v57 = vmul.f32 %v6270_v9, %v6338_v42  ;;  %v326_v42 = vmul.f32 %v6274_v36, %v285_v22 }
 0x1b1   :  { %v773_v29 = vadd.f32 %v772_v10, %v771_v21 }
 0x1b4   :  { %v634_v49 = vpop.permute.xlu1 %633 }
 0x1b5   :  { %v683_v54 = vmul.f32 %v6288_v0, %v634_v49  ;;  %v520_v49 = vadd.f32 %v488_v33, %v324_v16  ;;  %v327_v16 = vmul.f32 %v6274_v36, %v290_v30  ;;  %v5589_v30 = vld [vmem:[#allocation4 + $0x10] sm:$0xff]  }
 0x1b7   :  { %v6583_v50 = vadd.f32 %v683_v54, %v519_v5 }
 0x1b9   :  { %v280_v43 = vpop.permute.xlu1 %279  ;;  %v774_v24 = vsel %vm720_vm0, %v6583_v50, 0.0 }
 0x1ba   :  { %v325_v20 = vmul.f32 %v6274_v36, %v280_v43  ;;  %v775_v62 = vadd.f32 %v774_v24, %v773_v29 }
 0x1bc   :  { %v521_v40 = vadd.f32 %v489_v57, %v325_v20 }
 0x1be   :  { %v638_v27 = vpop.permute.xlu1 %637 }
 0x1bf   :  { %v684_v4 = vmul.f32 %v6288_v0, %v638_v27 }
 0x1c1   :  { %v6589_v37 = vadd.f32 %v684_v4, %v520_v49  ;;  %v5588_v49 = vld [vmem:[#allocation4 + $0x18] sm:$0xff]  }
 0x1c2   :  { %5422 = vmatprep.subr.bf16.mxu0 %v5588_v49 }
 0x1c3   :  { %v450_v47 = vpop.permute.xlu1 %449  ;;  %v776_v14 = vsel %vm720_vm0, %v6589_v37, 0.0  ;;  %5423 = vmatpush3.bf16.msra.mxu0 %v5588_v49 }
 0x1c4   :  { %v490_v43 = vmul.f32 %v6270_v9, %v450_v47  ;;  %v777_v22 = vadd.f32 %v776_v14, %v775_v62  ;;  %5424 = vmatprep.subr.bf16.mxu0 %v5589_v30 }
 0x1c6   :  { %v522_v12 = vadd.f32 %v490_v43, %v326_v42  ;;  %v5591_v43 = vld [vmem:[#allocation4] sm:$0xff]  }
 0x1c7   :  { %5425 = vmatpush3.bf16.msra.mxu0 %v5589_v30 }
 0x1c8   :  { %v642_v28 = vpop.permute.xlu1 %641  ;;  %v6605_v54 = vadd.f32 %v686_v59, %v522_v12 }
 0x1c9   :  { %v685_v27 = vmul.f32 %v6288_v0, %v642_v28 }
 0x1ca   :  { %v780_v20 = vsel %vm720_vm0, %v6605_v54, 0.0 }
 0x1cb   :  { %v6596_v56 = vadd.f32 %v685_v27, %v521_v40 }
 0x1cd   :  { %v454_v61 = vpop.permute.xlu1 %453  ;;  %v778_v44 = vsel %vm720_vm0, %v6596_v56, 0.0 }
 0x1ce   :  { %v491_v63 = vmul.f32 %v6270_v9, %v454_v61  ;;  %v779_v47 = vadd.f32 %v778_v44, %v777_v22 }
 0x1d0   :  { %v523_v33 = vadd.f32 %v491_v63, %v327_v16  ;;  %v781_v13 = vadd.f32 %v780_v20, %v779_v47 }
 0x1d2   :  { %v650_v53 = vpop.permute.xlu1 %649 }
 0x1d3   :  { %v687_v5 = vmul.f32 %v6288_v0, %v650_v53  ;;  %v5590_v0 = vld [vmem:[#allocation4 + $0x8] sm:$0xff]  }
 0x1d4   :  { %5426 = vmatprep.subr.bf16.mxu0 %v5590_v0 }
 0x1d5   :  { %v6610_v4 = vadd.f32 %v687_v5, %v523_v33  ;;  %5427 = vmatpush3.bf16.msra.mxu0 %v5590_v0 }
 0x1d6   :  { %5428 = vmatprep.subr.bf16.mxu0 %v5591_v43 }
 0x1d7   :  { %v782_v57 = vsel %vm720_vm0, %v6610_v4, 0.0 }
 0x1d8   :  { %v783_v9 = vadd.f32 %v782_v57, %v781_v13 }
 0x1d9   :  { %5429 = vmatpush3.bf16.msra.mxu0 %v5591_v43 }
 0x1da   :  { %v784_v25 = vrot.slane %v783_v9, 4 }
 0x1dc   :  { %v785_v36 = vadd.f32 %v784_v25, %v783_v9 }
 0x1de   :  { %v786_v10 = vrot.slane %v785_v36, 2 }
 0x1e0   :  { %v787_v28 = vadd.f32 %v786_v10, %v785_v36 }
 0x1e2   :  { %v788_v40 = vrot.slane %v787_v28, 1 }
 0x1e4   :  { %v789_v27 = vadd.f32 %v788_v40, %v787_v28 }
 0x1e6   :  { %v6614_v21 = vmul.f32 0.00390625, %v789_v27 }
 0x1e8   :  { %v6618_v8 = vsub.f32 %v6309_v38, %v6614_v21  ;;  %v6622_v42 = vsub.f32 %v6316_v34, %v6614_v21  ;;  %v6626_v24 = vsub.f32 %v6324_v26, %v6614_v21  ;;  %v6630_v29 = vsub.f32 %v6336_v7, %v6614_v21 }
 0x1e9   :  { %v6638_v38 = vsub.f32 %v6342_v31, %v6614_v21  ;;  %v6644_v26 = vsub.f32 %v6360_v45, %v6614_v21  ;;  %v6652_v44 = vsub.f32 %v6364_v6, %v6614_v21  ;;  %v6659_v45 = vsub.f32 %v6383_v32, %v6614_v21 }
 0x1ea   :  { %v824_v14 = vmul.f32 %v6618_v8, %v6618_v8  ;;  %v825_v12 = vmul.f32 %v6622_v42, %v6622_v42  ;;  %v826_v34 = vmul.f32 %v6626_v24, %v6626_v24  ;;  %v827_v7 = vmul.f32 %v6630_v29, %v6630_v29 }
 0x1eb   :  { %v828_v31 = vmul.f32 %v6638_v38, %v6638_v38  ;;  %v829_v16 = vmul.f32 %v6644_v26, %v6644_v26  ;;  %v6666_v6 = vsub.f32 %v6404_v1, %v6614_v21  ;;  %v830_v33 = vmul.f32 %v6652_v44, %v6652_v44 }
 0x1ec   :  { %v856_v59 = vsel %vm720_vm0, %v824_v14, 0.0  ;;  %v857_v61 = vsel %vm720_vm0, %v825_v12, 0.0  ;;  %v859_v63 = vsel %vm720_vm0, %v826_v34, 0.0  ;;  %v861_v47 = vsel %vm720_vm0, %v827_v7, 0.0 }
 0x1ed   :  { %v858_v62 = vadd.f32 %v857_v61, %v856_v59  ;;  %v863_v5 = vsel %vm720_vm0, %v828_v31, 0.0  ;;  %v6673_v32 = vsub.f32 %v6406_v39, %v6614_v21  ;;  %v831_v13 = vmul.f32 %v6659_v45, %v6659_v45 }
 0x1ee   :  { %v865_v57 = vsel %vm720_vm0, %v829_v16, 0.0  ;;  %v6680_v1 = vsub.f32 %v6408_v58, %v6614_v21  ;;  %v832_v49 = vmul.f32 %v6666_v6, %v6666_v6  ;;  %v867_v25 = vsel %vm720_vm0, %v830_v33, 0.0 }
 0x1ef   :  { %v860_v22 = vadd.f32 %v859_v63, %v858_v62  ;;  %v6687_v39 = vsub.f32 %v6418_v41, %v6614_v21  ;;  %v833_v30 = vmul.f32 %v6673_v32, %v6673_v32  ;;  %v869_v10 = vsel %vm720_vm0, %v831_v13, 0.0 }
 0x1f0   :  { %v6694_v58 = vsub.f32 %v6440_v52, %v6614_v21  ;;  %v834_v0 = vmul.f32 %v6680_v1, %v6680_v1  ;;  %v871_v40 = vsel %vm720_vm0, %v832_v49, 0.0  ;;  %v6701_v41 = vsub.f32 %v6452_v60, %v6614_v21 }
 0x1f1   :  { %v862_v53 = vadd.f32 %v861_v47, %v860_v22  ;;  %v835_v27 = vmul.f32 %v6687_v39, %v6687_v39  ;;  %v873_v14 = vsel %vm720_vm0, %v833_v30, 0.0  ;;  %v6708_v52 = vsub.f32 %v6456_v11, %v6614_v21 }
 0x1f2   :  { %v836_v34 = vmul.f32 %v6694_v58, %v6694_v58  ;;  %v875_v7 = vsel %vm720_vm0, %v834_v0, 0.0  ;;  %v6715_v60 = vsub.f32 %v6480_v18, %v6614_v21  ;;  %v837_v61 = vmul.f32 %v6701_v41, %v6701_v41 }
 0x1f3   :  { %v864_v20 = vadd.f32 %v863_v5, %v862_v53  ;;  %v877_v62 = vsel %vm720_vm0, %v835_v27, 0.0  ;;  %v6722_v11 = vsub.f32 %v6482_v2, %v6614_v21  ;;  %v838_v63 = vmul.f32 %v6708_v52, %v6708_v52 }
 0x1f4   :  { %v879_v22 = vsel %vm720_vm0, %v836_v34, 0.0  ;;  %v6729_v18 = vsub.f32 %v6488_v55, %v6614_v21  ;;  %v839_v47 = vmul.f32 %v6715_v60, %v6715_v60  ;;  %v881_v53 = vsel %vm720_vm0, %v837_v61, 0.0 }
 0x1f5   :  { %v866_v9 = vadd.f32 %v865_v57, %v864_v20  ;;  %v6736_v2 = vsub.f32 %v6502_v19, %v6614_v21  ;;  %v840_v5 = vmul.f32 %v6722_v11, %v6722_v11  ;;  %v883_v20 = vsel %vm720_vm0, %v838_v63, 0.0 }
 0x1f6   :  { %v6743_v55 = vsub.f32 %v6508_v46, %v6614_v21  ;;  %v841_v57 = vmul.f32 %v6729_v18, %v6729_v18  ;;  %v6750_v19 = vsub.f32 %v6528_v17, %v6614_v21  ;;  %v6757_v46 = vsub.f32 %v6530_v15, %v6614_v21 }
 0x1f7   :  { %v868_v36 = vadd.f32 %v867_v25, %v866_v9  ;;  %v885_v9 = vsel %vm720_vm0, %v839_v47, 0.0  ;;  %v842_v25 = vmul.f32 %v6736_v2, %v6736_v2  ;;  %v6764_v17 = vsub.f32 %v6538_v23, %v6614_v21 }
 0x1f8   :  { %v6771_v15 = vsub.f32 %v6552_v35, %v6614_v21  ;;  %v6778_v23 = vsub.f32 %v6556_v51, %v6614_v21  ;;  %v6785_v35 = vsub.f32 %v6573_v48, %v6614_v21  ;;  %v6792_v51 = vsub.f32 %v6575_v3, %v6614_v21 }
 0x1f9   :  { %v870_v28 = vadd.f32 %v869_v10, %v868_v36  ;;  %v887_v36 = vsel %vm720_vm0, %v840_v5, 0.0  ;;  %v843_v10 = vmul.f32 %v6743_v55, %v6743_v55  ;;  %v6799_v48 = vsub.f32 %v6583_v50, %v6614_v21 }
 0x1fa   :  { %v6806_v3 = vsub.f32 %v6589_v37, %v6614_v21  ;;  %v6813_v50 = vsub.f32 %v6596_v56, %v6614_v21  ;;  %v6820_v37 = vsub.f32 %v6605_v54, %v6614_v21  ;;  %v6827_v56 = vsub.f32 %v6610_v4, %v6614_v21 }
 0x1fb   :  { %v872_v43 = vadd.f32 %v871_v40, %v870_v28  ;;  %v889_v28 = vsel %vm720_vm0, %v841_v57, 0.0  ;;  %v844_v40 = vmul.f32 %v6750_v19, %v6750_v19 }
 0x1fc   :  { %v854_v54 = vmul.f32 %v6820_v37, %v6820_v37 }
 0x1fd   :  { %v874_v12 = vadd.f32 %v873_v14, %v872_v43  ;;  %v891_v43 = vsel %vm720_vm0, %v842_v25, 0.0  ;;  %v845_v14 = vmul.f32 %v6757_v46, %v6757_v46 }
 0x1fe   :  { %v915_v4 = vsel %vm720_vm0, %v854_v54, 0.0 }
 0x1ff   :  { %v876_v59 = vadd.f32 %v875_v7, %v874_v12  ;;  %v893_v12 = vsel %vm720_vm0, %v843_v10, 0.0  ;;  %v846_v7 = vmul.f32 %v6764_v17, %v6764_v17 }
 0x201   :  { %v878_v31 = vadd.f32 %v877_v62, %v876_v59  ;;  %v895_v59 = vsel %vm720_vm0, %v844_v40, 0.0  ;;  %v847_v62 = vmul.f32 %v6771_v15, %v6771_v15 }
 0x203   :  { %v880_v16 = vadd.f32 %v879_v22, %v878_v31  ;;  %v897_v31 = vsel %vm720_vm0, %v845_v14, 0.0  ;;  %v848_v22 = vmul.f32 %v6778_v23, %v6778_v23  ;;  %v855_v14 = vmul.f32 %v6827_v56, %v6827_v56 }
 0x205   :  { %v882_v33 = vadd.f32 %v881_v53, %v880_v16  ;;  %v899_v16 = vsel %vm720_vm0, %v846_v7, 0.0  ;;  %v849_v53 = vmul.f32 %v6785_v35, %v6785_v35  ;;  %v917_v7 = vsel %vm720_vm0, %v855_v14, 0.0 }
 0x207   :  { %v884_v13 = vadd.f32 %v883_v20, %v882_v33  ;;  %v901_v33 = vsel %vm720_vm0, %v847_v62, 0.0  ;;  %v850_v20 = vmul.f32 %v6792_v51, %v6792_v51 }
 0x209   :  { %v886_v49 = vadd.f32 %v885_v9, %v884_v13  ;;  %v903_v13 = vsel %vm720_vm0, %v848_v22, 0.0  ;;  %v851_v9 = vmul.f32 %v6799_v48, %v6799_v48 }
 0x20b   :  { %v888_v30 = vadd.f32 %v887_v36, %v886_v49  ;;  %v905_v49 = vsel %vm720_vm0, %v849_v53, 0.0  ;;  %v852_v36 = vmul.f32 %v6806_v3, %v6806_v3 }
 0x20d   :  { %v890_v0 = vadd.f32 %v889_v28, %v888_v30  ;;  %v907_v30 = vsel %vm720_vm0, %v850_v20, 0.0  ;;  %v853_v28 = vmul.f32 %v6813_v50, %v6813_v50 }
 0x20f   :  { %v892_v27 = vadd.f32 %v891_v43, %v890_v0  ;;  %v909_v0 = vsel %vm720_vm0, %v851_v9, 0.0  ;;  %v911_v43 = vsel %vm720_vm0, %v852_v36, 0.0 }
 0x211   :  { %v894_v34 = vadd.f32 %v893_v12, %v892_v27  ;;  %v913_v12 = vsel %vm720_vm0, %v853_v28, 0.0 }
 0x213   :  { %v896_v61 = vadd.f32 %v895_v59, %v894_v34 }
 0x215   :  { %v898_v63 = vadd.f32 %v897_v31, %v896_v61 }
 0x217   :  { %v900_v47 = vadd.f32 %v899_v16, %v898_v63 }
 0x219   :  { %v902_v5 = vadd.f32 %v901_v33, %v900_v47 }
 0x21b   :  { %v904_v57 = vadd.f32 %v903_v13, %v902_v5  ;;  %v10973_v5 = vld [vmem:[#allocation21_spill] sm:$0xff]  ;;  %v10975_v13 = vld [vmem:[#allocation26_spill] sm:$0xff] }
 0x21c   :  { %v6841_v20 = vsub.s32 3, %v10973_v5 }
 0x21d   :  { %v906_v25 = vadd.f32 %v905_v49, %v904_v57  ;;  %v6847_v49 = vld [vmem:[#allocation2 + $0x10] sm:$0xff] }
 0x21e   :  { %10974 = vst [vmem:[#allocation17_spill] sm:$0xff] %v6841_v20 }
 0x21f   :  { %v908_v10 = vadd.f32 %v907_v30, %v906_v25  ;;  %v10976_v25 = vld [vmem:[#allocation24_spill] sm:$0xff] }
 0x220   :  { %v6851_v36 = vrot.slane %v6847_v49, %v10976_v25 }
 0x221   :  { %v910_v40 = vadd.f32 %v909_v0, %v908_v10 }
 0x223   :  { %v912_v27 = vadd.f32 %v911_v43, %v910_v40 }
 0x225   :  { %v914_v34 = vadd.f32 %v913_v12, %v912_v27 }
 0x227   :  { %v916_v21 = vadd.f32 %v915_v4, %v914_v34 }
 0x229   :  { %v918_v59 = vadd.f32 %v917_v7, %v916_v21 }
 0x22b   :  { %v919_v61 = vrot.slane %v918_v59, 4 }
 0x22d   :  { %v920_v62 = vadd.f32 %v919_v61, %v918_v59 }
 0x22f   :  { %v921_v31 = vrot.slane %v920_v62, 2 }
 0x231   :  { %v922_v63 = vadd.f32 %v921_v31, %v920_v62 }
 0x233   :  { %v923_v22 = vrot.slane %v922_v63, 1 }
 0x235   :  { %v924_v16 = vadd.f32 %v923_v22, %v922_v63 }
 0x237   :  { %v925_v47 = vmul.f32 0.00390625, %v924_v16 }
 0x239   :  { %v926_v53 = vadd.f32 1e-05, %v925_v47 }
 0x23b   :  { %5688 = vrsqrt.f32 %v926_v53 }
 0x248   :  { %v5689_v33 = vpop.eup %5688 }
 0x249   :  { %v928_v57 = vmul.f32 %v5689_v33, %v10975_v13 }
 0x24b   :  { %v6845_v9 = vrot.slane %v928_v57, %v6841_v20 }
 0x24d   :  { %v935_v30 = vmul.f32 %v6845_v9, %v6626_v24  ;;  %v936_v10 = vmul.f32 %v6845_v9, %v6630_v29  ;;  %v937_v28 = vmul.f32 %v6845_v9, %v6638_v38  ;;  %v938_v0 = vmul.f32 %v6845_v9, %v6644_v26 }
 0x24e   :  { %v933_v54 = vmul.f32 %v6845_v9, %v6618_v8  ;;  %v934_v43 = vmul.f32 %v6845_v9, %v6622_v42  ;;  %v939_v34 = vmul.f32 %v6845_v9, %v6652_v44  ;;  %v940_v8 = vmul.f32 %v6845_v9, %v6659_v45 }
 0x24f   :  { %v971_v40 = vadd.f32 %v6851_v36, %v935_v30  ;;  %v972_v27 = vadd.f32 %v6851_v36, %v936_v10  ;;  %v973_v14 = vadd.f32 %v6851_v36, %v937_v28  ;;  %v974_v29 = vadd.f32 %v6851_v36, %v938_v0 }
 0x250   :  { %v969_v38 = vadd.f32 %v6851_v36, %v933_v54  ;;  %v970_v12 = vadd.f32 %v6851_v36, %v934_v43  ;;  %v941_v42 = vmul.f32 %v6845_v9, %v6666_v6  ;;  %v942_v4 = vmul.f32 %v6845_v9, %v6673_v32 }
 0x251   :  { %v1003_v24 = vmax.f32 %v971_v40, 0.0  ;;  %v1004_v26 = vmax.f32 %v972_v27, 0.0  ;;  %v1005_v59 = vmax.f32 %v973_v14, 0.0  ;;  %v1006_v61 = vmax.f32 %v974_v29, 0.0 }
 0x252   :  { %v1001_v21 = vmax.f32 %v969_v38, 0.0  ;;  %v1002_v7 = vmax.f32 %v970_v12, 0.0  ;;  %v976_v63 = vadd.f32 %v6851_v36, %v940_v8  ;;  %v975_v22 = vadd.f32 %v6851_v36, %v939_v34 }
 0x253   :  { %v1034_v62 = vpack.c.bf16 %v1004_v26, %v1003_v24  ;;  %v977_v44 = vadd.f32 %v6851_v36, %v941_v42  ;;  %v978_v45 = vadd.f32 %v6851_v36, %v942_v4  ;;  %v1035_v6 = vpack.c.bf16 %v1006_v61, %v1005_v59 }
 0x254   :  { %v1033_v31 = vpack.c.bf16 %v1002_v7, %v1001_v21  ;;  %v943_v32 = vmul.f32 %v6845_v9, %v6680_v1  ;;  %v944_v16 = vmul.f32 %v6845_v9, %v6687_v39  ;;  %v1007_v47 = vmax.f32 %v975_v22, 0.0 }
 0x255   :  { %v1008_v53 = vmax.f32 %v976_v63, 0.0  ;;  %v945_v33 = vmul.f32 %v6845_v9, %v6694_v58  ;;  %v946_v13 = vmul.f32 %v6845_v9, %v6701_v41  ;;  %v1009_v57 = vmax.f32 %v977_v44, 0.0 }
 0x256   :  { %5430 = vmatprep.mubr.msk.bf16.mxu0 %vm720_vm0, %v1033_v31  ;;  %v1010_v30 = vmax.f32 %v978_v45, 0.0  ;;  %v979_v28 = vadd.f32 %v6851_v36, %v943_v32  ;;  %v980_v0 = vadd.f32 %v6851_v36, %v944_v16  ;;  %v947_v58 = vmul.f32 %v6845_v9, %v6708_v52 }
 0x257   :  { %5431 = vmatmul.mubr.msk.bf16.vlgmr.msra.gmra.mxu0 %vm720_vm0, %v1034_v62  ;;  %v1036_v10 = vpack.c.bf16 %v1008_v53, %v1007_v47  ;;  %v981_v1 = vadd.f32 %v6851_v36, %v945_v33  ;;  %v982_v40 = vadd.f32 %v6851_v36, %v946_v13  ;;  %v948_v41 = vmul.f32 %v6845_v9, %v6715_v60 }
 0x258   :  { %5434 = vmatprep.mubr.msk.bf16.mxu0 %vm720_vm0, %v1035_v6  ;;  %v1037_v39 = vpack.c.bf16 %v1010_v30, %v1009_v57  ;;  %v1011_v54 = vmax.f32 %v979_v28, 0.0  ;;  %v1012_v43 = vmax.f32 %v980_v0, 0.0  ;;  %v949_v27 = vmul.f32 %v6845_v9, %v6722_v11 }
 0x259   :  { %v950_v24 = vmul.f32 %v6845_v9, %v6729_v18  ;;  %v1013_v14 = vmax.f32 %v981_v1, 0.0  ;;  %v1014_v29 = vmax.f32 %v982_v40, 0.0  ;;  %v983_v38 = vadd.f32 %v6851_v36, %v947_v58 }
 0x25a   :  { %v1038_v12 = vpack.c.bf16 %v1012_v43, %v1011_v54  ;;  %v984_v26 = vadd.f32 %v6851_v36, %v948_v41  ;;  %v985_v60 = vadd.f32 %v6851_v36, %v949_v27  ;;  %v951_v11 = vmul.f32 %v6845_v9, %v6736_v2 }
 0x25b   :  { %v986_v52 = vadd.f32 %v6851_v36, %v950_v24  ;;  %v1039_v34 = vpack.c.bf16 %v1014_v29, %v1013_v14  ;;  %v952_v18 = vmul.f32 %v6845_v9, %v6743_v55  ;;  %v1015_v8 = vmax.f32 %v983_v38, 0.0 }
 0x25c   :  { %v1016_v42 = vmax.f32 %v984_v26, 0.0  ;;  %v953_v4 = vmul.f32 %v6845_v9, %v6750_v19  ;;  %v954_v21 = vmul.f32 %v6845_v9, %v6757_v46  ;;  %v1017_v7 = vmax.f32 %v985_v60, 0.0 }
 0x25d   :  { %v1018_v59 = vmax.f32 %v986_v52, 0.0  ;;  %v987_v61 = vadd.f32 %v6851_v36, %v951_v11  ;;  %v988_v62 = vadd.f32 %v6851_v36, %v952_v18  ;;  %v955_v19 = vmul.f32 %v6845_v9, %v6764_v17 }
 0x25e   :  { %v1040_v31 = vpack.c.bf16 %v1016_v42, %v1015_v8  ;;  %v989_v2 = vadd.f32 %v6851_v36, %v953_v4  ;;  %v990_v55 = vadd.f32 %v6851_v36, %v954_v21  ;;  %v956_v46 = vmul.f32 %v6845_v9, %v6771_v15 }
 0x25f   :  { %5435 = vmatmul.mubr.msk.bf16.gmra.mxu0 %vm720_vm0, %v1036_v10  ;;  %v1041_v63 = vpack.c.bf16 %v1018_v59, %v1017_v7  ;;  %v1019_v22 = vmax.f32 %v987_v61, 0.0  ;;  %v1020_v44 = vmax.f32 %v988_v62, 0.0  ;;  %v957_v45 = vmul.f32 %v6845_v9, %v6778_v23 }
 0x260   :  { %5438 = vmatprep.mubr.msk.bf16.mxu0 %vm720_vm0, %v1037_v39  ;;  %v958_v6 = vmul.f32 %v6845_v9, %v6785_v35  ;;  %v1021_v32 = vmax.f32 %v989_v2, 0.0  ;;  %v1022_v16 = vmax.f32 %v990_v55, 0.0  ;;  %v991_v47 = vadd.f32 %v6851_v36, %v955_v19 }
 0x261   :  { %v992_v53 = vadd.f32 %v6851_v36, %v956_v46  ;;  %v1042_v33 = vpack.c.bf16 %v1020_v44, %v1019_v22  ;;  %v993_v17 = vadd.f32 %v6851_v36, %v957_v45  ;;  %v959_v23 = vmul.f32 %v6845_v9, %v6792_v51 }
 0x262   :  { %v1043_v13 = vpack.c.bf16 %v1022_v16, %v1021_v32  ;;  %v994_v15 = vadd.f32 %v6851_v36, %v958_v6  ;;  %v960_v35 = vmul.f32 %v6845_v9, %v6799_v48  ;;  %v1023_v57 = vmax.f32 %v991_v47, 0.0 }
 0x263   :  { %v1024_v30 = vmax.f32 %v992_v53, 0.0  ;;  %v961_v10 = vmul.f32 %v6845_v9, %v6806_v3  ;;  %v962_v28 = vmul.f32 %v6845_v9, %v6813_v50  ;;  %v1025_v0 = vmax.f32 %v993_v17, 0.0 }
 0x264   :  { %v1026_v1 = vmax.f32 %v994_v15, 0.0  ;;  %v996_v40 = vadd.f32 %v6851_v36, %v960_v35  ;;  %v995_v58 = vadd.f32 %v6851_v36, %v959_v23  ;;  %v964_v3 = vmul.f32 %v6845_v9, %v6827_v56 }
 0x265   :  { %v1044_v39 = vpack.c.bf16 %v1024_v30, %v1023_v57  ;;  %v997_v51 = vadd.f32 %v6851_v36, %v961_v10  ;;  %v998_v41 = vadd.f32 %v6851_v36, %v962_v28  ;;  %v963_v50 = vmul.f32 %v6845_v9, %v6820_v37 }
 0x266   :  { %v1045_v48 = vpack.c.bf16 %v1026_v1, %v1025_v0  ;;  %v1027_v54 = vmax.f32 %v995_v58, 0.0  ;;  %v1028_v43 = vmax.f32 %v996_v40, 0.0  ;;  %v1000_v14 = vadd.f32 %v6851_v36, %v964_v3 }
 0x267   :  { %5439 = vmatmul.mubr.msk.bf16.gmra.mxu0 %vm720_vm0, %v1038_v12  ;;  %v1029_v27 = vmax.f32 %v997_v51, 0.0  ;;  %v1030_v24 = vmax.f32 %v998_v41, 0.0  ;;  %v999_v29 = vadd.f32 %v6851_v36, %v963_v50 }
 0x268   :  { %5442 = vmatprep.mubr.msk.bf16.mxu0 %vm720_vm0, %v1039_v34  ;;  %v1046_v38 = vpack.c.bf16 %v1028_v43, %v1027_v54  ;;  %v1032_v52 = vmax.f32 %v1000_v14, 0.0  ;;  %v5594_v14 = vld [vmem:[#allocation6 + $0x70] ss:$8 sps:$4 sm:$0xff]  }
 0x269   :  { %v1047_v12 = vpack.c.bf16 %v1030_v24, %v1029_v27  ;;  %v1031_v26 = vmax.f32 %v999_v29, 0.0  ;;  %v5592_v27 = vld [vmem:[#allocation6 + $0x74] ss:$8 sps:$4 sm:$0xff]  }
 0x26a   :  { %1649 = vmatprep.subr.bf16.mxu1 %v5592_v27 }
 0x26b   :  { %v1048_v56 = vpack.c.bf16 %v1032_v52, %v1031_v26  ;;  %1650 = vmatpush1.bf16.msra.mxu1 %v5594_v14  ;;  %v5595_v26 = vld [vmem:[#allocation6 + $0x64] ss:$8 sps:$4 sm:$0xff]  }
 0x26c   :  { %1651 = vmatprep.subr.bf16.mxu1 %v5595_v26 }
 0x26f   :  { %5443 = vmatmul.mubr.msk.bf16.gmra.mxu0 %vm720_vm0, %v1040_v31 }
 0x270   :  { %5446 = vmatprep.mubr.msk.bf16.mxu0 %vm720_vm0, %v1041_v63 }
 0x277   :  { %5447 = vmatmul.mubr.msk.bf16.gmra.mxu0 %vm720_vm0, %v1042_v33 }
 0x278   :  { %5450 = vmatprep.mubr.msk.bf16.mxu0 %vm720_vm0, %v1043_v13 }
 0x27f   :  { %5451 = vmatmul.mubr.msk.bf16.gmra.mxu0 %vm720_vm0, %v1044_v39 }
 0x280   :  { %5454 = vmatprep.mubr.msk.bf16.mxu0 %vm720_vm0, %v1045_v48 }
 0x287   :  { %5455 = vmatmul.mubr.msk.bf16.gmra.mxu0 %vm720_vm0, %v1046_v38 }
 0x288   :  { %5458 = vmatprep.mubr.msk.bf16.mxu0 %vm720_vm0, %v1047_v12 }
 0x28f   :  { %5459 = vmatmul.mubr.msk.bf16.gmra.mxu0 %vm720_vm0, %v1048_v56  ;;  %v5597_v56 = vld [vmem:[#allocation6 + $0x60] ss:$8 sps:$4 sm:$0xff]  }
 0x290   :  { %1652 = vmatpush1.bf16.msra.mxu1 %v5597_v56 }
 0x317   :  { %v6965_v37 = vpop.f32.mrf.mxu0 }
 0x319   :  { %v6967_v9 = vpop.f32.mrf.mxu0 }
 0x31b   :  { %v6969_v34 = vpop.f32.mrf.mxu0 }
 0x31d   :  { %v6971_v60 = vpop.f32.mrf.mxu0 }
 0x31e   :  { %v1290_v36 = vadd.f32 %v6971_v60, %v6967_v9 }
 0x31f   :  { %v6975_v11 = vpop.f32.mrf.mxu0 }
 0x320   :  { %v1291_v18 = vadd.f32 %v6965_v37, %v1290_v36 }
 0x321   :  { %v6978_v8 = vpop.f32.mrf.mxu0 }
 0x322   :  { %v1292_v42 = vadd.f32 %v6969_v34, %v1291_v18 }
 0x323   :  { %v6981_v4 = vpop.f32.mrf.mxu0 }
 0x324   :  { %v1293_v21 = vadd.f32 %v1292_v42, %v6978_v8 }
 0x325   :  { %v6984_v7 = vpop.f32.mrf.mxu0 }
 0x326   :  { %v1294_v59 = vadd.f32 %v1293_v21, %v6984_v7  ;;  %v5598_v21 = vld [vmem:[#allocation6 + $0x54] ss:$8 sps:$4 sm:$0xff]  }
 0x327   :  { %v6987_v61 = vpop.f32.mrf.mxu0  ;;  %1653 = vmatprep.subr.bf16.mxu1 %v5598_v21 }
 0x328   :  { %v1295_v62 = vadd.f32 %v6975_v11, %v1294_v59 }
 0x329   :  { %v6990_v31 = vpop.f32.mrf.mxu0 }
 0x32a   :  { %v1296_v63 = vadd.f32 %v6981_v4, %v1295_v62  ;;  %v5600_v62 = vld [vmem:[#allocation6 + $0x50] ss:$8 sps:$4 sm:$0xff]  }
 0x32b   :  { %v6993_v2 = vpop.f32.mrf.mxu0  ;;  %1654 = vmatpush1.bf16.msra.mxu1 %v5600_v62 }
 0x32c   :  { %v1297_v55 = vadd.f32 %v1296_v63, %v6990_v31 }
 0x32d   :  { %v6996_v19 = vpop.f32.mrf.mxu0 }
 0x32e   :  { %v1298_v46 = vadd.f32 %v1297_v55, %v6996_v19 }
 0x32f   :  { %v6999_v22 = vpop.f32.mrf.mxu0 }
 0x330   :  { %v1299_v44 = vadd.f32 %v6987_v61, %v1298_v46  ;;  %v5601_v46 = vld [vmem:[#allocation6 + $0x44] ss:$8 sps:$4 sm:$0xff]  }
 0x331   :  { %v7002_v45 = vpop.f32.mrf.mxu0  ;;  %1655 = vmatprep.subr.bf16.mxu1 %v5601_v46 }
 0x332   :  { %v1300_v6 = vadd.f32 %v6993_v2, %v1299_v44  ;;  %v5603_v44 = vld [vmem:[#allocation6 + $0x40] ss:$8 sps:$4 sm:$0xff]  }
 0x333   :  { %v7005_v32 = vpop.f32.mrf.mxu0  ;;  %1656 = vmatpush1.bf16.msra.mxu1 %v5603_v44 }
 0x334   :  { %v1301_v16 = vadd.f32 %v1300_v6, %v7002_v45 }
 0x335   :  { %v7008_v47 = vpop.f32.mrf.mxu0 }
 0x336   :  { %v1302_v53 = vadd.f32 %v1301_v16, %v7008_v47 }
 0x337   :  { %v7011_v33 = vpop.f32.mrf.mxu0 }
 0x338   :  { %v1303_v17 = vadd.f32 %v6999_v22, %v1302_v53  ;;  %v5604_v53 = vld [vmem:[#allocation6 + $0x34] ss:$8 sps:$4 sm:$0xff]  }
 0x339   :  { %v7014_v13 = vpop.f32.mrf.mxu0  ;;  %1657 = vmatprep.subr.bf16.mxu1 %v5604_v53 }
 0x33a   :  { %v1304_v15 = vadd.f32 %v7005_v32, %v1303_v17  ;;  %v5606_v17 = vld [vmem:[#allocation6 + $0x30] ss:$8 sps:$4 sm:$0xff]  }
 0x33b   :  { %v7017_v23 = vpop.f32.mrf.mxu0  ;;  %1658 = vmatpush1.bf16.msra.mxu1 %v5606_v17 }
 0x33c   :  { %v1305_v35 = vadd.f32 %v1304_v15, %v7014_v13 }
 0x33d   :  { %v7020_v57 = vpop.f32.mrf.mxu0 }
 0x33e   :  { %v1306_v30 = vadd.f32 %v1305_v35, %v7020_v57 }
 0x33f   :  { %v7023_v10 = vpop.f32.mrf.mxu0 }
 0x340   :  { %v1307_v28 = vadd.f32 %v7011_v33, %v1306_v30  ;;  %v5607_v30 = vld [vmem:[#allocation6 + $0x24] ss:$8 sps:$4 sm:$0xff]  }
 0x341   :  { %v7026_v0 = vpop.f32.mrf.mxu0  ;;  %1659 = vmatprep.subr.bf16.mxu1 %v5607_v30 }
 0x342   :  { %v1308_v1 = vadd.f32 %v7017_v23, %v1307_v28  ;;  %v5609_v28 = vld [vmem:[#allocation6 + $0x20] ss:$8 sps:$4 sm:$0xff]  }
 0x343   :  { %v7029_v40 = vpop.f32.mrf.mxu0  ;;  %1660 = vmatpush1.bf16.msra.mxu1 %v5609_v28 }
 0x344   :  { %v1309_v39 = vadd.f32 %v1308_v1, %v7026_v0 }
 0x345   :  { %v7032_v58 = vpop.f32.mrf.mxu0 }
 0x346   :  { %v1310_v51 = vadd.f32 %v1309_v39, %v7032_v58  ;;  %v5610_v39 = vld [vmem:[#allocation6 + $0x14] ss:$8 sps:$4 sm:$0xff]  }
 0x347   :  { %v7035_v41 = vpop.f32.mrf.mxu0  ;;  %1661 = vmatprep.subr.bf16.mxu1 %v5610_v39 }
 0x348   :  { %v1311_v48 = vadd.f32 %v7023_v10, %v1310_v51  ;;  %v5612_v51 = vld [vmem:[#allocation6 + $0x10] ss:$8 sps:$4 sm:$0xff]  }
 0x349   :  { %v7038_v3 = vpop.f32.mrf.mxu0  ;;  %1662 = vmatpush1.bf16.msra.mxu1 %v5612_v51 }
 0x34a   :  { %v1312_v50 = vadd.f32 %v7029_v40, %v1311_v48 }
 0x34b   :  { %v7041_v54 = vpop.f32.mrf.mxu0 }
 0x34c   :  { %v1313_v43 = vadd.f32 %v1312_v50, %v7038_v3  ;;  %v5613_v50 = vld [vmem:[#allocation6 + $0x4] ss:$8 sps:$4 sm:$0xff]  }
 0x34d   :  { %v7044_v24 = vpop.f32.mrf.mxu0  ;;  %1663 = vmatprep.subr.bf16.mxu1 %v5613_v50 }
 0x34e   :  { %v1314_v29 = vadd.f32 %v1313_v43, %v7044_v24  ;;  %v5615_v43 = vld [vmem:[#allocation6] ss:$8 sps:$4 sm:$0xff]  }
 0x34f   :  { %v7047_v38 = vpop.f32.mrf.mxu0  ;;  %1664 = vmatpush1.bf16.msra.mxu1 %v5615_v43 }
 0x350   :  { %v1315_v12 = vadd.f32 %v7035_v41, %v1314_v29 }
 0x351   :  { %v7050_v52 = vpop.f32.mrf.mxu0 }
 0x352   :  { %v1316_v36 = vadd.f32 %v7041_v54, %v1315_v12 }
 0x353   :  { %v7053_v18 = vpop.f32.mrf.mxu0 }
 0x354   :  { %v1317_v42 = vadd.f32 %v1316_v36, %v7050_v52 }
 0x355   :  { %v7056_v59 = vpop.f32.mrf.mxu0 }
 0x356   :  { %v1318_v63 = vadd.f32 %v1317_v42, %v7056_v59 }
 0x358   :  { %v1319_v55 = vadd.f32 %v7047_v38, %v1318_v63 }
 0x35a   :  { %v1320_v6 = vadd.f32 %v7053_v18, %v1319_v55 }
 0x35c   :  { %v1321_v16 = vrot.slane %v1320_v6, 4 }
 0x35e   :  { %v1322_v15 = vadd.f32 %v1321_v16, %v1320_v6 }
 0x360   :  { %v1323_v35 = vrot.slane %v1322_v15, 2 }
 0x362   :  { %v1324_v1 = vadd.f32 %v1323_v35, %v1322_v15 }
 0x364   :  { %v1325_v48 = vrot.slane %v1324_v1, 1 }
 0x366   :  { %v1326_v27 = vadd.f32 %v1325_v48, %v1324_v1 }
 0x368   :  { %v7061_v14 = vmul.f32 0.00390625, %v1326_v27 }
 0x36a   :  { %v7065_v29 = vsub.f32 %v6967_v9, %v7061_v14  ;;  %v7069_v12 = vsub.f32 %v6971_v60, %v7061_v14  ;;  %v7073_v26 = vsub.f32 %v6965_v37, %v7061_v14  ;;  %v7081_v42 = vsub.f32 %v6969_v34, %v7061_v14 }
 0x36b   :  { %v7085_v9 = vsub.f32 %v6978_v8, %v7061_v14  ;;  %v7091_v37 = vsub.f32 %v6984_v7, %v7061_v14  ;;  %v7097_v34 = vsub.f32 %v6975_v11, %v7061_v14  ;;  %v7103_v46 = vsub.f32 %v6981_v4, %v7061_v14 }
 0x36c   :  { %v1360_v56 = vmul.f32 %v7065_v29, %v7065_v29  ;;  %v1361_v36 = vmul.f32 %v7069_v12, %v7069_v12  ;;  %v1362_v60 = vmul.f32 %v7073_v26, %v7073_v26  ;;  %v1363_v62 = vmul.f32 %v7081_v42, %v7081_v42 }
 0x36d   :  { %v1364_v8 = vmul.f32 %v7085_v9, %v7085_v9  ;;  %v1365_v7 = vmul.f32 %v7091_v37, %v7091_v37  ;;  %v7109_v6 = vsub.f32 %v6990_v31, %v7061_v14  ;;  %v1366_v11 = vmul.f32 %v7097_v34, %v7097_v34 }
 0x36e   :  { %v1392_v21 = vadd.f32 %v1361_v36, %v1360_v56  ;;  %v7115_v53 = vsub.f32 %v6996_v19, %v7061_v14  ;;  %v1367_v4 = vmul.f32 %v7103_v46, %v7103_v46  ;;  %v7121_v15 = vsub.f32 %v6987_v61, %v7061_v14 }
 0x36f   :  { %v1368_v31 = vmul.f32 %v7109_v6, %v7109_v6  ;;  %v7127_v30 = vsub.f32 %v6993_v2, %v7061_v14  ;;  %v7133_v1 = vsub.f32 %v7002_v45, %v7061_v14  ;;  %v7139_v51 = vsub.f32 %v7008_v47, %v7061_v14 }
 0x370   :  { %v1393_v63 = vadd.f32 %v1392_v21, %v1362_v60  ;;  %v1369_v19 = vmul.f32 %v7115_v53, %v7115_v53  ;;  %v1370_v61 = vmul.f32 %v7121_v15, %v7121_v15  ;;  %v7145_v50 = vsub.f32 %v6999_v22, %v7061_v14 }
 0x371   :  { %v1371_v2 = vmul.f32 %v7127_v30, %v7127_v30  ;;  %v1372_v45 = vmul.f32 %v7133_v1, %v7133_v1  ;;  %v7151_v27 = vsub.f32 %v7005_v32, %v7061_v14  ;;  %v1373_v47 = vmul.f32 %v7139_v51, %v7139_v51 }
 0x372   :  { %v1394_v55 = vadd.f32 %v1393_v63, %v1363_v62  ;;  %v7157_v36 = vsub.f32 %v7014_v13, %v7061_v14  ;;  %v1374_v22 = vmul.f32 %v7145_v50, %v7145_v50  ;;  %v7163_v21 = vsub.f32 %v7020_v57, %v7061_v14 }
 0x373   :  { %v1375_v32 = vmul.f32 %v7151_v27, %v7151_v27  ;;  %v7169_v63 = vsub.f32 %v7011_v33, %v7061_v14 }
 0x374   :  { %v1395_v44 = vadd.f32 %v1394_v55, %v1364_v8  ;;  %v1376_v13 = vmul.f32 %v7157_v36, %v7157_v36  ;;  %v7175_v55 = vsub.f32 %v7017_v23, %v7061_v14  ;;  %v1377_v57 = vmul.f32 %v7163_v21, %v7163_v21 }
 0x375   :  { %v1378_v33 = vmul.f32 %v7169_v63, %v7169_v63 }
 0x376   :  { %v1396_v16 = vadd.f32 %v1395_v44, %v1365_v7  ;;  %v7181_v44 = vsub.f32 %v7026_v0, %v7061_v14  ;;  %v1379_v23 = vmul.f32 %v7175_v55, %v7175_v55 }
 0x378   :  { %v1397_v17 = vadd.f32 %v1396_v16, %v1366_v11  ;;  %v7187_v16 = vsub.f32 %v7032_v58, %v7061_v14  ;;  %v1352_v58 = vsub.f32 %v7038_v3, %v7061_v14  ;;  %v1356_v3 = vsub.f32 %v7050_v52, %v7061_v14 }
 0x37a   :  { %v1398_v35 = vadd.f32 %v1397_v17, %v1367_v4  ;;  %v1350_v17 = vsub.f32 %v7023_v10, %v7061_v14 }
 0x37c   :  { %v1399_v28 = vadd.f32 %v1398_v35, %v1368_v31  ;;  %v1380_v31 = vmul.f32 %v7181_v44, %v7181_v44  ;;  %v1351_v35 = vsub.f32 %v7029_v40, %v7061_v14  ;;  %v1355_v40 = vsub.f32 %v7041_v54, %v7061_v14 }
 0x37d   :  { %v1359_v54 = vsub.f32 %v7053_v18, %v7061_v14 }
 0x37e   :  { %v1400_v39 = vadd.f32 %v1399_v28, %v1369_v19  ;;  %v1381_v19 = vmul.f32 %v7187_v16, %v7187_v16  ;;  %v1383_v10 = vmul.f32 %v1351_v35, %v1351_v35 }
 0x37f   :  { %v1391_v52 = vmul.f32 %v1359_v54, %v1359_v54 }
 0x380   :  { %v1401_v48 = vadd.f32 %v1400_v39, %v1370_v61  ;;  %v1382_v61 = vmul.f32 %v1350_v17, %v1350_v17 }
 0x382   :  { %v1402_v43 = vadd.f32 %v1401_v48, %v1371_v2  ;;  %v1353_v2 = vsub.f32 %v7044_v24, %v7061_v14  ;;  %v1357_v24 = vsub.f32 %v7056_v59, %v7061_v14 }
 0x384   :  { %v1403_v56 = vadd.f32 %v1402_v43, %v1372_v45  ;;  %v1354_v45 = vsub.f32 %v7035_v41, %v7061_v14  ;;  %v1384_v43 = vmul.f32 %v1352_v58, %v1352_v58  ;;  %v1358_v41 = vsub.f32 %v7047_v38, %v7061_v14  ;;  %v5704_v14 = vld [vmem:[#allocation2] sm:$0xff] }
 0x386   :  { %v1404_v60 = vadd.f32 %v1403_v56, %v1373_v47  ;;  %v1385_v56 = vmul.f32 %v1353_v2, %v1353_v2 }
 0x388   :  { %v1405_v62 = vadd.f32 %v1404_v60, %v1374_v22  ;;  %v1386_v60 = vmul.f32 %v1354_v45, %v1354_v45 }
 0x38a   :  { %v1406_v8 = vadd.f32 %v1405_v62, %v1375_v32  ;;  %v1387_v62 = vmul.f32 %v1355_v40, %v1355_v40 }
 0x38c   :  { %v1407_v7 = vadd.f32 %v1406_v8, %v1376_v13  ;;  %v1388_v8 = vmul.f32 %v1356_v3, %v1356_v3 }
 0x38e   :  { %v1408_v11 = vadd.f32 %v1407_v7, %v1377_v57  ;;  %v1389_v7 = vmul.f32 %v1357_v24, %v1357_v24 }
 0x390   :  { %v1409_v4 = vadd.f32 %v1408_v11, %v1378_v33  ;;  %v1390_v11 = vmul.f32 %v1358_v41, %v1358_v41 }
 0x392   :  { %v1410_v0 = vadd.f32 %v1409_v4, %v1379_v23 }
 0x394   :  { %v1411_v28 = vadd.f32 %v1410_v0, %v1380_v31 }
 0x396   :  { %v1412_v39 = vadd.f32 %v1411_v28, %v1381_v19 }
 0x398   :  { %v1413_v48 = vadd.f32 %v1412_v39, %v1382_v61 }
 0x39a   :  { %v1414_v47 = vadd.f32 %v1413_v48, %v1383_v10  ;;  %v7216_v48 = vsub.s32 4, %v10973_v5 }
 0x39c   :  { %v1415_v22 = vadd.f32 %v1414_v47, %v1384_v43  ;;  %10977 = vst [vmem:[#allocation22_spill] sm:$0xff] %v7216_v48  ;;  %v10978_v47 = vsub.s32 2, %v10973_v5 }
 0x39e   :  { %v1416_v32 = vadd.f32 %v1415_v22, %v1385_v56  ;;  %v7221_v56 = vrot.slane %v6847_v49, %v10978_v47 }
 0x3a0   :  { %v1417_v13 = vadd.f32 %v1416_v32, %v1386_v60 }
 0x3a2   :  { %v1418_v57 = vadd.f32 %v1417_v13, %v1387_v62 }
 0x3a4   :  { %v1419_v33 = vadd.f32 %v1418_v57, %v1388_v8 }
 0x3a6   :  { %v1420_v23 = vadd.f32 %v1419_v33, %v1389_v7 }
 0x3a8   :  { %v1421_v4 = vadd.f32 %v1420_v23, %v1390_v11 }
 0x3aa   :  { %v1422_v31 = vadd.f32 %v1421_v4, %v1391_v52 }
 0x3ac   :  { %v1423_v0 = vrot.slane %v1422_v31, 4 }
 0x3ae   :  { %v1424_v19 = vadd.f32 %v1423_v0, %v1422_v31 }
 0x3b0   :  { %v1425_v59 = vrot.slane %v1424_v19, 2 }
 0x3b2   :  { %v1426_v28 = vadd.f32 %v1425_v59, %v1424_v19 }
 0x3b4   :  { %v1427_v61 = vrot.slane %v1426_v28, 1 }
 0x3b6   :  { %v1428_v39 = vadd.f32 %v1427_v61, %v1426_v28 }
 0x3b8   :  { %v1429_v10 = vmul.f32 0.00390625, %v1428_v39 }
 0x3ba   :  { %v1430_v38 = vadd.f32 1e-05, %v1429_v10 }
 0x3bc   :  { %5690 = vrsqrt.f32 %v1430_v38 }
 0x3c9   :  { %v5691_v18 = vpop.eup %5690 }
 0x3ca   :  { %v1432_v43 = vmul.f32 %v5704_v14, %v5691_v18 }
 0x3cc   :  { %v7224_v22 = vrot.slane %v1432_v43, %v7216_v48 }
 0x3ce   :  { %v1466_v60 = vmul.f32 %v7224_v22, %v1357_v24  ;;  %v1437_v62 = vmul.f32 %v7224_v22, %v7065_v29  ;;  %v1438_v13 = vmul.f32 %v7224_v22, %v7069_v12  ;;  %v1439_v8 = vmul.f32 %v7224_v22, %v7073_v26 }
 0x3cf   :  { %v1453_v49 = vmul.f32 %v7224_v22, %v7157_v36  ;;  %v1454_v57 = vmul.f32 %v7224_v22, %v7163_v21  ;;  %v1455_v24 = vmul.f32 %v7224_v22, %v7169_v63  ;;  %v1456_v7 = vmul.f32 %v7224_v22, %v7175_v55 }
 0x3d0   :  { %v7228_v32 = vadd.f32 %v7221_v56, %v1466_v60  ;;  %v1457_v29 = vmul.f32 %v7224_v22, %v7181_v44  ;;  %v1458_v12 = vmul.f32 %v7224_v22, %v7187_v16  ;;  %v1459_v26 = vmul.f32 %v7224_v22, %v1350_v17 }
 0x3d1   :  { %v1460_v33 = vmul.f32 %v7224_v22, %v1351_v35  ;;  %v1461_v36 = vmul.f32 %v7224_v22, %v1352_v58  ;;  %v1462_v21 = vmul.f32 %v7224_v22, %v1353_v2  ;;  %v1463_v11 = vmul.f32 %v7224_v22, %v1354_v45 }
 0x3d2   :  { %v1464_v63 = vmul.f32 %v7224_v22, %v1355_v40  ;;  %v1465_v55 = vmul.f32 %v7224_v22, %v1356_v3  ;;  %v1467_v23 = vmul.f32 %v7224_v22, %v1358_v41  ;;  %v1468_v44 = vmul.f32 %v7224_v22, %v1359_v54 }
 0x3d3   :  { %v1473_v16 = vadd.f32 %v7221_v56, %v1437_v62  ;;  %v1489_v17 = vadd.f32 %v7221_v56, %v1453_v49  ;;  %v1490_v35 = vadd.f32 %v7221_v56, %v1454_v57  ;;  %v1491_v58 = vadd.f32 %v7221_v56, %v1455_v24 }
 0x3d4   :  { %v1492_v2 = vadd.f32 %v7221_v56, %v1456_v7  ;;  %v1493_v45 = vadd.f32 %v7221_v56, %v1457_v29  ;;  %v1494_v40 = vadd.f32 %v7221_v56, %v1458_v12  ;;  %v1495_v3 = vadd.f32 %v7221_v56, %v1459_v26 }
 0x3d5   :  { %v1496_v41 = vadd.f32 %v7221_v56, %v1460_v33  ;;  %v1497_v54 = vadd.f32 %v7221_v56, %v1461_v36  ;;  %v1498_v52 = vadd.f32 %v7221_v56, %v1462_v21  ;;  %v1499_v4 = vadd.f32 %v7221_v56, %v1463_v11 }
 0x3d6   :  { %v1500_v31 = vadd.f32 %v7221_v56, %v1464_v63  ;;  %v1501_v0 = vadd.f32 %v7221_v56, %v1465_v55  ;;  %v1503_v19 = vadd.f32 %v7221_v56, %v1467_v23  ;;  %v1504_v59 = vadd.f32 %v7221_v56, %v1468_v44 }
 0x3d7   :  { %v1440_v28 = vmul.f32 %v7224_v22, %v7081_v42  ;;  %v1474_v61 = vadd.f32 %v7221_v56, %v1438_v13  ;;  %v1505_v39 = vmax.f32 %v1473_v16, 0.0  ;;  %v1441_v10 = vmul.f32 %v7224_v22, %v7085_v9 }
 0x3d8   :  { %v1475_v18 = vadd.f32 %v7221_v56, %v1439_v8  ;;  %v1442_v47 = vmul.f32 %v7224_v22, %v7091_v37  ;;  %v1521_v62 = vmax.f32 %v1489_v17, 0.0  ;;  %v1522_v42 = vmax.f32 %v1490_v35, 0.0 }
 0x3d9   :  { %v1506_v38 = vmax.f32 %v1474_v61, 0.0  ;;  %v1476_v14 = vadd.f32 %v7221_v56, %v1440_v28  ;;  %v1477_v60 = vadd.f32 %v7221_v56, %v1441_v10  ;;  %v10979_v49 = vmov 0  }
 0x3da   :  { %v1507_v13 = vmax.f32 %v1475_v18, 0.0  ;;  %v1523_v57 = vmax.f32 %v1491_v58, 0.0  ;;  %v1524_v24 = vmax.f32 %v1492_v2, 0.0  ;;  %v1525_v9 = vmax.f32 %v1493_v45, 0.0 }
 0x3db   :  { %v1537_v43 = vpack.c.bf16 %v1506_v38, %v1505_v39  ;;  %v1508_v7 = vmax.f32 %v1476_v14, 0.0  ;;  %v7284_v29 = vpack.c.bf16 %v1522_v42, %v1521_v62  ;;  %v1526_v8 = vmax.f32 %v1494_v40, 0.0 }
 0x3dc   :  { %v1527_v12 = vmax.f32 %v1495_v3, 0.0  ;;  %v7286_v26 = vpack.c.bf16 %v1524_v24, %v1523_v57  ;;  %v1528_v33 = vmax.f32 %v1496_v41, 0.0  ;;  %v1529_v37 = vmax.f32 %v1497_v54, 0.0 }
 0x3dd   :  { %1682 = vmatmul.mubr.bf16.vlgmr.msra.gmra.mxu1 %v1537_v43  ;;  %v1530_v36 = vmax.f32 %v1498_v52, 0.0  ;;  %v7288_v21 = vpack.c.bf16 %v1526_v8, %v1525_v9  ;;  %v1531_v11 = vmax.f32 %v1499_v4, 0.0  ;;  %v1532_v63 = vmax.f32 %v1500_v31, 0.0 }
 0x3de   :  { %1691 = vmatprep.mubr.bf16.mxu1 %v10979_v49  ;;  %v1533_v55 = vmax.f32 %v1501_v0, 0.0  ;;  %v7290_v23 = vpack.c.bf16 %v1528_v33, %v1527_v12  ;;  %v1534_v16 = vmax.f32 %v7228_v32, 0.0  ;;  %v1535_v17 = vmax.f32 %v1503_v19, 0.0 }
 0x3df   :  { %v7292_v44 = vpack.c.bf16 %v1530_v36, %v1529_v37  ;;  %v1538_v35 = vpack.c.bf16 %v1508_v7, %v1507_v13  ;;  %v1478_v58 = vadd.f32 %v7221_v56, %v1442_v47  ;;  %v7296_v2 = vpack.c.bf16 %v1532_v63, %v1531_v11 }
 0x3e0   :  { %v1536_v45 = vmax.f32 %v1504_v59, 0.0  ;;  %v7298_v40 = vpack.c.bf16 %v1534_v16, %v1533_v55  ;;  %v1443_v41 = vmul.f32 %v7224_v22, %v7097_v34  ;;  %v1444_v32 = vmul.f32 %v7224_v22, %v7103_v46 }
 0x3e1   :  { %v1509_v54 = vmax.f32 %v1477_v60, 0.0  ;;  %v1510_v52 = vmax.f32 %v1478_v58, 0.0  ;;  %v1445_v19 = vmul.f32 %v7224_v22, %v7109_v6  ;;  %v1446_v59 = vmul.f32 %v7224_v22, %v7115_v53 }
 0x3e2   :  { %v7300_v3 = vpack.c.bf16 %v1536_v45, %v1535_v17  ;;  %v1479_v4 = vadd.f32 %v7221_v56, %v1443_v41  ;;  %v1480_v31 = vadd.f32 %v7221_v56, %v1444_v32  ;;  %v1447_v10 = vmul.f32 %v7224_v22, %v7121_v15 }
 0x3e3   :  { %v1539_v0 = vpack.c.bf16 %v1510_v52, %v1509_v54  ;;  %v1481_v46 = vadd.f32 %v7221_v56, %v1445_v19  ;;  %v1482_v39 = vadd.f32 %v7221_v56, %v1446_v59  ;;  %v1448_v38 = vmul.f32 %v7224_v22, %v7127_v30 }
 0x3e4   :  { %v1511_v34 = vmax.f32 %v1479_v4, 0.0  ;;  %v1512_v28 = vmax.f32 %v1480_v31, 0.0  ;;  %v1483_v53 = vadd.f32 %v7221_v56, %v1447_v10  ;;  %v1449_v47 = vmul.f32 %v7224_v22, %v7133_v1 }
 0x3e5   :  { %1692 = vmatmul.mubr.bf16.gmra.mxu1 %v1538_v35  ;;  %v1513_v6 = vmax.f32 %v1481_v46, 0.0  ;;  %v1514_v18 = vmax.f32 %v1482_v39, 0.0  ;;  %v1484_v14 = vadd.f32 %v7221_v56, %v1448_v38  ;;  %v1450_v60 = vmul.f32 %v7224_v22, %v7139_v51 }
 0x3e6   :  { %1701 = vmatprep.mubr.bf16.mxu1 %v10979_v49  ;;  %v1540_v61 = vpack.c.bf16 %v1512_v28, %v1511_v34  ;;  %v1515_v15 = vmax.f32 %v1483_v53, 0.0  ;;  %v1485_v30 = vadd.f32 %v7221_v56, %v1449_v47  ;;  %v1451_v57 = vmul.f32 %v7224_v22, %v7145_v50 }
 0x3e7   :  { %v1541_v43 = vpack.c.bf16 %v1514_v18, %v1513_v6  ;;  %v1516_v62 = vmax.f32 %v1484_v14, 0.0  ;;  %v1486_v13 = vadd.f32 %v7221_v56, %v1450_v60  ;;  %v1452_v24 = vmul.f32 %v7224_v22, %v7151_v27 }
 0x3e8   :  { %v1517_v1 = vmax.f32 %v1485_v30, 0.0  ;;  %v1487_v51 = vadd.f32 %v7221_v56, %v1451_v57 }
 0x3e9   :  { %v1542_v42 = vpack.c.bf16 %v1516_v62, %v1515_v15  ;;  %v1518_v9 = vmax.f32 %v1486_v13, 0.0  ;;  %v1488_v7 = vadd.f32 %v7221_v56, %v1452_v24 }
 0x3ea   :  { %v1519_v12 = vmax.f32 %v1487_v51, 0.0 }
 0x3eb   :  { %v1543_v8 = vpack.c.bf16 %v1518_v9, %v1517_v1  ;;  %v1520_v33 = vmax.f32 %v1488_v7, 0.0 }
 0x3ed   :  { %1702 = vmatmul.mubr.bf16.gmra.mxu1 %v1539_v0  ;;  %v1544_v37 = vpack.c.bf16 %v1520_v33, %v1519_v12 }
 0x3ee   :  { %1711 = vmatprep.mubr.bf16.mxu1 %v10979_v49 }
 0x3f5   :  { %1712 = vmatmul.mubr.bf16.gmra.mxu1 %v1540_v61 }
 0x3f6   :  { %1721 = vmatprep.mubr.bf16.mxu1 %v10979_v49 }
 0x3fd   :  { %1722 = vmatmul.mubr.bf16.gmra.mxu1 %v1541_v43 }
 0x3fe   :  { %1731 = vmatprep.mubr.bf16.mxu1 %v10979_v49 }
 0x405   :  { %1732 = vmatmul.mubr.bf16.gmra.mxu1 %v1542_v42 }
 0x406   :  { %1741 = vmatprep.mubr.bf16.mxu1 %v10979_v49 }
 0x40d   :  { %1742 = vmatmul.mubr.bf16.gmra.mxu1 %v1543_v8 }
 0x40e   :  { %1751 = vmatprep.mubr.bf16.mxu1 %v10979_v49 }
 0x415   :  { %1752 = vmatmul.mubr.bf16.gmra.mxu1 %v1544_v37 }
 0x416   :  { %1761 = vmatprep.mubr.bf16.mxu1 %v10979_v49 }
 0x41d   :  { %1762 = vmatmul.mubr.bf16.gmra.mxu1 %v7284_v29 }
 0x41e   :  { %1771 = vmatprep.mubr.bf16.mxu1 %v10979_v49 }
 0x425   :  { %1772 = vmatmul.mubr.bf16.gmra.mxu1 %v7286_v26 }
 0x426   :  { %1781 = vmatprep.mubr.bf16.mxu1 %v10979_v49 }
 0x42d   :  { %1782 = vmatmul.mubr.bf16.gmra.mxu1 %v7288_v21 }
 0x42e   :  { %1791 = vmatprep.mubr.bf16.mxu1 %v10979_v49 }
 0x435   :  { %1792 = vmatmul.mubr.bf16.gmra.mxu1 %v7290_v23 }
 0x436   :  { %1801 = vmatprep.mubr.bf16.mxu1 %v10979_v49 }
 0x43d   :  { %1802 = vmatmul.mubr.bf16.gmra.mxu1 %v7292_v44 }
 0x43e   :  { %1811 = vmatprep.mubr.bf16.mxu1 %v10979_v49 }
 0x445   :  { %1812 = vmatmul.mubr.bf16.gmra.mxu1 %v7296_v2 }
 0x446   :  { %1821 = vmatprep.mubr.bf16.mxu1 %v10979_v49 }
 0x44d   :  { %1822 = vmatmul.mubr.bf16.gmra.mxu1 %v7298_v40 }
 0x44e   :  { %1831 = vmatprep.mubr.bf16.mxu1 %v10979_v49 }
 0x455   :  { %1832 = vmatmul.mubr.bf16.gmra.mxu1 %v7300_v3 }
 0x49d   :  { %v7354_v50 = vpop.f32.mrf.mxu1 }
 0x49f   :  { %v7356_v27 = vpop.f32.mrf.mxu1 }
 0x4a1   :  { %v7358_v56 = vpop.f32.mrf.mxu1 }
 0x4a2   :  { %v1842_v61 = vadd.f32 %v7358_v56, %v7354_v50 }
 0x4a3   :  { %v7360_v22 = vpop.f32.mrf.mxu1 }
 0x4a4   :  { %v1879_v62 = vadd.f32 %v7360_v22, %v7356_v27 }
 0x4a5   :  { %v7362_v29 = vpop.f32.mrf.mxu1 }
 0x4a6   :  { %v1843_v10 = vadd.f32 %v1842_v61, %v7362_v29 }
 0x4a7   :  { %v7364_v26 = vpop.f32.mrf.mxu1 }
 0x4a8   :  { %v1880_v13 = vadd.f32 %v1879_v62, %v7364_v26 }
 0x4a9   :  { %v7366_v36 = vpop.f32.mrf.mxu1 }
 0x4aa   :  { %v1844_v6 = vadd.f32 %v1843_v10, %v7366_v36 }
 0x4ab   :  { %v7368_v21 = vpop.f32.mrf.mxu1 }
 0x4ac   :  { %v1881_v1 = vadd.f32 %v1880_v13, %v7368_v21 }
 0x4ad   :  { %v7370_v11 = vpop.f32.mrf.mxu1 }
 0x4ae   :  { %v1845_v53 = vadd.f32 %v1844_v6, %v7370_v11 }
 0x4af   :  { %v7372_v63 = vpop.f32.mrf.mxu1 }
 0x4b0   :  { %v1882_v7 = vadd.f32 %v1881_v1, %v7372_v63 }
 0x4b1   :  { %v7374_v55 = vpop.f32.mrf.mxu1 }
 0x4b2   :  { %v1846_v43 = vadd.f32 %v1845_v53, %v7374_v55 }
 0x4b3   :  { %v7376_v23 = vpop.f32.mrf.mxu1 }
 0x4b4   :  { %v1883_v33 = vadd.f32 %v1882_v7, %v7376_v23 }
 0x4b5   :  { %v7378_v44 = vpop.f32.mrf.mxu1 }
 0x4b6   :  { %v1847_v60 = vadd.f32 %v1846_v43, %v7378_v44 }
 0x4b7   :  { %v7380_v16 = vpop.f32.mrf.mxu1 }
 0x4b8   :  { %v1884_v10 = vadd.f32 %v1883_v33, %v7380_v16 }
 0x4b9   :  { %v7382_v17 = vpop.f32.mrf.mxu1 }
 0x4ba   :  { %v1848_v30 = vadd.f32 %v1847_v60, %v7382_v17 }
 0x4bb   :  { %v7384_v35 = vpop.f32.mrf.mxu1 }
 0x4bc   :  { %v1885_v43 = vadd.f32 %v1884_v10, %v7384_v35 }
 0x4bd   :  { %v7386_v58 = vpop.f32.mrf.mxu1 }
 0x4be   :  { %v1849_v57 = vadd.f32 %v1848_v30, %v7386_v58 }
 0x4bf   :  { %v7388_v2 = vpop.f32.mrf.mxu1 }
 0x4c0   :  { %v1886_v30 = vadd.f32 %v1885_v43, %v7388_v2 }
 0x4c1   :  { %v7390_v45 = vpop.f32.mrf.mxu1 }
 0x4c2   :  { %v1850_v9 = vadd.f32 %v1849_v57, %v7390_v45 }
 0x4c3   :  { %v7392_v40 = vpop.f32.mrf.mxu1 }
 0x4c4   :  { %v1887_v1 = vadd.f32 %v1886_v30, %v7392_v40 }
 0x4c5   :  { %v7394_v3 = vpop.f32.mrf.mxu1 }
 0x4c6   :  { %v1851_v8 = vadd.f32 %v1850_v9, %v7394_v3 }
 0x4c7   :  { %v7396_v41 = vpop.f32.mrf.mxu1 }
 0x4c9   :  { %v7398_v32 = vpop.f32.mrf.mxu1 }
 0x4ca   :  { %v1852_v37 = vadd.f32 %v1851_v8, %v7398_v32  ;;  %v1888_v8 = vadd.f32 %v1887_v1, %v7396_v41 }
 0x4cb   :  { %v7400_v54 = vpop.f32.mrf.mxu1 }
 0x4cc   :  { %v1889_v10 = vadd.f32 %v1888_v8, %v7400_v54 }
 0x4cd   :  { %v7402_v52 = vpop.f32.mrf.mxu1 }
 0x4ce   :  { %v1853_v6 = vadd.f32 %v1852_v37, %v7402_v52 }
 0x4cf   :  { %v7404_v4 = vpop.f32.mrf.mxu1 }
 0x4d1   :  { %v7406_v31 = vpop.f32.mrf.mxu1 }
 0x4d2   :  { %v1854_v60 = vadd.f32 %v1853_v6, %v7406_v31 }
 0x4d3   :  { %v7408_v0 = vpop.f32.mrf.mxu1 }
 0x4d5   :  { %v7410_v19 = vpop.f32.mrf.mxu1 }
 0x4d6   :  { %v1855_v13 = vadd.f32 %v1854_v60, %v7410_v19  ;;  %v1890_v60 = vadd.f32 %v1889_v10, %v7404_v4 }
 0x4d7   :  { %v7412_v59 = vpop.f32.mrf.mxu1 }
 0x4d9   :  { %v7414_v34 = vpop.f32.mrf.mxu1 }
 0x4da   :  { %v1856_v9 = vadd.f32 %v1855_v13, %v7414_v34  ;;  %v1891_v13 = vadd.f32 %v1890_v60, %v7408_v0 }
 0x4db   :  { %v7416_v28 = vpop.f32.mrf.mxu1 }
 0x4dc   :  { %10980 = vst [vmem:[#allocation18_spill] sm:$0xff] %v7416_v28 }
 0x4dd   :  { %v7418_v46 = vpop.f32.mrf.mxu1 }
 0x4de   :  { %v1857_v33 = vadd.f32 %v1856_v9, %v7418_v46  ;;  %v1892_v9 = vadd.f32 %v1891_v13, %v7412_v59 }
 0x4df   :  { %v7422_v39 = vpop.f32.mrf.mxu1 }
 0x4e0   :  { %10981 = vst [vmem:[#allocation19_spill] sm:$0xff] %v7422_v39 }
 0x4e1   :  { %v7425_v38 = vpop.f32.mrf.mxu1 }
 0x4e2   :  { %v1858_v6 = vadd.f32 %v1857_v33, %v7425_v38  ;;  %v1893_v33 = vadd.f32 %v1892_v9, %v7416_v28  ;;  %v5616_v9 = vld [vmem:[%s10848_s4 + $0x70] ss:$8 sps:$4 sm:$0xff]   ;;  %v5619_v28 = vld [vmem:[%s10848_s4 + $0x60] ss:$8 sps:$4 sm:$0xff]  }
 0x4e3   :  { %v7428_v18 = vpop.f32.mrf.mxu1 }
 0x4e4   :  { %10982 = vst [vmem:[#allocation23_spill] sm:$0xff] %v7428_v18 }
 0x4e5   :  { %v7431_v14 = vpop.f32.mrf.mxu1 }
 0x4e6   :  { %v1859_v30 = vadd.f32 %v1858_v6, %v7431_v14  ;;  %v1894_v6 = vadd.f32 %v1893_v33, %v7422_v39 }
 0x4e7   :  { %v7434_v47 = vpop.f32.mrf.mxu1 }
 0x4e8   :  { %10983 = vst [vmem:[#allocation20_spill] sm:$0xff] %v7434_v47  ;;  %v1895_v13 = vadd.f32 %v1894_v6, %v7428_v18  ;;  %v5621_v6 = vld [vmem:[%s10848_s4 + $0x64] ss:$8 sps:$4 sm:$0xff]  }
 0x4e9   :  { %v7437_v15 = vpop.f32.mrf.mxu1 }
 0x4ea   :  { %v1860_v1 = vadd.f32 %v1859_v30, %v7437_v15  ;;  %v5618_v30 = vld [vmem:[%s10848_s4 + $0x74] ss:$8 sps:$4 sm:$0xff]   ;;  %v1896_v33 = vadd.f32 %v1895_v13, %v7434_v47  ;;  %v5622_v47 = vld [vmem:[%s10848_s4 + $0x50] ss:$8 sps:$4 sm:$0xff]  }
 0x4eb   :  { %v7442_v42 = vpop.f32.mrf.mxu1  ;;  %2560 = vmatprep.subr.bf16.mxu0 %v5618_v30 }
 0x4ec   :  { %10984 = vst [vmem:[#allocation27_spill] sm:$0xff] %v7442_v42  ;;  %2561 = vmatpush1.bf16.msra.mxu0 %v5616_v9 }
 0x4ed   :  { %v7446_v24 = vpop.f32.mrf.mxu1  ;;  %2562 = vmatprep.subr.bf16.mxu0 %v5621_v6 }
 0x4ee   :  { %v1861_v8 = vadd.f32 %v1860_v1, %v7446_v24 }
 0x4ef   :  { %v7450_v51 = vpop.f32.mrf.mxu1 }
 0x4f0   :  { %10985 = vst [vmem:[#allocation13_spill] sm:$0xff] %v7450_v51  ;;  %2563 = vmatpush1.bf16.msra.mxu0 %v5619_v28 }
 0x4f1   :  { %v7454_v12 = vpop.f32.mrf.mxu1 }
 0x4f2   :  { %v1862_v10 = vadd.f32 %v1861_v8, %v7454_v12 }
 0x4f3   :  { %v7458_v61 = vpop.f32.mrf.mxu1 }
 0x4f4   :  { %10986 = vst [vmem:[#allocation14_spill] sm:$0xff] %v7458_v61 }
 0x4f5   :  { %v7462_v53 = vpop.f32.mrf.mxu1 }
 0x4f6   :  { %v1863_v60 = vadd.f32 %v1862_v10, %v7462_v53 }
 0x4f7   :  { %v7466_v62 = vpop.f32.mrf.mxu1 }
 0x4f8   :  { %10987 = vst [vmem:[#allocation29_spill] sm:$0xff] %v7466_v62 }
 0x4f9   :  { %v7470_v57 = vpop.f32.mrf.mxu1 }
 0x4fa   :  { %v1864_v1 = vadd.f32 %v1863_v60, %v7470_v57  ;;  %v1897_v60 = vadd.f32 %v1896_v33, %v7442_v42  ;;  %v5624_v33 = vld [vmem:[%s10848_s4 + $0x54] ss:$8 sps:$4 sm:$0xff]  }
 0x4fb   :  { %v7474_v7 = vpop.f32.mrf.mxu1  ;;  %2564 = vmatprep.subr.bf16.mxu0 %v5624_v33 }
 0x4fc   :  { %10988 = vst [vmem:[#allocation28_spill] sm:$0xff] %v7474_v7  ;;  %v1898_v13 = vadd.f32 %v1897_v60, %v7450_v51  ;;  %2565 = vmatpush1.bf16.msra.mxu0 %v5622_v47  ;;  %v5625_v51 = vld [vmem:[%s10848_s4 + $0x40] ss:$8 sps:$4 sm:$0xff]  }
 0x4fd   :  { %v7478_v37 = vpop.f32.mrf.mxu1 }
 0x4fe   :  { %v1865_v10 = vadd.f32 %v1864_v1, %v7478_v37 }
 0x4ff   :  { %v7482_v43 = vpop.f32.mrf.mxu1 }
 0x500   :  { %10989 = vst [vmem:[#allocation30_spill] sm:$0xff] %v7482_v43 }
 0x501   :  { %v7486_v49 = vpop.f32.mrf.mxu1 }
 0x502   :  { %v1866_v18 = vadd.f32 %v1865_v10, %v7486_v49  ;;  %v1899_v10 = vadd.f32 %v1898_v13, %v7458_v61  ;;  %v5627_v13 = vld [vmem:[%s10848_s4 + $0x44] ss:$8 sps:$4 sm:$0xff]  }
 0x503   :  { %v7490_v25 = vpop.f32.mrf.mxu1  ;;  %2566 = vmatprep.subr.bf16.mxu0 %v5627_v13 }
 0x504   :  { %10990 = vst [vmem:[#allocation15_spill] sm:$0xff] %v7490_v25  ;;  %2567 = vmatpush1.bf16.msra.mxu0 %v5625_v51  ;;  %v5633_v51 = vld [vmem:[%s10848_s4 + $0x24] ss:$8 sps:$4 sm:$0xff]  }
 0x505   :  { %v7494_v48 = vpop.f32.mrf.mxu1 }
 0x506   :  { %v1867_v1 = vadd.f32 %v1866_v18, %v7494_v48  ;;  %v1900_v18 = vadd.f32 %v1899_v10, %v7466_v62  ;;  %v5628_v62 = vld [vmem:[%s10848_s4 + $0x30] ss:$8 sps:$4 sm:$0xff]  }
 0x507   :  { %v7498_v20 = vpop.f32.mrf.mxu1 }
 0x509   :  { %v7502_v5 = vpop.f32.mrf.mxu1 }
 0x50a   :  { %v1868_v42 = vadd.f32 %v1867_v1, %v7502_v5  ;;  %v1901_v1 = vadd.f32 %v1900_v18, %v7474_v7  ;;  %v5630_v18 = vld [vmem:[%s10848_s4 + $0x34] ss:$8 sps:$4 sm:$0xff]  }
 0x50b   :  { %v7512_v8 = vpop.f32.mrf.mxu1  ;;  %2568 = vmatprep.subr.bf16.mxu0 %v5630_v18 }
 0x50c   :  { %2569 = vmatpush1.bf16.msra.mxu0 %v5628_v62  ;;  %v5636_v62 = vld [vmem:[%s10848_s4 + $0x14] ss:$8 sps:$4 sm:$0xff]  }
 0x50d   :  { %v7516_v39 = vpop.f32.mrf.mxu1  ;;  %2570 = vmatprep.subr.bf16.mxu0 %v5633_v51  ;;  %v5639_v51 = vld [vmem:[%s10848_s4 + $0x4] ss:$8 sps:$4 sm:$0xff]  }
 0x50e   :  { %v1869_v28 = vadd.f32 %v1868_v42, %v7516_v39  ;;  %v1902_v42 = vadd.f32 %v1901_v1, %v7482_v43 }
 0x50f   :  { %v7526_v30 = vpop.f32.mrf.mxu1 }
 0x511   :  { %v7530_v9 = vpop.f32.mrf.mxu1 }
 0x512   :  { %v1870_v61 = vadd.f32 %v1869_v28, %v7530_v9  ;;  %v1903_v28 = vadd.f32 %v1902_v42, %v7490_v25  ;;  %v5631_v42 = vld [vmem:[%s10848_s4 + $0x20] ss:$8 sps:$4 sm:$0xff]  }
 0x513   :  { %v7540_v6 = vpop.f32.mrf.mxu1  ;;  %2571 = vmatpush1.bf16.msra.mxu0 %v5631_v42 }
 0x514   :  { %v1904_v13 = vadd.f32 %v1903_v28, %v7498_v20  ;;  %2572 = vmatprep.subr.bf16.mxu0 %v5636_v62 }
 0x515   :  { %v7544_v60 = vpop.f32.mrf.mxu1 }
 0x516   :  { %v1871_v47 = vadd.f32 %v1870_v61, %v7544_v60  ;;  %v1905_v61 = vadd.f32 %v1904_v13, %v7512_v8 }
 0x517   :  { %v7554_v33 = vpop.f32.mrf.mxu1 }
 0x519   :  { %v7558_v10 = vpop.f32.mrf.mxu1 }
 0x51a   :  { %v1872_v7 = vadd.f32 %v1871_v47, %v7558_v10  ;;  %v1906_v47 = vadd.f32 %v1905_v61, %v7526_v30 }
 0x51b   :  { %v7584_v13 = vpop.f32.mrf.mxu1 }
 0x51c   :  { %v1873_v1 = vrot.slane %v1872_v7, 4  ;;  %v1907_v18 = vadd.f32 %v1906_v47, %v7540_v6 }
 0x51e   :  { %v1874_v43 = vadd.f32 %v1873_v1, %v1872_v7  ;;  %v5634_v7 = vld [vmem:[%s10848_s4 + $0x10] ss:$8 sps:$4 sm:$0xff]   ;;  %v1908_v1 = vadd.f32 %v1907_v18, %v7554_v33 }
 0x51f   :  { %2573 = vmatpush1.bf16.msra.mxu0 %v5634_v7  ;;  %v5640_v18 = vld [vmem:[%s10848_s4 + $0xf0] ss:$8 sps:$4 sm:$0xff]   ;;  %v5645_v7 = vld [vmem:[%s10848_s4 + $0xe4] ss:$8 sps:$4 sm:$0xff]  }
 0x520   :  { %v1875_v25 = vrot.slane %v1874_v43, 2  ;;  %v1909_v42 = vadd.f32 %v1908_v1, %v7584_v13  ;;  %2574 = vmatprep.subr.bf16.mxu0 %v5639_v51 }
 0x522   :  { %v1876_v28 = vadd.f32 %v1875_v25, %v1874_v43  ;;  %v5637_v25 = vld [vmem:[%s10848_s4] ss:$8 sps:$4 sm:$0xff]   ;;  %v5642_v43 = vld [vmem:[%s10848_s4 + $0xf4] ss:$8 sps:$4 sm:$0xff]   ;;  %v1910_v62 = vrot.slane %v1909_v42, 4 }
 0x523   :  { %2575 = vmatpush1.bf16.msra.mxu0 %v5637_v25  ;;  %v5643_v25 = vld [vmem:[%s10848_s4 + $0xe0] ss:$8 sps:$4 sm:$0xff]  }
 0x524   :  { %v1877_v61 = vrot.slane %v1876_v28, 1  ;;  %2576 = vmatprep.subr.bf16.mxu0 %v5642_v43  ;;  %v1911_v51 = vadd.f32 %v1910_v62, %v1909_v42  ;;  %v5646_v42 = vld [vmem:[%s10848_s4 + $0xd0] ss:$8 sps:$4 sm:$0xff]   ;;  %v5651_v62 = vld [vmem:[%s10848_s4 + $0xc4] ss:$8 sps:$4 sm:$0xff]  }
 0x526   :  { %v1878_v47 = vadd.f32 %v1877_v61, %v1876_v28  ;;  %v5648_v28 = vld [vmem:[%s10848_s4 + $0xd4] ss:$8 sps:$4 sm:$0xff]  }
 0x527   :  { %2577 = vmatpush2.bf16.msra.mxu0 %v5640_v18 }
 0x528   :  { %v7603_v1 = vmul.f32 0.00390625, %v1878_v47  ;;  %2578 = vmatprep.subr.bf16.mxu0 %v5645_v7  ;;  %v1912_v47 = vrot.slane %v1911_v51, 2 }
 0x52a   :  { %v7613_v61 = vsub.f32 %v7354_v50, %v7603_v1  ;;  %v7617_v43 = vsub.f32 %v7358_v56, %v7603_v1  ;;  %v7627_v18 = vsub.f32 %v7362_v29, %v7603_v1  ;;  %v1913_v7 = vadd.f32 %v1912_v47, %v1911_v51  ;;  %v5654_v29 = vld [vmem:[%s10848_s4 + $0xb4] ss:$8 sps:$4 sm:$0xff]  }
 0x52b   :  { %2579 = vmatpush2.bf16.msra.mxu0 %v5643_v25  ;;  %v5649_v25 = vld [vmem:[%s10848_s4 + $0xc0] ss:$8 sps:$4 sm:$0xff]  }
 0x52c   :  { %10991 = vst [vmem:[#allocation16_spill] sm:$0xff] %v7613_v61  ;;  %10992 = vst [vmem:[#allocation26_spill] sm:$0xff] %v7617_v43  ;;  %2580 = vmatprep.subr.bf16.mxu0 %v5648_v28  ;;  %v1982_v50 = vmul.f32 %v7613_v61, %v7613_v61  ;;  %v1984_v56 = vmul.f32 %v7617_v43, %v7617_v43  ;;  %v7638_v28 = vsub.f32 %v7366_v36, %v7603_v1 }
 0x52d   :  { %10993 = vst [vmem:[#allocation31_spill] sm:$0xff] %v7627_v18  ;;  %v1986_v51 = vmul.f32 %v7627_v18, %v7627_v18  ;;  %v1914_v43 = vrot.slane %v1913_v7, 1  ;;  %v7654_v36 = vsub.f32 %v7374_v55, %v7603_v1  ;;  %v5655_v55 = vld [vmem:[%s10848_s4 + $0xa0] ss:$8 sps:$4 sm:$0xff]  }
 0x52e   :  { %v2046_v47 = vadd.f32 %v1984_v56, %v1982_v50  ;;  %v7663_v50 = vsub.f32 %v7378_v44, %v7603_v1  ;;  %v5660_v44 = vld [vmem:[%s10848_s4 + $0x94] ss:$8 sps:$4 sm:$0xff]  }
 0x52f   :  { %2581 = vmatpush2.bf16.msra.mxu0 %v5646_v42  ;;  %v7645_v42 = vsub.f32 %v7370_v11, %v7603_v1  ;;  %v5657_v11 = vld [vmem:[%s10848_s4 + $0xa4] ss:$8 sps:$4 sm:$0xff]   ;;  %v1915_v18 = vadd.f32 %v1914_v43, %v1913_v7 }
 0x530   :  { %2582 = vmatprep.subr.bf16.mxu0 %v5651_v62  ;;  %v5652_v62 = vld [vmem:[%s10848_s4 + $0xb0] ss:$8 sps:$4 sm:$0xff]   ;;  %v2047_v61 = vadd.f32 %v2046_v47, %v1986_v51  ;;  %v7672_v51 = vsub.f32 %v7382_v17, %v7603_v1  ;;  %v1992_v47 = vmul.f32 %v7654_v36, %v7654_v36  ;;  %v1994_v43 = vmul.f32 %v7663_v50, %v7663_v50 }
 0x531   :  { %v1990_v56 = vmul.f32 %v7645_v42, %v7645_v42  ;;  %v5658_v17 = vld [vmem:[%s10848_s4 + $0x90] ss:$8 sps:$4 sm:$0xff]  }
 0x533   :  { %2583 = vmatpush2.bf16.msra.mxu0 %v5649_v25  ;;  %v1988_v25 = vmul.f32 %v7638_v28, %v7638_v28 }
 0x534   :  { %2584 = vmatprep.subr.bf16.mxu0 %v5654_v29 }
 0x535   :  { %v2048_v29 = vadd.f32 %v2047_v61, %v1988_v25  ;;  %v7681_v61 = vsub.f32 %v7386_v58, %v7603_v1  ;;  %v7685_v25 = vmul.f32 0.00390625, %v1915_v18  ;;  %v5663_v18 = vld [vmem:[%s10848_s4 + $0x84] ss:$8 sps:$4 sm:$0xff]  }
 0x537   :  { %2585 = vmatpush2.bf16.msra.mxu0 %v5652_v62  ;;  %v2049_v62 = vadd.f32 %v2048_v29, %v1990_v56  ;;  %10994 = vst [vmem:[#allocation32_spill] sm:$0xff] %v7681_v61  ;;  %v1996_v56 = vmul.f32 %v7672_v51, %v7672_v51  ;;  %v5661_v29 = vld [vmem:[%s10848_s4 + $0x80] ss:$8 sps:$4 sm:$0xff]  }
 0x538   :  { %2586 = vmatprep.subr.bf16.mxu0 %v5657_v11  ;;  %v7692_v11 = vsub.f32 %v7390_v45, %v7603_v1  ;;  %v1998_v45 = vmul.f32 %v7681_v61, %v7681_v61  ;;  %v5706_v61 = vld [vmem:[#allocation2 + $0x10] sm:$0xff] }
 0x539   :  { %v2050_v7 = vadd.f32 %v2049_v62, %v1992_v47  ;;  %v7710_v62 = vsub.f32 %v7356_v27, %v7685_v25 }
 0x53a   :  { %10995 = vst [vmem:[#allocation33_spill] sm:$0xff] %v7692_v11 }
 0x53b   :  { %2587 = vmatpush2.bf16.msra.mxu0 %v5655_v55  ;;  %v2051_v58 = vadd.f32 %v2050_v7, %v1994_v43  ;;  %v7704_v55 = vsub.f32 %v7394_v3, %v7603_v1  ;;  %v7718_v43 = vsub.f32 %v7398_v32, %v7603_v1  ;;  %v2000_v3 = vmul.f32 %v7692_v11, %v7692_v11 }
 0x53c   :  { %2588 = vmatprep.subr.bf16.mxu0 %v5660_v44  ;;  %v7714_v44 = vsub.f32 %v7360_v22, %v7685_v25  ;;  %v7730_v22 = vsub.f32 %v7364_v26, %v7685_v25  ;;  %v1983_v32 = vmul.f32 %v7710_v62, %v7710_v62  ;;  %v7748_v26 = vsub.f32 %v7410_v19, %v7603_v1 }
 0x53d   :  { %10996 = vst [vmem:[#allocation34_spill] sm:$0xff] %v7704_v55  ;;  %v2052_v47 = vadd.f32 %v2051_v58, %v1996_v56  ;;  %10997 = vst [vmem:[#allocation35_spill] sm:$0xff] %v7718_v43  ;;  %v2002_v27 = vmul.f32 %v7704_v55, %v7704_v55 }
 0x53e   :  { %v1985_v58 = vmul.f32 %v7714_v44, %v7714_v44  ;;  %11000 = vst [vmem:[#allocation38_spill] sm:$0xff] %v7748_v26 }
 0x53f   :  { %2589 = vmatpush2.bf16.msra.mxu0 %v5658_v17  ;;  %v2053_v7 = vadd.f32 %v2052_v47, %v1998_v45  ;;  %v7724_v17 = vsub.f32 %v7402_v52, %v7603_v1  ;;  %v2004_v52 = vmul.f32 %v7718_v43, %v7718_v43  ;;  %v7744_v45 = vsub.f32 %v7368_v21, %v7685_v25 }
 0x540   :  { %2590 = vmatprep.subr.bf16.mxu0 %v5663_v18  ;;  %v7760_v21 = vsub.f32 %v7414_v34, %v7603_v1  ;;  %v2010_v34 = vmul.f32 %v7748_v26, %v7748_v26 }
 0x541   :  { %10998 = vst [vmem:[#allocation36_spill] sm:$0xff] %v7724_v17  ;;  %v2054_v56 = vadd.f32 %v2053_v7, %v2000_v3  ;;  %v2006_v47 = vmul.f32 %v7724_v17, %v7724_v17  ;;  %v1987_v7 = vmul.f32 %v7730_v22, %v7730_v22  ;;  %v7766_v17 = vsub.f32 %v7376_v23, %v7685_v25 }
 0x542   :  { %11001 = vst [vmem:[#allocation39_spill] sm:$0xff] %v7760_v21 }
 0x543   :  { %2591 = vmatpush2.bf16.msra.mxu0 %v5661_v29  ;;  %v7738_v29 = vsub.f32 %v7406_v31, %v7603_v1  ;;  %v2055_v18 = vadd.f32 %v2054_v56, %v2002_v27  ;;  %v7754_v31 = vsub.f32 %v7372_v63, %v7685_v25  ;;  %v2083_v27 = vadd.f32 %v1985_v58, %v1983_v32 }
 0x544   :  { %v1989_v63 = vmul.f32 %v7744_v45, %v7744_v45  ;;  %v7778_v58 = vsub.f32 %v7380_v16, %v7685_v25  ;;  %v1993_v16 = vmul.f32 %v7766_v17, %v7766_v17 }
 0x545   :  { %10999 = vst [vmem:[#allocation37_spill] sm:$0xff] %v7738_v29  ;;  %v2056_v3 = vadd.f32 %v2055_v18, %v2004_v52  ;;  %v2008_v19 = vmul.f32 %v7738_v29, %v7738_v29  ;;  %v2084_v52 = vadd.f32 %v2083_v27, %v1987_v7  ;;  %v7772_v18 = vsub.f32 %v7418_v46, %v7603_v1 }
 0x546   :  { %v1991_v23 = vmul.f32 %v7754_v31, %v7754_v31  ;;  %v2012_v46 = vmul.f32 %v7760_v21, %v7760_v21  ;;  %v7790_v27 = vsub.f32 %v7384_v35, %v7685_v25  ;;  %v1995_v35 = vmul.f32 %v7778_v58, %v7778_v58 }
 0x547   :  { %v2057_v56 = vadd.f32 %v2056_v3, %v2006_v47  ;;  %v2085_v47 = vadd.f32 %v2084_v52, %v1989_v63  ;;  %v7784_v3 = vsub.f32 %v7425_v38, %v7603_v1  ;;  %v2014_v38 = vmul.f32 %v7772_v18, %v7772_v18 }
 0x548   :  { %v7802_v52 = vsub.f32 %v7388_v2, %v7685_v25  ;;  %v1997_v2 = vmul.f32 %v7790_v27, %v7790_v27 }
 0x549   :  { %v2058_v32 = vadd.f32 %v2057_v56, %v2008_v19  ;;  %v2086_v19 = vadd.f32 %v2085_v47, %v1991_v23  ;;  %v7796_v56 = vsub.f32 %v7431_v14, %v7603_v1  ;;  %v2016_v14 = vmul.f32 %v7784_v3, %v7784_v3 }
 0x54a   :  { %11002 = vst [vmem:[#allocation40_spill] sm:$0xff] %v7802_v52  ;;  %v7814_v47 = vsub.f32 %v7392_v40, %v7685_v25  ;;  %v1999_v40 = vmul.f32 %v7802_v52, %v7802_v52 }
 0x54b   :  { %v2059_v7 = vadd.f32 %v2058_v32, %v2010_v34  ;;  %v2087_v34 = vadd.f32 %v2086_v19, %v1993_v16  ;;  %v7808_v32 = vsub.f32 %v7437_v15, %v7603_v1  ;;  %v2018_v15 = vmul.f32 %v7796_v56, %v7796_v56 }
 0x54c   :  { %11003 = vst [vmem:[#allocation41_spill] sm:$0xff] %v7814_v47  ;;  %v7826_v19 = vsub.f32 %v7396_v41, %v7685_v25  ;;  %v2001_v41 = vmul.f32 %v7814_v47, %v7814_v47  ;;  %v11025_v47 = vld [vmem:[#allocation17_spill] sm:$0xff] }
 0x54d   :  { %v2060_v63 = vadd.f32 %v2059_v7, %v2012_v46  ;;  %v2088_v46 = vadd.f32 %v2087_v34, %v1995_v35  ;;  %v7820_v7 = vsub.f32 %v7446_v24, %v7603_v1  ;;  %v2020_v24 = vmul.f32 %v7808_v32, %v7808_v32 }
 0x54e   :  { %11004 = vst [vmem:[#allocation42_spill] sm:$0xff] %v7826_v19  ;;  %v7838_v34 = vsub.f32 %v7400_v54, %v7685_v25  ;;  %v2003_v54 = vmul.f32 %v7826_v19, %v7826_v19 }
 0x54f   :  { %v2061_v23 = vadd.f32 %v2060_v63, %v2014_v38  ;;  %v2089_v38 = vadd.f32 %v2088_v46, %v1997_v2  ;;  %v7832_v63 = vsub.f32 %v7454_v12, %v7603_v1  ;;  %v2022_v12 = vmul.f32 %v7820_v7, %v7820_v7 }
 0x550   :  { %11005 = vst [vmem:[#allocation43_spill] sm:$0xff] %v7838_v34  ;;  %v7850_v46 = vsub.f32 %v7404_v4, %v7685_v25  ;;  %v2005_v4 = vmul.f32 %v7838_v34, %v7838_v34 }
 0x551   :  { %v2062_v16 = vadd.f32 %v2061_v23, %v2016_v14  ;;  %v2090_v14 = vadd.f32 %v2089_v38, %v1999_v40  ;;  %v7844_v23 = vsub.f32 %v7462_v53, %v7603_v1  ;;  %v2024_v53 = vmul.f32 %v7832_v63, %v7832_v63 }
 0x552   :  { %11006 = vst [vmem:[#allocation44_spill] sm:$0xff] %v7850_v46  ;;  %v7862_v38 = vsub.f32 %v7408_v0, %v7685_v25  ;;  %v2007_v0 = vmul.f32 %v7850_v46, %v7850_v46 }
 0x553   :  { %v2063_v35 = vadd.f32 %v2062_v16, %v2018_v15  ;;  %v2091_v15 = vadd.f32 %v2090_v14, %v2001_v41  ;;  %v7856_v16 = vsub.f32 %v7470_v57, %v7603_v1  ;;  %v2026_v57 = vmul.f32 %v7844_v23, %v7844_v23 }
 0x554   :  { %11007 = vst [vmem:[#allocation45_spill] sm:$0xff] %v7862_v38  ;;  %v7874_v14 = vsub.f32 %v7412_v59, %v7685_v25  ;;  %v2009_v59 = vmul.f32 %v7862_v38, %v7862_v38  ;;  %v11020_v38 = vld [vmem:[#allocation28_spill] sm:$0xff] }
 0x555   :  { %v2064_v2 = vadd.f32 %v2063_v35, %v2020_v24  ;;  %v2092_v24 = vadd.f32 %v2091_v15, %v2003_v54  ;;  %v7868_v35 = vsub.f32 %v7478_v37, %v7603_v1  ;;  %v2028_v37 = vmul.f32 %v7856_v16, %v7856_v16  ;;  %v11009_v15 = vld [vmem:[#allocation18_spill] sm:$0xff] }
 0x556   :  { %11008 = vst [vmem:[#allocation46_spill] sm:$0xff] %v7874_v14  ;;  %v7886_v21 = vsub.f32 %v11009_v15, %v7685_v25  ;;  %v7904_v15 = vsub.f32 %v7502_v5, %v7603_v1  ;;  %v7974_v46 = vsub.f32 %v11020_v38, %v7685_v25 }
 0x557   :  { %v2065_v40 = vadd.f32 %v2064_v2, %v2022_v12  ;;  %v2093_v12 = vadd.f32 %v2092_v24, %v2005_v4  ;;  %v7880_v2 = vsub.f32 %v7486_v49, %v7603_v1  ;;  %v2030_v49 = vmul.f32 %v7868_v35, %v7868_v35  ;;  %v11011_v24 = vld [vmem:[#allocation19_spill] sm:$0xff] }
 0x558   :  { %11010 = vst [vmem:[#allocation18_spill] sm:$0xff] %v7886_v21  ;;  %v7898_v26 = vsub.f32 %v11011_v24, %v7685_v25  ;;  %v7916_v24 = vsub.f32 %v7516_v39, %v7603_v1  ;;  %v2036_v39 = vmul.f32 %v7904_v15, %v7904_v15  ;;  %v2029_v38 = vmul.f32 %v7974_v46, %v7974_v46 }
 0x559   :  { %v2066_v41 = vadd.f32 %v2065_v40, %v2024_v53  ;;  %v2094_v53 = vadd.f32 %v2093_v12, %v2007_v0  ;;  %v7892_v40 = vsub.f32 %v7494_v48, %v7603_v1  ;;  %v2032_v48 = vmul.f32 %v7880_v2, %v7880_v2  ;;  %v11013_v12 = vld [vmem:[#allocation23_spill] sm:$0xff] }
 0x55a   :  { %11012 = vst [vmem:[#allocation19_spill] sm:$0xff] %v7898_v26  ;;  %v7910_v29 = vsub.f32 %v11013_v12, %v7685_v25  ;;  %v7928_v12 = vsub.f32 %v7530_v9, %v7603_v1  ;;  %v2038_v9 = vmul.f32 %v7916_v24, %v7916_v24 }
 0x55b   :  { %v2067_v54 = vadd.f32 %v2066_v41, %v2026_v57  ;;  %v2011_v57 = vmul.f32 %v7874_v14, %v7874_v14  ;;  %v2095_v41 = vadd.f32 %v2094_v53, %v2009_v59  ;;  %v2034_v5 = vmul.f32 %v7892_v40, %v7892_v40  ;;  %v11015_v53 = vld [vmem:[#allocation20_spill] sm:$0xff] }
 0x55c   :  { %11014 = vst [vmem:[#allocation23_spill] sm:$0xff] %v7910_v29  ;;  %v7922_v14 = vsub.f32 %v11015_v53, %v7685_v25  ;;  %v7940_v53 = vsub.f32 %v7544_v60, %v7603_v1  ;;  %v2040_v60 = vmul.f32 %v7928_v12, %v7928_v12 }
 0x55d   :  { %v2068_v4 = vadd.f32 %v2067_v54, %v2028_v37  ;;  %v2013_v37 = vmul.f32 %v7886_v21, %v7886_v21  ;;  %v2096_v54 = vadd.f32 %v2095_v41, %v2011_v57  ;;  %v11016_v41 = vld [vmem:[#allocation27_spill] sm:$0xff] }
 0x55e   :  { %v7934_v21 = vsub.f32 %v11016_v41, %v7685_v25  ;;  %v7952_v41 = vsub.f32 %v7558_v10, %v7603_v1 }
 0x55f   :  { %v2069_v0 = vadd.f32 %v2068_v4, %v2030_v49  ;;  %v2015_v49 = vmul.f32 %v7898_v26, %v7898_v26  ;;  %v2097_v4 = vadd.f32 %v2096_v54, %v2013_v37  ;;  %v11017_v54 = vld [vmem:[#allocation13_spill] sm:$0xff] }
 0x560   :  { %v7946_v26 = vsub.f32 %v11017_v54, %v7685_v25  ;;  %v2042_v54 = vmul.f32 %v7940_v53, %v7940_v53 }
 0x561   :  { %v2070_v59 = vadd.f32 %v2069_v0, %v2032_v48  ;;  %v2017_v48 = vmul.f32 %v7910_v29, %v7910_v29  ;;  %v2098_v0 = vadd.f32 %v2097_v4, %v2015_v49  ;;  %v11018_v4 = vld [vmem:[#allocation14_spill] sm:$0xff] }
 0x562   :  { %v7958_v29 = vsub.f32 %v11018_v4, %v7685_v25  ;;  %v2023_v1 = vmul.f32 %v7946_v26, %v7946_v26 }
 0x563   :  { %v2071_v57 = vadd.f32 %v2070_v59, %v2034_v5  ;;  %v2019_v5 = vmul.f32 %v7922_v14, %v7922_v14  ;;  %v2099_v59 = vadd.f32 %v2098_v0, %v2017_v48  ;;  %v11019_v0 = vld [vmem:[#allocation29_spill] sm:$0xff] }
 0x564   :  { %v7966_v10 = vsub.f32 %v11019_v0, %v7685_v25 }
 0x565   :  { %v2072_v37 = vadd.f32 %v2071_v57, %v2036_v39  ;;  %v2021_v39 = vmul.f32 %v7934_v21, %v7934_v21  ;;  %v2100_v57 = vadd.f32 %v2099_v59, %v2019_v5  ;;  %v2025_v5 = vmul.f32 %v7958_v29, %v7958_v29 }
 0x567   :  { %v2073_v49 = vadd.f32 %v2072_v37, %v2038_v9  ;;  %v2101_v9 = vadd.f32 %v2100_v57, %v2021_v39  ;;  %v2044_v37 = vmul.f32 %v7952_v41, %v7952_v41  ;;  %v2027_v39 = vmul.f32 %v7966_v10, %v7966_v10 }
 0x569   :  { %v2074_v48 = vadd.f32 %v2073_v49, %v2040_v60  ;;  %v2102_v59 = vadd.f32 %v2101_v9, %v2023_v1  ;;  %v11021_v49 = vld [vmem:[#allocation30_spill] sm:$0xff]  ;;  %v7992_v1 = vsub.f32 %v7498_v20, %v7685_v25 }
 0x56a   :  { %v7980_v0 = vsub.f32 %v11021_v49, %v7685_v25 }
 0x56b   :  { %v2075_v4 = vadd.f32 %v2074_v48, %v2042_v54  ;;  %v2103_v57 = vadd.f32 %v2102_v59, %v2025_v5  ;;  %v11022_v54 = vld [vmem:[#allocation15_spill] sm:$0xff]  ;;  %v7998_v5 = vsub.f32 %v7512_v8, %v7685_v25  ;;  %v2035_v20 = vmul.f32 %v7992_v1, %v7992_v1 }
 0x56c   :  { %v7986_v48 = vsub.f32 %v11022_v54, %v7685_v25  ;;  %v2031_v9 = vmul.f32 %v7980_v0, %v7980_v0 }
 0x56d   :  { %v2076_v60 = vadd.f32 %v2075_v4, %v2044_v37  ;;  %v2104_v55 = vadd.f32 %v2103_v57, %v2027_v39  ;;  %v2037_v8 = vmul.f32 %v7998_v5, %v7998_v5 }
 0x56e   :  { %v2033_v59 = vmul.f32 %v7986_v48, %v7986_v48 }
 0x56f   :  { %v2077_v43 = vrot.slane %v2076_v60, 4  ;;  %v2105_v37 = vadd.f32 %v2104_v55, %v2029_v38  ;;  %v8010_v55 = vsub.f32 %v7540_v6, %v7685_v25 }
 0x571   :  { %v2078_v34 = vadd.f32 %v2077_v43, %v2076_v60  ;;  %v2106_v49 = vadd.f32 %v2105_v37, %v2031_v9  ;;  %v8004_v43 = vsub.f32 %v7526_v30, %v7685_v25  ;;  %v2041_v6 = vmul.f32 %v8010_v55, %v8010_v55 }
 0x573   :  { %v2079_v4 = vrot.slane %v2078_v34, 2  ;;  %v2107_v60 = vadd.f32 %v2106_v49, %v2033_v59  ;;  %v2039_v30 = vmul.f32 %v8004_v43, %v8004_v43 }
 0x575   :  { %v2080_v54 = vadd.f32 %v2079_v4, %v2078_v34  ;;  %v2108_v57 = vadd.f32 %v2107_v60, %v2035_v20  ;;  %v8016_v34 = vsub.f32 %v7554_v33, %v7685_v25  ;;  %v8022_v4 = vsub.f32 %v7584_v13, %v7685_v25  ;;  %v11023_v25 = vld [vmem:[#allocation21_spill] sm:$0xff] }
 0x576   :  { %v8031_v19 = vsub.s32 5, %v11023_v25 }
 0x577   :  { %v2081_v39 = vrot.slane %v2080_v54, 1  ;;  %v2109_v9 = vadd.f32 %v2108_v57, %v2037_v8  ;;  %v2045_v33 = vmul.f32 %v8022_v4, %v8022_v4 }
 0x578   :  { %11024 = vst [vmem:[#allocation20_spill] sm:$0xff] %v8031_v19 }
 0x579   :  { %v2082_v38 = vadd.f32 %v2081_v39, %v2080_v54  ;;  %v2110_v59 = vadd.f32 %v2109_v9, %v2039_v30  ;;  %v2043_v54 = vmul.f32 %v8016_v34, %v8016_v34  ;;  %v5705_v30 = vld [vmem:[#allocation2] sm:$0xff] }
 0x57b   :  { %v2120_v37 = vmul.f32 0.00390625, %v2082_v38  ;;  %v2111_v20 = vadd.f32 %v2110_v59, %v2041_v6  ;;  %v8034_v6 = vrot.slane %v5706_v61, %v11025_v47 }
 0x57d   :  { %v2122_v49 = vadd.f32 1e-05, %v2120_v37  ;;  %v2112_v60 = vadd.f32 %v2111_v20, %v2043_v54 }
 0x57f   :  { %5692 = vrsqrt.f32 %v2122_v49  ;;  %v2113_v39 = vadd.f32 %v2112_v60, %v2045_v33 }
 0x581   :  { %v2114_v8 = vrot.slane %v2113_v39, 4 }
 0x583   :  { %v2115_v57 = vadd.f32 %v2114_v8, %v2113_v39 }
 0x585   :  { %v2116_v38 = vrot.slane %v2115_v57, 2 }
 0x587   :  { %v2117_v13 = vadd.f32 %v2116_v38, %v2115_v57 }
 0x589   :  { %v2118_v37 = vrot.slane %v2117_v13, 1 }
 0x58b   :  { %v2119_v54 = vadd.f32 %v2118_v37, %v2117_v13 }
 0x58c   :  { %v5693_v11 = vpop.eup %5692 }
 0x58d   :  { %v2126_v9 = vmul.f32 %v5705_v30, %v5693_v11  ;;  %v2121_v33 = vmul.f32 0.00390625, %v2119_v54 }
 0x58f   :  { %v8037_v59 = vrot.slane %v2126_v9, %v8031_v19  ;;  %v2123_v39 = vadd.f32 1e-05, %v2121_v33 }
 0x591   :  { %v2198_v49 = vmul.f32 %v8037_v59, %v7952_v41  ;;  %v2168_v60 = vmul.f32 %v8037_v59, %v7772_v18  ;;  %v2170_v11 = vmul.f32 %v8037_v59, %v7784_v3  ;;  %v2172_v61 = vmul.f32 %v8037_v59, %v7796_v56 }
 0x592   :  { %v2174_v8 = vmul.f32 %v8037_v59, %v7808_v32  ;;  %v2176_v41 = vmul.f32 %v8037_v59, %v7820_v7  ;;  %v2178_v57 = vmul.f32 %v8037_v59, %v7832_v63  ;;  %v2180_v38 = vmul.f32 %v8037_v59, %v7844_v23 }
 0x593   :  { %v8042_v20 = vadd.f32 %v8034_v6, %v2198_v49  ;;  %v2182_v18 = vmul.f32 %v8037_v59, %v7856_v16  ;;  %v2184_v3 = vmul.f32 %v8037_v59, %v7868_v35  ;;  %5694 = vrsqrt.f32 %v2123_v39 }
 0x594   :  { %v2186_v56 = vmul.f32 %v8037_v59, %v7880_v2  ;;  %v2188_v32 = vmul.f32 %v8037_v59, %v7892_v40  ;;  %v2190_v7 = vmul.f32 %v8037_v59, %v7904_v15  ;;  %v2192_v63 = vmul.f32 %v8037_v59, %v7916_v24 }
 0x595   :  { %v2194_v23 = vmul.f32 %v8037_v59, %v7928_v12  ;;  %v2196_v16 = vmul.f32 %v8037_v59, %v7940_v53  ;;  %v2240_v35 = vadd.f32 %v8034_v6, %v2168_v60  ;;  %v2242_v13 = vadd.f32 %v8034_v6, %v2170_v11  ;;  %v128_v11 = vld [vmem:[#allocation2 + $0x8] sm:$0xff] }
 0x596   :  { %v2244_v2 = vadd.f32 %v8034_v6, %v2172_v61  ;;  %v2246_v40 = vadd.f32 %v8034_v6, %v2174_v8  ;;  %v2248_v30 = vadd.f32 %v8034_v6, %v2176_v41  ;;  %v2250_v15 = vadd.f32 %v8034_v6, %v2178_v57  ;;  %v130_v57 = vld [vmem:[#allocation2 + $0x18] sm:$0xff] }
 0x597   :  { %v2252_v24 = vadd.f32 %v8034_v6, %v2180_v38  ;;  %v2254_v9 = vadd.f32 %v8034_v6, %v2182_v18  ;;  %v2256_v12 = vadd.f32 %v8034_v6, %v2184_v3  ;;  %v2258_v53 = vadd.f32 %v8034_v6, %v2186_v56 }
 0x598   :  { %v8085_v37 = vadd.f32 %v8034_v6, %v2188_v32  ;;  %v8088_v49 = vadd.f32 %v8034_v6, %v2190_v7  ;;  %v8091_v54 = vadd.f32 %v8034_v6, %v2192_v63  ;;  %v8094_v33 = vadd.f32 %v8034_v6, %v2194_v23 }
 0x599   :  { %v8097_v60 = vadd.f32 %v8034_v6, %v2196_v16  ;;  %v2304_v39 = vmax.f32 %v2240_v35, 0.0  ;;  %v2306_v61 = vmax.f32 %v2242_v13, 0.0  ;;  %v2308_v8 = vmax.f32 %v2244_v2, 0.0 }
 0x59a   :  { %v2310_v38 = vmax.f32 %v2246_v40, 0.0  ;;  %v2312_v18 = vmax.f32 %v2248_v30, 0.0  ;;  %v2314_v3 = vmax.f32 %v2250_v15, 0.0  ;;  %v2316_v7 = vmax.f32 %v2252_v24, 0.0  ;;  %v11026_v15 = vld [vmem:[#allocation16_spill] sm:$0xff] }
 0x59b   :  { %v8099_v32 = vpack.c.bf16 %v2306_v61, %v2304_v39  ;;  %v2318_v63 = vmax.f32 %v2254_v9, 0.0  ;;  %v2320_v16 = vmax.f32 %v2256_v12, 0.0  ;;  %v2322_v52 = vmax.f32 %v2258_v53, 0.0  ;;  %v11027_v9 = vld [vmem:[#allocation26_spill] sm:$0xff]  ;;  %v11028_v53 = vld [vmem:[#allocation31_spill] sm:$0xff] }
 0x59c   :  { %v8101_v25 = vpack.c.bf16 %v2310_v38, %v2308_v8  ;;  %v8103_v23 = vpack.c.bf16 %v2314_v3, %v2312_v18  ;;  %v8106_v35 = vrot.slane %v130_v57, %v11025_v47  ;;  %v2136_v24 = vmul.f32 %v8037_v59, %v11026_v15 }
 0x59d   :  { %v8111_v2 = vpack.c.bf16 %v2318_v63, %v2316_v7  ;;  %v8113_v40 = vpack.c.bf16 %v2322_v52, %v2320_v16  ;;  %v2138_v12 = vmul.f32 %v8037_v59, %v11027_v9  ;;  %v2140_v47 = vmul.f32 %v8037_v59, %v11028_v53 }
 0x59e   :  { %v2144_v52 = vmul.f32 %v8037_v59, %v7645_v42 }
 0x59f   :  { %v2210_v8 = vadd.f32 %v8034_v6, %v2138_v12 }
 0x5a0   :  { %v5695_v41 = vpop.eup %5694 }
 0x5a1   :  { %v2127_v56 = vmul.f32 %v5695_v41, %v128_v11  ;;  %v2142_v11 = vmul.f32 %v8037_v59, %v7638_v28  ;;  %v8135_v41 = vadd.f32 %v8034_v6, %v2140_v47 }
 0x5a3   :  { %v8109_v13 = vrot.slane %v2127_v56, %v8031_v19  ;;  %v8138_v57 = vadd.f32 %v8034_v6, %v2142_v11 }
 0x5a5   :  { %v2199_v30 = vmul.f32 %v8109_v13, %v8022_v4  ;;  %v2208_v4 = vadd.f32 %v8034_v6, %v2136_v24  ;;  %v2137_v61 = vmul.f32 %v8109_v13, %v7710_v62  ;;  %v2139_v28 = vmul.f32 %v8109_v13, %v7714_v44 }
 0x5a6   :  { %v2141_v38 = vmul.f32 %v8109_v13, %v7730_v22  ;;  %v2143_v42 = vmul.f32 %v8109_v13, %v7744_v45  ;;  %v2173_v62 = vmul.f32 %v8109_v13, %v7922_v14  ;;  %v2175_v18 = vmul.f32 %v8109_v13, %v7934_v21 }
 0x5a7   :  { %v8126_v39 = vadd.f32 %v8106_v35, %v2199_v30  ;;  %v2177_v3 = vmul.f32 %v8109_v13, %v7946_v26  ;;  %v2179_v56 = vmul.f32 %v8109_v13, %v7958_v29  ;;  %v2181_v44 = vmul.f32 %v8109_v13, %v7966_v10 }
 0x5a8   :  { %v2183_v22 = vmul.f32 %v8109_v13, %v7974_v46  ;;  %v2185_v45 = vmul.f32 %v8109_v13, %v7980_v0  ;;  %v2187_v14 = vmul.f32 %v8109_v13, %v7986_v48  ;;  %v2189_v21 = vmul.f32 %v8109_v13, %v7992_v1 }
 0x5a9   :  { %v2191_v26 = vmul.f32 %v8109_v13, %v7998_v5  ;;  %v2193_v29 = vmul.f32 %v8109_v13, %v8004_v43  ;;  %v2195_v10 = vmul.f32 %v8109_v13, %v8010_v55  ;;  %v2197_v46 = vmul.f32 %v8109_v13, %v8016_v34 }
 0x5aa   :  { %v2145_v0 = vmul.f32 %v8109_v13, %v7754_v31  ;;  %v2209_v48 = vadd.f32 %v8106_v35, %v2137_v61  ;;  %v2213_v7 = vadd.f32 %v8106_v35, %v2141_v38  ;;  %v2245_v1 = vadd.f32 %v8106_v35, %v2173_v62 }
 0x5ab   :  { %v2247_v5 = vadd.f32 %v8106_v35, %v2175_v18  ;;  %v2249_v63 = vadd.f32 %v8106_v35, %v2177_v3  ;;  %v2251_v43 = vadd.f32 %v8106_v35, %v2179_v56  ;;  %v2253_v55 = vadd.f32 %v8106_v35, %v2181_v44 }
 0x5ac   :  { %v2255_v16 = vadd.f32 %v8106_v35, %v2183_v22  ;;  %v2257_v34 = vadd.f32 %v8106_v35, %v2185_v45  ;;  %v2259_v31 = vadd.f32 %v8106_v35, %v2187_v14  ;;  %v2261_v30 = vadd.f32 %v8106_v35, %v2189_v21 }
 0x5ad   :  { %v2263_v15 = vadd.f32 %v8106_v35, %v2191_v26  ;;  %v2265_v24 = vadd.f32 %v8106_v35, %v2193_v29  ;;  %v2267_v9 = vadd.f32 %v8106_v35, %v2195_v10  ;;  %v2269_v12 = vadd.f32 %v8106_v35, %v2197_v46 }
 0x5ae   :  { %v2147_v53 = vmul.f32 %v8109_v13, %v7766_v17  ;;  %v2211_v47 = vadd.f32 %v8106_v35, %v2139_v28  ;;  %v2273_v11 = vmax.f32 %v2209_v48, 0.0  ;;  %v2215_v61 = vadd.f32 %v8106_v35, %v2143_v42 }
 0x5af   :  { %v2272_v38 = vmax.f32 %v2208_v4, 0.0  ;;  %v2274_v62 = vmax.f32 %v2210_v8, 0.0  ;;  %v2277_v3 = vmax.f32 %v2213_v7, 0.0  ;;  %v2146_v44 = vmul.f32 %v8037_v59, %v7654_v36 }
 0x5b0   :  { %v2275_v18 = vmax.f32 %v2211_v47, 0.0  ;;  %v2279_v56 = vmax.f32 %v2215_v61, 0.0  ;;  %v8196_v22 = vadd.f32 %v8034_v6, %v2144_v52  ;;  %v2276_v45 = vmax.f32 %v8135_v41, 0.0 }
 0x5b1   :  { %v2217_v17 = vadd.f32 %v8106_v35, %v2145_v0  ;;  %v2278_v28 = vmax.f32 %v8138_v57, 0.0  ;;  %v2219_v42 = vadd.f32 %v8106_v35, %v2147_v53  ;;  %v2336_v4 = vpack.c.bf16 %v2274_v62, %v2272_v38 }
 0x5b2   :  { %v2337_v14 = vpack.c.bf16 %v2275_v18, %v2273_v11  ;;  %v2324_v8 = vmax.f32 %v8085_v37, 0.0  ;;  %v2326_v21 = vmax.f32 %v8088_v49, 0.0  ;;  %v2328_v26 = vmax.f32 %v8091_v54, 0.0 }
 0x5b3   :  { %v2149_v36 = vmul.f32 %v8109_v13, %v7778_v58  ;;  %v2339_v52 = vpack.c.bf16 %v2279_v56, %v2277_v3  ;;  %v2330_v41 = vmax.f32 %v8094_v33, 0.0  ;;  %v2332_v29 = vmax.f32 %v8097_v60, 0.0 }
 0x5b4   :  { %2592 = vmatprep.mubr.bf16.mxu0 %v2337_v14  ;;  %v2151_v57 = vmul.f32 %v8109_v13, %v7790_v27  ;;  %v2309_v10 = vmax.f32 %v2245_v1, 0.0  ;;  %v2311_v46 = vmax.f32 %v2247_v5, 0.0  ;;  %v2313_v37 = vmax.f32 %v2249_v63, 0.0 }
 0x5b5   :  { %2593 = vmatmul.mubr.bf16.vlgmr.msra.gmra.mxu0 %v2336_v4  ;;  %v2281_v49 = vmax.f32 %v2217_v17, 0.0  ;;  %v2283_v0 = vmax.f32 %v2219_v42, 0.0  ;;  %v2315_v54 = vmax.f32 %v2251_v43, 0.0  ;;  %v2317_v48 = vmax.f32 %v2253_v55, 0.0  ;;  %v11030_v17 = vld [vmem:[#allocation41_spill] sm:$0xff] }
 0x5b6   :  { %2602 = vmatprep.mubr.bf16.mxu0 %v2339_v52  ;;  %v8211_v7 = vpack.c.bf16 %v2311_v46, %v2309_v10  ;;  %v2319_v58 = vmax.f32 %v2255_v16, 0.0  ;;  %v2321_v53 = vmax.f32 %v2257_v34, 0.0  ;;  %v2323_v47 = vmax.f32 %v2259_v31, 0.0  ;;  %v11032_v52 = vld [vmem:[#allocation33_spill] sm:$0xff]  ;;  %v11033_v10 = vld [vmem:[#allocation42_spill] sm:$0xff] }
 0x5b7   :  { %v8213_v33 = vpack.c.bf16 %v2315_v54, %v2313_v37  ;;  %v2325_v60 = vmax.f32 %v2261_v30, 0.0  ;;  %v2327_v11 = vmax.f32 %v2263_v15, 0.0  ;;  %v8215_v61 = vpack.c.bf16 %v2326_v21, %v2324_v8  ;;  %v11034_v37 = vld [vmem:[#allocation43_spill] sm:$0xff] }
 0x5b8   :  { %v8217_v27 = vpack.c.bf16 %v2319_v58, %v2317_v48  ;;  %v8219_v1 = vpack.c.bf16 %v2323_v47, %v2321_v53  ;;  %v2329_v5 = vmax.f32 %v2265_v24, 0.0  ;;  %v2331_v63 = vmax.f32 %v2267_v9, 0.0 }
 0x5b9   :  { %v8221_v38 = vpack.c.bf16 %v2327_v11, %v2325_v60  ;;  %v8223_v43 = vpack.c.bf16 %v2330_v41, %v2328_v26  ;;  %v2333_v55 = vmax.f32 %v2269_v12, 0.0  ;;  %v2335_v16 = vmax.f32 %v8126_v39, 0.0 }
 0x5ba   :  { %v2218_v34 = vadd.f32 %v8034_v6, %v2146_v44  ;;  %v2338_v31 = vpack.c.bf16 %v2278_v28, %v2276_v45  ;;  %v8227_v30 = vpack.c.bf16 %v2331_v63, %v2329_v5  ;;  %v2334_v15 = vmax.f32 %v8042_v20, 0.0  ;;  %v11029_v44 = vld [vmem:[#allocation40_spill] sm:$0xff]  ;;  %v11035_v5 = vld [vmem:[#allocation34_spill] sm:$0xff] }
 0x5bb   :  { %v2221_v62 = vadd.f32 %v8106_v35, %v2149_v36  ;;  %v2341_v18 = vpack.c.bf16 %v2283_v0, %v2281_v49  ;;  %v2223_v24 = vadd.f32 %v8106_v35, %v2151_v57  ;;  %v8232_v9 = vpack.c.bf16 %v2335_v16, %v2333_v55  ;;  %v11036_v55 = vld [vmem:[#allocation35_spill] sm:$0xff] }
 0x5bc   :  { %v8234_v3 = vpack.c.bf16 %v2334_v15, %v2332_v29  ;;  %v2148_v39 = vmul.f32 %v8037_v59, %v7663_v50  ;;  %v2150_v12 = vmul.f32 %v8037_v59, %v7672_v51  ;;  %v2280_v56 = vmax.f32 %v8196_v22, 0.0  ;;  %v11031_v22 = vld [vmem:[#allocation32_spill] sm:$0xff] }
 0x5bd   :  { %2603 = vmatmul.mubr.bf16.gmra.mxu0 %v2338_v31  ;;  %v2282_v20 = vmax.f32 %v2218_v34, 0.0  ;;  %v2153_v45 = vmul.f32 %v8109_v13, %v11029_v44  ;;  %v2155_v14 = vmul.f32 %v8109_v13, %v11030_v17  ;;  %v2285_v28 = vmax.f32 %v2221_v62, 0.0  ;;  %v11037_v15 = vld [vmem:[#allocation44_spill] sm:$0xff] }
 0x5be   :  { %2612 = vmatprep.mubr.bf16.mxu0 %v2341_v18  ;;  %v2287_v42 = vmax.f32 %v2223_v24, 0.0  ;;  %v2220_v4 = vadd.f32 %v8034_v6, %v2148_v39  ;;  %v2222_v8 = vadd.f32 %v8034_v6, %v2150_v12  ;;  %v2152_v36 = vmul.f32 %v8037_v59, %v11031_v22  ;;  %v11038_v18 = vld [vmem:[#allocation45_spill] sm:$0xff]  ;;  %v11042_v22 = vld [vmem:[#allocation18_spill] sm:$0xff] }
 0x5bf   :  { %v2340_v21 = vpack.c.bf16 %v2282_v20, %v2280_v56  ;;  %v2225_v50 = vadd.f32 %v8106_v35, %v2153_v45  ;;  %v2227_v51 = vadd.f32 %v8106_v35, %v2155_v14  ;;  %v2154_v41 = vmul.f32 %v8037_v59, %v11032_v52 }
 0x5c0   :  { %v2343_v26 = vpack.c.bf16 %v2287_v42, %v2285_v28  ;;  %v2284_v29 = vmax.f32 %v2220_v4, 0.0  ;;  %v2286_v57 = vmax.f32 %v2222_v8, 0.0  ;;  %v2157_v46 = vmul.f32 %v8109_v13, %v11033_v10  ;;  %v11039_v28 = vld [vmem:[#allocation36_spill] sm:$0xff]  ;;  %v11040_v4 = vld [vmem:[#allocation37_spill] sm:$0xff] }
 0x5c1   :  { %v2159_v49 = vmul.f32 %v8109_v13, %v11034_v37  ;;  %v2289_v0 = vmax.f32 %v2225_v50, 0.0  ;;  %v2291_v54 = vmax.f32 %v2227_v51, 0.0  ;;  %v2224_v48 = vadd.f32 %v8034_v6, %v2152_v36  ;;  %v11041_v51 = vld [vmem:[#allocation46_spill] sm:$0xff] }
 0x5c2   :  { %v2226_v58 = vadd.f32 %v8034_v6, %v2154_v41  ;;  %v2342_v53 = vpack.c.bf16 %v2286_v57, %v2284_v29  ;;  %v2229_v47 = vadd.f32 %v8106_v35, %v2157_v46  ;;  %v2156_v63 = vmul.f32 %v8037_v59, %v11035_v5  ;;  %v11046_v5 = vld [vmem:[#allocation23_spill] sm:$0xff] }
 0x5c3   :  { %v2231_v60 = vadd.f32 %v8106_v35, %v2159_v49  ;;  %v2345_v11 = vpack.c.bf16 %v2291_v54, %v2289_v0  ;;  %v2158_v16 = vmul.f32 %v8037_v59, %v11036_v55  ;;  %v2288_v34 = vmax.f32 %v2224_v48, 0.0  ;;  %v11043_v0 = vld [vmem:[#allocation38_spill] sm:$0xff]  ;;  %v11044_v48 = vld [vmem:[#allocation39_spill] sm:$0xff] }
 0x5c4   :  { %v2290_v31 = vmax.f32 %v2226_v58, 0.0  ;;  %v2161_v62 = vmul.f32 %v8109_v13, %v11037_v15  ;;  %v2163_v24 = vmul.f32 %v8109_v13, %v11038_v18  ;;  %v2293_v39 = vmax.f32 %v2229_v47, 0.0 }
 0x5c5   :  { %2613 = vmatmul.mubr.bf16.gmra.mxu0 %v2340_v21  ;;  %v2295_v12 = vmax.f32 %v2231_v60, 0.0  ;;  %v2228_v56 = vadd.f32 %v8034_v6, %v2156_v63  ;;  %v2230_v20 = vadd.f32 %v8034_v6, %v2158_v16  ;;  %v2160_v42 = vmul.f32 %v8037_v59, %v11039_v28  ;;  %v11045_v60 = vld [vmem:[#allocation19_spill] sm:$0xff] }
 0x5c6   :  { %2622 = vmatprep.mubr.bf16.mxu0 %v2343_v26  ;;  %v2344_v44 = vpack.c.bf16 %v2290_v31, %v2288_v34  ;;  %v2233_v45 = vadd.f32 %v8106_v35, %v2161_v62  ;;  %v2235_v17 = vadd.f32 %v8106_v35, %v2163_v24  ;;  %v2162_v8 = vmul.f32 %v8037_v59, %v11040_v4 }
 0x5c7   :  { %v2347_v14 = vpack.c.bf16 %v2295_v12, %v2293_v39  ;;  %v2292_v21 = vmax.f32 %v2228_v56, 0.0  ;;  %v2294_v50 = vmax.f32 %v2230_v20, 0.0  ;;  %v2165_v26 = vmul.f32 %v8109_v13, %v11041_v51 }
 0x5c8   :  { %v2167_v36 = vmul.f32 %v8109_v13, %v11042_v22  ;;  %v2297_v52 = vmax.f32 %v2233_v45, 0.0  ;;  %v2299_v41 = vmax.f32 %v2235_v17, 0.0  ;;  %v2232_v29 = vadd.f32 %v8034_v6, %v2160_v42 }
 0x5c9   :  { %v2234_v57 = vadd.f32 %v8034_v6, %v2162_v8  ;;  %v2346_v10 = vpack.c.bf16 %v2294_v50, %v2292_v21  ;;  %v2237_v46 = vadd.f32 %v8106_v35, %v2165_v26  ;;  %v2164_v54 = vmul.f32 %v8037_v59, %v11043_v0 }
 0x5ca   :  { %v2239_v37 = vadd.f32 %v8106_v35, %v2167_v36  ;;  %v2349_v49 = vpack.c.bf16 %v2299_v41, %v2297_v52  ;;  %v2166_v58 = vmul.f32 %v8037_v59, %v11044_v48  ;;  %v2171_v63 = vmul.f32 %v8109_v13, %v11046_v5 }
 0x5cb   :  { %v2298_v47 = vmax.f32 %v2234_v57, 0.0  ;;  %v2301_v55 = vmax.f32 %v2237_v46, 0.0  ;;  %v2236_v34 = vadd.f32 %v8034_v6, %v2164_v54 }
 0x5cc   :  { %v2303_v16 = vmax.f32 %v2239_v37, 0.0  ;;  %v2238_v31 = vadd.f32 %v8034_v6, %v2166_v58  ;;  %v2243_v18 = vadd.f32 %v8106_v35, %v2171_v63 }
 0x5cd   :  { %2623 = vmatmul.mubr.bf16.gmra.mxu0 %v2342_v53  ;;  %v2296_v53 = vmax.f32 %v2232_v29, 0.0  ;;  %v2300_v24 = vmax.f32 %v2236_v34, 0.0 }
 0x5ce   :  { %2632 = vmatprep.mubr.bf16.mxu0 %v2345_v11  ;;  %v2169_v11 = vmul.f32 %v8109_v13, %v11045_v60  ;;  %v2351_v59 = vpack.c.bf16 %v2303_v16, %v2301_v55  ;;  %v2302_v39 = vmax.f32 %v2238_v31, 0.0  ;;  %v2307_v56 = vmax.f32 %v2243_v18, 0.0 }
 0x5cf   :  { %v2348_v15 = vpack.c.bf16 %v2298_v47, %v2296_v53 }
 0x5d0   :  { %v2241_v62 = vadd.f32 %v8106_v35, %v2169_v11  ;;  %v2350_v20 = vpack.c.bf16 %v2302_v39, %v2300_v24 }
 0x5d2   :  { %v2305_v12 = vmax.f32 %v2241_v62, 0.0 }
 0x5d4   :  { %v2353_v13 = vpack.c.bf16 %v2307_v56, %v2305_v12 }
 0x5d5   :  { %2633 = vmatmul.mubr.bf16.gmra.mxu0 %v2344_v44 }
 0x5d6   :  { %2642 = vmatprep.mubr.bf16.mxu0 %v2347_v14 }
 0x5dd   :  { %2643 = vmatmul.mubr.bf16.gmra.mxu0 %v2346_v10 }
 0x5de   :  { %2652 = vmatprep.mubr.bf16.mxu0 %v2349_v49 }
 0x5e5   :  { %2653 = vmatmul.mubr.bf16.gmra.mxu0 %v2348_v15 }
 0x5e6   :  { %2662 = vmatprep.mubr.bf16.mxu0 %v2351_v59 }
 0x5ed   :  { %2663 = vmatmul.mubr.bf16.gmra.mxu0 %v2350_v20 }
 0x5ee   :  { %2672 = vmatprep.mubr.bf16.mxu0 %v2353_v13 }
 0x5f5   :  { %2673 = vmatmul.mubr.bf16.gmra.mxu0 %v8099_v32 }
 0x5f6   :  { %2682 = vmatprep.mubr.bf16.mxu0 %v8211_v7 }
 0x5fd   :  { %2683 = vmatmul.mubr.bf16.gmra.mxu0 %v8101_v25  ;;  %v5664_v25 = vld [vmem:[#allocation7 + $0x78] sm:$0xff]  }
 0x5fe   :  { %2692 = vmatprep.mubr.bf16.mxu0 %v8213_v33  ;;  %5286 = vmatprep.subr.bf16.mxu1 %v5664_v25 }
 0x605   :  { %2693 = vmatmul.mubr.bf16.gmra.mxu0 %v8103_v23 }
 0x606   :  { %2702 = vmatprep.mubr.bf16.mxu0 %v8217_v27 }
 0x60d   :  { %2703 = vmatmul.mubr.bf16.gmra.mxu0 %v8111_v2 }
 0x60e   :  { %2712 = vmatprep.mubr.bf16.mxu0 %v8219_v1 }
 0x615   :  { %2713 = vmatmul.mubr.bf16.gmra.mxu0 %v8113_v40 }
 0x616   :  { %2722 = vmatprep.mubr.bf16.mxu0 %v8221_v38 }
 0x61d   :  { %2723 = vmatmul.mubr.bf16.gmra.mxu0 %v8215_v61 }
 0x61e   :  { %2732 = vmatprep.mubr.bf16.mxu0 %v8227_v30 }
 0x625   :  { %2733 = vmatmul.mubr.bf16.gmra.mxu0 %v8223_v43 }
 0x626   :  { %2742 = vmatprep.mubr.bf16.mxu0 %v8232_v9 }
 0x62d   :  { %2743 = vmatmul.mubr.bf16.gmra.mxu0 %v8234_v3 }
 0x675   :  { %v8312_v6 = vpop.f32.mrf.mxu0 }
 0x677   :  { %v8314_v32 = vpop.f32.mrf.mxu0 }
 0x679   :  { %v8316_v23 = vpop.f32.mrf.mxu0 }
 0x67a   :  { %v2753_v57 = vadd.f32 %v8316_v23, %v8312_v6 }
 0x67b   :  { %v8318_v35 = vpop.f32.mrf.mxu0 }
 0x67c   :  { %v2790_v11 = vadd.f32 %v8318_v35, %v8314_v32 }
 0x67d   :  { %v8320_v2 = vpop.f32.mrf.mxu0 }
 0x67e   :  { %v2754_v46 = vadd.f32 %v2753_v57, %v8320_v2 }
 0x67f   :  { %v8322_v40 = vpop.f32.mrf.mxu0 }
 0x680   :  { %v2791_v55 = vadd.f32 %v2790_v11, %v8322_v40 }
 0x681   :  { %v8324_v7 = vpop.f32.mrf.mxu0 }
 0x682   :  { %v2755_v49 = vadd.f32 %v2754_v46, %v8324_v7 }
 0x683   :  { %v8326_v33 = vpop.f32.mrf.mxu0 }
 0x684   :  { %v2792_v31 = vadd.f32 %v2791_v55, %v8326_v33 }
 0x685   :  { %v8328_v61 = vpop.f32.mrf.mxu0 }
 0x686   :  { %v2756_v54 = vadd.f32 %v2755_v49, %v8328_v61 }
 0x687   :  { %v8330_v27 = vpop.f32.mrf.mxu0 }
 0x688   :  { %v2793_v18 = vadd.f32 %v2792_v31, %v8330_v27 }
 0x689   :  { %v8332_v1 = vpop.f32.mrf.mxu0 }
 0x68a   :  { %v2757_v58 = vadd.f32 %v2756_v54, %v8332_v1 }
 0x68b   :  { %v8334_v38 = vpop.f32.mrf.mxu0 }
 0x68c   :  { %v2794_v39 = vadd.f32 %v2793_v18, %v8334_v38 }
 0x68d   :  { %v8336_v43 = vpop.f32.mrf.mxu0 }
 0x68e   :  { %v2758_v47 = vadd.f32 %v2757_v58, %v8336_v43 }
 0x68f   :  { %v8338_v30 = vpop.f32.mrf.mxu0 }
 0x690   :  { %v2795_v20 = vadd.f32 %v2794_v39, %v8338_v30 }
 0x691   :  { %v8340_v9 = vpop.f32.mrf.mxu0 }
 0x692   :  { %v2759_v5 = vadd.f32 %v2758_v47, %v8340_v9 }
 0x693   :  { %v8342_v3 = vpop.f32.mrf.mxu0 }
 0x694   :  { %v2796_v57 = vadd.f32 %v2795_v20, %v8342_v3 }
 0x695   :  { %v8344_v44 = vpop.f32.mrf.mxu0 }
 0x696   :  { %v2760_v16 = vadd.f32 %v2759_v5, %v8344_v44 }
 0x697   :  { %v8346_v45 = vpop.f32.mrf.mxu0 }
 0x698   :  { %v2797_v54 = vadd.f32 %v2796_v57, %v8346_v45 }
 0x699   :  { %v8348_v17 = vpop.f32.mrf.mxu0 }
 0x69a   :  { %v2761_v15 = vadd.f32 %v2760_v16, %v8348_v17 }
 0x69b   :  { %v8350_v14 = vpop.f32.mrf.mxu0 }
 0x69c   :  { %v2798_v11 = vadd.f32 %v2797_v54, %v8350_v14 }
 0x69d   :  { %v8352_v28 = vpop.f32.mrf.mxu0 }
 0x69e   :  { %v2762_v59 = vadd.f32 %v2761_v15, %v8352_v28 }
 0x69f   :  { %v8354_v42 = vpop.f32.mrf.mxu0 }
 0x6a0   :  { %v2799_v16 = vadd.f32 %v2798_v11, %v8354_v42 }
 0x6a1   :  { %v8356_v4 = vpop.f32.mrf.mxu0 }
 0x6a2   :  { %v2763_v12 = vadd.f32 %v2762_v59, %v8356_v4 }
 0x6a3   :  { %v8358_v8 = vpop.f32.mrf.mxu0 }
 0x6a4   :  { %v2800_v18 = vadd.f32 %v2799_v16, %v8358_v8 }
 0x6a5   :  { %v8360_v21 = vpop.f32.mrf.mxu0 }
 0x6a6   :  { %v2764_v13 = vadd.f32 %v2763_v12, %v8360_v21 }
 0x6a7   :  { %v8362_v50 = vpop.f32.mrf.mxu0 }
 0x6a8   :  { %v2801_v12 = vadd.f32 %v2800_v18, %v8362_v50 }
 0x6a9   :  { %v8364_v51 = vpop.f32.mrf.mxu0 }
 0x6aa   :  { %v2765_v46 = vadd.f32 %v2764_v13, %v8364_v51 }
 0x6ab   :  { %v8366_v26 = vpop.f32.mrf.mxu0 }
 0x6ac   :  { %v2802_v57 = vadd.f32 %v2801_v12, %v8366_v26 }
 0x6ad   :  { %v8368_v22 = vpop.f32.mrf.mxu0 }
 0x6ae   :  { %v2766_v58 = vadd.f32 %v2765_v46, %v8368_v22 }
 0x6af   :  { %v8370_v36 = vpop.f32.mrf.mxu0 }
 0x6b0   :  { %11047 = vst [vmem:[#allocation27_spill] sm:$0xff] %v8370_v36 }
 0x6b1   :  { %v8372_v52 = vpop.f32.mrf.mxu0 }
 0x6b2   :  { %v2767_v5 = vadd.f32 %v2766_v58, %v8372_v52  ;;  %v2803_v58 = vadd.f32 %v2802_v57, %v8370_v36 }
 0x6b3   :  { %v8374_v41 = vpop.f32.mrf.mxu0 }
 0x6b4   :  { %11048 = vst [vmem:[#allocation13_spill] sm:$0xff] %v8374_v41  ;;  %v2804_v16 = vadd.f32 %v2803_v58, %v8374_v41 }
 0x6b5   :  { %v8376_v29 = vpop.f32.mrf.mxu0 }
 0x6b6   :  { %v2768_v31 = vadd.f32 %v2767_v5, %v8376_v29 }
 0x6b7   :  { %v8380_v10 = vpop.f32.mrf.mxu0 }
 0x6b8   :  { %11049 = vst [vmem:[#allocation14_spill] sm:$0xff] %v8380_v10 }
 0x6b9   :  { %v8383_v37 = vpop.f32.mrf.mxu0 }
 0x6ba   :  { %v2769_v59 = vadd.f32 %v2768_v31, %v8383_v37 }
 0x6bb   :  { %v8386_v0 = vpop.f32.mrf.mxu0 }
 0x6bc   :  { %11050 = vst [vmem:[#allocation29_spill] sm:$0xff] %v8386_v0 }
 0x6bd   :  { %v8389_v48 = vpop.f32.mrf.mxu0 }
 0x6be   :  { %v2770_v20 = vadd.f32 %v2769_v59, %v8389_v48  ;;  %v2805_v59 = vadd.f32 %v2804_v16, %v8380_v10 }
 0x6bf   :  { %v8392_v53 = vpop.f32.mrf.mxu0 }
 0x6c0   :  { %11051 = vst [vmem:[#allocation28_spill] sm:$0xff] %v8392_v53 }
 0x6c1   :  { %v8395_v60 = vpop.f32.mrf.mxu0 }
 0x6c2   :  { %v2771_v46 = vadd.f32 %v2770_v20, %v8395_v60  ;;  %v2806_v20 = vadd.f32 %v2805_v59, %v8386_v0 }
 0x6c3   :  { %v8400_v63 = vpop.f32.mrf.mxu0 }
 0x6c4   :  { %11052 = vst [vmem:[#allocation30_spill] sm:$0xff] %v8400_v63 }
 0x6c5   :  { %v8404_v34 = vpop.f32.mrf.mxu0 }
 0x6c6   :  { %v2772_v11 = vadd.f32 %v2771_v46, %v8404_v34  ;;  %v2807_v46 = vadd.f32 %v2806_v20, %v8392_v53  ;;  %v5665_v53 = vld [vmem:[#allocation7 + $0x38] sm:$0xff]  }
 0x6c7   :  { %v8408_v62 = vpop.f32.mrf.mxu0  ;;  %5287 = vmatpush3.bf16.msra.mxu1 %v5665_v53 }
 0x6c8   :  { %11053 = vst [vmem:[#allocation15_spill] sm:$0xff] %v8408_v62 }
 0x6c9   :  { %v8412_v24 = vpop.f32.mrf.mxu0 }
 0x6ca   :  { %v2773_v31 = vadd.f32 %v2772_v11, %v8412_v24  ;;  %v2808_v11 = vadd.f32 %v2807_v46, %v8400_v63 }
 0x6cb   :  { %v8416_v56 = vpop.f32.mrf.mxu0 }
 0x6cc   :  { %11054 = vst [vmem:[#allocation17_spill] sm:$0xff] %v8416_v56 }
 0x6cd   :  { %v8420_v25 = vpop.f32.mrf.mxu0 }
 0x6ce   :  { %v2774_v12 = vadd.f32 %v2773_v31, %v8420_v25  ;;  %v2809_v31 = vadd.f32 %v2808_v11, %v8408_v62 }
 0x6cf   :  { %v8424_v49 = vpop.f32.mrf.mxu0 }
 0x6d0   :  { %11055 = vst [vmem:[#allocation16_spill] sm:$0xff] %v8424_v49 }
 0x6d1   :  { %v8428_v47 = vpop.f32.mrf.mxu0 }
 0x6d2   :  { %v2775_v57 = vadd.f32 %v2774_v12, %v8428_v47  ;;  %v2810_v12 = vadd.f32 %v2809_v31, %v8416_v56 }
 0x6d3   :  { %v8432_v55 = vpop.f32.mrf.mxu0 }
 0x6d4   :  { %11056 = vst [vmem:[#allocation26_spill] sm:$0xff] %v8432_v55 }
 0x6d5   :  { %v8436_v15 = vpop.f32.mrf.mxu0 }
 0x6d6   :  { %11057 = vst [vmem:[#allocation31_spill] sm:$0xff] %v8436_v15  ;;  %v2776_v58 = vadd.f32 %v2775_v57, %v8436_v15  ;;  %v2811_v15 = vadd.f32 %v2810_v12, %v8424_v49 }
 0x6d7   :  { %v8440_v39 = vpop.f32.mrf.mxu0 }
 0x6d8   :  { %11058 = vst [vmem:[#allocation40_spill] sm:$0xff] %v8440_v39  ;;  %v2812_v11 = vadd.f32 %v2811_v15, %v8432_v55 }
 0x6d9   :  { %v8444_v13 = vpop.f32.mrf.mxu0 }
 0x6da   :  { %v2777_v16 = vadd.f32 %v2776_v58, %v8444_v13  ;;  %v2813_v31 = vadd.f32 %v2812_v11, %v8440_v39 }
 0x6db   :  { %v8448_v54 = vpop.f32.mrf.mxu0 }
 0x6dc   :  { %11059 = vst [vmem:[#allocation41_spill] sm:$0xff] %v8448_v54  ;;  %v2814_v63 = vadd.f32 %v2813_v31, %v8448_v54 }
 0x6dd   :  { %v8452_v5 = vpop.f32.mrf.mxu0 }
 0x6de   :  { %v2778_v59 = vadd.f32 %v2777_v16, %v8452_v5 }
 0x6df   :  { %v8456_v18 = vpop.f32.mrf.mxu0 }
 0x6e0   :  { %11060 = vst [vmem:[#allocation32_spill] sm:$0xff] %v8456_v18  ;;  %v2815_v53 = vadd.f32 %v2814_v63, %v8456_v18 }
 0x6e1   :  { %v8460_v19 = vpop.f32.mrf.mxu0 }
 0x6e2   :  { %v2779_v20 = vadd.f32 %v2778_v59, %v8460_v19 }
 0x6e3   :  { %v8464_v36 = vpop.f32.mrf.mxu0 }
 0x6e4   :  { %v2816_v49 = vadd.f32 %v2815_v53, %v8464_v36 }
 0x6e5   :  { %v8468_v41 = vpop.f32.mrf.mxu0 }
 0x6e6   :  { %v2780_v46 = vadd.f32 %v2779_v20, %v8468_v41 }
 0x6e7   :  { %v8472_v10 = vpop.f32.mrf.mxu0 }
 0x6e9   :  { %v8476_v0 = vpop.f32.mrf.mxu0 }
 0x6ea   :  { %11061 = vst [vmem:[#allocation33_spill] sm:$0xff] %v8476_v0  ;;  %v2781_v16 = vadd.f32 %v2780_v46, %v8476_v0  ;;  %v2817_v46 = vadd.f32 %v2816_v49, %v8472_v10 }
 0x6eb   :  { %v8480_v57 = vpop.f32.mrf.mxu0 }
 0x6ec   :  { %v2818_v0 = vadd.f32 %v2817_v46, %v8480_v57 }
 0x6ed   :  { %v8484_v58 = vpop.f32.mrf.mxu0 }
 0x6ee   :  { %11062 = vst [vmem:[#allocation42_spill] sm:$0xff] %v8484_v58  ;;  %v2782_v59 = vadd.f32 %v2781_v16, %v8484_v58 }
 0x6ef   :  { %v8488_v62 = vpop.f32.mrf.mxu0 }
 0x6f0   :  { %v2819_v16 = vadd.f32 %v2818_v0, %v8488_v62 }
 0x6f1   :  { %v8492_v56 = vpop.f32.mrf.mxu0 }
 0x6f2   :  { %v2783_v12 = vadd.f32 %v2782_v59, %v8492_v56 }
 0x6f3   :  { %v8500_v39 = vpop.f32.mrf.mxu0 }
 0x6f4   :  { %v2784_v20 = vrot.slane %v2783_v12, 4  ;;  %v2820_v31 = vadd.f32 %v2819_v16, %v8500_v39 }
 0x6f6   :  { %v2785_v15 = vadd.f32 %v2784_v20, %v2783_v12  ;;  %v2821_v54 = vrot.slane %v2820_v31, 4  ;;  %v5666_v20 = vld [vmem:[#allocation7 + $0x70] sm:$0xff]  }
 0x6f7   :  { %5288 = vmatprep.subr.bf16.mxu1 %v5666_v20 }
 0x6f8   :  { %v2786_v55 = vrot.slane %v2785_v15, 2  ;;  %v2822_v18 = vadd.f32 %v2821_v54, %v2820_v31  ;;  %v5668_v31 = vld [vmem:[#allocation7 + $0x68] sm:$0xff]  }
 0x6fa   :  { %v2787_v11 = vadd.f32 %v2786_v55, %v2785_v15  ;;  %v2823_v55 = vrot.slane %v2822_v18, 2  ;;  %v5667_v15 = vld [vmem:[#allocation7 + $0x30] sm:$0xff]  }
 0x6fb   :  { %5289 = vmatpush3.bf16.msra.mxu1 %v5667_v15 }
 0x6fc   :  { %v2788_v58 = vrot.slane %v2787_v11, 1  ;;  %v2824_v54 = vadd.f32 %v2823_v55, %v2822_v18  ;;  %5290 = vmatprep.subr.bf16.mxu1 %v5668_v31 }
 0x6fe   :  { %v2789_v59 = vadd.f32 %v2788_v58, %v2787_v11  ;;  %v2825_v11 = vrot.slane %v2824_v54, 1 }
 0x700   :  { %v8504_v63 = vmul.f32 0.00390625, %v2789_v59  ;;  %v5669_v59 = vld [vmem:[#allocation7 + $0x28] sm:$0xff]  }
 0x701   :  { %5291 = vmatpush3.bf16.msra.mxu1 %v5669_v59  ;;  %v5672_v59 = vld [vmem:[#allocation7 + $0x58] sm:$0xff]  }
 0x702   :  { %v8508_v12 = vsub.f32 %v8312_v6, %v8504_v63  ;;  %v8512_v49 = vsub.f32 %v8316_v23, %v8504_v63  ;;  %v8516_v0 = vsub.f32 %v8320_v2, %v8504_v63  ;;  %v8524_v6 = vsub.f32 %v8324_v7, %v8504_v63 }
 0x703   :  { %v8528_v23 = vsub.f32 %v8328_v61, %v8504_v63  ;;  %v8534_v18 = vsub.f32 %v8332_v1, %v8504_v63  ;;  %v8540_v61 = vsub.f32 %v8336_v43, %v8504_v63  ;;  %v8546_v1 = vsub.f32 %v8340_v9, %v8504_v63 }
 0x704   :  { %v2893_v58 = vmul.f32 %v8508_v12, %v8508_v12  ;;  %v2895_v53 = vmul.f32 %v8512_v49, %v8512_v49  ;;  %v2897_v2 = vmul.f32 %v8516_v0, %v8516_v0  ;;  %v2899_v7 = vmul.f32 %v8524_v6, %v8524_v6 }
 0x705   :  { %11063 = vst [vmem:[#allocation43_spill] sm:$0xff] %v8534_v18  ;;  %11064 = vst [vmem:[#allocation34_spill] sm:$0xff] %v8540_v61  ;;  %v2901_v55 = vmul.f32 %v8528_v23, %v8528_v23  ;;  %v2903_v20 = vmul.f32 %v8534_v18, %v8534_v18  ;;  %v8552_v43 = vsub.f32 %v8344_v44, %v8504_v63 }
 0x706   :  { %v2957_v46 = vadd.f32 %v2895_v53, %v2893_v58  ;;  %v2826_v53 = vadd.f32 %v2825_v11, %v2824_v54  ;;  %11065 = vst [vmem:[#allocation35_spill] sm:$0xff] %v8546_v1  ;;  %v8560_v9 = vsub.f32 %v8348_v17, %v8504_v63  ;;  %v8566_v44 = vsub.f32 %v8352_v28, %v8504_v63 }
 0x707   :  { %11066 = vst [vmem:[#allocation44_spill] sm:$0xff] %v8552_v43 }
 0x708   :  { %v2958_v16 = vadd.f32 %v2957_v46, %v2897_v2  ;;  %v5670_v2 = vld [vmem:[#allocation7 + $0x60] sm:$0xff]   ;;  %v8556_v11 = vmul.f32 0.00390625, %v2826_v53  ;;  %11067 = vst [vmem:[#allocation45_spill] sm:$0xff] %v8560_v9  ;;  %11068 = vst [vmem:[#allocation36_spill] sm:$0xff] %v8566_v44  ;;  %v2911_v28 = vmul.f32 %v8560_v9, %v8560_v9 }
 0x709   :  { %v5671_v46 = vld [vmem:[#allocation7 + $0x20] sm:$0xff]   ;;  %5292 = vmatprep.subr.bf16.mxu1 %v5670_v2 }
 0x70a   :  { %v2959_v58 = vadd.f32 %v2958_v16, %v2899_v7  ;;  %v2905_v7 = vmul.f32 %v8540_v61, %v8540_v61  ;;  %5293 = vmatpush3.bf16.msra.mxu1 %v5671_v46  ;;  %v2907_v16 = vmul.f32 %v8546_v1, %v8546_v1  ;;  %v8576_v17 = vsub.f32 %v8318_v35, %v8556_v11  ;;  %v5674_v46 = vld [vmem:[#allocation7 + $0x50] sm:$0xff]  }
 0x70b   :  { %5294 = vmatprep.subr.bf16.mxu1 %v5672_v59  ;;  %v5675_v35 = vld [vmem:[#allocation7 + $0x10] sm:$0xff]  }
 0x70c   :  { %v2960_v15 = vadd.f32 %v2959_v58, %v2901_v55  ;;  %v5673_v55 = vld [vmem:[#allocation7 + $0x18] sm:$0xff]   ;;  %v2909_v58 = vmul.f32 %v8552_v43, %v8552_v43 }
 0x70e   :  { %v2961_v54 = vadd.f32 %v2960_v15, %v2903_v20  ;;  %v8572_v20 = vsub.f32 %v8314_v32, %v8556_v11  ;;  %5295 = vmatpush3.bf16.msra.mxu1 %v5673_v55  ;;  %v8580_v15 = vsub.f32 %v8356_v4, %v8504_v63  ;;  %v2913_v32 = vmul.f32 %v8566_v44, %v8566_v44 }
 0x70f   :  { %5296 = vmatprep.subr.bf16.mxu1 %v5674_v46  ;;  %v8616_v46 = vsub.f32 %v8330_v27, %v8556_v11  ;;  %v8628_v27 = vsub.f32 %v8334_v38, %v8556_v11 }
 0x710   :  { %v2962_v31 = vadd.f32 %v2961_v54, %v2905_v7  ;;  %11069 = vst [vmem:[#allocation37_spill] sm:$0xff] %v8580_v15  ;;  %v8586_v7 = vsub.f32 %v8360_v21, %v8504_v63  ;;  %v2894_v4 = vmul.f32 %v8572_v20, %v8572_v20  ;;  %v8600_v21 = vsub.f32 %v8364_v51, %v8504_v63 }
 0x711   :  { %v2915_v59 = vmul.f32 %v8580_v15, %v8580_v15  ;;  %v2902_v38 = vmul.f32 %v8616_v46, %v8616_v46  ;;  %v11098_v15 = vld [vmem:[#allocation26_spill] sm:$0xff] }
 0x712   :  { %v2963_v53 = vadd.f32 %v2962_v31, %v2907_v16  ;;  %11070 = vst [vmem:[#allocation46_spill] sm:$0xff] %v8586_v7  ;;  %v8592_v16 = vsub.f32 %v8322_v40, %v8556_v11  ;;  %v2896_v31 = vmul.f32 %v8576_v17, %v8576_v17  ;;  %11071 = vst [vmem:[#allocation18_spill] sm:$0xff] %v8600_v21  ;;  %5297 = vmatpush3.bf16.msra.mxu1 %v5675_v35 }
 0x713   :  { %v8606_v40 = vsub.f32 %v8326_v33, %v8556_v11  ;;  %v8622_v33 = vsub.f32 %v8372_v52, %v8504_v63  ;;  %v8836_v44 = vsub.f32 %v11098_v15, %v8556_v11 }
 0x714   :  { %v2964_v2 = vadd.f32 %v2963_v53, %v2909_v58  ;;  %v5676_v58 = vld [vmem:[#allocation7 + $0x48] sm:$0xff]   ;;  %v8610_v53 = vsub.f32 %v8368_v22, %v8504_v63  ;;  %v2994_v35 = vadd.f32 %v2896_v31, %v2894_v4  ;;  %v2919_v22 = vmul.f32 %v8600_v21, %v8600_v21 }
 0x715   :  { %5298 = vmatprep.subr.bf16.mxu1 %v5676_v58  ;;  %11073 = vst [vmem:[#allocation39_spill] sm:$0xff] %v8622_v33  ;;  %v8634_v31 = vsub.f32 %v8376_v29, %v8504_v63  ;;  %v2923_v29 = vmul.f32 %v8622_v33, %v8622_v33  ;;  %v2940_v15 = vmul.f32 %v8836_v44, %v8836_v44 }
 0x716   :  { %v2965_v54 = vadd.f32 %v2964_v2, %v2911_v28  ;;  %11072 = vst [vmem:[#allocation38_spill] sm:$0xff] %v8610_v53  ;;  %v2917_v28 = vmul.f32 %v8586_v7, %v8586_v7  ;;  %v5677_v2 = vld [vmem:[#allocation7 + $0x8] sm:$0xff]   ;;  %v5679_v7 = vld [vmem:[#allocation7] sm:$0xff]   ;;  %v2921_v52 = vmul.f32 %v8610_v53, %v8610_v53 }
 0x717   :  { %5299 = vmatpush3.bf16.msra.mxu1 %v5677_v2 }
 0x718   :  { %v2966_v55 = vadd.f32 %v2965_v54, %v2913_v32  ;;  %v2898_v32 = vmul.f32 %v8592_v16, %v8592_v16  ;;  %v5678_v54 = vld [vmem:[#allocation7 + $0x40] sm:$0xff]  }
 0x719   :  { %5300 = vmatprep.subr.bf16.mxu1 %v5678_v54  ;;  %v8658_v54 = vsub.f32 %v8389_v48, %v8504_v63 }
 0x71a   :  { %v2967_v51 = vadd.f32 %v2966_v55, %v2915_v59  ;;  %v2900_v55 = vmul.f32 %v8606_v40, %v8606_v40  ;;  %v2995_v4 = vadd.f32 %v2994_v35, %v2898_v32  ;;  %v8652_v35 = vsub.f32 %v8342_v3, %v8556_v11 }
 0x71b   :  { %5301 = vmatpush3.bf16.msra.mxu1 %v5679_v7  ;;  %v8664_v7 = vsub.f32 %v8346_v45, %v8556_v11 }
 0x71c   :  { %v2968_v59 = vadd.f32 %v2967_v51, %v2917_v28  ;;  %v8640_v28 = vsub.f32 %v8338_v30, %v8556_v11  ;;  %v2996_v2 = vadd.f32 %v2995_v4, %v2900_v55  ;;  %v8646_v51 = vsub.f32 %v8383_v37, %v8504_v63  ;;  %11075 = vst [vmem:[#allocation23_spill] sm:$0xff] %v8652_v35 }
 0x71d   :  { %v2904_v30 = vmul.f32 %v8628_v27, %v8628_v27  ;;  %v2925_v37 = vmul.f32 %v8634_v31, %v8634_v31  ;;  %11076 = vst [vmem:[#allocation47_spill] sm:$0xff] %v8664_v7  ;;  %v8670_v4 = vsub.f32 %v8395_v60, %v8504_v63  ;;  %v2908_v45 = vmul.f32 %v8652_v35, %v8652_v35 }
 0x71e   :  { %v2969_v58 = vadd.f32 %v2968_v59, %v2919_v22  ;;  %11074 = vst [vmem:[#allocation19_spill] sm:$0xff] %v8640_v28  ;;  %v2997_v22 = vadd.f32 %v2996_v2, %v2902_v38  ;;  %v2906_v3 = vmul.f32 %v8640_v28, %v8640_v28  ;;  %v2927_v48 = vmul.f32 %v8646_v51, %v8646_v51 }
 0x71f   :  { %v8682_v2 = vsub.f32 %v8404_v34, %v8504_v63  ;;  %v2929_v60 = vmul.f32 %v8658_v54, %v8658_v54  ;;  %v2931_v34 = vmul.f32 %v8670_v4, %v8670_v4 }
 0x720   :  { %v2970_v32 = vadd.f32 %v2969_v58, %v2921_v52  ;;  %v2998_v55 = vadd.f32 %v2997_v22, %v2904_v30  ;;  %v8676_v58 = vsub.f32 %v8350_v14, %v8556_v11  ;;  %v2910_v14 = vmul.f32 %v8664_v7, %v8664_v7 }
 0x721   :  { %v8694_v22 = vsub.f32 %v8412_v24, %v8504_v63  ;;  %v2933_v24 = vmul.f32 %v8682_v2, %v8682_v2 }
 0x722   :  { %v2971_v59 = vadd.f32 %v2970_v32, %v2923_v29  ;;  %11077 = vst [vmem:[#allocation48_spill] sm:$0xff] %v8676_v58  ;;  %v2999_v38 = vadd.f32 %v2998_v55, %v2906_v3  ;;  %v8688_v32 = vsub.f32 %v8354_v42, %v8556_v11  ;;  %v2912_v42 = vmul.f32 %v8676_v58, %v8676_v58  ;;  %v5707_v58 = vld [vmem:[#allocation2] sm:$0xff] }
 0x723   :  { %v8706_v55 = vsub.f32 %v8420_v25, %v8504_v63  ;;  %v2935_v25 = vmul.f32 %v8694_v22, %v8694_v22 }
 0x724   :  { %v2972_v52 = vadd.f32 %v2971_v59, %v2925_v37  ;;  %11078 = vst [vmem:[#allocation49_spill] sm:$0xff] %v8688_v32  ;;  %v3000_v30 = vadd.f32 %v2999_v38, %v2908_v45  ;;  %v8700_v59 = vsub.f32 %v8358_v8, %v8556_v11  ;;  %v2914_v8 = vmul.f32 %v8688_v32, %v8688_v32 }
 0x725   :  { %v8718_v38 = vsub.f32 %v8428_v47, %v8504_v63  ;;  %v2937_v47 = vmul.f32 %v8706_v55, %v8706_v55 }
 0x726   :  { %v2973_v29 = vadd.f32 %v2972_v52, %v2927_v48  ;;  %11079 = vst [vmem:[#allocation50_spill] sm:$0xff] %v8700_v59  ;;  %v3001_v3 = vadd.f32 %v3000_v30, %v2910_v14  ;;  %v8712_v52 = vsub.f32 %v8362_v50, %v8556_v11  ;;  %v2916_v50 = vmul.f32 %v8700_v59, %v8700_v59  ;;  %v11082_v30 = vld [vmem:[#allocation31_spill] sm:$0xff] }
 0x728   :  { %v2974_v37 = vadd.f32 %v2973_v29, %v2929_v60  ;;  %11080 = vst [vmem:[#allocation51_spill] sm:$0xff] %v8712_v52  ;;  %v3002_v45 = vadd.f32 %v3001_v3, %v2912_v42  ;;  %v8724_v29 = vsub.f32 %v8366_v26, %v8556_v11  ;;  %v11083_v42 = vld [vmem:[#allocation27_spill] sm:$0xff]  ;;  %v2918_v26 = vmul.f32 %v8712_v52, %v8712_v52 }
 0x729   :  { %v8736_v3 = vsub.f32 %v11083_v42, %v8556_v11  ;;  %v8754_v42 = vsub.f32 %v8452_v5, %v8504_v63 }
 0x72a   :  { %v2975_v48 = vadd.f32 %v2974_v37, %v2931_v34  ;;  %11081 = vst [vmem:[#allocation52_spill] sm:$0xff] %v8724_v29  ;;  %v3003_v14 = vadd.f32 %v3002_v45, %v2914_v8  ;;  %v8730_v34 = vsub.f32 %v11082_v30, %v8504_v63  ;;  %v2939_v8 = vmul.f32 %v8718_v38, %v8718_v38  ;;  %v11085_v30 = vld [vmem:[#allocation13_spill] sm:$0xff] }
 0x72b   :  { %11084 = vst [vmem:[#allocation31_spill] sm:$0xff] %v8736_v3  ;;  %v8748_v33 = vsub.f32 %v11085_v30, %v8556_v11  ;;  %v8766_v30 = vsub.f32 %v8460_v19, %v8504_v63  ;;  %v2945_v19 = vmul.f32 %v8754_v42, %v8754_v42 }
 0x72c   :  { %v2976_v60 = vadd.f32 %v2975_v48, %v2933_v24  ;;  %v3004_v24 = vadd.f32 %v3003_v14, %v2916_v50  ;;  %v8742_v48 = vsub.f32 %v8444_v13, %v8504_v63  ;;  %v2941_v13 = vmul.f32 %v8730_v34, %v8730_v34  ;;  %v11087_v14 = vld [vmem:[#allocation14_spill] sm:$0xff] }
 0x72d   :  { %11086 = vst [vmem:[#allocation27_spill] sm:$0xff] %v8748_v33  ;;  %v8760_v53 = vsub.f32 %v11087_v14, %v8556_v11  ;;  %v8778_v14 = vsub.f32 %v8468_v41, %v8504_v63  ;;  %v2947_v41 = vmul.f32 %v8766_v30, %v8766_v30 }
 0x72e   :  { %v2977_v37 = vadd.f32 %v2976_v60, %v2935_v25  ;;  %v2920_v25 = vmul.f32 %v8724_v29, %v8724_v29  ;;  %v3005_v60 = vadd.f32 %v3004_v24, %v2918_v26  ;;  %v2943_v5 = vmul.f32 %v8742_v48, %v8742_v48  ;;  %v11089_v24 = vld [vmem:[#allocation29_spill] sm:$0xff] }
 0x72f   :  { %11088 = vst [vmem:[#allocation13_spill] sm:$0xff] %v8760_v53  ;;  %v8772_v21 = vsub.f32 %v11089_v24, %v8556_v11  ;;  %v11092_v24 = vld [vmem:[#allocation33_spill] sm:$0xff] }
 0x730   :  { %v2978_v45 = vadd.f32 %v2977_v37, %v2937_v47  ;;  %v2922_v47 = vmul.f32 %v8736_v3, %v8736_v3  ;;  %v3006_v37 = vadd.f32 %v3005_v60, %v2920_v25  ;;  %v11091_v60 = vld [vmem:[#allocation28_spill] sm:$0xff] }
 0x731   :  { %11090 = vst [vmem:[#allocation14_spill] sm:$0xff] %v8772_v21  ;;  %v8784_v3 = vsub.f32 %v11091_v60, %v8556_v11  ;;  %v11094_v60 = vld [vmem:[#allocation42_spill] sm:$0xff] }
 0x732   :  { %v2979_v50 = vadd.f32 %v2978_v45, %v2939_v8  ;;  %v2924_v8 = vmul.f32 %v8748_v33, %v8748_v33  ;;  %v3007_v45 = vadd.f32 %v3006_v37, %v2922_v47  ;;  %v8790_v33 = vsub.f32 %v11092_v24, %v8504_v63  ;;  %v11093_v37 = vld [vmem:[#allocation30_spill] sm:$0xff]  ;;  %v11095_v24 = vld [vmem:[#allocation15_spill] sm:$0xff] }
 0x733   :  { %v8796_v29 = vsub.f32 %v11093_v37, %v8556_v11  ;;  %v8808_v52 = vsub.f32 %v11095_v24, %v8556_v11  ;;  %v8814_v37 = vsub.f32 %v8492_v56, %v8504_v63 }
 0x734   :  { %v2980_v26 = vadd.f32 %v2979_v50, %v2941_v13  ;;  %v2926_v13 = vmul.f32 %v8760_v53, %v8760_v53  ;;  %v3008_v50 = vadd.f32 %v3007_v45, %v2924_v8  ;;  %v8802_v53 = vsub.f32 %v11094_v60, %v8504_v63  ;;  %v11096_v60 = vld [vmem:[#allocation17_spill] sm:$0xff] }
 0x735   :  { %v2949_v8 = vmul.f32 %v8778_v14, %v8778_v14  ;;  %v2934_v63 = vmul.f32 %v8808_v52, %v8808_v52 }
 0x736   :  { %v2981_v25 = vadd.f32 %v2980_v26, %v2943_v5  ;;  %v2928_v5 = vmul.f32 %v8772_v21, %v8772_v21  ;;  %v3009_v26 = vadd.f32 %v3008_v50, %v2926_v13  ;;  %v2951_v13 = vmul.f32 %v8790_v33, %v8790_v33 }
 0x737   :  { %v8820_v21 = vsub.f32 %v11096_v60, %v8556_v11  ;;  %v2953_v24 = vmul.f32 %v8802_v53, %v8802_v53 }
 0x738   :  { %v2982_v47 = vadd.f32 %v2981_v25, %v2945_v19  ;;  %v2930_v19 = vmul.f32 %v8784_v3, %v8784_v3  ;;  %v3010_v25 = vadd.f32 %v3009_v26, %v2928_v5  ;;  %v11097_v26 = vld [vmem:[#allocation16_spill] sm:$0xff] }
 0x739   :  { %v8828_v56 = vsub.f32 %v11097_v26, %v8556_v11 }
 0x73a   :  { %v2983_v45 = vadd.f32 %v2982_v47, %v2947_v41  ;;  %v2932_v41 = vmul.f32 %v8796_v29, %v8796_v29  ;;  %v3011_v47 = vadd.f32 %v3010_v25, %v2930_v19  ;;  %v2936_v19 = vmul.f32 %v8820_v21, %v8820_v21 }
 0x73c   :  { %v2984_v50 = vadd.f32 %v2983_v45, %v2949_v8  ;;  %v3012_v8 = vadd.f32 %v3011_v47, %v2932_v41  ;;  %v2955_v45 = vmul.f32 %v8814_v37, %v8814_v37  ;;  %v2938_v41 = vmul.f32 %v8828_v56, %v8828_v56 }
 0x73e   :  { %v2985_v5 = vadd.f32 %v2984_v50, %v2951_v13  ;;  %v3013_v25 = vadd.f32 %v3012_v8, %v2934_v63  ;;  %v11099_v50 = vld [vmem:[#allocation40_spill] sm:$0xff] }
 0x73f   :  { %v8842_v26 = vsub.f32 %v11099_v50, %v8556_v11  ;;  %v11101_v63 = vld [vmem:[#allocation32_spill] sm:$0xff] }
 0x740   :  { %v2986_v60 = vadd.f32 %v2985_v5, %v2953_v24  ;;  %v3014_v47 = vadd.f32 %v3013_v25, %v2936_v19  ;;  %v11100_v24 = vld [vmem:[#allocation41_spill] sm:$0xff]  ;;  %v8854_v8 = vsub.f32 %v11101_v63, %v8556_v11  ;;  %v8860_v19 = vsub.f32 %v8464_v36, %v8556_v11 }
 0x741   :  { %v8848_v5 = vsub.f32 %v11100_v24, %v8556_v11 }
 0x742   :  { %v2987_v13 = vadd.f32 %v2986_v60, %v2955_v45  ;;  %v3015_v32 = vadd.f32 %v3014_v47, %v2938_v41  ;;  %v2942_v45 = vmul.f32 %v8842_v26, %v8842_v26  ;;  %v2948_v36 = vmul.f32 %v8860_v19, %v8860_v19 }
 0x743   :  { %v2944_v25 = vmul.f32 %v8848_v5, %v8848_v5 }
 0x744   :  { %v2988_v59 = vrot.slane %v2987_v13, 4  ;;  %v3016_v60 = vadd.f32 %v3015_v32, %v2940_v15  ;;  %v8872_v32 = vsub.f32 %v8480_v57, %v8556_v11 }
 0x746   :  { %v2989_v9 = vadd.f32 %v2988_v59, %v2987_v13  ;;  %v3017_v24 = vadd.f32 %v3016_v60, %v2942_v45  ;;  %v8866_v59 = vsub.f32 %v8472_v10, %v8556_v11  ;;  %v2946_v13 = vmul.f32 %v8854_v8, %v8854_v8 }
 0x747   :  { %v2952_v57 = vmul.f32 %v8872_v32, %v8872_v32 }
 0x748   :  { %v2990_v50 = vrot.slane %v2989_v9, 2  ;;  %v3018_v41 = vadd.f32 %v3017_v24, %v2944_v25  ;;  %v2950_v10 = vmul.f32 %v8866_v59, %v8866_v59 }
 0x74a   :  { %v2991_v43 = vadd.f32 %v2990_v50, %v2989_v9  ;;  %v3019_v15 = vadd.f32 %v3018_v41, %v2946_v13  ;;  %v8878_v9 = vsub.f32 %v8488_v62, %v8556_v11  ;;  %v8884_v50 = vsub.f32 %v8500_v39, %v8556_v11 }
 0x74c   :  { %v2992_v47 = vrot.slane %v2991_v43, 1  ;;  %v3020_v45 = vadd.f32 %v3019_v15, %v2948_v36  ;;  %v2956_v62 = vmul.f32 %v8884_v50, %v8884_v50 }
 0x74e   :  { %v2993_v63 = vadd.f32 %v2992_v47, %v2991_v43  ;;  %v3021_v25 = vadd.f32 %v3020_v45, %v2950_v10  ;;  %v2954_v43 = vmul.f32 %v8878_v9, %v8878_v9  ;;  %v5708_v45 = vld [vmem:[#allocation2 + $0x10] sm:$0xff] }
 0x750   :  { %v3031_v60 = vmul.f32 0.00390625, %v2993_v63  ;;  %v3022_v13 = vadd.f32 %v3021_v25, %v2952_v57  ;;  %v11102_v63 = vld [vmem:[#allocation21_spill] sm:$0xff] }
 0x751   :  { %v8893_v39 = vsub.s32 6, %v11102_v63 }
 0x752   :  { %v3033_v24 = vadd.f32 1e-05, %v3031_v60  ;;  %v3023_v41 = vadd.f32 %v3022_v13, %v2954_v43  ;;  %v11103_v60 = vld [vmem:[#allocation22_spill] sm:$0xff] }
 0x753   :  { %v8896_v1 = vrot.slane %v5708_v45, %v11103_v60 }
 0x754   :  { %5696 = vrsqrt.f32 %v3033_v24  ;;  %v3024_v47 = vadd.f32 %v3023_v41, %v2956_v62 }
 0x756   :  { %v3025_v36 = vrot.slane %v3024_v47, 4 }
 0x758   :  { %v3026_v15 = vadd.f32 %v3025_v36, %v3024_v47 }
 0x75a   :  { %v3027_v10 = vrot.slane %v3026_v15, 2 }
 0x75c   :  { %v3028_v24 = vadd.f32 %v3027_v10, %v3026_v15 }
 0x75e   :  { %v3029_v13 = vrot.slane %v3028_v24, 1 }
 0x760   :  { %v3030_v41 = vadd.f32 %v3029_v13, %v3028_v24 }
 0x761   :  { %v5697_v11 = vpop.eup %5696 }
 0x762   :  { %v3037_v7 = vmul.f32 %v5707_v58, %v5697_v11 }
 0x764   :  { %v8899_v57 = vrot.slane %v3037_v7, %v8893_v39 }
 0x766   :  { %v3109_v25 = vmul.f32 %v8899_v57, %v8814_v37  ;;  %v3079_v62 = vmul.f32 %v8899_v57, %v8634_v31  ;;  %v3081_v58 = vmul.f32 %v8899_v57, %v8646_v51  ;;  %v3083_v47 = vmul.f32 %v8899_v57, %v8658_v54 }
 0x767   :  { %v3085_v7 = vmul.f32 %v8899_v57, %v8670_v4  ;;  %v3087_v37 = vmul.f32 %v8899_v57, %v8682_v2  ;;  %v3089_v36 = vmul.f32 %v8899_v57, %v8694_v22  ;;  %v3091_v15 = vmul.f32 %v8899_v57, %v8706_v55 }
 0x768   :  { %v3181_v43 = vadd.f32 %v8896_v1, %v3109_v25  ;;  %v3093_v31 = vmul.f32 %v8899_v57, %v8718_v38  ;;  %v3095_v51 = vmul.f32 %v8899_v57, %v8730_v34  ;;  %v3097_v54 = vmul.f32 %v8899_v57, %v8742_v48 }
 0x769   :  { %v3099_v4 = vmul.f32 %v8899_v57, %v8754_v42  ;;  %v3101_v2 = vmul.f32 %v8899_v57, %v8766_v30  ;;  %v3103_v22 = vmul.f32 %v8899_v57, %v8778_v14  ;;  %v3105_v55 = vmul.f32 %v8899_v57, %v8790_v33 }
 0x76a   :  { %v3107_v38 = vmul.f32 %v8899_v57, %v8802_v53  ;;  %v3151_v34 = vadd.f32 %v8896_v1, %v3079_v62  ;;  %v3153_v11 = vadd.f32 %v8896_v1, %v3081_v58  ;;  %v3032_v48 = vmul.f32 0.00390625, %v3030_v41 }
 0x76b   :  { %v3155_v10 = vadd.f32 %v8896_v1, %v3083_v47  ;;  %v3157_v42 = vadd.f32 %v8896_v1, %v3085_v7  ;;  %v3159_v30 = vadd.f32 %v8896_v1, %v3087_v37  ;;  %v3161_v45 = vadd.f32 %v8896_v1, %v3089_v36 }
 0x76c   :  { %v3163_v14 = vadd.f32 %v8896_v1, %v3091_v15  ;;  %v3165_v33 = vadd.f32 %v8896_v1, %v3093_v31  ;;  %v3167_v25 = vadd.f32 %v8896_v1, %v3095_v51  ;;  %v3169_v53 = vadd.f32 %v8896_v1, %v3097_v54 }
 0x76d   :  { %v3171_v24 = vadd.f32 %v8896_v1, %v3099_v4  ;;  %v3173_v13 = vadd.f32 %v8896_v1, %v3101_v2  ;;  %v3175_v62 = vadd.f32 %v8896_v1, %v3103_v22  ;;  %v3177_v58 = vadd.f32 %v8896_v1, %v3105_v55 }
 0x76e   :  { %v3179_v41 = vadd.f32 %v8896_v1, %v3107_v38  ;;  %v3034_v47 = vadd.f32 1e-05, %v3032_v48  ;;  %v3231_v7 = vmax.f32 %v3167_v25, 0.0  ;;  %v3233_v37 = vmax.f32 %v3169_v53, 0.0 }
 0x76f   :  { %v3235_v36 = vmax.f32 %v3171_v24, 0.0  ;;  %v3237_v15 = vmax.f32 %v3173_v13, 0.0  ;;  %v3239_v31 = vmax.f32 %v3175_v62, 0.0  ;;  %v3241_v51 = vmax.f32 %v3177_v58, 0.0 }
 0x770   :  { %5698 = vrsqrt.f32 %v3034_v47  ;;  %v3215_v63 = vmax.f32 %v3151_v34, 0.0  ;;  %v3245_v54 = vmax.f32 %v3181_v43, 0.0  ;;  %v3243_v61 = vmax.f32 %v3179_v41, 0.0 }
 0x771   :  { %v3217_v4 = vmax.f32 %v3153_v11, 0.0  ;;  %v3219_v35 = vmax.f32 %v3155_v10, 0.0  ;;  %v3221_v2 = vmax.f32 %v3157_v42, 0.0  ;;  %v3223_v28 = vmax.f32 %v3159_v30, 0.0  ;;  %v5709_v42 = vld [vmem:[#allocation2 + $0x8] sm:$0xff]  ;;  %v5710_v30 = vld [vmem:[#allocation2 + $0x18] sm:$0xff] }
 0x772   :  { %v3225_v22 = vmax.f32 %v3161_v45, 0.0  ;;  %v3227_v55 = vmax.f32 %v3163_v14, 0.0  ;;  %v3229_v38 = vmax.f32 %v3165_v33, 0.0  ;;  %v8951_v48 = vpack.c.bf16 %v3233_v37, %v3231_v7 }
 0x773   :  { %v8949_v18 = vpack.c.bf16 %v3217_v4, %v3215_v63  ;;  %v8953_v25 = vpack.c.bf16 %v3221_v2, %v3219_v35  ;;  %v8957_v24 = vpack.c.bf16 %v3237_v15, %v3235_v36  ;;  %v8959_v34 = vpack.c.bf16 %v3241_v51, %v3239_v31 }
 0x774   :  { %v8955_v53 = vpack.c.bf16 %v3225_v22, %v3223_v28  ;;  %v8961_v43 = vpack.c.bf16 %v3229_v38, %v3227_v55  ;;  %v8963_v11 = vpack.c.bf16 %v3245_v54, %v3243_v61  ;;  %v8966_v45 = vrot.slane %v5710_v30, %v11103_v60 }
 0x775   :  { %v3047_v35 = vmul.f32 %v8899_v57, %v8508_v12  ;;  %v3049_v28 = vmul.f32 %v8899_v57, %v8512_v49  ;;  %v3051_v60 = vmul.f32 %v8899_v57, %v8516_v0  ;;  %v3053_v12 = vmul.f32 %v8899_v57, %v8524_v6 }
 0x777   :  { %v3119_v33 = vadd.f32 %v8896_v1, %v3047_v35  ;;  %v3121_v13 = vadd.f32 %v8896_v1, %v3049_v28  ;;  %v3055_v35 = vmul.f32 %v8899_v57, %v8528_v23  ;;  %v3123_v28 = vadd.f32 %v8896_v1, %v3051_v60 }
 0x779   :  { %v3183_v49 = vmax.f32 %v3119_v33, 0.0  ;;  %v3185_v58 = vmax.f32 %v3121_v13, 0.0  ;;  %v3187_v60 = vmax.f32 %v3123_v28, 0.0 }
 0x77b   :  { %v3247_v13 = vpack.c.bf16 %v3185_v58, %v3183_v49 }
 0x77d   :  { %v5699_v10 = vpop.eup %5698 }
 0x77e   :  { %v3038_v63 = vmul.f32 %v5709_v42, %v5699_v10 }
 0x780   :  { %v8973_v14 = vrot.slane %v3038_v63, %v8893_v39 }
 0x782   :  { %v3110_v61 = vmul.f32 %v8973_v14, %v8884_v50  ;;  %v3048_v41 = vmul.f32 %v8973_v14, %v8572_v20  ;;  %v3050_v50 = vmul.f32 %v8973_v14, %v8576_v17  ;;  %v3052_v47 = vmul.f32 %v8973_v14, %v8592_v16 }
 0x783   :  { %v3054_v7 = vmul.f32 %v8973_v14, %v8606_v40  ;;  %v3056_v0 = vmul.f32 %v8973_v14, %v8616_v46  ;;  %v3058_v6 = vmul.f32 %v8973_v14, %v8628_v27  ;;  %v3084_v37 = vmul.f32 %v8973_v14, %v8784_v3 }
 0x784   :  { %v8980_v62 = vadd.f32 %v8966_v45, %v3110_v61  ;;  %v3086_v20 = vmul.f32 %v8973_v14, %v8796_v29  ;;  %v3088_v17 = vmul.f32 %v8973_v14, %v8808_v52  ;;  %v3090_v16 = vmul.f32 %v8973_v14, %v8820_v21 }
 0x785   :  { %v3092_v40 = vmul.f32 %v8973_v14, %v8828_v56  ;;  %v3094_v46 = vmul.f32 %v8973_v14, %v8836_v44  ;;  %v3096_v27 = vmul.f32 %v8973_v14, %v8842_v26  ;;  %v3098_v3 = vmul.f32 %v8973_v14, %v8848_v5 }
 0x786   :  { %v3100_v29 = vmul.f32 %v8973_v14, %v8854_v8  ;;  %v3102_v52 = vmul.f32 %v8973_v14, %v8860_v19  ;;  %v3104_v21 = vmul.f32 %v8973_v14, %v8866_v59  ;;  %v3106_v56 = vmul.f32 %v8973_v14, %v8872_v32 }
 0x787   :  { %v3108_v44 = vmul.f32 %v8973_v14, %v8878_v9  ;;  %v3120_v26 = vadd.f32 %v8966_v45, %v3048_v41  ;;  %v3122_v36 = vadd.f32 %v8966_v45, %v3050_v50  ;;  %v3124_v5 = vadd.f32 %v8966_v45, %v3052_v47  ;;  %v11104_v47 = vld [vmem:[#allocation43_spill] sm:$0xff] }
 0x788   :  { %v3126_v8 = vadd.f32 %v8966_v45, %v3054_v7  ;;  %v3156_v15 = vadd.f32 %v8966_v45, %v3084_v37  ;;  %v3158_v19 = vadd.f32 %v8966_v45, %v3086_v20  ;;  %v3160_v59 = vadd.f32 %v8966_v45, %v3088_v17  ;;  %v11105_v17 = vld [vmem:[#allocation19_spill] sm:$0xff] }
 0x789   :  { %v3162_v31 = vadd.f32 %v8966_v45, %v3090_v16  ;;  %v3164_v32 = vadd.f32 %v8966_v45, %v3092_v40  ;;  %v3166_v9 = vadd.f32 %v8966_v45, %v3094_v46  ;;  %v3168_v51 = vadd.f32 %v8966_v45, %v3096_v27 }
 0x78a   :  { %v3170_v54 = vadd.f32 %v8966_v45, %v3098_v3  ;;  %v3172_v4 = vadd.f32 %v8966_v45, %v3100_v29  ;;  %v3174_v2 = vadd.f32 %v8966_v45, %v3102_v52  ;;  %v3176_v22 = vadd.f32 %v8966_v45, %v3104_v21 }
 0x78b   :  { %v3178_v55 = vadd.f32 %v8966_v45, %v3106_v56  ;;  %v3180_v38 = vadd.f32 %v8966_v45, %v3108_v44  ;;  %v3184_v10 = vmax.f32 %v3120_v26, 0.0  ;;  %v3186_v42 = vmax.f32 %v3122_v36, 0.0 }
 0x78c   :  { %v3188_v63 = vmax.f32 %v3124_v5, 0.0  ;;  %v3190_v30 = vmax.f32 %v3126_v8, 0.0  ;;  %v3125_v61 = vadd.f32 %v8896_v1, %v3053_v12  ;;  %v3128_v41 = vadd.f32 %v8966_v45, %v3056_v0  ;;  %v11106_v12 = vld [vmem:[#allocation23_spill] sm:$0xff] }
 0x78d   :  { %v3248_v33 = vpack.c.bf16 %v3186_v42, %v3184_v10  ;;  %v3130_v50 = vadd.f32 %v8966_v45, %v3058_v6  ;;  %v3057_v7 = vmul.f32 %v8899_v57, %v11104_v47  ;;  %v3127_v20 = vadd.f32 %v8896_v1, %v3055_v35  ;;  %v11108_v42 = vld [vmem:[#allocation35_spill] sm:$0xff] }
 0x78e   :  { %v3250_v37 = vpack.c.bf16 %v3190_v30, %v3188_v63  ;;  %v3060_v23 = vmul.f32 %v8973_v14, %v11105_v17  ;;  %v3189_v16 = vmax.f32 %v3125_v61, 0.0  ;;  %v3062_v49 = vmul.f32 %v8973_v14, %v11106_v12  ;;  %v11110_v61 = vld [vmem:[#allocation48_spill] sm:$0xff] }
 0x78f   :  { %3439 = vmatprep.mubr.bf16.mxu1 %v3248_v33  ;;  %v3220_v58 = vmax.f32 %v3156_v15, 0.0  ;;  %v3222_v0 = vmax.f32 %v3158_v19, 0.0  ;;  %v3224_v6 = vmax.f32 %v3160_v59, 0.0  ;;  %v3192_v40 = vmax.f32 %v3128_v41, 0.0 }
 0x790   :  { %3440 = vmatmul.mubr.bf16.vlgmr.msra.gmra.mxu1 %v3247_v13  ;;  %v3194_v46 = vmax.f32 %v3130_v50, 0.0  ;;  %v3226_v27 = vmax.f32 %v3162_v31, 0.0  ;;  %v3228_v3 = vmax.f32 %v3164_v32, 0.0  ;;  %v3230_v52 = vmax.f32 %v3166_v9, 0.0 }
 0x791   :  { %3447 = vmatprep.mubr.bf16.mxu1 %v3250_v37  ;;  %v9054_v29 = vpack.c.bf16 %v3222_v0, %v3220_v58  ;;  %v3232_v21 = vmax.f32 %v3168_v51, 0.0  ;;  %v3234_v56 = vmax.f32 %v3170_v54, 0.0  ;;  %v3236_v26 = vmax.f32 %v3172_v4, 0.0  ;;  %v11113_v0 = vld [vmem:[#allocation49_spill] sm:$0xff] }
 0x792   :  { %v9056_v44 = vpack.c.bf16 %v3226_v27, %v3224_v6  ;;  %v3238_v36 = vmax.f32 %v3174_v2, 0.0  ;;  %v3240_v5 = vmax.f32 %v3176_v22, 0.0  ;;  %v9058_v8 = vpack.c.bf16 %v3230_v52, %v3228_v3 }
 0x793   :  { %v9060_v10 = vpack.c.bf16 %v3234_v56, %v3232_v21  ;;  %v3242_v15 = vmax.f32 %v3178_v55, 0.0  ;;  %v3244_v19 = vmax.f32 %v3180_v38, 0.0  ;;  %v3129_v59 = vadd.f32 %v8896_v1, %v3057_v7  ;;  %v11107_v55 = vld [vmem:[#allocation34_spill] sm:$0xff] }
 0x794   :  { %v3249_v31 = vpack.c.bf16 %v3189_v16, %v3187_v60  ;;  %v9063_v32 = vpack.c.bf16 %v3238_v36, %v3236_v26  ;;  %v3246_v9 = vmax.f32 %v8980_v62, 0.0  ;;  %v3132_v51 = vadd.f32 %v8966_v45, %v3060_v23  ;;  %v11109_v62 = vld [vmem:[#allocation47_spill] sm:$0xff]  ;;  %v11112_v16 = vld [vmem:[#allocation45_spill] sm:$0xff] }
 0x795   :  { %v3134_v54 = vadd.f32 %v8966_v45, %v3062_v49  ;;  %v3252_v4 = vpack.c.bf16 %v3194_v46, %v3192_v40  ;;  %v9068_v2 = vpack.c.bf16 %v3242_v15, %v3240_v5  ;;  %v3059_v38 = vmul.f32 %v8899_v57, %v11107_v55  ;;  %v11114_v40 = vld [vmem:[#allocation50_spill] sm:$0xff]  ;;  %v11115_v15 = vld [vmem:[#allocation36_spill] sm:$0xff] }
 0x796   :  { %v9070_v22 = vpack.c.bf16 %v3246_v9, %v3244_v19  ;;  %v3061_v63 = vmul.f32 %v8899_v57, %v11108_v42  ;;  %v3191_v30 = vmax.f32 %v3127_v20, 0.0  ;;  %v3193_v35 = vmax.f32 %v3129_v59, 0.0  ;;  %v11111_v20 = vld [vmem:[#allocation44_spill] sm:$0xff]  ;;  %v11116_v59 = vld [vmem:[#allocation37_spill] sm:$0xff] }
 0x797   :  { %v3064_v28 = vmul.f32 %v8973_v14, %v11109_v62  ;;  %v3066_v33 = vmul.f32 %v8973_v14, %v11110_v61  ;;  %v3196_v13 = vmax.f32 %v3132_v51, 0.0  ;;  %v3198_v41 = vmax.f32 %v3134_v54, 0.0  ;;  %v11117_v54 = vld [vmem:[#allocation51_spill] sm:$0xff]  ;;  %v11118_v55 = vld [vmem:[#allocation52_spill] sm:$0xff] }
 0x798   :  { %3448 = vmatmul.mubr.bf16.gmra.mxu1 %v3249_v31  ;;  %v3131_v50 = vadd.f32 %v8896_v1, %v3059_v38  ;;  %v3133_v47 = vadd.f32 %v8896_v1, %v3061_v63  ;;  %v3251_v7 = vpack.c.bf16 %v3193_v35, %v3191_v30  ;;  %v3063_v60 = vmul.f32 %v8899_v57, %v11111_v20  ;;  %v11122_v20 = vld [vmem:[#allocation27_spill] sm:$0xff] }
 0x799   :  { %3455 = vmatprep.mubr.bf16.mxu1 %v3252_v4  ;;  %v3136_v37 = vadd.f32 %v8966_v45, %v3064_v28  ;;  %v3138_v17 = vadd.f32 %v8966_v45, %v3066_v33  ;;  %v3254_v23 = vpack.c.bf16 %v3198_v41, %v3196_v13  ;;  %v3065_v12 = vmul.f32 %v8899_v57, %v11112_v16  ;;  %v11119_v13 = vld [vmem:[#allocation46_spill] sm:$0xff] }
 0x79a   :  { %v3195_v49 = vmax.f32 %v3131_v50, 0.0  ;;  %v3197_v58 = vmax.f32 %v3133_v47, 0.0  ;;  %v3068_v6 = vmul.f32 %v8973_v14, %v11113_v0  ;;  %v3070_v46 = vmul.f32 %v8973_v14, %v11114_v40  ;;  %v11120_v50 = vld [vmem:[#allocation18_spill] sm:$0xff] }
 0x79b   :  { %v3200_v27 = vmax.f32 %v3136_v37, 0.0  ;;  %v3202_v3 = vmax.f32 %v3138_v17, 0.0  ;;  %v3135_v52 = vadd.f32 %v8896_v1, %v3063_v60  ;;  %v3137_v21 = vadd.f32 %v8896_v1, %v3065_v12  ;;  %v11121_v17 = vld [vmem:[#allocation31_spill] sm:$0xff] }
 0x79c   :  { %v3253_v56 = vpack.c.bf16 %v3197_v58, %v3195_v49  ;;  %v3140_v26 = vadd.f32 %v8966_v45, %v3068_v6  ;;  %v3142_v36 = vadd.f32 %v8966_v45, %v3070_v46  ;;  %v3067_v19 = vmul.f32 %v8899_v57, %v11115_v15  ;;  %v11126_v15 = vld [vmem:[#allocation14_spill] sm:$0xff] }
 0x79d   :  { %v3256_v5 = vpack.c.bf16 %v3202_v3, %v3200_v27  ;;  %v3069_v31 = vmul.f32 %v8899_v57, %v11116_v59  ;;  %v3199_v9 = vmax.f32 %v3135_v52, 0.0  ;;  %v3201_v51 = vmax.f32 %v3137_v21, 0.0  ;;  %v11123_v27 = vld [vmem:[#allocation38_spill] sm:$0xff]  ;;  %v11124_v52 = vld [vmem:[#allocation39_spill] sm:$0xff] }
 0x79e   :  { %v3072_v4 = vmul.f32 %v8973_v14, %v11117_v54  ;;  %v3074_v38 = vmul.f32 %v8973_v14, %v11118_v55  ;;  %v3204_v42 = vmax.f32 %v3140_v26, 0.0  ;;  %v3206_v63 = vmax.f32 %v3142_v36, 0.0  ;;  %v11125_v36 = vld [vmem:[#allocation13_spill] sm:$0xff] }
 0x79f   :  { %v3139_v30 = vadd.f32 %v8896_v1, %v3067_v19  ;;  %v3141_v35 = vadd.f32 %v8896_v1, %v3069_v31  ;;  %v3255_v62 = vpack.c.bf16 %v3201_v51, %v3199_v9  ;;  %v3071_v41 = vmul.f32 %v8899_v57, %v11119_v13 }
 0x7a0   :  { %3456 = vmatmul.mubr.bf16.gmra.mxu1 %v3251_v7  ;;  %v3144_v28 = vadd.f32 %v8966_v45, %v3072_v4  ;;  %v3146_v61 = vadd.f32 %v8966_v45, %v3074_v38  ;;  %v3258_v33 = vpack.c.bf16 %v3206_v63, %v3204_v42  ;;  %v3073_v47 = vmul.f32 %v8899_v57, %v11120_v50 }
 0x7a1   :  { %3463 = vmatprep.mubr.bf16.mxu1 %v3254_v23  ;;  %v3203_v7 = vmax.f32 %v3139_v30, 0.0  ;;  %v3205_v37 = vmax.f32 %v3141_v35, 0.0  ;;  %v3076_v23 = vmul.f32 %v8973_v14, %v11121_v17  ;;  %v3078_v60 = vmul.f32 %v8973_v14, %v11122_v20 }
 0x7a2   :  { %v3208_v16 = vmax.f32 %v3144_v28, 0.0  ;;  %v3210_v12 = vmax.f32 %v3146_v61, 0.0  ;;  %v3143_v49 = vadd.f32 %v8896_v1, %v3071_v41  ;;  %v3145_v58 = vadd.f32 %v8896_v1, %v3073_v47 }
 0x7a3   :  { %v3257_v0 = vpack.c.bf16 %v3205_v37, %v3203_v7  ;;  %v3148_v6 = vadd.f32 %v8966_v45, %v3076_v23  ;;  %v3150_v40 = vadd.f32 %v8966_v45, %v3078_v60  ;;  %v3075_v3 = vmul.f32 %v8899_v57, %v11123_v27 }
 0x7a4   :  { %v3260_v46 = vpack.c.bf16 %v3210_v12, %v3208_v16  ;;  %v3077_v21 = vmul.f32 %v8899_v57, %v11124_v52  ;;  %v3209_v26 = vmax.f32 %v3145_v58, 0.0  ;;  %v3082_v19 = vmul.f32 %v8973_v14, %v11126_v15 }
 0x7a5   :  { %v3212_v59 = vmax.f32 %v3148_v6, 0.0  ;;  %v3214_v31 = vmax.f32 %v3150_v40, 0.0  ;;  %v3147_v9 = vadd.f32 %v8896_v1, %v3075_v3 }
 0x7a6   :  { %v3149_v51 = vadd.f32 %v8896_v1, %v3077_v21  ;;  %v3154_v55 = vadd.f32 %v8966_v45, %v3082_v19 }
 0x7a7   :  { %v3262_v57 = vpack.c.bf16 %v3214_v31, %v3212_v59  ;;  %v3211_v38 = vmax.f32 %v3147_v9, 0.0 }
 0x7a8   :  { %3464 = vmatmul.mubr.bf16.gmra.mxu1 %v3253_v56  ;;  %v3207_v56 = vmax.f32 %v3143_v49, 0.0  ;;  %v3213_v42 = vmax.f32 %v3149_v51, 0.0  ;;  %v3218_v30 = vmax.f32 %v3154_v55, 0.0 }
 0x7a9   :  { %3471 = vmatprep.mubr.bf16.mxu1 %v3256_v5  ;;  %v3080_v5 = vmul.f32 %v8973_v14, %v11125_v36 }
 0x7aa   :  { %v3259_v54 = vpack.c.bf16 %v3209_v26, %v3207_v56  ;;  %v3261_v35 = vpack.c.bf16 %v3213_v42, %v3211_v38 }
 0x7ab   :  { %v3152_v4 = vadd.f32 %v8966_v45, %v3080_v5 }
 0x7ad   :  { %v3216_v63 = vmax.f32 %v3152_v4, 0.0 }
 0x7af   :  { %v3264_v14 = vpack.c.bf16 %v3218_v30, %v3216_v63 }
 0x7b0   :  { %3472 = vmatmul.mubr.bf16.gmra.mxu1 %v3255_v62 }
 0x7b1   :  { %3479 = vmatprep.mubr.bf16.mxu1 %v3258_v33 }
 0x7b8   :  { %3480 = vmatmul.mubr.bf16.gmra.mxu1 %v3257_v0 }
 0x7b9   :  { %3487 = vmatprep.mubr.bf16.mxu1 %v3260_v46 }
 0x7c0   :  { %3488 = vmatmul.mubr.bf16.gmra.mxu1 %v3259_v54 }
 0x7c1   :  { %3495 = vmatprep.mubr.bf16.mxu1 %v3262_v57 }
 0x7c8   :  { %3496 = vmatmul.mubr.bf16.gmra.mxu1 %v3261_v35 }
 0x7c9   :  { %3503 = vmatprep.mubr.bf16.mxu1 %v3264_v14 }
 0x7d0   :  { %3504 = vmatmul.mubr.bf16.gmra.mxu1 %v8949_v18  ;;  %v5680_v18 = vld [vmem:[#allocation9 + $0x38] sm:$0xff]  }
 0x7d1   :  { %3511 = vmatprep.mubr.bf16.mxu1 %v9054_v29  ;;  %5462 = vmatprep.subr.bf16.mxu0 %v5680_v18 }
 0x7d2   :  { %5463 = vmatpush3.bf16.msra.mxu0 %v5680_v18 }
 0x7d8   :  { %3512 = vmatmul.mubr.bf16.gmra.mxu1 %v8953_v25 }
 0x7d9   :  { %3519 = vmatprep.mubr.bf16.mxu1 %v9056_v44 }
 0x7e0   :  { %3520 = vmatmul.mubr.bf16.gmra.mxu1 %v8955_v53 }
 0x7e1   :  { %3527 = vmatprep.mubr.bf16.mxu1 %v9058_v8 }
 0x7e8   :  { %3528 = vmatmul.mubr.bf16.gmra.mxu1 %v8961_v43 }
 0x7e9   :  { %3535 = vmatprep.mubr.bf16.mxu1 %v9060_v10 }
 0x7f0   :  { %3536 = vmatmul.mubr.bf16.gmra.mxu1 %v8951_v48 }
 0x7f1   :  { %3543 = vmatprep.mubr.bf16.mxu1 %v9063_v32 }
 0x7f8   :  { %3544 = vmatmul.mubr.bf16.gmra.mxu1 %v8957_v24 }
 0x7f9   :  { %3551 = vmatprep.mubr.bf16.mxu1 %v9068_v2 }
 0x800   :  { %3552 = vmatmul.mubr.bf16.gmra.mxu1 %v8959_v34 }
 0x801   :  { %3559 = vmatprep.mubr.bf16.mxu1 %v9070_v22 }
 0x808   :  { %3560 = vmatmul.mubr.bf16.gmra.mxu1 %v8963_v11 }
 0x850   :  { %v5302_v1 = vpop.f32.mrf.mxu1 }
 0x852   :  { %v5303_v25 = vpop.f32.mrf.mxu1 }
 0x853   :  { %v9147_v53 = vadd.f32 %v5303_v25, %v5302_v1 }
 0x854   :  { %v5305_v48 = vpop.f32.mrf.mxu1 }
 0x856   :  { %v5306_v43 = vpop.f32.mrf.mxu1 }
 0x857   :  { %v9149_v0 = vadd.f32 %v5306_v43, %v5305_v48 }
 0x858   :  { %v5308_v45 = vpop.f32.mrf.mxu1 }
 0x859   :  { %v3568_v27 = vadd.f32 %v9149_v0, %v9147_v53 }
 0x85a   :  { %v5309_v29 = vpop.f32.mrf.mxu1 }
 0x85b   :  { %v9151_v40 = vadd.f32 %v5309_v29, %v5308_v45 }
 0x85c   :  { %v5311_v24 = vpop.f32.mrf.mxu1 }
 0x85d   :  { %v3569_v21 = vadd.f32 %v9151_v40, %v3568_v27 }
 0x85e   :  { %v5312_v44 = vpop.f32.mrf.mxu1 }
 0x85f   :  { %v9155_v3 = vadd.f32 %v5312_v44, %v5311_v24 }
 0x860   :  { %v5314_v8 = vpop.f32.mrf.mxu1 }
 0x861   :  { %v3570_v36 = vadd.f32 %v9155_v3, %v3569_v21 }
 0x862   :  { %v5315_v10 = vpop.f32.mrf.mxu1 }
 0x863   :  { %v9158_v56 = vadd.f32 %v5315_v10, %v5314_v8 }
 0x864   :  { %v5317_v34 = vpop.f32.mrf.mxu1 }
 0x865   :  { %v3571_v19 = vadd.f32 %v9158_v56, %v3570_v36 }
 0x866   :  { %v5318_v32 = vpop.f32.mrf.mxu1 }
 0x867   :  { %v9161_v5 = vadd.f32 %v5318_v32, %v5317_v34 }
 0x868   :  { %v5320_v2 = vpop.f32.mrf.mxu1 }
 0x869   :  { %v3572_v9 = vadd.f32 %v9161_v5, %v3571_v19 }
 0x86a   :  { %v5321_v22 = vpop.f32.mrf.mxu1 }
 0x86b   :  { %v9164_v59 = vadd.f32 %v5321_v22, %v5320_v2 }
 0x86c   :  { %v5323_v11 = vpop.f32.mrf.mxu1 }
 0x86d   :  { %v3573_v4 = vadd.f32 %v9164_v59, %v3572_v9 }
 0x86e   :  { %v5324_v62 = vpop.f32.mrf.mxu1 }
 0x86f   :  { %v9167_v51 = vadd.f32 %v5324_v62, %v5323_v11 }
 0x870   :  { %v5326_v28 = vpop.f32.mrf.mxu1 }
 0x871   :  { %v3574_v38 = vadd.f32 %v9167_v51, %v3573_v4 }
 0x872   :  { %v5327_v61 = vpop.f32.mrf.mxu1 }
 0x873   :  { %v9170_v55 = vadd.f32 %v5327_v61, %v5326_v28 }
 0x874   :  { %v5329_v33 = vpop.f32.mrf.mxu1 }
 0x875   :  { %v3575_v30 = vadd.f32 %v9170_v55, %v3574_v38  ;;  %v5681_v38 = vld [vmem:[#allocation9 + $0x30] sm:$0xff]  }
 0x876   :  { %v5330_v13 = vpop.f32.mrf.mxu1  ;;  %5464 = vmatprep.subr.bf16.mxu0 %v5681_v38 }
 0x877   :  { %v9173_v42 = vadd.f32 %v5330_v13, %v5329_v33  ;;  %5465 = vmatpush3.bf16.msra.mxu0 %v5681_v38 }
 0x878   :  { %v5332_v41 = vpop.f32.mrf.mxu1 }
 0x879   :  { %v3576_v18 = vadd.f32 %v9173_v42, %v3575_v30 }
 0x87a   :  { %v5333_v50 = vpop.f32.mrf.mxu1 }
 0x87b   :  { %v9176_v35 = vadd.f32 %v5333_v50, %v5332_v41 }
 0x87c   :  { %v5335_v47 = vpop.f32.mrf.mxu1 }
 0x87d   :  { %v3577_v48 = vadd.f32 %v9176_v35, %v3576_v18 }
 0x87e   :  { %v5336_v7 = vpop.f32.mrf.mxu1 }
 0x87f   :  { %v9179_v1 = vadd.f32 %v5336_v7, %v5335_v47 }
 0x880   :  { %v5338_v37 = vpop.f32.mrf.mxu1 }
 0x881   :  { %v3578_v29 = vadd.f32 %v9179_v1, %v3577_v48 }
 0x882   :  { %v5339_v17 = vpop.f32.mrf.mxu1 }
 0x883   :  { %v9182_v43 = vadd.f32 %v5339_v17, %v5338_v37 }
 0x884   :  { %v5341_v23 = vpop.f32.mrf.mxu1 }
 0x885   :  { %v3579_v8 = vadd.f32 %v9182_v43, %v3578_v29 }
 0x886   :  { %v5342_v20 = vpop.f32.mrf.mxu1 }
 0x887   :  { %v9185_v24 = vadd.f32 %v5342_v20, %v5341_v23 }
 0x888   :  { %v5344_v60 = vpop.f32.mrf.mxu1 }
 0x889   :  { %v3580_v32 = vadd.f32 %v9185_v24, %v3579_v8 }
 0x88a   :  { %v5345_v16 = vpop.f32.mrf.mxu1 }
 0x88b   :  { %v9188_v10 = vadd.f32 %v5345_v16, %v5344_v60 }
 0x88c   :  { %v5347_v12 = vpop.f32.mrf.mxu1 }
 0x88d   :  { %v3581_v11 = vadd.f32 %v9188_v10, %v3580_v32 }
 0x88e   :  { %v5348_v49 = vpop.f32.mrf.mxu1 }
 0x88f   :  { %v9191_v2 = vadd.f32 %v5348_v49, %v5347_v12 }
 0x890   :  { %v5350_v58 = vpop.f32.mrf.mxu1 }
 0x891   :  { %v3582_v61 = vadd.f32 %v9191_v2, %v3581_v11  ;;  %v5683_v11 = vld [vmem:[#allocation9 + $0x20] sm:$0xff]  }
 0x892   :  { %v5351_v6 = vpop.f32.mrf.mxu1 }
 0x893   :  { %v9194_v62 = vadd.f32 %v5351_v6, %v5350_v58 }
 0x894   :  { %v5353_v46 = vpop.f32.mrf.mxu1 }
 0x895   :  { %v3583_v41 = vadd.f32 %v9194_v62, %v3582_v61 }
 0x896   :  { %v5354_v52 = vpop.f32.mrf.mxu1 }
 0x897   :  { %v9197_v33 = vadd.f32 %v5354_v52, %v5353_v46 }
 0x898   :  { %v5356_v26 = vpop.f32.mrf.mxu1 }
 0x899   :  { %v3584_v7 = vadd.f32 %v9197_v33, %v3583_v41 }
 0x89a   :  { %v5357_v15 = vpop.f32.mrf.mxu1 }
 0x89b   :  { %v9200_v50 = vadd.f32 %v5357_v15, %v5356_v26 }
 0x89c   :  { %v5359_v31 = vpop.f32.mrf.mxu1 }
 0x89d   :  { %v3585_v23 = vadd.f32 %v9200_v50, %v3584_v7 }
 0x89e   :  { %v5360_v54 = vpop.f32.mrf.mxu1 }
 0x89f   :  { %v9203_v37 = vadd.f32 %v5360_v54, %v5359_v31 }
 0x8a0   :  { %v5362_v57 = vpop.f32.mrf.mxu1 }
 0x8a1   :  { %v3586_v16 = vadd.f32 %v9203_v37, %v3585_v23  ;;  %v5685_v23 = vld [vmem:[#allocation9 + $0x10] sm:$0xff]  }
 0x8a2   :  { %v5363_v63 = vpop.f32.mrf.mxu1 }
 0x8a3   :  { %v9206_v20 = vadd.f32 %v5363_v63, %v5362_v57 }
 0x8a4   :  { %v5365_v14 = vpop.f32.mrf.mxu1 }
 0x8a5   :  { %v3587_v58 = vadd.f32 %v9206_v20, %v3586_v16 }
 0x8a6   :  { %v5366_v25 = vpop.f32.mrf.mxu1 }
 0x8a7   :  { %v9209_v12 = vadd.f32 %v5366_v25, %v5365_v14 }
 0x8a8   :  { %v5368_v45 = vpop.f32.mrf.mxu1 }
 0x8a9   :  { %v3588_v27 = vadd.f32 %v9209_v12, %v3587_v58 }
 0x8aa   :  { %v5369_v44 = vpop.f32.mrf.mxu1 }
 0x8ab   :  { %v9212_v6 = vadd.f32 %v5369_v44, %v5368_v45  ;;  %v5682_v45 = vld [vmem:[#allocation9 + $0x28] sm:$0xff]  }
 0x8ac   :  { %v5371_v34 = vpop.f32.mrf.mxu1  ;;  %5466 = vmatprep.subr.bf16.mxu0 %v5682_v45 }
 0x8ad   :  { %v3589_v26 = vadd.f32 %v9212_v6, %v3588_v27  ;;  %5467 = vmatpush3.bf16.msra.mxu0 %v5682_v45 }
 0x8ae   :  { %v5372_v22 = vpop.f32.mrf.mxu1  ;;  %5468 = vmatprep.subr.bf16.mxu0 %v5683_v11 }
 0x8af   :  { %v9215_v52 = vadd.f32 %v5372_v22, %v5371_v34 }
 0x8b0   :  { %v5374_v28 = vpop.f32.mrf.mxu1 }
 0x8b1   :  { %v3590_v19 = vadd.f32 %v9215_v52, %v3589_v26  ;;  %5469 = vmatpush3.bf16.msra.mxu0 %v5683_v11 }
 0x8b2   :  { %v5375_v13 = vpop.f32.mrf.mxu1 }
 0x8b3   :  { %v9218_v36 = vadd.f32 %v5375_v13, %v5374_v28 }
 0x8b4   :  { %v5377_v47 = vpop.f32.mrf.mxu1 }
 0x8b5   :  { %v3591_v54 = vadd.f32 %v9218_v36, %v3590_v19 }
 0x8b6   :  { %v5378_v17 = vpop.f32.mrf.mxu1 }
 0x8b7   :  { %v9221_v31 = vadd.f32 %v5378_v17, %v5377_v47  ;;  %v5684_v47 = vld [vmem:[#allocation9 + $0x18] sm:$0xff]  }
 0x8b8   :  { %v5380_v60 = vpop.f32.mrf.mxu1  ;;  %5470 = vmatprep.subr.bf16.mxu0 %v5684_v47 }
 0x8b9   :  { %v3592_v63 = vadd.f32 %v9221_v31, %v3591_v54  ;;  %5471 = vmatpush3.bf16.msra.mxu0 %v5684_v47 }
 0x8ba   :  { %v5381_v49 = vpop.f32.mrf.mxu1  ;;  %5472 = vmatprep.subr.bf16.mxu0 %v5685_v23 }
 0x8bb   :  { %v9224_v4 = vadd.f32 %v5381_v49, %v5380_v60  ;;  %v5686_v49 = vld [vmem:[#allocation9 + $0x8] sm:$0xff]  }
 0x8bc   :  { %v5383_v46 = vpop.f32.mrf.mxu1 }
 0x8bd   :  { %v3593_v18 = vadd.f32 %v9224_v4, %v3592_v63  ;;  %5473 = vmatpush3.bf16.msra.mxu0 %v5685_v23 }
 0x8be   :  { %v5384_v21 = vpop.f32.mrf.mxu1  ;;  %5474 = vmatprep.subr.bf16.mxu0 %v5686_v49 }
 0x8bf   :  { %v9227_v30 = vadd.f32 %v5384_v21, %v5383_v46  ;;  %v5687_v46 = vld [vmem:[#allocation9] sm:$0xff]  }
 0x8c0   :  { %v5386_v15 = vpop.f32.mrf.mxu1 }
 0x8c1   :  { %v3594_v29 = vadd.f32 %v9227_v30, %v3593_v18  ;;  %5475 = vmatpush3.bf16.msra.mxu0 %v5686_v49 }
 0x8c2   :  { %v5387_v9 = vpop.f32.mrf.mxu1  ;;  %5476 = vmatprep.subr.bf16.mxu0 %v5687_v46 }
 0x8c3   :  { %v9230_v25 = vadd.f32 %v5387_v9, %v5386_v15 }
 0x8c4   :  { %v5389_v57 = vpop.f32.mrf.mxu1 }
 0x8c5   :  { %v3595_v34 = vadd.f32 %v9230_v25, %v3594_v29  ;;  %5477 = vmatpush3.bf16.msra.mxu0 %v5687_v46 }
 0x8c6   :  { %v5390_v14 = vpop.f32.mrf.mxu1 }
 0x8c7   :  { %v9233_v44 = vadd.f32 %v5390_v14, %v5389_v57 }
 0x8c8   :  { %v5392_v48 = vpop.f32.mrf.mxu1 }
 0x8c9   :  { %v3596_v28 = vadd.f32 %v9233_v44, %v3595_v34 }
 0x8ca   :  { %v5393_v8 = vpop.f32.mrf.mxu1 }
 0x8cb   :  { %v9236_v32 = vadd.f32 %v5393_v8, %v5392_v48 }
 0x8cc   :  { %v5395_v22 = vpop.f32.mrf.mxu1 }
 0x8cd   :  { %v3597_v13 = vadd.f32 %v9236_v32, %v3596_v28 }
 0x8ce   :  { %v5396_v61 = vpop.f32.mrf.mxu1 }
 0x8cf   :  { %v9240_v41 = vadd.f32 %v5396_v61, %v5395_v22 }
 0x8d1   :  { %v3598_v7 = vadd.f32 %v9240_v41, %v3597_v13 }
 0x8d3   :  { %v3599_v17 = vrot.slane %v3598_v7, 4 }
 0x8d5   :  { %v3600_v60 = vadd.f32 %v3599_v17, %v3598_v7 }
 0x8d7   :  { %v3601_v16 = vrot.slane %v3600_v60, 2 }
 0x8d9   :  { %v3602_v58 = vadd.f32 %v3601_v16, %v3600_v60 }
 0x8db   :  { %v3603_v27 = vrot.slane %v3602_v58, 1 }
 0x8dd   :  { %v3604_v21 = vadd.f32 %v3603_v27, %v3602_v58 }
 0x8df   :  { %v9243_v26 = vmul.f32 0.00390625, %v3604_v21 }
 0x8e1   :  { %v9247_v15 = vsub.f32 %v9147_v53, %v9243_v26  ;;  %v9251_v19 = vsub.f32 %v9149_v0, %v9243_v26  ;;  %v9255_v9 = vsub.f32 %v9151_v40, %v9243_v26  ;;  %v9263_v38 = vsub.f32 %v9155_v3, %v9243_v26 }
 0x8e2   :  { %v9267_v53 = vsub.f32 %v9158_v56, %v9243_v26  ;;  %v9273_v40 = vsub.f32 %v9161_v5, %v9243_v26  ;;  %v9279_v3 = vsub.f32 %v9164_v59, %v9243_v26  ;;  %v9285_v45 = vsub.f32 %v9167_v51, %v9243_v26 }
 0x8e3   :  { %v3638_v54 = vmul.f32 %v9247_v15, %v9247_v15  ;;  %v3639_v57 = vmul.f32 %v9251_v19, %v9251_v19  ;;  %v3640_v0 = vmul.f32 %v9255_v9, %v9255_v9  ;;  %v3641_v14 = vmul.f32 %v9263_v38, %v9263_v38 }
 0x8e4   :  { %v3642_v56 = vmul.f32 %v9267_v53, %v9267_v53  ;;  %v3643_v5 = vmul.f32 %v9273_v40, %v9273_v40  ;;  %v9291_v8 = vsub.f32 %v9170_v55, %v9243_v26  ;;  %v3644_v59 = vmul.f32 %v9279_v3, %v9279_v3 }
 0x8e5   :  { %v3670_v63 = vadd.f32 %v3639_v57, %v3638_v54  ;;  %v9297_v22 = vsub.f32 %v9173_v42, %v9243_v26  ;;  %v3645_v51 = vmul.f32 %v9285_v45, %v9285_v45  ;;  %v9303_v28 = vsub.f32 %v9176_v35, %v9243_v26 }
 0x8e6   :  { %v3646_v55 = vmul.f32 %v9291_v8, %v9291_v8  ;;  %v9309_v13 = vsub.f32 %v9179_v1, %v9243_v26  ;;  %v9315_v7 = vsub.f32 %v9182_v43, %v9243_v26  ;;  %v9321_v23 = vsub.f32 %v9185_v24, %v9243_v26 }
 0x8e7   :  { %v3671_v18 = vadd.f32 %v3670_v63, %v3640_v0  ;;  %v3647_v42 = vmul.f32 %v9297_v22, %v9297_v22  ;;  %v3648_v35 = vmul.f32 %v9303_v28, %v9303_v28  ;;  %v9327_v16 = vsub.f32 %v9188_v10, %v9243_v26 }
 0x8e8   :  { %v3649_v1 = vmul.f32 %v9309_v13, %v9309_v13  ;;  %v3650_v43 = vmul.f32 %v9315_v7, %v9315_v7  ;;  %v9333_v58 = vsub.f32 %v9191_v2, %v9243_v26  ;;  %v3651_v24 = vmul.f32 %v9321_v23, %v9321_v23 }
 0x8e9   :  { %v3672_v48 = vadd.f32 %v3671_v18, %v3641_v14  ;;  %v9339_v27 = vsub.f32 %v9194_v62, %v9243_v26  ;;  %v3652_v10 = vmul.f32 %v9327_v16, %v9327_v16  ;;  %v9345_v54 = vsub.f32 %v9197_v33, %v9243_v26 }
 0x8ea   :  { %v3653_v2 = vmul.f32 %v9333_v58, %v9333_v58  ;;  %v9351_v0 = vsub.f32 %v9200_v50, %v9243_v26  ;;  %v9357_v14 = vsub.f32 %v9203_v37, %v9243_v26 }
 0x8eb   :  { %v3673_v29 = vadd.f32 %v3672_v48, %v3642_v56  ;;  %v3654_v62 = vmul.f32 %v9339_v27, %v9339_v27  ;;  %v3655_v33 = vmul.f32 %v9345_v54, %v9345_v54  ;;  %v9363_v56 = vsub.f32 %v9206_v20, %v9243_v26 }
 0x8ec   :  { %v3656_v50 = vmul.f32 %v9351_v0, %v9351_v0  ;;  %v3657_v37 = vmul.f32 %v9357_v14, %v9357_v14 }
 0x8ed   :  { %v3674_v34 = vadd.f32 %v3673_v29, %v3643_v5  ;;  %v9369_v5 = vsub.f32 %v9209_v12, %v9243_v26  ;;  %v3658_v20 = vmul.f32 %v9363_v56, %v9363_v56 }
 0x8ef   :  { %v3675_v11 = vadd.f32 %v3674_v34, %v3644_v59  ;;  %v9375_v59 = vsub.f32 %v9212_v6, %v9243_v26  ;;  %v3659_v12 = vmul.f32 %v9369_v5, %v9369_v5 }
 0x8f1   :  { %v3676_v61 = vadd.f32 %v3675_v11, %v3645_v51  ;;  %v9381_v51 = vsub.f32 %v9215_v52, %v9243_v26  ;;  %v3660_v6 = vmul.f32 %v9375_v59, %v9375_v59 }
 0x8f3   :  { %v3677_v47 = vadd.f32 %v3676_v61, %v3646_v55  ;;  %v9387_v55 = vsub.f32 %v9218_v36, %v9243_v26  ;;  %v3661_v52 = vmul.f32 %v9381_v51, %v9381_v51 }
 0x8f5   :  { %v3678_v17 = vadd.f32 %v3677_v47, %v3647_v42  ;;  %v9393_v42 = vsub.f32 %v9221_v31, %v9243_v26  ;;  %v3662_v36 = vmul.f32 %v9387_v55, %v9387_v55 }
 0x8f7   :  { %v3679_v60 = vadd.f32 %v3678_v17, %v3648_v35  ;;  %v9399_v35 = vsub.f32 %v9224_v4, %v9243_v26  ;;  %v3663_v31 = vmul.f32 %v9393_v42, %v9393_v42 }
 0x8f9   :  { %v3680_v49 = vadd.f32 %v3679_v60, %v3649_v1  ;;  %v9405_v1 = vsub.f32 %v9227_v30, %v9243_v26  ;;  %v3664_v4 = vmul.f32 %v9399_v35, %v9399_v35 }
 0x8fb   :  { %v3681_v46 = vadd.f32 %v3680_v49, %v3650_v43  ;;  %v9411_v43 = vsub.f32 %v9230_v25, %v9243_v26  ;;  %v3665_v30 = vmul.f32 %v9405_v1, %v9405_v1 }
 0x8fd   :  { %v3682_v21 = vadd.f32 %v3681_v46, %v3651_v24  ;;  %v9417_v24 = vsub.f32 %v9233_v44, %v9243_v26  ;;  %v3666_v25 = vmul.f32 %v9411_v43, %v9411_v43 }
 0x8ff   :  { %v3683_v57 = vadd.f32 %v3682_v21, %v3652_v10  ;;  %v9423_v10 = vsub.f32 %v9236_v32, %v9243_v26  ;;  %v3667_v44 = vmul.f32 %v9417_v24, %v9417_v24 }
 0x901   :  { %v3684_v63 = vadd.f32 %v3683_v57, %v3653_v2  ;;  %v9429_v2 = vsub.f32 %v9240_v41, %v9243_v26 }
 0x903   :  { %v3685_v18 = vadd.f32 %v3684_v63, %v3654_v62  ;;  %v3668_v62 = vmul.f32 %v9423_v10, %v9423_v10  ;;  %v3669_v32 = vmul.f32 %v9429_v2, %v9429_v2 }
 0x905   :  { %v3686_v48 = vadd.f32 %v3685_v18, %v3655_v33 }
 0x907   :  { %v3687_v29 = vadd.f32 %v3686_v48, %v3656_v50 }
 0x909   :  { %v3688_v34 = vadd.f32 %v3687_v29, %v3657_v37 }
 0x90b   :  { %v3689_v11 = vadd.f32 %v3688_v34, %v3658_v20 }
 0x90d   :  { %v3690_v61 = vadd.f32 %v3689_v11, %v3659_v12  ;;  %v5711_v11 = vld [vmem:[#allocation2] sm:$0xff] }
 0x90f   :  { %v3691_v47 = vadd.f32 %v3690_v61, %v3660_v6  ;;  %v11127_v61 = vld [vmem:[#allocation21_spill] sm:$0xff] }
 0x911   :  { %v3692_v17 = vadd.f32 %v3691_v47, %v3661_v52  ;;  %v3713_v52 = vsub.s32 7, %v11127_v61 }
 0x913   :  { %v3693_v60 = vadd.f32 %v3692_v17, %v3662_v36  ;;  %v9442_v36 = vld [vmem:[#allocation2 + $0x10] sm:$0xff]  ;;  %v11128_v17 = vld [vmem:[#allocation20_spill] sm:$0xff] }
 0x915   :  { %v3694_v49 = vadd.f32 %v3693_v60, %v3663_v31  ;;  %v9446_v31 = vrot.slane %v9442_v36, %v11128_v17 }
 0x917   :  { %v3695_v46 = vadd.f32 %v3694_v49, %v3664_v4 }
 0x919   :  { %v3696_v21 = vadd.f32 %v3695_v46, %v3665_v30 }
 0x91b   :  { %v3697_v57 = vadd.f32 %v3696_v21, %v3666_v25 }
 0x91d   :  { %v3698_v63 = vadd.f32 %v3697_v57, %v3667_v44 }
 0x91f   :  { %v3699_v33 = vadd.f32 %v3698_v63, %v3668_v62 }
 0x921   :  { %v3700_v18 = vadd.f32 %v3699_v33, %v3669_v32 }
 0x923   :  { %v3701_v50 = vrot.slane %v3700_v18, 4 }
 0x925   :  { %v3702_v48 = vadd.f32 %v3701_v50, %v3700_v18 }
 0x927   :  { %v3703_v37 = vrot.slane %v3702_v48, 2 }
 0x929   :  { %v3704_v29 = vadd.f32 %v3703_v37, %v3702_v48 }
 0x92b   :  { %v3705_v20 = vrot.slane %v3704_v29, 1 }
 0x92d   :  { %v3706_v41 = vadd.f32 %v3705_v20, %v3704_v29 }
 0x92f   :  { %v3707_v26 = vmul.f32 0.00390625, %v3706_v41 }
 0x931   :  { %v3708_v34 = vadd.f32 1e-05, %v3707_v26 }
 0x933   :  { %5700 = vrsqrt.f32 %v3708_v34 }
 0x940   :  { %v5701_v12 = vpop.eup %5700 }
 0x941   :  { %v3710_v6 = vmul.f32 %v5711_v11, %v5701_v12 }
 0x943   :  { %v9440_v47 = vrot.slane %v3710_v6, %v3713_v52 }
 0x945   :  { %v3717_v60 = vmul.f32 %v9440_v47, %v9255_v9  ;;  %v3718_v4 = vmul.f32 %v9440_v47, %v9263_v38  ;;  %v3715_v46 = vmul.f32 %v9440_v47, %v9247_v15  ;;  %v3716_v25 = vmul.f32 %v9440_v47, %v9251_v19 }
 0x946   :  { %v3719_v21 = vmul.f32 %v9440_v47, %v9267_v53  ;;  %v3720_v44 = vmul.f32 %v9440_v47, %v9273_v40  ;;  %v3721_v15 = vmul.f32 %v9440_v47, %v9279_v3  ;;  %v3722_v19 = vmul.f32 %v9440_v47, %v9285_v45 }
 0x947   :  { %v3753_v49 = vadd.f32 %v9446_v31, %v3717_v60  ;;  %v3754_v30 = vadd.f32 %v9446_v31, %v3718_v4  ;;  %v3751_v38 = vadd.f32 %v9446_v31, %v3715_v46  ;;  %v3752_v62 = vadd.f32 %v9446_v31, %v3716_v25 }
 0x948   :  { %v3755_v63 = vadd.f32 %v9446_v31, %v3719_v21  ;;  %v3723_v53 = vmul.f32 %v9440_v47, %v9291_v8  ;;  %v3756_v32 = vadd.f32 %v9446_v31, %v3720_v44  ;;  %v3724_v40 = vmul.f32 %v9440_v47, %v9297_v22 }
 0x949   :  { %v3785_v9 = vmax.f32 %v3753_v49, 0.0  ;;  %v3786_v57 = vmax.f32 %v3754_v30, 0.0  ;;  %v3783_v33 = vmax.f32 %v3751_v38, 0.0  ;;  %v3784_v18 = vmax.f32 %v3752_v62, 0.0 }
 0x94a   :  { %v3787_v50 = vmax.f32 %v3755_v63, 0.0  ;;  %v3788_v37 = vmax.f32 %v3756_v32, 0.0  ;;  %v3757_v20 = vadd.f32 %v9446_v31, %v3721_v15  ;;  %v3758_v3 = vadd.f32 %v9446_v31, %v3722_v19 }
 0x94b   :  { %v3816_v48 = vpack.c.bf16 %v3786_v57, %v3785_v9  ;;  %v3815_v29 = vpack.c.bf16 %v3784_v18, %v3783_v33  ;;  %v3759_v41 = vadd.f32 %v9446_v31, %v3723_v53  ;;  %v3760_v8 = vadd.f32 %v9446_v31, %v3724_v40 }
 0x94c   :  { %v3817_v45 = vpack.c.bf16 %v3788_v37, %v3787_v50  ;;  %v3725_v22 = vmul.f32 %v9440_v47, %v9303_v28  ;;  %v3726_v26 = vmul.f32 %v9440_v47, %v9309_v13  ;;  %v3789_v34 = vmax.f32 %v3757_v20, 0.0 }
 0x94d   :  { %5478 = vmatprep.mubr.bf16.mxu0 %v3815_v29  ;;  %v3790_v12 = vmax.f32 %v3758_v3, 0.0  ;;  %v3727_v11 = vmul.f32 %v9440_v47, %v9315_v7  ;;  %v3728_v6 = vmul.f32 %v9440_v47, %v9321_v23  ;;  %v3791_v17 = vmax.f32 %v3759_v41, 0.0 }
 0x94e   :  { %5479 = vmatmul.mubr.bf16.vlgmr.msra.gmra.mxu0 %v3816_v48  ;;  %v3792_v60 = vmax.f32 %v3760_v8, 0.0  ;;  %v3761_v49 = vadd.f32 %v9446_v31, %v3725_v22  ;;  %v3762_v30 = vadd.f32 %v9446_v31, %v3726_v26  ;;  %v3729_v7 = vmul.f32 %v9440_v47, %v9327_v16 }
 0x94f   :  { %5482 = vmatprep.mubr.bf16.mxu0 %v3817_v45  ;;  %v3818_v4 = vpack.c.bf16 %v3790_v12, %v3789_v34  ;;  %v3763_v28 = vadd.f32 %v9446_v31, %v3727_v11  ;;  %v3764_v13 = vadd.f32 %v9446_v31, %v3728_v6  ;;  %v3730_v23 = vmul.f32 %v9440_v47, %v9333_v58 }
 0x950   :  { %v3819_v46 = vpack.c.bf16 %v3792_v60, %v3791_v17  ;;  %v3793_v25 = vmax.f32 %v3761_v49, 0.0  ;;  %v3794_v21 = vmax.f32 %v3762_v30, 0.0  ;;  %v3731_v44 = vmul.f32 %v9440_v47, %v9339_v27 }
 0x951   :  { %v3732_v9 = vmul.f32 %v9440_v47, %v9345_v54  ;;  %v3795_v57 = vmax.f32 %v3763_v28, 0.0  ;;  %v3796_v38 = vmax.f32 %v3764_v13, 0.0  ;;  %v3765_v63 = vadd.f32 %v9446_v31, %v3729_v7 }
 0x952   :  { %v3820_v62 = vpack.c.bf16 %v3794_v21, %v3793_v25  ;;  %v3766_v15 = vadd.f32 %v9446_v31, %v3730_v23  ;;  %v3767_v16 = vadd.f32 %v9446_v31, %v3731_v44  ;;  %v3733_v27 = vmul.f32 %v9440_v47, %v9351_v0 }
 0x953   :  { %v3821_v19 = vpack.c.bf16 %v3796_v38, %v3795_v57  ;;  %v3768_v58 = vadd.f32 %v9446_v31, %v3732_v9  ;;  %v3734_v54 = vmul.f32 %v9440_v47, %v9357_v14  ;;  %v3797_v53 = vmax.f32 %v3765_v63, 0.0 }
 0x954   :  { %v3798_v32 = vmax.f32 %v3766_v15, 0.0  ;;  %v3735_v40 = vmul.f32 %v9440_v47, %v9363_v56  ;;  %v3736_v33 = vmul.f32 %v9440_v47, %v9369_v5  ;;  %v3799_v18 = vmax.f32 %v3767_v16, 0.0 }
 0x955   :  { %v3800_v50 = vmax.f32 %v3768_v58, 0.0  ;;  %v3769_v48 = vadd.f32 %v9446_v31, %v3733_v27  ;;  %v3770_v37 = vadd.f32 %v9446_v31, %v3734_v54  ;;  %v3737_v56 = vmul.f32 %v9440_v47, %v9375_v59 }
 0x956   :  { %5483 = vmatmul.mubr.bf16.gmra.mxu0 %v3818_v4  ;;  %v3822_v29 = vpack.c.bf16 %v3798_v32, %v3797_v53  ;;  %v3771_v0 = vadd.f32 %v9446_v31, %v3735_v40  ;;  %v3772_v14 = vadd.f32 %v9446_v31, %v3736_v33  ;;  %v3738_v5 = vmul.f32 %v9440_v47, %v9381_v51 }
 0x957   :  { %5486 = vmatprep.mubr.bf16.mxu0 %v3819_v46  ;;  %v3823_v20 = vpack.c.bf16 %v3800_v50, %v3799_v18  ;;  %v3801_v3 = vmax.f32 %v3769_v48, 0.0  ;;  %v3802_v45 = vmax.f32 %v3770_v37, 0.0  ;;  %v3739_v41 = vmul.f32 %v9440_v47, %v9387_v55 }
 0x958   :  { %v3740_v8 = vmul.f32 %v9440_v47, %v9393_v42  ;;  %v3803_v22 = vmax.f32 %v3771_v0, 0.0  ;;  %v3804_v26 = vmax.f32 %v3772_v14, 0.0  ;;  %v3773_v34 = vadd.f32 %v9446_v31, %v3737_v56 }
 0x959   :  { %v3774_v12 = vadd.f32 %v9446_v31, %v3738_v5  ;;  %v3824_v11 = vpack.c.bf16 %v3802_v45, %v3801_v3  ;;  %v3775_v59 = vadd.f32 %v9446_v31, %v3739_v41  ;;  %v3741_v55 = vmul.f32 %v9440_v47, %v9399_v35 }
 0x95a   :  { %v3825_v6 = vpack.c.bf16 %v3804_v26, %v3803_v22  ;;  %v3776_v51 = vadd.f32 %v9446_v31, %v3740_v8  ;;  %v3742_v42 = vmul.f32 %v9440_v47, %v9405_v1  ;;  %v3805_v17 = vmax.f32 %v3773_v34, 0.0 }
 0x95b   :  { %v3806_v60 = vmax.f32 %v3774_v12, 0.0  ;;  %v3743_v4 = vmul.f32 %v9440_v47, %v9411_v43  ;;  %v3744_v49 = vmul.f32 %v9440_v47, %v9417_v24  ;;  %v3807_v30 = vmax.f32 %v3775_v59, 0.0 }
 0x95c   :  { %v3808_v46 = vmax.f32 %v3776_v51, 0.0  ;;  %v3777_v28 = vadd.f32 %v9446_v31, %v3741_v55  ;;  %v3778_v13 = vadd.f32 %v9446_v31, %v3742_v42  ;;  %v3746_v43 = vmul.f32 %v9440_v47, %v9429_v2 }
 0x95d   :  { %v3826_v7 = vpack.c.bf16 %v3806_v60, %v3805_v17  ;;  %v3779_v35 = vadd.f32 %v9446_v31, %v3743_v4  ;;  %v3780_v1 = vadd.f32 %v9446_v31, %v3744_v49  ;;  %v3745_v24 = vmul.f32 %v9440_v47, %v9423_v10 }
 0x95e   :  { %5487 = vmatmul.mubr.bf16.gmra.mxu0 %v3820_v62  ;;  %v3827_v23 = vpack.c.bf16 %v3808_v46, %v3807_v30  ;;  %v3809_v25 = vmax.f32 %v3777_v28, 0.0  ;;  %v3810_v21 = vmax.f32 %v3778_v13, 0.0  ;;  %v3782_v57 = vadd.f32 %v9446_v31, %v3746_v43 }
 0x95f   :  { %5490 = vmatprep.mubr.bf16.mxu0 %v3821_v19  ;;  %v3811_v44 = vmax.f32 %v3779_v35, 0.0  ;;  %v3812_v9 = vmax.f32 %v3780_v1, 0.0  ;;  %v3781_v38 = vadd.f32 %v9446_v31, %v3745_v24 }
 0x960   :  { %v3828_v62 = vpack.c.bf16 %v3810_v21, %v3809_v25  ;;  %v3814_v15 = vmax.f32 %v3782_v57, 0.0 }
 0x961   :  { %v3829_v63 = vpack.c.bf16 %v3812_v9, %v3811_v44  ;;  %v3813_v19 = vmax.f32 %v3781_v38, 0.0 }
 0x963   :  { %v3830_v16 = vpack.c.bf16 %v3814_v15, %v3813_v19 }
 0x966   :  { %5491 = vmatmul.mubr.bf16.gmra.mxu0 %v3822_v29 }
 0x967   :  { %5494 = vmatprep.mubr.bf16.mxu0 %v3823_v20 }
 0x96e   :  { %5495 = vmatmul.mubr.bf16.gmra.mxu0 %v3824_v11 }
 0x96f   :  { %5498 = vmatprep.mubr.bf16.mxu0 %v3825_v6 }
 0x976   :  { %5499 = vmatmul.mubr.bf16.gmra.mxu0 %v3826_v7 }
 0x977   :  { %5502 = vmatprep.mubr.bf16.mxu0 %v3827_v23 }
 0x97e   :  { %5503 = vmatmul.mubr.bf16.gmra.mxu0 %v3828_v62 }
 0x97f   :  { %5506 = vmatprep.mubr.bf16.mxu0 %v3829_v63 }
 0x986   :  { %5507 = vmatmul.mubr.bf16.gmra.mxu0 %v3830_v16 }
 0xa0e   :  { %v9544_v2 = vpop.f32.mrf.mxu0 }
 0xa0f   :  { %v4059_v32 = vsel %vm720_vm0, %v9544_v2, 0.0 }
 0xa10   :  { %v9546_v58 = vpop.f32.mrf.mxu0 }
 0xa11   :  { %v4056_v27 = vsel %vm720_vm0, %v9546_v58, 0.0 }
 0xa12   :  { %v9548_v10 = vpop.f32.mrf.mxu0 }
 0xa13   :  { %v4061_v18 = vsel %vm720_vm0, %v9548_v10, 0.0 }
 0xa14   :  { %v9550_v47 = vpop.f32.mrf.mxu0 }
 0xa15   :  { %v4057_v31 = vsel %vm720_vm0, %v9550_v47, 0.0 }
 0xa16   :  { %v4058_v54 = vadd.f32 %v4057_v31, %v4056_v27  ;;  %v9556_v53 = vpop.f32.mrf.mxu0 }
 0xa17   :  { %v4067_v5 = vsel %vm720_vm0, %v9556_v53, 0.0 }
 0xa18   :  { %v4060_v40 = vadd.f32 %v4059_v32, %v4058_v54  ;;  %v9560_v33 = vpop.f32.mrf.mxu0 }
 0xa19   :  { %v4063_v37 = vsel %vm720_vm0, %v9560_v33, 0.0 }
 0xa1a   :  { %v4062_v50 = vadd.f32 %v4061_v18, %v4060_v40  ;;  %v9564_v48 = vpop.f32.mrf.mxu0 }
 0xa1b   :  { %v4069_v41 = vsel %vm720_vm0, %v9564_v48, 0.0 }
 0xa1c   :  { %v4064_v29 = vadd.f32 %v4063_v37, %v4062_v50  ;;  %v9568_v20 = vpop.f32.mrf.mxu0 }
 0xa1d   :  { %v4065_v0 = vsel %vm720_vm0, %v9568_v20, 0.0 }
 0xa1e   :  { %v4066_v14 = vadd.f32 %v4065_v0, %v4064_v29  ;;  %v9572_v56 = vpop.f32.mrf.mxu0 }
 0xa1f   :  { %v4075_v51 = vsel %vm720_vm0, %v9572_v56, 0.0 }
 0xa20   :  { %v4068_v3 = vadd.f32 %v4067_v5, %v4066_v14  ;;  %v9576_v45 = vpop.f32.mrf.mxu0 }
 0xa21   :  { %v4071_v26 = vsel %vm720_vm0, %v9576_v45, 0.0 }
 0xa22   :  { %v4070_v8 = vadd.f32 %v4069_v41, %v4068_v3  ;;  %v9580_v22 = vpop.f32.mrf.mxu0 }
 0xa23   :  { %v4077_v17 = vsel %vm720_vm0, %v9580_v22, 0.0 }
 0xa24   :  { %v4072_v34 = vadd.f32 %v4071_v26, %v4070_v8  ;;  %v9584_v12 = vpop.f32.mrf.mxu0 }
 0xa25   :  { %v4073_v11 = vsel %vm720_vm0, %v9584_v12, 0.0 }
 0xa26   :  { %v4074_v6 = vadd.f32 %v4073_v11, %v4072_v34  ;;  %v9588_v59 = vpop.f32.mrf.mxu0 }
 0xa27   :  { %v4083_v23 = vsel %vm720_vm0, %v9588_v59, 0.0 }
 0xa28   :  { %v4076_v55 = vadd.f32 %v4075_v51, %v4074_v6  ;;  %v9592_v42 = vpop.f32.mrf.mxu0 }
 0xa29   :  { %v4079_v49 = vsel %vm720_vm0, %v9592_v42, 0.0 }
 0xa2a   :  { %v4078_v60 = vadd.f32 %v4077_v17, %v4076_v55  ;;  %v9596_v4 = vpop.f32.mrf.mxu0 }
 0xa2b   :  { %v4085_v43 = vsel %vm720_vm0, %v9596_v4, 0.0 }
 0xa2c   :  { %v4080_v30 = vadd.f32 %v4079_v49, %v4078_v60  ;;  %v9600_v46 = vpop.f32.mrf.mxu0 }
 0xa2d   :  { %v4081_v28 = vsel %vm720_vm0, %v9600_v46, 0.0 }
 0xa2e   :  { %v4082_v13 = vadd.f32 %v4081_v28, %v4080_v30  ;;  %v9604_v7 = vpop.f32.mrf.mxu0 }
 0xa2f   :  { %v4091_v63 = vsel %vm720_vm0, %v9604_v7, 0.0 }
 0xa30   :  { %v4084_v35 = vadd.f32 %v4083_v23, %v4082_v13  ;;  %v9608_v1 = vpop.f32.mrf.mxu0 }
 0xa31   :  { %v4087_v21 = vsel %vm720_vm0, %v9608_v1, 0.0 }
 0xa32   :  { %v4086_v24 = vadd.f32 %v4085_v43, %v4084_v35  ;;  %v9612_v25 = vpop.f32.mrf.mxu0 }
 0xa33   :  { %v4093_v16 = vsel %vm720_vm0, %v9612_v25, 0.0 }
 0xa34   :  { %v4088_v44 = vadd.f32 %v4087_v21, %v4086_v24  ;;  %v9616_v9 = vpop.f32.mrf.mxu0 }
 0xa35   :  { %v4089_v57 = vsel %vm720_vm0, %v9616_v9, 0.0 }
 0xa36   :  { %v4090_v38 = vadd.f32 %v4089_v57, %v4088_v44  ;;  %v9620_v62 = vpop.f32.mrf.mxu0 }
 0xa37   :  { %v4099_v29 = vsel %vm720_vm0, %v9620_v62, 0.0 }
 0xa38   :  { %v4092_v15 = vadd.f32 %v4091_v63, %v4090_v38  ;;  %v9624_v19 = vpop.f32.mrf.mxu0 }
 0xa39   :  { %v4095_v54 = vsel %vm720_vm0, %v9624_v19, 0.0 }
 0xa3a   :  { %v4094_v27 = vadd.f32 %v4093_v16, %v4092_v15  ;;  %v9628_v31 = vpop.f32.mrf.mxu0 }
 0xa3b   :  { %v4101_v5 = vsel %vm720_vm0, %v9628_v31, 0.0 }
 0xa3c   :  { %v4096_v32 = vadd.f32 %v4095_v54, %v4094_v27  ;;  %v9632_v40 = vpop.f32.mrf.mxu0 }
 0xa3d   :  { %v4097_v18 = vsel %vm720_vm0, %v9632_v40, 0.0 }
 0xa3e   :  { %v4098_v50 = vadd.f32 %v4097_v18, %v4096_v32  ;;  %v9636_v37 = vpop.f32.mrf.mxu0 }
 0xa3f   :  { %v4107_v55 = vsel %vm720_vm0, %v9636_v37, 0.0 }
 0xa40   :  { %v4100_v0 = vadd.f32 %v4099_v29, %v4098_v50  ;;  %v9640_v14 = vpop.f32.mrf.mxu0 }
 0xa41   :  { %v4103_v8 = vsel %vm720_vm0, %v9640_v14, 0.0 }
 0xa42   :  { %v4102_v3 = vadd.f32 %v4101_v5, %v4100_v0  ;;  %v9644_v41 = vpop.f32.mrf.mxu0 }
 0xa43   :  { %v4109_v49 = vsel %vm720_vm0, %v9644_v41, 0.0 }
 0xa44   :  { %v4104_v26 = vadd.f32 %v4103_v8, %v4102_v3  ;;  %v9648_v34 = vpop.f32.mrf.mxu0 }
 0xa45   :  { %v4105_v11 = vsel %vm720_vm0, %v9648_v34, 0.0 }
 0xa46   :  { %v4106_v6 = vadd.f32 %v4105_v11, %v4104_v26  ;;  %v9652_v51 = vpop.f32.mrf.mxu0 }
 0xa47   :  { %v4115_v21 = vsel %vm720_vm0, %v9652_v51, 0.0 }
 0xa48   :  { %v4108_v17 = vadd.f32 %v4107_v55, %v4106_v6  ;;  %v9656_v60 = vpop.f32.mrf.mxu0 }
 0xa49   :  { %v4111_v13 = vsel %vm720_vm0, %v9656_v60, 0.0 }
 0xa4a   :  { %v4110_v30 = vadd.f32 %v4109_v49, %v4108_v17  ;;  %v9660_v28 = vpop.f32.mrf.mxu0 }
 0xa4b   :  { %v4117_v57 = vsel %vm720_vm0, %v9660_v28, 0.0 }
 0xa4c   :  { %v4112_v23 = vadd.f32 %v4111_v13, %v4110_v30  ;;  %v9664_v35 = vpop.f32.mrf.mxu0 }
 0xa4d   :  { %v4113_v43 = vsel %vm720_vm0, %v9664_v35, 0.0 }
 0xa4e   :  { %v4114_v24 = vadd.f32 %v4113_v43, %v4112_v23 }
 0xa50   :  { %v4116_v44 = vadd.f32 %v4115_v21, %v4114_v24 }
 0xa52   :  { %v4118_v38 = vadd.f32 %v4117_v57, %v4116_v44 }
 0xa54   :  { %v4119_v63 = vrot.slane %v4118_v38, 4 }
 0xa56   :  { %v4120_v15 = vadd.f32 %v4119_v63, %v4118_v38 }
 0xa58   :  { %v4121_v16 = vrot.slane %v4120_v15, 2 }
 0xa5a   :  { %v4122_v27 = vadd.f32 %v4121_v16, %v4120_v15 }
 0xa5c   :  { %v4123_v54 = vrot.slane %v4122_v27, 1 }
 0xa5e   :  { %v4124_v32 = vadd.f32 %v4123_v54, %v4122_v27 }
 0xa60   :  { %v9672_v18 = vmul.f32 0.00390625, %v4124_v32 }
 0xa62   :  { %v9676_v50 = vsub.f32 %v9546_v58, %v9672_v18  ;;  %v9680_v29 = vsub.f32 %v9550_v47, %v9672_v18  ;;  %v9684_v0 = vsub.f32 %v9544_v2, %v9672_v18  ;;  %v9688_v5 = vsub.f32 %v9548_v10, %v9672_v18 }
 0xa63   :  { %v9696_v58 = vsub.f32 %v9560_v33, %v9672_v18  ;;  %v9702_v2 = vsub.f32 %v9568_v20, %v9672_v18  ;;  %v9710_v55 = vsub.f32 %v9556_v53, %v9672_v18  ;;  %v9717_v20 = vsub.f32 %v9564_v48, %v9672_v18 }
 0xa64   :  { %v4158_v3 = vmul.f32 %v9676_v50, %v9676_v50  ;;  %v4159_v8 = vmul.f32 %v9680_v29, %v9680_v29  ;;  %v4160_v47 = vmul.f32 %v9684_v0, %v9684_v0  ;;  %v4161_v10 = vmul.f32 %v9688_v5, %v9688_v5 }
 0xa65   :  { %v4162_v33 = vmul.f32 %v9696_v58, %v9696_v58  ;;  %v4163_v30 = vmul.f32 %v9702_v2, %v9702_v2  ;;  %v9724_v53 = vsub.f32 %v9576_v45, %v9672_v18  ;;  %v4164_v43 = vmul.f32 %v9710_v55, %v9710_v55 }
 0xa66   :  { %v4190_v26 = vsel %vm720_vm0, %v4158_v3, 0.0  ;;  %v4191_v11 = vsel %vm720_vm0, %v4159_v8, 0.0  ;;  %v4193_v17 = vsel %vm720_vm0, %v4160_v47, 0.0  ;;  %v4195_v13 = vsel %vm720_vm0, %v4161_v10, 0.0 }
 0xa67   :  { %v4192_v6 = vadd.f32 %v4191_v11, %v4190_v26  ;;  %v4197_v24 = vsel %vm720_vm0, %v4162_v33, 0.0  ;;  %v9731_v48 = vsub.f32 %v9584_v12, %v9672_v18  ;;  %v4165_v44 = vmul.f32 %v9717_v20, %v9717_v20 }
 0xa68   :  { %v4199_v57 = vsel %vm720_vm0, %v4163_v30, 0.0  ;;  %v9738_v45 = vsub.f32 %v9572_v56, %v9672_v18  ;;  %v4166_v63 = vmul.f32 %v9724_v53, %v9724_v53  ;;  %v4201_v15 = vsel %vm720_vm0, %v4164_v43, 0.0 }
 0xa69   :  { %v4194_v49 = vadd.f32 %v4193_v17, %v4192_v6  ;;  %v9745_v12 = vsub.f32 %v9580_v22, %v9672_v18  ;;  %v4167_v27 = vmul.f32 %v9731_v48, %v9731_v48  ;;  %v4203_v54 = vsel %vm720_vm0, %v4165_v44, 0.0 }
 0xa6a   :  { %v9752_v56 = vsub.f32 %v9592_v42, %v9672_v18  ;;  %v4168_v3 = vmul.f32 %v9738_v45, %v9738_v45  ;;  %v4205_v8 = vsel %vm720_vm0, %v4166_v63, 0.0  ;;  %v9759_v22 = vsub.f32 %v9600_v46, %v9672_v18 }
 0xa6b   :  { %v4196_v23 = vadd.f32 %v4195_v13, %v4194_v49  ;;  %v4169_v10 = vmul.f32 %v9745_v12, %v9745_v12  ;;  %v4207_v26 = vsel %vm720_vm0, %v4167_v27, 0.0  ;;  %v9766_v42 = vsub.f32 %v9588_v59, %v9672_v18 }
 0xa6c   :  { %v4170_v6 = vmul.f32 %v9752_v56, %v9752_v56  ;;  %v4209_v33 = vsel %vm720_vm0, %v4168_v3, 0.0  ;;  %v9773_v46 = vsub.f32 %v9596_v4, %v9672_v18  ;;  %v4171_v49 = vmul.f32 %v9759_v22, %v9759_v22 }
 0xa6d   :  { %v4198_v21 = vadd.f32 %v4197_v24, %v4196_v23  ;;  %v4211_v30 = vsel %vm720_vm0, %v4169_v10, 0.0  ;;  %v9780_v59 = vsub.f32 %v9608_v1, %v9672_v18  ;;  %v4172_v23 = vmul.f32 %v9766_v42, %v9766_v42 }
 0xa6e   :  { %v4213_v43 = vsel %vm720_vm0, %v4170_v6, 0.0  ;;  %v9787_v4 = vsub.f32 %v9616_v9, %v9672_v18  ;;  %v4215_v44 = vsel %vm720_vm0, %v4171_v49, 0.0  ;;  %v9794_v1 = vsub.f32 %v9604_v7, %v9672_v18 }
 0xa6f   :  { %v4200_v38 = vadd.f32 %v4199_v57, %v4198_v21  ;;  %v4173_v21 = vmul.f32 %v9773_v46, %v9773_v46  ;;  %v4217_v63 = vsel %vm720_vm0, %v4172_v23, 0.0  ;;  %v9801_v9 = vsub.f32 %v9612_v25, %v9672_v18 }
 0xa70   :  { %v9808_v7 = vsub.f32 %v9624_v19, %v9672_v18  ;;  %v9815_v25 = vsub.f32 %v9632_v40, %v9672_v18  ;;  %v9822_v19 = vsub.f32 %v9620_v62, %v9672_v18  ;;  %v9829_v40 = vsub.f32 %v9628_v31, %v9672_v18 }
 0xa71   :  { %v4202_v16 = vadd.f32 %v4201_v15, %v4200_v38  ;;  %v4174_v38 = vmul.f32 %v9780_v59, %v9780_v59  ;;  %v4219_v27 = vsel %vm720_vm0, %v4173_v21, 0.0  ;;  %v9836_v62 = vsub.f32 %v9640_v14, %v9672_v18 }
 0xa72   :  { %v9843_v31 = vsub.f32 %v9648_v34, %v9672_v18  ;;  %v9850_v14 = vsub.f32 %v9636_v37, %v9672_v18  ;;  %v9857_v34 = vsub.f32 %v9644_v41, %v9672_v18  ;;  %v4154_v37 = vsub.f32 %v9656_v60, %v9672_v18 }
 0xa73   :  { %v4204_v32 = vadd.f32 %v4203_v54, %v4202_v16  ;;  %v4175_v16 = vmul.f32 %v9787_v4, %v9787_v4  ;;  %v4221_v3 = vsel %vm720_vm0, %v4174_v38, 0.0 }
 0xa74   :  { %v4185_v41 = vmul.f32 %v9857_v34, %v9857_v34 }
 0xa75   :  { %v4206_v47 = vadd.f32 %v4205_v8, %v4204_v32  ;;  %v4176_v32 = vmul.f32 %v9794_v1, %v9794_v1  ;;  %v4223_v10 = vsel %vm720_vm0, %v4175_v16, 0.0 }
 0xa77   :  { %v4208_v11 = vadd.f32 %v4207_v26, %v4206_v47  ;;  %v4177_v47 = vmul.f32 %v9801_v9, %v9801_v9  ;;  %v4225_v6 = vsel %vm720_vm0, %v4176_v32, 0.0 }
 0xa79   :  { %v4210_v17 = vadd.f32 %v4209_v33, %v4208_v11  ;;  %v4178_v11 = vmul.f32 %v9808_v7, %v9808_v7  ;;  %v4227_v49 = vsel %vm720_vm0, %v4177_v47, 0.0 }
 0xa7b   :  { %v4212_v13 = vadd.f32 %v4211_v30, %v4210_v17  ;;  %v4179_v17 = vmul.f32 %v9815_v25, %v9815_v25  ;;  %v4229_v23 = vsel %vm720_vm0, %v4178_v11, 0.0  ;;  %v4186_v11 = vmul.f32 %v4154_v37, %v4154_v37 }
 0xa7d   :  { %v4214_v24 = vadd.f32 %v4213_v43, %v4212_v13  ;;  %v4180_v13 = vmul.f32 %v9822_v19, %v9822_v19  ;;  %v4231_v21 = vsel %vm720_vm0, %v4179_v17, 0.0 }
 0xa7f   :  { %v4216_v57 = vadd.f32 %v4215_v44, %v4214_v24  ;;  %v4181_v24 = vmul.f32 %v9829_v40, %v9829_v40  ;;  %v4233_v38 = vsel %vm720_vm0, %v4180_v13, 0.0  ;;  %v4245_v13 = vsel %vm720_vm0, %v4186_v11, 0.0 }
 0xa81   :  { %v4218_v15 = vadd.f32 %v4217_v63, %v4216_v57  ;;  %v4182_v57 = vmul.f32 %v9836_v62, %v9836_v62  ;;  %v4235_v16 = vsel %vm720_vm0, %v4181_v24, 0.0 }
 0xa83   :  { %v4220_v54 = vadd.f32 %v4219_v27, %v4218_v15  ;;  %v4183_v15 = vmul.f32 %v9843_v31, %v9843_v31  ;;  %v4237_v32 = vsel %vm720_vm0, %v4182_v57, 0.0 }
 0xa85   :  { %v4222_v8 = vadd.f32 %v4221_v3, %v4220_v54  ;;  %v4184_v54 = vmul.f32 %v9850_v14, %v9850_v14  ;;  %v4239_v47 = vsel %vm720_vm0, %v4183_v15, 0.0 }
 0xa87   :  { %v4224_v26 = vadd.f32 %v4223_v10, %v4222_v8  ;;  %v4155_v8 = vsub.f32 %v9664_v35, %v9672_v18  ;;  %v4241_v60 = vsel %vm720_vm0, %v4184_v54, 0.0 }
 0xa89   :  { %v4226_v33 = vadd.f32 %v4225_v6, %v4224_v26  ;;  %v4156_v26 = vsub.f32 %v9652_v51, %v9672_v18  ;;  %v4187_v17 = vmul.f32 %v4155_v8, %v4155_v8 }
 0xa8b   :  { %v4228_v30 = vadd.f32 %v4227_v49, %v4226_v33  ;;  %v4157_v33 = vsub.f32 %v9660_v28, %v9672_v18  ;;  %v4243_v49 = vsel %vm720_vm0, %v4185_v41, 0.0  ;;  %v4247_v24 = vsel %vm720_vm0, %v4187_v17, 0.0 }
 0xa8d   :  { %v4230_v43 = vadd.f32 %v4229_v23, %v4228_v30  ;;  %v4188_v30 = vmul.f32 %v4156_v26, %v4156_v26 }
 0xa8f   :  { %v4232_v44 = vadd.f32 %v4231_v21, %v4230_v43  ;;  %v4189_v43 = vmul.f32 %v4157_v33, %v4157_v33  ;;  %v4249_v51 = vsel %vm720_vm0, %v4188_v30, 0.0 }
 0xa91   :  { %v4234_v63 = vadd.f32 %v4233_v38, %v4232_v44  ;;  %v4251_v57 = vsel %vm720_vm0, %v4189_v43, 0.0 }
 0xa93   :  { %v4236_v27 = vadd.f32 %v4235_v16, %v4234_v63 }
 0xa95   :  { %v4238_v3 = vadd.f32 %v4237_v32, %v4236_v27 }
 0xa97   :  { %v4240_v10 = vadd.f32 %v4239_v47, %v4238_v3  ;;  %v9885_v47 = vrot.slane %v9442_v36, %v8893_v39 }
 0xa99   :  { %v4242_v6 = vadd.f32 %v4241_v60, %v4240_v10  ;;  %v11129_v10 = vld [vmem:[#allocation25_spill] sm:$0xff] }
 0xa9b   :  { %v4244_v35 = vadd.f32 %v4243_v49, %v4242_v6 }
 0xa9d   :  { %v4246_v23 = vadd.f32 %v4245_v13, %v4244_v35 }
 0xa9f   :  { %v4248_v21 = vadd.f32 %v4247_v24, %v4246_v23  ;;  %v131_v23 = vld [vmem:[#allocation2 + $0x20] sm:$0xff] }
 0xaa1   :  { %v4250_v44 = vadd.f32 %v4249_v51, %v4248_v21  ;;  %v9903_v21 = vrot.slane %v131_v23, %v11129_v10 }
 0xaa3   :  { %v4252_v38 = vadd.f32 %v4251_v57, %v4250_v44 }
 0xaa5   :  { %v4253_v63 = vrot.slane %v4252_v38, 4 }
 0xaa7   :  { %v4254_v28 = vadd.f32 %v4253_v63, %v4252_v38 }
 0xaa9   :  { %v4255_v18 = vrot.slane %v4254_v28, 2 }
 0xaab   :  { %v4256_v15 = vadd.f32 %v4255_v18, %v4254_v28  ;;  %v11130_v28 = vld [vmem:[#allocation24_spill] sm:$0xff] }
 0xaac   :  { %v9918_v18 = vrot.slane %v131_v23, %v11130_v28 }
 0xaad   :  { %v4257_v16 = vrot.slane %v4256_v15, 1 }
 0xaaf   :  { %v4258_v27 = vadd.f32 %v4257_v16, %v4256_v15 }
 0xab1   :  { %v4259_v54 = vmul.f32 0.00390625, %v4258_v27 }
 0xab3   :  { %v4260_v32 = vadd.f32 1e-05, %v4259_v54 }
 0xab5   :  { %5702 = vrsqrt.f32 %v4260_v32 }
 0xac2   :  { %v5703_v3 = vpop.eup %5702 }
 0xac3   :  { %v4262_v41 = vmul.f32 %v9442_v36, %v5703_v3 }
 0xac5   :  { %v9888_v11 = vrot.slane %v4262_v41, %v11129_v10 }
 0xac7   :  { %v4295_v60 = vmul.f32 %v9888_v11, %v4154_v37  ;;  %v4296_v6 = vmul.f32 %v9888_v11, %v4155_v8  ;;  %v4267_v13 = vmul.f32 %v9888_v11, %v9676_v50  ;;  %v4268_v39 = vmul.f32 %v9888_v11, %v9680_v29 }
 0xac8   :  { %v4269_v51 = vmul.f32 %v9888_v11, %v9684_v0  ;;  %v4297_v50 = vmul.f32 %v9888_v11, %v4156_v26  ;;  %v4298_v44 = vmul.f32 %v9888_v11, %v4157_v33  ;;  %v4270_v57 = vmul.f32 %v9888_v11, %v9688_v5 }
 0xac9   :  { %v4331_v17 = vadd.f32 %v9885_v47, %v4295_v60  ;;  %v4332_v49 = vadd.f32 %v9885_v47, %v4296_v6  ;;  %v4303_v43 = vadd.f32 %v9885_v47, %v4267_v13  ;;  %v4304_v37 = vadd.f32 %v9885_v47, %v4268_v39 }
 0xaca   :  { %v4271_v38 = vmul.f32 %v9888_v11, %v9696_v58  ;;  %v4272_v63 = vmul.f32 %v9888_v11, %v9702_v2  ;;  %v4273_v0 = vmul.f32 %v9888_v11, %v9710_v55  ;;  %v4274_v26 = vmul.f32 %v9888_v11, %v9717_v20 }
 0xacb   :  { %v4363_v35 = vmax.f32 %v4331_v17, 0.0  ;;  %v4364_v30 = vmax.f32 %v4332_v49, 0.0  ;;  %v4335_v8 = vmax.f32 %v4303_v43, 0.0  ;;  %v4336_v24 = vmax.f32 %v4304_v37, 0.0 }
 0xacc   :  { %v4275_v33 = vmul.f32 %v9888_v11, %v9724_v53  ;;  %v4276_v58 = vmul.f32 %v9888_v11, %v9731_v48  ;;  %v4277_v2 = vmul.f32 %v9888_v11, %v9738_v45  ;;  %v4278_v15 = vmul.f32 %v9888_v11, %v9745_v12 }
 0xacd   :  { %v9898_v36 = vpack.c.bf16 %v4364_v30, %v4363_v35  ;;  %v9909_v29 = vpack.c.bf16 %v4336_v24, %v4335_v8  ;;  %v4279_v55 = vmul.f32 %v9888_v11, %v9752_v56  ;;  %v4305_v53 = vadd.f32 %v9885_v47, %v4269_v51 }
 0xace   :  { %v9940_v16 = vadd.f32 %v9885_v47, %v4297_v50  ;;  %v9943_v48 = vadd.f32 %v9885_v47, %v4298_v44  ;;  %v4306_v45 = vadd.f32 %v9885_v47, %v4270_v57  ;;  %v4307_v27 = vadd.f32 %v9885_v47, %v4271_v38 }
 0xacf   :  { %v4384_v5 = vunpack.c.h.bf16 %v9909_v29  ;;  %v4308_v12 = vadd.f32 %v9885_v47, %v4272_v63  ;;  %v4383_v56 = vunpack.c.l.bf16 %v9909_v29  ;;  %v4280_v54 = vmul.f32 %v9888_v11, %v9759_v22 }
 0xad0   :  { %v4309_v3 = vadd.f32 %v9885_v47, %v4273_v0  ;;  %v4310_v41 = vadd.f32 %v9885_v47, %v4274_v26  ;;  %v4281_v10 = vmul.f32 %v9888_v11, %v9766_v42  ;;  %v4282_v60 = vmul.f32 %v9888_v11, %v9773_v46 }
 0xad1   :  { %v4420_v20 = vmul.f32 %v9903_v21, %v4384_v5  ;;  %v4283_v6 = vmul.f32 %v9888_v11, %v9780_v59  ;;  %v4419_v22 = vmul.f32 %v9903_v21, %v4383_v56  ;;  %v4284_v17 = vmul.f32 %v9888_v11, %v9787_v4 }
 0xad2   :  { %v4285_v49 = vmul.f32 %v9888_v11, %v9794_v1  ;;  %v4286_v42 = vmul.f32 %v9888_v11, %v9801_v9  ;;  %v4337_v35 = vmax.f32 %v4305_v53, 0.0  ;;  %v4338_v30 = vmax.f32 %v4306_v45, 0.0 }
 0xad3   :  { %v4454_v32 = vsel %vm720_vm0, %v4420_v20, 0.0  ;;  %v4451_v46 = vsel %vm720_vm0, %v4419_v22, 0.0  ;;  %v4339_v13 = vmax.f32 %v4307_v27, 0.0  ;;  %v4340_v59 = vmax.f32 %v4308_v12, 0.0 }
 0xad4   :  { %4455 = vadd.xlane.f32.xlu0 %v4454_v32  ;;  %v4311_v39 = vadd.f32 %v9885_v47, %v4275_v33  ;;  %v4312_v23 = vadd.f32 %v9885_v47, %v4276_v58  ;;  %4452 = vadd.xlane.f32.xlu1 %v4451_v46  ;;  %v4341_v43 = vmax.f32 %v4309_v3, 0.0  ;;  %v4342_v37 = vmax.f32 %v4310_v41, 0.0 }
 0xad5   :  { %v4287_v4 = vmul.f32 %v9888_v11, %v9808_v7  ;;  %v4288_v1 = vmul.f32 %v9888_v11, %v9815_v25  ;;  %v4289_v9 = vmul.f32 %v9888_v11, %v9822_v19  ;;  %v4290_v8 = vmul.f32 %v9888_v11, %v9829_v40 }
 0xad6   :  { %v4291_v24 = vmul.f32 %v9888_v11, %v9836_v62  ;;  %v4292_v51 = vmul.f32 %v9888_v11, %v9843_v31  ;;  %v4293_v50 = vmul.f32 %v9888_v11, %v9850_v14  ;;  %v9988_v7 = vmul.f32 %v9888_v11, %v9857_v34 }
 0xad7   :  { %v4313_v25 = vadd.f32 %v9885_v47, %v4277_v2  ;;  %v4314_v19 = vadd.f32 %v9885_v47, %v4278_v15  ;;  %v9992_v44 = vpack.c.bf16 %v4338_v30, %v4337_v35  ;;  %v9994_v40 = vpack.c.bf16 %v4340_v59, %v4339_v13 }
 0xad8   :  { %v4315_v62 = vadd.f32 %v9885_v47, %v4279_v55  ;;  %v4343_v57 = vmax.f32 %v4311_v39, 0.0  ;;  %v4344_v38 = vmax.f32 %v4312_v23, 0.0  ;;  %v9997_v31 = vpack.c.bf16 %v4342_v37, %v4341_v43 }
 0xad9   :  { %v4385_v14 = vunpack.c.l.bf16 %v9992_v44  ;;  %v4386_v63 = vunpack.c.h.bf16 %v9992_v44  ;;  %v4387_v34 = vunpack.c.l.bf16 %v9994_v40  ;;  %v4388_v11 = vunpack.c.h.bf16 %v9994_v40 }
 0xada   :  { %v4316_v28 = vadd.f32 %v9885_v47, %v4280_v54  ;;  %v4317_v0 = vadd.f32 %v9885_v47, %v4281_v10  ;;  %v4318_v26 = vadd.f32 %v9885_v47, %v4282_v60  ;;  %v4319_v33 = vadd.f32 %v9885_v47, %v4283_v6 }
 0xadb   :  { %v4320_v58 = vadd.f32 %v9885_v47, %v4284_v17  ;;  %v4345_v2 = vmax.f32 %v4313_v25, 0.0  ;;  %v4421_v15 = vmul.f32 %v9903_v21, %v4385_v14  ;;  %v4422_v55 = vmul.f32 %v9903_v21, %v4386_v63 }
 0xadc   :  { %v4346_v20 = vmax.f32 %v4314_v19, 0.0  ;;  %v4389_v53 = vunpack.c.l.bf16 %v9997_v31  ;;  %v4390_v45 = vunpack.c.h.bf16 %v9997_v31  ;;  %v10016_v27 = vpack.c.bf16 %v4344_v38, %v4343_v57 }
 0xadd   :  { %v4457_v12 = vsel %vm720_vm0, %v4421_v15, 0.0  ;;  %v4460_v54 = vsel %vm720_vm0, %v4422_v55, 0.0  ;;  %v4423_v32 = vmul.f32 %v9903_v21, %v4387_v34  ;;  %v4424_v3 = vmul.f32 %v9903_v21, %v4388_v11 }
 0xade   :  { %v10027_v41 = vadd.f32 %v9885_v47, %v4285_v49  ;;  %v10030_v10 = vadd.f32 %v9885_v47, %v4286_v42  ;;  %v10033_v60 = vadd.f32 %v9885_v47, %v4287_v4  ;;  %v4347_v6 = vmax.f32 %v4315_v62, 0.0  ;;  %4458 = vadd.xlane.f32.xlu0 %v4457_v12  ;;  %4461 = vadd.xlane.f32.xlu1 %v4460_v54 }
 0xadf   :  { %v4348_v22 = vmax.f32 %v4316_v28, 0.0  ;;  %v4349_v17 = vmax.f32 %v4317_v0, 0.0  ;;  %v4350_v35 = vmax.f32 %v4318_v26, 0.0  ;;  %v4351_v46 = vmax.f32 %v4319_v33, 0.0 }
 0xae0   :  { %v4352_v30 = vmax.f32 %v4320_v58, 0.0  ;;  %v4391_v13 = vunpack.c.l.bf16 %v10016_v27  ;;  %v4392_v59 = vunpack.c.h.bf16 %v10016_v27  ;;  %v10037_v49 = vpack.c.bf16 %v4346_v20, %v4345_v2 }
 0xae1   :  { %v4463_v42 = vsel %vm720_vm0, %v4423_v32, 0.0  ;;  %v4466_v39 = vsel %vm720_vm0, %v4424_v3, 0.0  ;;  %v4425_v23 = vmul.f32 %v9903_v21, %v4389_v53  ;;  %v4426_v43 = vmul.f32 %v9903_v21, %v4390_v45 }
 0xae2   :  { %v10048_v37 = vadd.f32 %v9885_v47, %v4288_v1  ;;  %v10051_v4 = vadd.f32 %v9885_v47, %v4289_v9  ;;  %v10054_v25 = vadd.f32 %v9885_v47, %v4290_v8  ;;  %4464 = vadd.xlane.f32.xlu0 %v4463_v42  ;;  %4467 = vadd.xlane.f32.xlu1 %v4466_v39  ;;  %v4411_v19 = vunpack.c.l.bf16 %v9898_v36 }
 0xae3   :  { %v10058_v62 = vadd.f32 %v9885_v47, %v4291_v24  ;;  %v10061_v57 = vadd.f32 %v9885_v47, %v4292_v51  ;;  %v10063_v38 = vpack.c.bf16 %v4348_v22, %v4347_v6  ;;  %v10065_v1 = vpack.c.bf16 %v4350_v35, %v4349_v17 }
 0xae4   :  { %v10068_v9 = vadd.f32 %v9885_v47, %v4293_v50  ;;  %v4427_v8 = vmul.f32 %v9903_v21, %v4391_v13  ;;  %v4428_v28 = vmul.f32 %v9903_v21, %v4392_v59  ;;  %v10076_v24 = vpack.c.bf16 %v4352_v30, %v4351_v46 }
 0xae5   :  { %v4469_v51 = vsel %vm720_vm0, %v4425_v23, 0.0  ;;  %v4472_v0 = vsel %vm720_vm0, %v4426_v43, 0.0  ;;  %v4393_v26 = vunpack.c.l.bf16 %v10037_v49  ;;  %v4394_v33 = vunpack.c.h.bf16 %v10037_v49 }
 0xae6   :  { %v10084_v50 = vadd.f32 %v9885_v47, %v9988_v7  ;;  %v4353_v58 = vmax.f32 %v10027_v41, 0.0  ;;  %v4354_v2 = vmax.f32 %v10030_v10, 0.0  ;;  %4470 = vadd.xlane.f32.xlu0 %v4469_v51  ;;  %4473 = vadd.xlane.f32.xlu1 %v4472_v0  ;;  %v10091_v15 = vmul.f32 %v9903_v21, %v4411_v19 }
 0xae7   :  { %v4355_v55 = vmax.f32 %v10033_v60, 0.0  ;;  %v4395_v20 = vunpack.c.l.bf16 %v10063_v38  ;;  %v4396_v12 = vunpack.c.h.bf16 %v10063_v38  ;;  %v4397_v47 = vunpack.c.l.bf16 %v10065_v1 }
 0xae8   :  { %v4356_v7 = vmax.f32 %v10048_v37, 0.0  ;;  %v4475_v54 = vsel %vm720_vm0, %v4427_v8, 0.0  ;;  %v4478_v32 = vsel %vm720_vm0, %v4428_v28, 0.0  ;;  %v4398_v3 = vunpack.c.h.bf16 %v10065_v1 }
 0xae9   :  { %v4429_v41 = vmul.f32 %v9903_v21, %v4393_v26  ;;  %v4430_v10 = vmul.f32 %v9903_v21, %v4394_v33  ;;  %v4399_v60 = vunpack.c.l.bf16 %v10076_v24  ;;  %v4412_v6 = vunpack.c.h.bf16 %v9898_v36 }
 0xaea   :  { %v4357_v22 = vmax.f32 %v10051_v4, 0.0  ;;  %v4358_v17 = vmax.f32 %v10054_v25, 0.0  ;;  %v4365_v35 = vmax.f32 %v9940_v16, 0.0  ;;  %v4366_v46 = vmax.f32 %v9943_v48, 0.0  ;;  %4476 = vadd.xlane.f32.xlu0 %v4475_v54  ;;  %4479 = vadd.xlane.f32.xlu1 %v4478_v32 }
 0xaeb   :  { %v4359_v30 = vmax.f32 %v10058_v62, 0.0  ;;  %v4431_v42 = vmul.f32 %v9903_v21, %v4395_v20  ;;  %v4432_v39 = vmul.f32 %v9903_v21, %v4396_v12  ;;  %v4433_v23 = vmul.f32 %v9903_v21, %v4397_v47 }
 0xaec   :  { %v4360_v16 = vmax.f32 %v10061_v57, 0.0  ;;  %v4361_v48 = vmax.f32 %v10068_v9, 0.0  ;;  %v4434_v43 = vmul.f32 %v9903_v21, %v4398_v3  ;;  %v4400_v37 = vunpack.c.h.bf16 %v10076_v24 }
 0xaed   :  { %v4481_v4 = vsel %vm720_vm0, %v4429_v41, 0.0  ;;  %v4484_v25 = vsel %vm720_vm0, %v4430_v10, 0.0  ;;  %v4435_v62 = vmul.f32 %v9903_v21, %v4399_v60  ;;  %v10137_v57 = vmul.f32 %v9903_v21, %v4412_v6 }
 0xaee   :  { %v4362_v9 = vmax.f32 %v10084_v50, 0.0  ;;  %4482 = vadd.xlane.f32.xlu0 %v4481_v4  ;;  %4485 = vadd.xlane.f32.xlu1 %v4484_v25  ;;  %v10140_v8 = vpack.c.bf16 %v4366_v46, %v4365_v35  ;;  %v10145_v28 = vmul.f32 %v9918_v18, %v4383_v56  ;;  %v10150_v51 = vmul.f32 %v9918_v18, %v4384_v5 }
 0xaef   :  { %v4487_v0 = vsel %vm720_vm0, %v4431_v42, 0.0  ;;  %v4490_v54 = vsel %vm720_vm0, %v4432_v39, 0.0  ;;  %v4493_v50 = vsel %vm720_vm0, %v4433_v23, 0.0  ;;  %v10158_v32 = vmul.f32 %v9918_v18, %v4385_v14 }
 0xaf0   :  { %v4436_v41 = vmul.f32 %v9903_v21, %v4400_v37  ;;  %v4376_v56 = vpack.c.bf16 %v4354_v2, %v4353_v58  ;;  %v4413_v10 = vunpack.c.l.bf16 %v10140_v8  ;;  %v4414_v29 = vunpack.c.h.bf16 %v10140_v8 }
 0xaf1   :  { %v4496_v5 = vsel %vm720_vm0, %v4434_v43, 0.0  ;;  %v4377_v35 = vpack.c.bf16 %v4356_v7, %v4355_v55  ;;  %v10167_v46 = vmul.f32 %v9918_v18, %v4386_v63  ;;  %v10172_v14 = vmul.f32 %v9918_v18, %v4387_v34 }
 0xaf2   :  { %4488 = vadd.xlane.f32.xlu0 %v4487_v0  ;;  %4491 = vadd.xlane.f32.xlu1 %v4490_v54  ;;  %v4499_v58 = vsel %vm720_vm0, %v4435_v62, 0.0  ;;  %v10176_v2 = vmul.f32 %v9903_v21, %v4413_v10  ;;  %v10179_v42 = vmul.f32 %v9903_v21, %v4414_v29  ;;  %v10184_v44 = vmul.f32 %v9918_v18, %v4388_v11 }
 0xaf3   :  { %v4378_v63 = vpack.c.bf16 %v4358_v17, %v4357_v22  ;;  %v4379_v55 = vpack.c.bf16 %v4360_v16, %v4359_v30  ;;  %v10189_v34 = vmul.f32 %v9918_v18, %v4389_v53  ;;  %v10194_v7 = vmul.f32 %v9918_v18, %v4390_v45 }
 0xaf4   :  { %v4502_v39 = vsel %vm720_vm0, %v4436_v41, 0.0  ;;  %v4401_v23 = vunpack.c.l.bf16 %v4376_v56  ;;  %v4380_v43 = vpack.c.bf16 %v4362_v9, %v4361_v48  ;;  %v10200_v40 = vmul.f32 %v9918_v18, %v4391_v13 }
 0xaf5   :  { %v4402_v11 = vunpack.c.h.bf16 %v4376_v56  ;;  %v4403_v22 = vunpack.c.l.bf16 %v4377_v35  ;;  %v10205_v53 = vmul.f32 %v9918_v18, %v4392_v59  ;;  %v10210_v31 = vmul.f32 %v9918_v18, %v4393_v26 }
 0xaf6   :  { %4494 = vadd.xlane.f32.xlu0 %v4493_v50  ;;  %4497 = vadd.xlane.f32.xlu1 %v4496_v5  ;;  %v4404_v45 = vunpack.c.h.bf16 %v4377_v35  ;;  %v10215_v13 = vmul.f32 %v9918_v18, %v4394_v33  ;;  %v10220_v27 = vmul.f32 %v9918_v18, %v4395_v20  ;;  %v10225_v59 = vmul.f32 %v9918_v18, %v4396_v12 }
 0xaf7   :  { %v4405_v26 = vunpack.c.l.bf16 %v4378_v63  ;;  %v4406_v17 = vunpack.c.h.bf16 %v4378_v63  ;;  %v10230_v30 = vmul.f32 %v9918_v18, %v4397_v47  ;;  %v10235_v49 = vmul.f32 %v9918_v18, %v4398_v3 }
 0xaf8   :  { %v4437_v33 = vmul.f32 %v9903_v21, %v4401_v23  ;;  %v4407_v20 = vunpack.c.l.bf16 %v4379_v55  ;;  %v4408_v16 = vunpack.c.h.bf16 %v4379_v55  ;;  %v10241_v38 = vmul.f32 %v9918_v18, %v4399_v60 }
 0xaf9   :  { %v4438_v12 = vmul.f32 %v9903_v21, %v4402_v11  ;;  %v4409_v48 = vunpack.c.l.bf16 %v4380_v43  ;;  %v10245_v47 = vmul.f32 %v9918_v18, %v4400_v37  ;;  %v10248_v1 = vmul.f32 %v9918_v18, %v4401_v23 }
 0xafa   :  { %4500 = vadd.xlane.f32.xlu0 %v4499_v58  ;;  %4503 = vadd.xlane.f32.xlu1 %v4502_v39  ;;  %v4410_v3 = vunpack.c.h.bf16 %v4380_v43  ;;  %v10251_v4 = vmul.f32 %v9918_v18, %v4402_v11  ;;  %v10254_v24 = vmul.f32 %v9918_v18, %v4403_v22  ;;  %v10257_v60 = vmul.f32 %v9918_v18, %v4404_v45 }
 0xafb   :  { %v10260_v25 = vmul.f32 %v9918_v18, %v4405_v26  ;;  %v10263_v37 = vmul.f32 %v9918_v18, %v4406_v17  ;;  %v4439_v62 = vmul.f32 %v9903_v21, %v4403_v22  ;;  %v4440_v9 = vmul.f32 %v9903_v21, %v4404_v45 }
 0xafc   :  { %v10268_v8 = vmul.f32 %v9918_v18, %v4407_v20  ;;  %v4505_v0 = vsel %vm720_vm0, %v4437_v33, 0.0  ;;  %v4508_v54 = vsel %vm720_vm0, %v4438_v12, 0.0  ;;  %v10273_v50 = vmul.f32 %v9918_v18, %v4408_v16 }
 0xafd   :  { %v10276_v41 = vmul.f32 %v9918_v18, %v4409_v48  ;;  %v10279_v56 = vmul.f32 %v9918_v18, %v4410_v3  ;;  %v10284_v5 = vmul.f32 %v9918_v18, %v4411_v19  ;;  %v10289_v35 = vmul.f32 %v9918_v18, %v4412_v6 }
 0xafe   :  { %4506 = vadd.xlane.f32.xlu0 %v4505_v0  ;;  %4509 = vadd.xlane.f32.xlu1 %v4508_v54  ;;  %v10292_v58 = vmul.f32 %v9918_v18, %v4413_v10  ;;  %v10295_v63 = vmul.f32 %v9918_v18, %v4414_v29  ;;  %v4511_v55 = vsel %vm720_vm0, %v4439_v62, 0.0  ;;  %v4514_v39 = vsel %vm720_vm0, %v4440_v9, 0.0 }
 0xaff   :  { %v4441_v23 = vmul.f32 %v9903_v21, %v4405_v26  ;;  %v4442_v19 = vmul.f32 %v9903_v21, %v4406_v17  ;;  %v4443_v10 = vmul.f32 %v9903_v21, %v4407_v20  ;;  %v4444_v43 = vmul.f32 %v9903_v21, %v4408_v16 }
 0xb00   :  { %v4445_v11 = vmul.f32 %v9903_v21, %v4409_v48  ;;  %v4446_v22 = vmul.f32 %v9903_v21, %v4410_v3  ;;  %v4535_v17 = vsel %vm720_vm0, %v10091_v15, 0.0  ;;  %v4538_v33 = vsel %vm720_vm0, %v10137_v57, 0.0 }
 0xb01   :  { %v4517_v36 = vsel %vm720_vm0, %v4441_v23, 0.0  ;;  %v4520_v6 = vsel %vm720_vm0, %v4442_v19, 0.0  ;;  %v4523_v18 = vsel %vm720_vm0, %v4443_v10, 0.0  ;;  %v4526_v29 = vsel %vm720_vm0, %v4444_v43, 0.0 }
 0xb02   :  { %4512 = vadd.xlane.f32.xlu0 %v4511_v55  ;;  %4515 = vadd.xlane.f32.xlu1 %v4514_v39  ;;  %v4529_v45 = vsel %vm720_vm0, %v4445_v11, 0.0  ;;  %v4532_v26 = vsel %vm720_vm0, %v4446_v22, 0.0  ;;  %v4541_v20 = vsel %vm720_vm0, %v10176_v2, 0.0  ;;  %v4544_v21 = vsel %vm720_vm0, %v10179_v42, 0.0 }
 0xb03   :  { %v4619_v16 = vsel %vm720_vm0, %v10145_v28, 0.0  ;;  %v4622_v12 = vsel %vm720_vm0, %v10150_v51, 0.0  ;;  %v4625_v15 = vsel %vm720_vm0, %v10158_v32, 0.0  ;;  %v4628_v57 = vsel %vm720_vm0, %v10167_v46, 0.0 }
 0xb04   :  { %v4631_v2 = vsel %vm720_vm0, %v10172_v14, 0.0  ;;  %v4634_v42 = vsel %vm720_vm0, %v10184_v44, 0.0  ;;  %v4637_v28 = vsel %vm720_vm0, %v10189_v34, 0.0  ;;  %v4640_v51 = vsel %vm720_vm0, %v10194_v7, 0.0 }
 0xb05   :  { %v4643_v32 = vsel %vm720_vm0, %v10200_v40, 0.0  ;;  %v4646_v46 = vsel %vm720_vm0, %v10205_v53, 0.0  ;;  %v4649_v14 = vsel %vm720_vm0, %v10210_v31, 0.0  ;;  %v4652_v44 = vsel %vm720_vm0, %v10215_v13, 0.0 }
 0xb06   :  { %4518 = vadd.xlane.f32.xlu0 %v4517_v36  ;;  %4521 = vadd.xlane.f32.xlu1 %v4520_v6  ;;  %v4655_v34 = vsel %vm720_vm0, %v10220_v27, 0.0  ;;  %v4658_v7 = vsel %vm720_vm0, %v10225_v59, 0.0  ;;  %v4661_v40 = vsel %vm720_vm0, %v10230_v30, 0.0  ;;  %v4664_v53 = vsel %vm720_vm0, %v10235_v49, 0.0 }
 0xb07   :  { %v4667_v31 = vsel %vm720_vm0, %v10241_v38, 0.0  ;;  %v4670_v13 = vsel %vm720_vm0, %v10245_v47, 0.0  ;;  %v4673_v27 = vsel %vm720_vm0, %v10248_v1, 0.0  ;;  %v4676_v59 = vsel %vm720_vm0, %v10251_v4, 0.0 }
 0xb08   :  { %v4679_v30 = vsel %vm720_vm0, %v10254_v24, 0.0  ;;  %v4682_v49 = vsel %vm720_vm0, %v10257_v60, 0.0  ;;  %v4685_v38 = vsel %vm720_vm0, %v10260_v25, 0.0  ;;  %v4688_v48 = vsel %vm720_vm0, %v10263_v37, 0.0 }
 0xb09   :  { %v4691_v47 = vsel %vm720_vm0, %v10268_v8, 0.0  ;;  %v4694_v1 = vsel %vm720_vm0, %v10273_v50, 0.0  ;;  %v4697_v3 = vsel %vm720_vm0, %v10276_v41, 0.0  ;;  %v4700_v4 = vsel %vm720_vm0, %v10279_v56, 0.0 }
 0xb0a   :  { %4524 = vadd.xlane.f32.xlu0 %v4523_v18  ;;  %4527 = vadd.xlane.f32.xlu1 %v4526_v29  ;;  %v4703_v24 = vsel %vm720_vm0, %v10284_v5, 0.0  ;;  %v4706_v60 = vsel %vm720_vm0, %v10289_v35, 0.0  ;;  %v4709_v25 = vsel %vm720_vm0, %v10292_v58, 0.0  ;;  %v4712_v37 = vsel %vm720_vm0, %v10295_v63, 0.0 }
 0xb0e   :  { %4530 = vadd.xlane.f32.xlu0 %v4529_v45  ;;  %4533 = vadd.xlane.f32.xlu1 %v4532_v26 }
 0xb12   :  { %4536 = vadd.xlane.f32.xlu0 %v4535_v17  ;;  %4539 = vadd.xlane.f32.xlu1 %v4538_v33 }
 0xb16   :  { %4542 = vadd.xlane.f32.xlu0 %v4541_v20  ;;  %4545 = vadd.xlane.f32.xlu1 %v4544_v21 }
 0xb1a   :  { %4620 = vadd.xlane.f32.xlu0 %v4619_v16  ;;  %4623 = vadd.xlane.f32.xlu1 %v4622_v12 }
 0xb1e   :  { %4626 = vadd.xlane.f32.xlu0 %v4625_v15  ;;  %4629 = vadd.xlane.f32.xlu1 %v4628_v57  ;;  %v5713_v15 = vld [vmem:[#allocation2 + $0x10] sm:$0xff] }
 0xb1f   :  { %v10449_v57 = vrot.slane %v5713_v15, %v3713_v52 }
 0xb22   :  { %4632 = vadd.xlane.f32.xlu0 %v4631_v2  ;;  %4635 = vadd.xlane.f32.xlu1 %v4634_v42 }
 0xb26   :  { %4638 = vadd.xlane.f32.xlu0 %v4637_v28  ;;  %4641 = vadd.xlane.f32.xlu1 %v4640_v51 }
 0xb2a   :  { %4644 = vadd.xlane.f32.xlu0 %v4643_v32  ;;  %4647 = vadd.xlane.f32.xlu1 %v4646_v46 }
 0xb2e   :  { %4650 = vadd.xlane.f32.xlu0 %v4649_v14  ;;  %4653 = vadd.xlane.f32.xlu1 %v4652_v44 }
 0xb32   :  { %4656 = vadd.xlane.f32.xlu0 %v4655_v34  ;;  %4659 = vadd.xlane.f32.xlu1 %v4658_v7 }
 0xb36   :  { %4662 = vadd.xlane.f32.xlu0 %v4661_v40  ;;  %4665 = vadd.xlane.f32.xlu1 %v4664_v53 }
 0xb3a   :  { %4668 = vadd.xlane.f32.xlu0 %v4667_v31  ;;  %4671 = vadd.xlane.f32.xlu1 %v4670_v13 }
 0xb3e   :  { %4674 = vadd.xlane.f32.xlu0 %v4673_v27  ;;  %4677 = vadd.xlane.f32.xlu1 %v4676_v59 }
 0xb42   :  { %4680 = vadd.xlane.f32.xlu0 %v4679_v30  ;;  %4683 = vadd.xlane.f32.xlu1 %v4682_v49 }
 0xb46   :  { %4686 = vadd.xlane.f32.xlu0 %v4685_v38  ;;  %4689 = vadd.xlane.f32.xlu1 %v4688_v48 }
 0xb4a   :  { %4692 = vadd.xlane.f32.xlu0 %v4691_v47  ;;  %4695 = vadd.xlane.f32.xlu1 %v4694_v1 }
 0xb4e   :  { %4698 = vadd.xlane.f32.xlu0 %v4697_v3  ;;  %4701 = vadd.xlane.f32.xlu1 %v4700_v4 }
 0xb52   :  { %4704 = vadd.xlane.f32.xlu0 %v4703_v24  ;;  %4707 = vadd.xlane.f32.xlu1 %v4706_v60 }
 0xb56   :  { %4710 = vadd.xlane.f32.xlu0 %v4709_v25  ;;  %4713 = vadd.xlane.f32.xlu1 %v4712_v37 }
 0xb5d   :  { %v10383_v62 = vpop.xlane.xlu0 %4455  ;;  %v10385_v9 = vpop.xlane.xlu1 %4452 }
 0xb67   :  { %v10387_v8 = vpop.xlane.xlu0 %4458  ;;  %v10389_v0 = vpop.xlane.xlu1 %4461 }
 0xb6b   :  { %v10391_v54 = vpop.xlane.xlu0 %4464  ;;  %v10393_v50 = vpop.xlane.xlu1 %4467 }
 0xb6f   :  { %v10395_v41 = vpop.xlane.xlu0 %4470  ;;  %v10397_v56 = vpop.xlane.xlu1 %4473 }
 0xb73   :  { %v10399_v5 = vpop.xlane.xlu0 %4476  ;;  %v10401_v35 = vpop.xlane.xlu1 %4479 }
 0xb77   :  { %v10403_v58 = vpop.xlane.xlu0 %4482  ;;  %v10405_v63 = vpop.xlane.xlu1 %4485 }
 0xb7b   :  { %v10407_v55 = vpop.xlane.xlu0 %4488  ;;  %v10409_v39 = vpop.xlane.xlu1 %4491 }
 0xb7f   :  { %v10411_v23 = vpop.xlane.xlu0 %4494  ;;  %v10413_v19 = vpop.xlane.xlu1 %4497 }
 0xb83   :  { %v10415_v36 = vpop.xlane.xlu0 %4500  ;;  %v10417_v6 = vpop.xlane.xlu1 %4503 }
 0xb87   :  { %v10419_v10 = vpop.xlane.xlu0 %4506  ;;  %v10421_v43 = vpop.xlane.xlu1 %4509 }
 0xb8b   :  { %v10423_v18 = vpop.xlane.xlu0 %4512  ;;  %v10425_v29 = vpop.xlane.xlu1 %4515 }
 0xb8f   :  { %v10427_v11 = vpop.xlane.xlu0 %4518  ;;  %v10429_v22 = vpop.xlane.xlu1 %4521 }
 0xb93   :  { %v10431_v45 = vpop.xlane.xlu0 %4524  ;;  %v10433_v26 = vpop.xlane.xlu1 %4527 }
 0xb97   :  { %v10435_v17 = vpop.xlane.xlu0 %4530  ;;  %v10437_v33 = vpop.xlane.xlu1 %4533 }
 0xb9b   :  { %v10439_v20 = vpop.xlane.xlu0 %4536  ;;  %v10441_v21 = vpop.xlane.xlu1 %4539 }
 0xb9f   :  { %v10443_v16 = vpop.xlane.xlu0 %4542  ;;  %v10445_v12 = vpop.xlane.xlu1 %4545 }
 0xba3   :  { %v4621_v2 = vpop.xlane.xlu0 %4620  ;;  %v4624_v42 = vpop.xlane.xlu1 %4623 }
 0xba4   :  { %v4715_v28 = vadd.f32 %v4621_v2, %v10449_v57  ;;  %v4716_v51 = vadd.f32 %v4624_v42, %v10449_v57 }
 0xba6   :  { %4753 = vperm.xlu0 %5584, %v4715_v28   ;;  %4758 = vperm.xlu1 %5585, %v4716_v51  }
 0xba7   :  { %v4627_v32 = vpop.xlane.xlu0 %4626  ;;  %v4630_v46 = vpop.xlane.xlu1 %4629 }
 0xba8   :  { %v4717_v14 = vadd.f32 %v4627_v32, %v10449_v57  ;;  %v4718_v7 = vadd.f32 %v4630_v46, %v10449_v57 }
 0xbaa   :  { %4763 = vperm.xlu1 %5585, %v4717_v14  }
 0xbab   :  { %v4633_v44 = vpop.xlane.xlu0 %4632  ;;  %v4636_v34 = vpop.xlane.xlu1 %4635 }
 0xbac   :  { %v4719_v40 = vadd.f32 %v4633_v44, %v10449_v57  ;;  %v4720_v13 = vadd.f32 %v4636_v34, %v10449_v57 }
 0xbae   :  { %4768 = vperm.xlu1 %5585, %v4718_v7  }
 0xbaf   :  { %v4639_v61 = vpop.xlane.xlu0 %4638  ;;  %v4642_v52 = vpop.xlane.xlu1 %4641 }
 0xbb0   :  { %v4721_v49 = vadd.f32 %v4639_v61, %v10449_v57  ;;  %v4722_v1 = vadd.f32 %v4642_v52, %v10449_v57 }
 0xbb2   :  { %4773 = vperm.xlu1 %5585, %v4719_v40  }
 0xbb3   :  { %v4645_v53 = vpop.xlane.xlu0 %4644  ;;  %v4648_v31 = vpop.xlane.xlu1 %4647 }
 0xbb4   :  { %v4724_v27 = vadd.f32 %v4648_v31, %v10449_v57  ;;  %v4723_v60 = vadd.f32 %v4645_v53, %v10449_v57 }
 0xbb6   :  { %4778 = vperm.xlu1 %5585, %v4720_v13   ;;  %4798 = vperm.xlu0 %5584, %v4724_v27  }
 0xbb7   :  { %v4651_v59 = vpop.xlane.xlu0 %4650  ;;  %v4654_v30 = vpop.xlane.xlu1 %4653 }
 0xbb8   :  { %v4726_v38 = vadd.f32 %v4654_v30, %v10449_v57  ;;  %v4725_v2 = vadd.f32 %v4651_v59, %v10449_v57 }
 0xbba   :  { %4783 = vperm.xlu1 %5585, %v4721_v49   ;;  %4808 = vperm.xlu0 %5584, %v4726_v38  }
 0xbbb   :  { %v4657_v48 = vpop.xlane.xlu0 %4656  ;;  %v4660_v47 = vpop.xlane.xlu1 %4659 }
 0xbbc   :  { %v4728_v3 = vadd.f32 %v4660_v47, %v10449_v57  ;;  %v4727_v32 = vadd.f32 %v4657_v48, %v10449_v57 }
 0xbbe   :  { %4788 = vperm.xlu1 %5585, %v4722_v1   ;;  %4818 = vperm.xlu0 %5584, %v4728_v3  }
 0xbbf   :  { %v4663_v4 = vpop.xlane.xlu0 %4662  ;;  %v4666_v24 = vpop.xlane.xlu1 %4665 }
 0xbc0   :  { %v4730_v25 = vadd.f32 %v4666_v24, %v10449_v57  ;;  %v4729_v34 = vadd.f32 %v4663_v4, %v10449_v57 }
 0xbc2   :  { %4793 = vperm.xlu1 %5585, %v4723_v60   ;;  %4828 = vperm.xlu0 %5584, %v4730_v25  }
 0xbc3   :  { %v4669_v37 = vpop.xlane.xlu0 %4668  ;;  %v4672_v15 = vpop.xlane.xlu1 %4671 }
 0xbc4   :  { %v4732_v42 = vadd.f32 %v4672_v15, %v10449_v57  ;;  %v4731_v52 = vadd.f32 %v4669_v37, %v10449_v57  ;;  %v4552_v15 = vadd.f32 %v10449_v57, %v10383_v62  ;;  %v4551_v62 = vadd.f32 %v10449_v57, %v10385_v9 }
 0xbc5   :  { %v4563_v9 = vadd.f32 %v10449_v57, %v10407_v55  ;;  %v4569_v55 = vadd.f32 %v10449_v57, %v10419_v10  ;;  %v4575_v10 = vadd.f32 %v10449_v57, %v10431_v45  ;;  %v4581_v45 = vadd.f32 %v10449_v57, %v10443_v16 }
 0xbc6   :  { %4803 = vperm.xlu1 %5585, %v4725_v2   ;;  %4838 = vperm.xlu0 %5584, %v4732_v42   ;;  %v11131_v2 = vmov 0  }
 0xbc7   :  { %v4675_v28 = vpop.xlane.xlu0 %4674  ;;  %v4678_v51 = vpop.xlane.xlu1 %4677 }
 0xbc8   :  { %v4734_v46 = vadd.f32 %v4678_v51, %v10449_v57  ;;  %v4733_v13 = vadd.f32 %v4675_v28, %v10449_v57  ;;  %v4555_v28 = vadd.f32 %v10449_v57, %v10391_v54  ;;  %v4553_v54 = vadd.f32 %v10449_v57, %v10387_v8 }
 0xbc9   :  { %v4558_v8 = vadd.f32 %v10449_v57, %v10397_v56  ;;  %v4564_v56 = vadd.f32 %v10449_v57, %v10409_v39  ;;  %v4570_v39 = vadd.f32 %v10449_v57, %v10421_v43  ;;  %v4576_v43 = vadd.f32 %v10449_v57, %v10433_v26 }
 0xbca   :  { %4813 = vperm.xlu1 %5585, %v4727_v32   ;;  %4848 = vperm.xlu0 %5584, %v4734_v46   ;;  %v4557_v46 = vadd.f32 %v10449_v57, %v10395_v41  ;;  %v4554_v41 = vadd.f32 %v10449_v57, %v10389_v0  ;;  %v4560_v0 = vadd.f32 %v10449_v57, %v10401_v35 }
 0xbcb   :  { %v4681_v14 = vpop.xlane.xlu0 %4680  ;;  %v4684_v44 = vpop.xlane.xlu1 %4683  ;;  %v4566_v35 = vadd.f32 %v10449_v57, %v10413_v19  ;;  %v4572_v19 = vadd.f32 %v10449_v57, %v10425_v29  ;;  %v4580_v29 = vadd.f32 %v10449_v57, %v10441_v21 }
 0xbcc   :  { %v4736_v7 = vadd.f32 %v4684_v44, %v10449_v57  ;;  %v4735_v49 = vadd.f32 %v4681_v14, %v10449_v57  ;;  %v4559_v14 = vadd.f32 %v10449_v57, %v10399_v5  ;;  %v4561_v44 = vadd.f32 %v10449_v57, %v10403_v58 }
 0xbcd   :  { %v4556_v5 = vadd.f32 %v10449_v57, %v10393_v50  ;;  %v4567_v58 = vadd.f32 %v10449_v57, %v10415_v36  ;;  %v4562_v50 = vadd.f32 %v10449_v57, %v10405_v63  ;;  %v4573_v36 = vadd.f32 %v10449_v57, %v10427_v11 }
 0xbce   :  { %4823 = vperm.xlu1 %5585, %v4729_v34   ;;  %4858 = vperm.xlu0 %5584, %v4736_v7   ;;  %v4565_v34 = vadd.f32 %v10449_v57, %v10411_v23  ;;  %v4571_v23 = vadd.f32 %v10449_v57, %v10423_v18  ;;  %v4568_v63 = vadd.f32 %v10449_v57, %v10417_v6 }
 0xbcf   :  { %v4690_v61 = vpop.xlane.xlu1 %4689  ;;  %v4687_v53 = vpop.xlane.xlu0 %4686  ;;  %v4577_v18 = vadd.f32 %v10449_v57, %v10435_v17  ;;  %v4579_v11 = vadd.f32 %v10449_v57, %v10439_v20  ;;  %v4574_v6 = vadd.f32 %v10449_v57, %v10429_v22  ;;  %v4578_v20 = vadd.f32 %v10449_v57, %v10437_v33 }
 0xbd0   :  { %v4738_v40 = vadd.f32 %v4690_v61, %v10449_v57  ;;  %v4737_v47 = vadd.f32 %v4687_v53, %v10449_v57  ;;  %v4582_v22 = vadd.f32 %v10449_v57, %v10445_v12 }
 0xbd2   :  { %4833 = vperm.xlu1 %5585, %v4731_v52   ;;  %4868 = vperm.xlu0 %5584, %v4738_v40  }
 0xbd3   :  { %v4696_v31 = vpop.xlane.xlu1 %4695  ;;  %v4693_v59 = vpop.xlane.xlu0 %4692 }
 0xbd4   :  { %v4740_v27 = vadd.f32 %v4696_v31, %v10449_v57  ;;  %v4739_v24 = vadd.f32 %v4693_v59, %v10449_v57 }
 0xbd6   :  { %4843 = vperm.xlu1 %5585, %v4733_v13   ;;  %4878 = vperm.xlu0 %5584, %v4740_v27  }
 0xbd7   :  { %v4702_v30 = vpop.xlane.xlu1 %4701  ;;  %v4699_v3 = vpop.xlane.xlu0 %4698 }
 0xbd8   :  { %v4742_v38 = vadd.f32 %v4702_v30, %v10449_v57  ;;  %v4741_v37 = vadd.f32 %v4699_v3, %v10449_v57 }
 0xbda   :  { %4853 = vperm.xlu1 %5585, %v4735_v49   ;;  %4888 = vperm.xlu0 %5584, %v4742_v38  }
 0xbdb   :  { %v4708_v48 = vpop.xlane.xlu1 %4707  ;;  %v4705_v25 = vpop.xlane.xlu0 %4704 }
 0xbdc   :  { %v4744_v1 = vadd.f32 %v4708_v48, %v10449_v57  ;;  %v4743_v42 = vadd.f32 %v4705_v25, %v10449_v57 }
 0xbde   :  { %4863 = vperm.xlu1 %5585, %v4737_v47   ;;  %4898 = vperm.xlu0 %5584, %v4744_v1  }
 0xbdf   :  { %v4714_v4 = vpop.xlane.xlu1 %4713  ;;  %v4711_v51 = vpop.xlane.xlu0 %4710 }
 0xbe0   :  { %v4746_v60 = vadd.f32 %v4714_v4, %v10449_v57  ;;  %v4745_v32 = vadd.f32 %v4711_v51, %v10449_v57 }
 0xbe2   :  { %4873 = vperm.xlu1 %5585, %v4739_v24   ;;  %4908 = vperm.xlu0 %5584, %v4746_v60  }
 0xbe6   :  { %4883 = vperm.xlu1 %5585, %v4741_v37   ;;  %5587 = vset.pattern.permute.xlu0 %v11131_v2  ;;  %v11132_v37 = vlaneseq }
 0xbe7   :  { %4950 = vperm.xlu0 %5587, %v4552_v15  }
 0xbe8   :  { %v10584_v15 = vand.u32 127, %v11132_v37 }
 0xbea   :  { %4893 = vperm.xlu1 %5585, %v4743_v42   ;;  %vm4750_vm1 = vcmp.eq.s32.totalorder %v10584_v15, 1  ;;  %vm4749_vm2 = vcmp.eq.s32.totalorder %v10584_v15, 0 }
 0xbeb   :  { %4965 = vperm.xlu0 %5587, %v4555_v28  }
 0xbee   :  { %4903 = vperm.xlu1 %5585, %v4745_v32  }
 0xbef   :  { %4975 = vperm.xlu0 %5587, %v4557_v46  }
 0xbf2   :  { %5586 = vset.pattern.permute.xlu1 %v11131_v2 }
 0xbf3   :  { %4945 = vperm.xlu1 %5586, %v4551_v62   ;;  %4985 = vperm.xlu0 %5587, %v4559_v14  }
 0xbf7   :  { %4955 = vperm.xlu1 %5586, %v4553_v54   ;;  %4995 = vperm.xlu0 %5587, %v4561_v44  }
 0xbfb   :  { %4960 = vperm.xlu1 %5586, %v4554_v41   ;;  %5005 = vperm.xlu0 %5587, %v4563_v9  }
 0xbff   :  { %4970 = vperm.xlu1 %5586, %v4556_v5   ;;  %5015 = vperm.xlu0 %5587, %v4565_v34  }
 0xc03   :  { %4980 = vperm.xlu1 %5586, %v4558_v8   ;;  %5025 = vperm.xlu0 %5587, %v4567_v58  }
 0xc07   :  { %4990 = vperm.xlu1 %5586, %v4560_v0   ;;  %5035 = vperm.xlu0 %5587, %v4569_v55  }
 0xc0b   :  { %5000 = vperm.xlu1 %5586, %v4562_v50   ;;  %5045 = vperm.xlu0 %5587, %v4571_v23  }
 0xc0f   :  { %5010 = vperm.xlu1 %5586, %v4564_v56   ;;  %5055 = vperm.xlu0 %5587, %v4573_v36  }
 0xc13   :  { %5020 = vperm.xlu1 %5586, %v4566_v35   ;;  %5065 = vperm.xlu0 %5587, %v4575_v10  }
 0xc17   :  { %5030 = vperm.xlu1 %5586, %v4568_v63   ;;  %5075 = vperm.xlu0 %5587, %v4577_v18  }
 0xc1b   :  { %5040 = vperm.xlu1 %5586, %v4570_v39   ;;  %5085 = vperm.xlu0 %5587, %v4579_v11  }
 0xc1f   :  { %5050 = vperm.xlu1 %5586, %v4572_v19   ;;  %5095 = vperm.xlu0 %5587, %v4581_v45  }
 0xc21   :  { %v4759_v17 = vpop.permute.xlu1 %4758  ;;  %v4754_v16 = vpop.permute.xlu0 %4753 }
 0xc22   :  { %v4912_v51 = vsel %vm4750_vm1, %v4759_v17, 0.0  ;;  %v4911_v8 = vsel %vm4750_vm1, %v4754_v16, 0.0 }
 0xc23   :  { %5060 = vperm.xlu1 %5586, %v4574_v6  }
 0xc25   :  { %v4764_v7 = vpop.permute.xlu1 %4763 }
 0xc26   :  { %v4913_v56 = vsel %vm4750_vm1, %v4764_v7, 0.0 }
 0xc27   :  { %5070 = vperm.xlu1 %5586, %v4576_v43  }
 0xc29   :  { %v10545_v61 = vpop.permute.xlu1 %4768 }
 0xc2a   :  { %v4914_v39 = vsel %vm4750_vm1, %v10545_v61, 0.0 }
 0xc2b   :  { %5080 = vperm.xlu1 %5586, %v4578_v20  }
 0xc2d   :  { %v4774_v52 = vpop.permute.xlu1 %4773 }
 0xc2e   :  { %v4915_v14 = vsel %vm4750_vm1, %v4774_v52, 0.0 }
 0xc2f   :  { %5090 = vperm.xlu1 %5586, %v4580_v29  }
 0xc31   :  { %v10551_v40 = vpop.permute.xlu0 %4798  ;;  %v10553_v26 = vpop.permute.xlu1 %4778 }
 0xc32   :  { %v4916_v43 = vsel %vm4750_vm1, %v10553_v26, 0.0 }
 0xc33   :  { %5100 = vperm.xlu1 %5586, %v4582_v22  }
 0xc35   :  { %v10555_v53 = vpop.permute.xlu0 %4808  ;;  %v4784_v33 = vpop.permute.xlu1 %4783 }
 0xc36   :  { %v4917_v9 = vsel %vm4750_vm1, %v4784_v33, 0.0 }
 0xc39   :  { %v10557_v31 = vpop.permute.xlu0 %4818  ;;  %v10559_v13 = vpop.permute.xlu1 %4788 }
 0xc3a   :  { %v4918_v52 = vsel %vm4750_vm1, %v10559_v13, 0.0  ;;  %v4920_v13 = vsel %vm4750_vm1, %v10551_v40, 0.0  ;;  %v4922_v40 = vsel %vm4750_vm1, %v10555_v53, 0.0  ;;  %v4924_v53 = vsel %vm4750_vm1, %v10557_v31, 0.0 }
 0xc3d   :  { %v10561_v27 = vpop.permute.xlu0 %4828  ;;  %v4794_v21 = vpop.permute.xlu1 %4793 }
 0xc3e   :  { %v4919_v58 = vsel %vm4750_vm1, %v4794_v21, 0.0  ;;  %v4926_v31 = vsel %vm4750_vm1, %v10561_v27, 0.0 }
 0xc41   :  { %v10563_v59 = vpop.permute.xlu0 %4838  ;;  %v4804_v30 = vpop.permute.xlu1 %4803 }
 0xc42   :  { %v4921_v36 = vsel %vm4750_vm1, %v4804_v30, 0.0  ;;  %v4928_v27 = vsel %vm4750_vm1, %v10563_v59, 0.0 }
 0xc45   :  { %v10565_v49 = vpop.permute.xlu0 %4848  ;;  %v4814_v12 = vpop.permute.xlu1 %4813 }
 0xc46   :  { %v4923_v11 = vsel %vm4750_vm1, %v4814_v12, 0.0  ;;  %v4930_v59 = vsel %vm4750_vm1, %v10565_v49, 0.0 }
 0xc49   :  { %v10567_v57 = vpop.permute.xlu0 %4858  ;;  %v4824_v38 = vpop.permute.xlu1 %4823 }
 0xc4a   :  { %v4925_v7 = vsel %vm4750_vm1, %v4824_v38, 0.0  ;;  %v4932_v49 = vsel %vm4750_vm1, %v10567_v57, 0.0 }
 0xc4d   :  { %v10569_v48 = vpop.permute.xlu0 %4868  ;;  %v4834_v47 = vpop.permute.xlu1 %4833 }
 0xc4e   :  { %v4927_v22 = vsel %vm4750_vm1, %v4834_v47, 0.0  ;;  %v4934_v57 = vsel %vm4750_vm1, %v10569_v48, 0.0 }
 0xc51   :  { %v10571_v1 = vpop.permute.xlu0 %4878  ;;  %v10573_v3 = vpop.permute.xlu1 %4843 }
 0xc52   :  { %v4929_v12 = vsel %vm4750_vm1, %v10573_v3, 0.0 }
 0xc55   :  { %v10575_v4 = vpop.permute.xlu0 %4888  ;;  %v10577_v24 = vpop.permute.xlu1 %4853 }
 0xc56   :  { %v4931_v3 = vsel %vm4750_vm1, %v10577_v24, 0.0  ;;  %v4938_v48 = vsel %vm4750_vm1, %v10575_v4, 0.0 }
 0xc59   :  { %v10579_v60 = vpop.permute.xlu0 %4898  ;;  %v10581_v25 = vpop.permute.xlu1 %4863 }
 0xc5a   :  { %v4933_v24 = vsel %vm4750_vm1, %v10581_v25, 0.0 }
 0xc5d   :  { %v10586_v2 = vpop.permute.xlu0 %4908  ;;  %v10588_v42 = vpop.permute.xlu1 %4873 }
 0xc5e   :  { %v4935_v25 = vsel %vm4750_vm1, %v10588_v42, 0.0  ;;  %v4942_v4 = vsel %vm4750_vm1, %v10586_v2, 0.0 }
 0xc61   :  { %v10592_v28 = vpop.permute.xlu1 %4883 }
 0xc62   :  { %v4951_v32 = vpop.permute.xlu0 %4950  ;;  %v4937_v42 = vsel %vm4750_vm1, %v10592_v28, 0.0 }
 0xc63   :  { %v5104_v46 = vsel %vm4749_vm2, %v4951_v32, %v4912_v51 }
 0xc64   :  { %5136 = vst [vmem:[%s10851_s7 + $0x8] sm:$0xff] %v5104_v46 }
 0xc65   :  { %v10601_v62 = vpop.permute.xlu1 %4893 }
 0xc66   :  { %v4966_v54 = vpop.permute.xlu0 %4965  ;;  %v4939_v28 = vsel %vm4750_vm1, %v10601_v62, 0.0 }
 0xc67   :  { %v5107_v44 = vsel %vm4749_vm2, %v4966_v54, %v4915_v14 }
 0xc68   :  { %5139 = vst [vmem:[%s10851_s7 + $0x20] sm:$0xff] %v5107_v44 }
 0xc69   :  { %v10610_v41 = vpop.permute.xlu1 %4903 }
 0xc6a   :  { %v4976_v5 = vpop.permute.xlu0 %4975  ;;  %v4941_v62 = vsel %vm4750_vm1, %v10610_v41, 0.0 }
 0xc6b   :  { %v5109_v34 = vsel %vm4749_vm2, %v4976_v5, %v4917_v9 }
 0xc6c   :  { %5141 = vst [vmem:[%s10851_s7 + $0x30] sm:$0xff] %v5109_v34 }
 0xc6e   :  { %v4986_v0 = vpop.permute.xlu0 %4985  ;;  %v4946_v55 = vpop.permute.xlu1 %4945 }
 0xc6f   :  { %v5111_v50 = vsel %vm4749_vm2, %v4986_v0, %v4919_v58  ;;  %v5103_v23 = vsel %vm4749_vm2, %v4946_v55, %v4911_v8 }
 0xc70   :  { %5143 = vst [vmem:[%s10851_s7 + $0x40] sm:$0xff] %v5111_v50  ;;  %5135 = vst [vmem:[%s10851_s7] sm:$0xff] %v5103_v23 }
 0xc72   :  { %v4996_v35 = vpop.permute.xlu0 %4995  ;;  %v4956_v10 = vpop.permute.xlu1 %4955 }
 0xc73   :  { %v5113_v63 = vsel %vm4749_vm2, %v4996_v35, %v4921_v36  ;;  %v5105_v18 = vsel %vm4749_vm2, %v4956_v10, %v4913_v56 }
 0xc74   :  { %5145 = vst [vmem:[%s10851_s7 + $0x50] sm:$0xff] %v5113_v63  ;;  %5137 = vst [vmem:[%s10851_s7 + $0x10] sm:$0xff] %v5105_v18 }
 0xc76   :  { %v5006_v19 = vpop.permute.xlu0 %5005  ;;  %v4961_v45 = vpop.permute.xlu1 %4960 }
 0xc77   :  { %v5115_v6 = vsel %vm4749_vm2, %v5006_v19, %v4923_v11  ;;  %v5106_v17 = vsel %vm4749_vm2, %v4961_v45, %v4914_v39 }
 0xc78   :  { %5147 = vst [vmem:[%s10851_s7 + $0x60] sm:$0xff] %v5115_v6  ;;  %5138 = vst [vmem:[%s10851_s7 + $0x18] sm:$0xff] %v5106_v17  ;;  %v4936_v17 = vsel %vm4750_vm1, %v10571_v1, 0.0  ;;  %v4940_v1 = vsel %vm4750_vm1, %v10579_v60, 0.0 }
 0xc7a   :  { %v5016_v20 = vpop.permute.xlu0 %5015  ;;  %v4971_v61 = vpop.permute.xlu1 %4970 }
 0xc7b   :  { %v5117_v29 = vsel %vm4749_vm2, %v5016_v20, %v4925_v7  ;;  %v5108_v16 = vsel %vm4749_vm2, %v4971_v61, %v4916_v43 }
 0xc7c   :  { %5149 = vst [vmem:[%s10851_s7 + $0x70] sm:$0xff] %v5117_v29  ;;  %5140 = vst [vmem:[%s10851_s7 + $0x28] sm:$0xff] %v5108_v16 }
 0xc7e   :  { %v5026_v26 = vpop.permute.xlu0 %5025  ;;  %v4981_v33 = vpop.permute.xlu1 %4980 }
 0xc7f   :  { %v5119_v21 = vsel %vm4749_vm2, %v5026_v26, %v4927_v22  ;;  %v5110_v30 = vsel %vm4749_vm2, %v4981_v33, %v4918_v52 }
 0xc80   :  { %5151 = vst [vmem:[%s10851_s7 + $0x80] sm:$0xff] %v5119_v21  ;;  %5142 = vst [vmem:[%s10851_s7 + $0x38] sm:$0xff] %v5110_v30 }
 0xc82   :  { %v5036_v38 = vpop.permute.xlu0 %5035  ;;  %v4991_v47 = vpop.permute.xlu1 %4990 }
 0xc83   :  { %v5121_v37 = vsel %vm4749_vm2, %v5036_v38, %v4929_v12  ;;  %v5112_v51 = vsel %vm4749_vm2, %v4991_v47, %v4920_v13 }
 0xc84   :  { %5153 = vst [vmem:[%s10851_s7 + $0x90] sm:$0xff] %v5121_v37  ;;  %5144 = vst [vmem:[%s10851_s7 + $0x48] sm:$0xff] %v5112_v51 }
 0xc86   :  { %v5046_v32 = vpop.permute.xlu0 %5045  ;;  %v5001_v46 = vpop.permute.xlu1 %5000 }
 0xc87   :  { %v5123_v14 = vsel %vm4749_vm2, %v5046_v32, %v4931_v3  ;;  %v5114_v54 = vsel %vm4749_vm2, %v5001_v46, %v4922_v40 }
 0xc88   :  { %5155 = vst [vmem:[%s10851_s7 + $0xa0] sm:$0xff] %v5123_v14  ;;  %5146 = vst [vmem:[%s10851_s7 + $0x58] sm:$0xff] %v5114_v54 }
 0xc8a   :  { %v5056_v44 = vpop.permute.xlu0 %5055  ;;  %v5011_v9 = vpop.permute.xlu1 %5010 }
 0xc8b   :  { %v5125_v5 = vsel %vm4749_vm2, %v5056_v44, %v4933_v24  ;;  %v5116_v34 = vsel %vm4749_vm2, %v5011_v9, %v4924_v53 }
 0xc8c   :  { %5157 = vst [vmem:[%s10851_s7 + $0xb0] sm:$0xff] %v5125_v5  ;;  %5148 = vst [vmem:[%s10851_s7 + $0x68] sm:$0xff] %v5116_v34 }
 0xc8e   :  { %v5066_v8 = vpop.permute.xlu0 %5065  ;;  %v5021_v58 = vpop.permute.xlu1 %5020 }
 0xc8f   :  { %v5127_v0 = vsel %vm4749_vm2, %v5066_v8, %v4935_v25  ;;  %v5118_v55 = vsel %vm4749_vm2, %v5021_v58, %v4926_v31 }
 0xc90   :  { %5159 = vst [vmem:[%s10851_s7 + $0xc0] sm:$0xff] %v5127_v0  ;;  %5150 = vst [vmem:[%s10851_s7 + $0x78] sm:$0xff] %v5118_v55 }
 0xc92   :  { %v5076_v50 = vpop.permute.xlu0 %5075  ;;  %v5031_v23 = vpop.permute.xlu1 %5030 }
 0xc93   :  { %v5129_v56 = vsel %vm4749_vm2, %v5076_v50, %v4937_v42  ;;  %v5120_v36 = vsel %vm4749_vm2, %v5031_v23, %v4928_v27 }
 0xc94   :  { %5161 = vst [vmem:[%s10851_s7 + $0xd0] sm:$0xff] %v5129_v56  ;;  %5152 = vst [vmem:[%s10851_s7 + $0x88] sm:$0xff] %v5120_v36 }
 0xc96   :  { %v5086_v35 = vpop.permute.xlu0 %5085  ;;  %v5041_v10 = vpop.permute.xlu1 %5040 }
 0xc97   :  { %v5131_v63 = vsel %vm4749_vm2, %v5086_v35, %v4939_v28  ;;  %v5122_v18 = vsel %vm4749_vm2, %v5041_v10, %v4930_v59 }
 0xc98   :  { %5163 = vst [vmem:[%s10851_s7 + $0xe0] sm:$0xff] %v5131_v63  ;;  %5154 = vst [vmem:[%s10851_s7 + $0x98] sm:$0xff] %v5122_v18 }
 0xc9a   :  { %v5096_v39 = vpop.permute.xlu0 %5095  ;;  %v5051_v11 = vpop.permute.xlu1 %5050 }
 0xc9b   :  { %v5133_v19 = vsel %vm4749_vm2, %v5096_v39, %v4941_v62  ;;  %v5124_v45 = vsel %vm4749_vm2, %v5051_v11, %v4932_v49 }
 0xc9c   :  { %5165 = vst [vmem:[%s10851_s7 + $0xf0] sm:$0xff] %v5133_v19  ;;  %5156 = vst [vmem:[%s10851_s7 + $0xa8] sm:$0xff] %v5124_v45 }
 0xc9e   :  { %v5061_v41 = vpop.permute.xlu1 %5060 }
 0xc9f   :  { %v5126_v6 = vsel %vm4749_vm2, %v5061_v41, %v4934_v57 }
 0xca0   :  { %5158 = vst [vmem:[%s10851_s7 + $0xb8] sm:$0xff] %v5126_v6 }
 0xca2   :  { %v5071_v43 = vpop.permute.xlu1 %5070 }
 0xca3   :  { %v5128_v7 = vsel %vm4749_vm2, %v5071_v43, %v4936_v17 }
 0xca4   :  { %5160 = vst [vmem:[%s10851_s7 + $0xc8] sm:$0xff] %v5128_v7 }
 0xca6   :  { %v5081_v20 = vpop.permute.xlu1 %5080 }
 0xca7   :  { %v5130_v61 = vsel %vm4749_vm2, %v5081_v20, %v4938_v48 }
 0xca8   :  { %5162 = vst [vmem:[%s10851_s7 + $0xd8] sm:$0xff] %v5130_v61 }
 0xcaa   :  { %v5091_v29 = vpop.permute.xlu1 %5090 }
 0xcab   :  { %v5132_v16 = vsel %vm4749_vm2, %v5091_v29, %v4940_v1 }
 0xcac   :  { %5164 = vst [vmem:[%s10851_s7 + $0xe8] sm:$0xff] %v5132_v16 }
 0xcae   :  { %v5101_v52 = vpop.permute.xlu1 %5100 }
 0xcaf   :  { %v5134_v22 = vsel %vm4749_vm2, %v5101_v52, %v4942_v4 }
 0xcb0   :  { %5166 = vst [vmem:[%s10851_s7 + $0xf8] sm:$0xff] %v5134_v22 }
 0xcb1   :  { %5171 = vsyncpa [#allocation3], 1 }
 0xcb2   :  { %5172 = vsyncpa [#allocation5], 1 }
 0xcb3   :  { %5173 = vsyncpa [#allocation8], 1 }

</bundles_post_ra>
